<compile_context>
chip_gen: v6e
topology: v6e:2x2x1
jax: 0.10.0
libtpu: 0.0.40
codegen_flags: <defaults>
</compile_context>

<pallas_src>
import jax
import jax.numpy as jnp
from jax import lax
from jax.experimental import pallas as pl
from jax.experimental.pallas import tpu as pltpu

_BN_EPS = 1e-5
_PREC = lax.Precision.HIGHEST


# ---------------------------------------------------------------------------
# In-kernel helpers
# ---------------------------------------------------------------------------
def _frelu(y, fw_ref, fb_ref, ypad_ref):
    """FReLU: max(y, depthwise_conv3x3(y) + fb); BN scale pre-folded into fw.

    y        : (H, W, C) float32 value (conv + BN output)
    fw_ref   : (9, C)    depthwise 3x3 weights (scale folded), tap-major rows
    fb_ref   : (1, C)    folded BN bias
    ypad_ref : (H+2, W+2, C) VMEM scratch; borders must already be zero
               (the interior is fully overwritten here).
    """
    H, W, C = y.shape
    ypad_ref[1:H + 1, 1:W + 1, :] = y
    t = jnp.zeros((H, W, C), jnp.float32)
    for dy in range(3):
        for dx in range(3):
            t = t + ypad_ref[dy:dy + H, dx:dx + W, :] * fw_ref[dy * 3 + dx, :]
    return jnp.maximum(y, t + fb_ref[0, :])


def _conv3x3s2_taps(x_ref, w_ref, hh, wh, cin, cout):
    """3x3 stride-2 conv as 9 per-tap MXU matmuls on the parity-split input."""
    acc = jnp.zeros((hh * wh, cout), jnp.float32)
    for dy in range(3):
        r0, rp = dy // 2, dy % 2
        for dx in range(3):
            c0, cp = dx // 2, dx % 2
            # Static (non-strided) slice picks padded rows 2*i+dy, cols 2*j+dx.
            tap = x_ref[0, r0:r0 + hh, rp, c0:c0 + wh, cp, :]      # (hh, wh, cin)
            w_tap = w_ref[(dy * 3 + dx) * cin:(dy * 3 + dx + 1) * cin, :]
            acc = acc + jnp.dot(tap.reshape(hh * wh, cin), w_tap,
                                precision=_PREC,
                                preferred_element_type=jnp.float32)
    return acc


# ---------------------------------------------------------------------------
# Kernels (grid iterates over batch; one image per grid step)
# ---------------------------------------------------------------------------
def _cv1_cv2_hpool_kernel(x_ref, w1_ref, b1_ref, fw1_ref, fb1_ref,
                          w2_ref, b2_ref, fw2_ref, fb2_ref,
                          y2_ref, p1_ref, ypad_ref):
    # x_ref : (1, Hh+1, 2, Wh+1, 2, Cin)  zero-padded input, H/W parity split
    # y2_ref: (1, Hh, Wh, c_)   cv2(cv1(x)) output
    # p1_ref: (1, Ho, Wh, c_)   H-direction half of MaxPool2d(2,2)(cv1(x))
    _, hp1, _, wp1, _, cin = x_ref.shape
    hh, wh = hp1 - 1, wp1 - 1
    cmid = y2_ref.shape[-1]
    ho = p1_ref.shape[1]

    # Zero scratch once per grid step (interior always overwritten below).
    ypad_ref[...] = jnp.zeros(ypad_ref.shape, ypad_ref.dtype)

    # cv1: 3x3 s2 conv + folded BN + FReLU.
    acc = _conv3x3s2_taps(x_ref, w1_ref, hh, wh, cin, cmid)
    y1 = (acc + b1_ref[0, :]).reshape(hh, wh, cmid)
    y1 = _frelu(y1, fw1_ref, fb1_ref, ypad_ref)

    # H half of MaxPool2d(2,2): free leading-axis split + max.
    p1_ref[0, :, :, :] = jnp.max(
        y1.reshape(ho, 2, wh, cmid), axis=1).astype(p1_ref.dtype)

    # cv2: 1x1 conv + folded BN + FReLU.
    y2 = jnp.dot(y1.reshape(hh * wh, cmid), w2_ref[...], precision=_PREC,
                 preferred_element_type=jnp.float32)
    y2 = (y2 + b2_ref[0, :]).reshape(hh, wh, cmid)
    y2_ref[0, :, :, :] = _frelu(y2, fw2_ref, fb2_ref,
                                ypad_ref).astype(y2_ref.dtype)


def _conv3x3s2_bn_frelu_kernel(x_ref, w_ref, b_ref, fw_ref, fb_ref,
                               o_ref, ypad_ref):
    # cv3: x_ref (1, Ho+1, 2, Wo+1, 2, Cin) -> o_ref (1, Ho, Wo, Cout)
    _, hp1, _, wp1, _, cin = x_ref.shape
    ho, wo = hp1 - 1, wp1 - 1
    cout = o_ref.shape[-1]
    ypad_ref[...] = jnp.zeros(ypad_ref.shape, ypad_ref.dtype)
    acc = _conv3x3s2_taps(x_ref, w_ref, ho, wo, cin, cout)
    y = (acc + b_ref[0, :]).reshape(ho, wo, cout)
    o_ref[0, :, :, :] = _frelu(y, fw_ref, fb_ref, ypad_ref).astype(o_ref.dtype)


def _pool_cat_cv4_kernel(y3_ref, p1_ref, wa_ref, wb_ref, b_ref, fw_ref, fb_ref,
                         o_ref, ypad_ref):
    # Fuses: remaining W-pool max ++ channel concat ++ cv4 (1x1) + BN + FReLU.
    # y3_ref : (1, Ho, Wo, c_)       cv3 branch
    # p1_ref : (1, Ho, Wo, 2, c_)    H-pooled cv1 output, W pool pairs split out
    # wa_ref : (c_, Cout) cv4 weights hitting the cv3 half of the concat
    # wb_ref : (c_, Cout) cv4 weights hitting the pooled half of the concat
    _, ho, wo, cc = y3_ref.shape
    cout = o_ref.shape[-1]
    ypad_ref[...] = jnp.zeros(ypad_ref.shape, ypad_ref.dtype)
    pooled = jnp.max(p1_ref[0, :, :, :, :], axis=2)           # (Ho, Wo, c_)
    y = jnp.dot(y3_ref[0, :, :, :].reshape(ho * wo, cc), wa_ref[...],
                precision=_PREC, preferred_element_type=jnp.float32)
    y = y + jnp.dot(pooled.reshape(ho * wo, cc), wb_ref[...],
                    precision=_PREC, preferred_element_type=jnp.float32)
    y = (y + b_ref[0, :]).reshape(ho, wo, cout)
    o_ref[0, :, :, :] = _frelu(y, fw_ref, fb_ref, ypad_ref).astype(o_ref.dtype)


# ---------------------------------------------------------------------------
# pallas_call wrappers
# ---------------------------------------------------------------------------
def _full_spec(shape):
    nd = len(shape)
    return pl.BlockSpec(shape, lambda b, _nd=nd: (0,) * _nd)


def _cv1_cv2_block(x, p1, p2):
    """x: (B,H,W,Cin) NHWC -> (y2: (B,H/2,W/2,c_), p1h: (B,H/4,W/2,c_))."""
    B, H, W, Cin = x.shape
    Hh, Wh = H // 2, W // 2
    Ho = Hh // 2
    Cm = p1["w"].shape[-1]
    # Zero-pad (pad=1) then split H/W parity (free row-major reshape) so the
    # stride-2 taps become plain static slices inside the kernel.
    xp = jnp.pad(x, ((0, 0), (1, 1), (1, 1), (0, 0)))
    x6 = xp.reshape(B, Hh + 1, 2, Wh + 1, 2, Cin)

    flops = 2 * B * Hh * Wh * Cm * (9 * Cin + Cm + 2 * 10 + 4)
    bytes_accessed = 4 * (x6.size + p1["w"].size + p2["w"].size
                          + 2 * 9 * Cm + B * Hh * Wh * Cm + B * Ho * Wh * Cm)

    return pl.pallas_call(
        _cv1_cv2_hpool_kernel,
        out_shape=(jax.ShapeDtypeStruct((B, Hh, Wh, Cm), x.dtype),
                   jax.ShapeDtypeStruct((B, Ho, Wh, Cm), x.dtype)),
        grid=(B,),
        in_specs=[
            pl.BlockSpec((1, Hh + 1, 2, Wh + 1, 2, Cin),
                         lambda b: (b, 0, 0, 0, 0, 0)),
            _full_spec(p1["w"].shape), _full_spec(p1["bias"].shape),
            _full_spec(p1["fw"].shape), _full_spec(p1["fbias"].shape),
            _full_spec(p2["w"].shape), _full_spec(p2["bias"].shape),
            _full_spec(p2["fw"].shape), _full_spec(p2["fbias"].shape),
        ],
        out_specs=[pl.BlockSpec((1, Hh, Wh, Cm), lambda b: (b, 0, 0, 0)),
                   pl.BlockSpec((1, Ho, Wh, Cm), lambda b: (b, 0, 0, 0))],
        scratch_shapes=[pltpu.VMEM((Hh + 2, Wh + 2, Cm), jnp.float32)],
        compiler_params=pltpu.CompilerParams(dimension_semantics=("parallel",)),
        cost_estimate=pl.CostEstimate(flops=flops, transcendentals=0,
                                      bytes_accessed=bytes_accessed),
    )(x6, p1["w"], p1["bias"], p1["fw"], p1["fbias"],
      p2["w"], p2["bias"], p2["fw"], p2["fbias"])


def _conv3x3s2_block(x, p):
    """cv3: (B, Hh, Wh, Cin) -> (B, Hh//2, Wh//2, Cout). Fused conv+BN+FReLU."""
    B, H, W, Cin = x.shape
    Ho, Wo = H // 2, W // 2
    Cout = p["w"].shape[-1]
    xp = jnp.pad(x, ((0, 0), (1, 1), (1, 1), (0, 0)))
    x6 = xp.reshape(B, Ho + 1, 2, Wo + 1, 2, Cin)

    flops = 2 * B * Ho * Wo * Cout * (9 * Cin + 9 + 2)
    bytes_accessed = 4 * (x6.size + p["w"].size + p["fw"].size
                          + B * Ho * Wo * Cout)

    return pl.pallas_call(
        _conv3x3s2_bn_frelu_kernel,
        out_shape=jax.ShapeDtypeStruct((B, Ho, Wo, Cout), x.dtype),
        grid=(B,),
        in_specs=[
            pl.BlockSpec((1, Ho + 1, 2, Wo + 1, 2, Cin),
                         lambda b: (b, 0, 0, 0, 0, 0)),
            _full_spec(p["w"].shape), _full_spec(p["bias"].shape),
            _full_spec(p["fw"].shape), _full_spec(p["fbias"].shape),
        ],
        out_specs=pl.BlockSpec((1, Ho, Wo, Cout), lambda b: (b, 0, 0, 0)),
        scratch_shapes=[pltpu.VMEM((Ho + 2, Wo + 2, Cout), jnp.float32)],
        compiler_params=pltpu.CompilerParams(dimension_semantics=("parallel",)),
        cost_estimate=pl.CostEstimate(flops=flops, transcendentals=0,
                                      bytes_accessed=bytes_accessed),
    )(x6, p["w"], p["bias"], p["fw"], p["fbias"])


def _pool_cat_cv4_block(y3, p1h, p):
    """y3: (B,Ho,Wo,c_) cv3 output; p1h: (B,Ho,2*Wo,c_) H-pooled cv1 output."""
    B, Ho, Wo, Cc = y3.shape
    Cout = p["wa"].shape[-1]
    p1w = p1h.reshape(B, Ho, Wo, 2, Cc)    # free split of the W pool pairs
    flops = 2 * B * Ho * Wo * Cout * (2 * Cc + 9 + 2)
    bytes_accessed = 4 * (y3.size + p1h.size + p["wa"].size + p["wb"].size
                          + p["fw"].size + B * Ho * Wo * Cout)
    return pl.pallas_call(
        _pool_cat_cv4_kernel,
        out_shape=jax.ShapeDtypeStruct((B, Ho, Wo, Cout), y3.dtype),
        grid=(B,),
        in_specs=[
            pl.BlockSpec((1, Ho, Wo, Cc), lambda b: (b, 0, 0, 0)),
            pl.BlockSpec((1, Ho, Wo, 2, Cc), lambda b: (b, 0, 0, 0, 0)),
            _full_spec(p["wa"].shape), _full_spec(p["wb"].shape),
            _full_spec(p["bias"].shape),
            _full_spec(p["fw"].shape), _full_spec(p["fbias"].shape),
        ],
        out_specs=pl.BlockSpec((1, Ho, Wo, Cout), lambda b: (b, 0, 0, 0)),
        scratch_shapes=[pltpu.VMEM((Ho + 2, Wo + 2, Cout), jnp.float32)],
        compiler_params=pltpu.CompilerParams(dimension_semantics=("parallel",)),
        cost_estimate=pl.CostEstimate(flops=flops, transcendentals=0,
                                      bytes_accessed=bytes_accessed),
    )(y3, p1w, p["wa"], p["wb"], p["bias"], p["fw"], p["fbias"])


def stem_forward(x_nchw, params):
    """Pallas Stem forward. x_nchw: (B, c1, H, W) -> (B, c2, H//4, W//4) NCHW."""
    B, C1, H, W = x_nchw.shape
    if H % 4 != 0 or W % 4 != 0:
        raise ValueError("Stem requires H and W divisible by 4.")
    x = jnp.transpose(x_nchw, (0, 2, 3, 1))                    # single NCHW->NHWC
    y2, p1h = _cv1_cv2_block(x, params["cv1"], params["cv2"])  # fused cv1+cv2+Hpool
    y3 = _conv3x3s2_block(y2, params["cv3"])                   # (B, H/4, W/4, c_)
    out = _pool_cat_cv4_block(y3, p1h, params["cv4"])          # (B, H/4, W/4, c2)
    return jnp.transpose(out, (0, 3, 1, 2))                    # back to NCHW


# ---------------------------------------------------------------------------
# Parameter preparation (PyTorch layouts -> kernel layouts, BN folding)
# ---------------------------------------------------------------------------
def _fold_bn(gamma, beta, mean, var):
    scale = gamma / jnp.sqrt(var + _BN_EPS)
    return scale, beta - mean * scale


def _prep_conv_block(raw, k):
    cw = raw["conv_w"]                                    # (Cout, Cin, k, k)
    cout, cin = cw.shape[0], cw.shape[1]
    scale, bias = _fold_bn(raw["bn_g"], raw["bn_b"], raw["bn_m"], raw["bn_v"])
    if k == 1:
        w = cw.reshape(cout, cin).T * scale[None, :]      # (Cin, Cout), scale folded
    else:
        w = (jnp.transpose(cw, (2, 3, 1, 0)).reshape(k * k * cin, cout)
             * scale[None, :])                            # (9*Cin, Cout), tap-major
    fscale, fbias = _fold_bn(raw["f_g"], raw["f_b"], raw["f_m"], raw["f_v"])
    fw = raw["f_w"].reshape(cout, 9).T * fscale[None, :]  # (9, Cout), scale folded
    return dict(w=w, bias=bias.reshape(1, -1), fw=fw, fbias=fbias.reshape(1, -1))


def prepare_params(raw_params, c_):
    p = {
        "cv1": _prep_conv_block(raw_params["cv1"], 3),
        "cv2": _prep_conv_block(raw_params["cv2"], 1),
        "cv3": _prep_conv_block(raw_params["cv3"], 3),
    }
    cv4 = _prep_conv_block(raw_params["cv4"], 1)
    w4 = cv4.pop("w")                                     # (2*c_, c2)
    cv4["wa"] = w4[:c_, :]                                # cv3 half of the concat
    cv4["wb"] = w4[c_:, :]                                # pooled half of the concat
    p["cv4"] = cv4
    return p


# ---------------------------------------------------------------------------
# Pure-JAX reference (mirrors the PyTorch module, NCHW) and parameter init
# ---------------------------------------------------------------------------
def _conv2d_nchw(x, w, stride, pad, groups=1):
    return lax.conv_general_dilated(
        x, w, window_strides=(stride, stride),
        padding=((pad, pad), (pad, pad)),
        dimension_numbers=("NCHW", "OIHW", "NCHW"),
        feature_group_count=groups, precision=_PREC)


def _bn_nchw(x, gamma, beta, mean, var):
    scale = gamma / jnp.sqrt(var + _BN_EPS)
    bias = beta - mean * scale
    return x * scale[None, :, None, None] + bias[None, :, None, None]


def _conv_block_ref(x, raw, k, s):
    y = _conv2d_nchw(x, raw["conv_w"], s, k // 2)
    y = _bn_nchw(y, raw["bn_g"], raw["bn_b"], raw["bn_m"], raw["bn_v"])
    t = _conv2d_nchw(y, raw["f_w"], 1, 1, groups=y.shape[1])
    t = _bn_nchw(t, raw["f_g"], raw["f_b"], raw["f_m"], raw["f_v"])
    return jnp.maximum(y, t)                              # FReLU


def stem_reference(x, raw_params):
    y1 = _conv_block_ref(x, raw_params["cv1"], 3, 2)
    y2 = _conv_block_ref(y1, raw_params["cv2"], 1, 1)
    y3 = _conv_block_ref(y2, raw_params["cv3"], 3, 2)
    pooled = lax.reduce_window(y1, -jnp.inf, lax.max,
                               (1, 1, 2, 2), (1, 1, 2, 2), "VALID")
    cat = jnp.concatenate([y3, pooled], axis=1)
    return _conv_block_ref(cat, raw_params["cv4"], 1, 1)


def _init_conv_block(key, cin, cout, k):
    ks = jax.random.split(key, 10)
    return dict(
        conv_w=0.25 * jax.random.normal(ks[0], (cout, cin, k, k), jnp.float32),
        bn_g=jax.random.uniform(ks[1], (cout,), jnp.float32, 0.5, 1.5),
        bn_b=0.1 * jax.random.normal(ks[2], (cout,), jnp.float32),
        bn_m=0.1 * jax.random.normal(ks[3], (cout,), jnp.float32),
        bn_v=jax.random.uniform(ks[4], (cout,), jnp.float32, 0.5, 1.5),
        f_w=0.25 * jax.random.normal(ks[5], (cout, 1, 3, 3), jnp.float32),
        f_g=jax.random.uniform(ks[6], (cout,), jnp.float32, 0.5, 1.5),
        f_b=0.1 * jax.random.normal(ks[7], (cout,), jnp.float32),
        f_m=0.1 * jax.random.normal(ks[8], (cout,), jnp.float32),
        f_v=jax.random.uniform(ks[9], (cout,), jnp.float32, 0.5, 1.5),
    )


def init_stem_params(key, c1, c2):
    c_ = c2 // 2
    k1, k2, k3, k4 = jax.random.split(key, 4)
    return dict(
        cv1=_init_conv_block(k1, c1, c_, 3),
        cv2=_init_conv_block(k2, c_, c_, 1),
        cv3=_init_conv_block(k3, c_, c_, 3),
        cv4=_init_conv_block(k4, 2 * c_, c2, 1),
    )


if __name__ == "__main__":
    key = jax.random.PRNGKey(0)
    kx, kp = jax.random.split(key)

    B, C1, H, W = 2, 4, 16, 16
    C2 = 32
    c_ = C2 // 2

    x = jax.random.normal(kx, (B, C1, H, W), jnp.float32)
    raw_params = init_stem_params(kp, C1, C2)
    params = prepare_params(raw_params, c_)

    out = jax.block_until_ready(jax.jit(stem_forward)(x, params))
    ref = jax.block_until_ready(stem_reference(x, raw_params))

    assert out.shape == (B, C2, H // 4, W // 4), out.shape
    assert out.dtype == x.dtype
    max_err = float(jnp.max(jnp.abs(out - ref)))
    assert jnp.allclose(out, ref, rtol=1e-3, atol=1e-3), f"max abs err = {max_err}"
    print("KERNEL_OK")
</pallas_src>

<mosaic_0001>
module attributes {stable_mosaic.version = 11 : i64} {
  func.func @_cv1_cv2_hpool_kernel(%arg0: i32, %arg1: memref<1x9x2x9x2x4xf32, #tpu.memory_space<vmem>>, %arg2: memref<36x16xf32, #tpu.memory_space<vmem>>, %arg3: memref<1x16xf32, #tpu.memory_space<vmem>>, %arg4: memref<9x16xf32, #tpu.memory_space<vmem>>, %arg5: memref<1x16xf32, #tpu.memory_space<vmem>>, %arg6: memref<16x16xf32, #tpu.memory_space<vmem>>, %arg7: memref<1x16xf32, #tpu.memory_space<vmem>>, %arg8: memref<9x16xf32, #tpu.memory_space<vmem>>, %arg9: memref<1x16xf32, #tpu.memory_space<vmem>>, %arg10: memref<1x8x8x16xf32, #tpu.memory_space<vmem>>, %arg11: memref<1x4x8x16xf32, #tpu.memory_space<vmem>>, %arg12: memref<10x10x16xf32, #tpu.memory_space<vmem>>) attributes {dimension_semantics = [#tpu.dimension_semantics<parallel>], iteration_bounds = array<i64: 2>, scalar_prefetch = 0 : i64, scratch_operands = 1 : i64, tpu.core_type = #tpu.core_type<tc>, window_params = [{transform_indices = @transform_0, window_bounds = array<i64: 1, 9, 2, 9, 2, 4>}, {pipeline_mode = #tpu.pipeline_mode<synchronous>, transform_indices = @transform_1, window_bounds = array<i64: 36, 16>}, {pipeline_mode = #tpu.pipeline_mode<synchronous>, transform_indices = @transform_2, window_bounds = array<i64: 1, 16>}, {pipeline_mode = #tpu.pipeline_mode<synchronous>, transform_indices = @transform_3, window_bounds = array<i64: 9, 16>}, {pipeline_mode = #tpu.pipeline_mode<synchronous>, transform_indices = @transform_4, window_bounds = array<i64: 1, 16>}, {pipeline_mode = #tpu.pipeline_mode<synchronous>, transform_indices = @transform_5, window_bounds = array<i64: 16, 16>}, {pipeline_mode = #tpu.pipeline_mode<synchronous>, transform_indices = @transform_6, window_bounds = array<i64: 1, 16>}, {pipeline_mode = #tpu.pipeline_mode<synchronous>, transform_indices = @transform_7, window_bounds = array<i64: 9, 16>}, {pipeline_mode = #tpu.pipeline_mode<synchronous>, transform_indices = @transform_8, window_bounds = array<i64: 1, 16>}, {transform_indices = @transform_9, window_bounds = array<i64: 1, 8, 8, 16>}, {transform_indices = @transform_10, window_bounds = array<i64: 1, 4, 8, 16>}]} {
    %cst = arith.constant 0.000000e+00 : f32
    %0 = vector.broadcast %cst : f32 to vector<10x10x16xf32>
    %c0 = arith.constant 0 : index
    %c0_0 = arith.constant 0 : index
    %c0_1 = arith.constant 0 : index
    %1 = vector.load %arg12[%c0, %c0_0, %c0_1] : memref<10x10x16xf32, #tpu.memory_space<vmem>>, vector<10x10x16xf32>
    tpu.vector_store %arg12[%c0, %c0_0, %c0_1], %0 {strides = array<i32>} : memref<10x10x16xf32, #tpu.memory_space<vmem>>, vector<10x10x16xf32>,
    %cst_2 = arith.constant 0.000000e+00 : f32
    %2 = vector.broadcast %cst_2 : f32 to vector<64x16xf32>
    %c0_3 = arith.constant 0 : index
    %c0_4 = arith.constant 0 : index
    %c0_5 = arith.constant 0 : index
    %c0_6 = arith.constant 0 : index
    %c0_7 = arith.constant 0 : index
    %c0_8 = arith.constant 0 : index
    %3 = vector.load %arg1[%c0_3, %c0_4, %c0_5, %c0_6, %c0_7, %c0_8] : memref<1x9x2x9x2x4xf32, #tpu.memory_space<vmem>>, vector<1x8x1x8x1x4xf32>
    %4 = vector.shape_cast %3 : vector<1x8x1x8x1x4xf32> to vector<8x8x4xf32>
    %c0_9 = arith.constant 0 : index
    %c0_10 = arith.constant 0 : index
    %5 = vector.load %arg2[%c0_9, %c0_10] : memref<36x16xf32, #tpu.memory_space<vmem>>, vector<4x16xf32>
    %6 = vector.shape_cast %4 : vector<8x8x4xf32> to vector<64x4xf32>
    %cst_11 = arith.constant dense<0.000000e+00> : vector<64x16xf32>
    %7 = tpu.matmul %6, %5, %cst_11 {dimension_numbers = #tpu.dot_dimension_numbers<[1], [0], [0], [1], [0, 0, 1, 1], [], []>, precision = #tpu.contract_precision<fp32>} : vector<64x4xf32>, vector<4x16xf32>, vector<64x16xf32> -> vector<64x16xf32>
    %8 = arith.addf %2, %7 : vector<64x16xf32>
    %c0_12 = arith.constant 0 : index
    %c0_13 = arith.constant 0 : index
    %c0_14 = arith.constant 0 : index
    %c0_15 = arith.constant 0 : index
    %c1 = arith.constant 1 : index
    %c0_16 = arith.constant 0 : index
    %9 = vector.load %arg1[%c0_12, %c0_13, %c0_14, %c0_15, %c1, %c0_16] : memref<1x9x2x9x2x4xf32, #tpu.memory_space<vmem>>, vector<1x8x1x8x1x4xf32>
    %10 = vector.shape_cast %9 : vector<1x8x1x8x1x4xf32> to vector<8x8x4xf32>
    %c4 = arith.constant 4 : index
    %c0_17 = arith.constant 0 : index
    %11 = vector.load %arg2[%c4, %c0_17] : memref<36x16xf32, #tpu.memory_space<vmem>>, vector<4x16xf32>
    %12 = vector.shape_cast %10 : vector<8x8x4xf32> to vector<64x4xf32>
    %cst_18 = arith.constant dense<0.000000e+00> : vector<64x16xf32>
    %13 = tpu.matmul %12, %11, %cst_18 {dimension_numbers = #tpu.dot_dimension_numbers<[1], [0], [0], [1], [0, 0, 1, 1], [], []>, precision = #tpu.contract_precision<fp32>} : vector<64x4xf32>, vector<4x16xf32>, vector<64x16xf32> -> vector<64x16xf32>
    %14 = arith.addf %8, %13 : vector<64x16xf32>
    %c0_19 = arith.constant 0 : index
    %c0_20 = arith.constant 0 : index
    %c0_21 = arith.constant 0 : index
    %c1_22 = arith.constant 1 : index
    %c0_23 = arith.constant 0 : index
    %c0_24 = arith.constant 0 : index
    %15 = vector.load %arg1[%c0_19, %c0_20, %c0_21, %c1_22, %c0_23, %c0_24] : memref<1x9x2x9x2x4xf32, #tpu.memory_space<vmem>>, vector<1x8x1x8x1x4xf32>
    %16 = vector.shape_cast %15 : vector<1x8x1x8x1x4xf32> to vector<8x8x4xf32>
    %c8 = arith.constant 8 : index
    %c0_25 = arith.constant 0 : index
    %17 = vector.load %arg2[%c8, %c0_25] : memref<36x16xf32, #tpu.memory_space<vmem>>, vector<4x16xf32>
    %18 = vector.shape_cast %16 : vector<8x8x4xf32> to vector<64x4xf32>
    %cst_26 = arith.constant dense<0.000000e+00> : vector<64x16xf32>
    %19 = tpu.matmul %18, %17, %cst_26 {dimension_numbers = #tpu.dot_dimension_numbers<[1], [0], [0], [1], [0, 0, 1, 1], [], []>, precision = #tpu.contract_precision<fp32>} : vector<64x4xf32>, vector<4x16xf32>, vector<64x16xf32> -> vector<64x16xf32>
    %20 = arith.addf %14, %19 : vector<64x16xf32>
    %c0_27 = arith.constant 0 : index
    %c0_28 = arith.constant 0 : index
    %c1_29 = arith.constant 1 : index
    %c0_30 = arith.constant 0 : index
    %c0_31 = arith.constant 0 : index
    %c0_32 = arith.constant 0 : index
    %21 = vector.load %arg1[%c0_27, %c0_28, %c1_29, %c0_30, %c0_31, %c0_32] : memref<1x9x2x9x2x4xf32, #tpu.memory_space<vmem>>, vector<1x8x1x8x1x4xf32>
    %22 = vector.shape_cast %21 : vector<1x8x1x8x1x4xf32> to vector<8x8x4xf32>
    %c12 = arith.constant 12 : index
    %c0_33 = arith.constant 0 : index
    %23 = vector.load %arg2[%c12, %c0_33] : memref<36x16xf32, #tpu.memory_space<vmem>>, vector<4x16xf32>
    %24 = vector.shape_cast %22 : vector<8x8x4xf32> to vector<64x4xf32>
    %cst_34 = arith.constant dense<0.000000e+00> : vector<64x16xf32>
    %25 = tpu.matmul %24, %23, %cst_34 {dimension_numbers = #tpu.dot_dimension_numbers<[1], [0], [0], [1], [0, 0, 1, 1], [], []>, precision = #tpu.contract_precision<fp32>} : vector<64x4xf32>, vector<4x16xf32>, vector<64x16xf32> -> vector<64x16xf32>
    %26 = arith.addf %20, %25 : vector<64x16xf32>
    %c0_35 = arith.constant 0 : index
    %c0_36 = arith.constant 0 : index
    %c1_37 = arith.constant 1 : index
    %c0_38 = arith.constant 0 : index
    %c1_39 = arith.constant 1 : index
    %c0_40 = arith.constant 0 : index
    %27 = vector.load %arg1[%c0_35, %c0_36, %c1_37, %c0_38, %c1_39, %c0_40] : memref<1x9x2x9x2x4xf32, #tpu.memory_space<vmem>>, vector<1x8x1x8x1x4xf32>
    %28 = vector.shape_cast %27 : vector<1x8x1x8x1x4xf32> to vector<8x8x4xf32>
    %c16 = arith.constant 16 : index
    %c0_41 = arith.constant 0 : index
    %29 = vector.load %arg2[%c16, %c0_41] : memref<36x16xf32, #tpu.memory_space<vmem>>, vector<4x16xf32>
    %30 = vector.shape_cast %28 : vector<8x8x4xf32> to vector<64x4xf32>
    %cst_42 = arith.constant dense<0.000000e+00> : vector<64x16xf32>
    %31 = tpu.matmul %30, %29, %cst_42 {dimension_numbers = #tpu.dot_dimension_numbers<[1], [0], [0], [1], [0, 0, 1, 1], [], []>, precision = #tpu.contract_precision<fp32>} : vector<64x4xf32>, vector<4x16xf32>, vector<64x16xf32> -> vector<64x16xf32>
    %32 = arith.addf %26, %31 : vector<64x16xf32>
    %c0_43 = arith.constant 0 : index
    %c0_44 = arith.constant 0 : index
    %c1_45 = arith.constant 1 : index
    %c1_46 = arith.constant 1 : index
    %c0_47 = arith.constant 0 : index
    %c0_48 = arith.constant 0 : index
    %33 = vector.load %arg1[%c0_43, %c0_44, %c1_45, %c1_46, %c0_47, %c0_48] : memref<1x9x2x9x2x4xf32, #tpu.memory_space<vmem>>, vector<1x8x1x8x1x4xf32>
    %34 = vector.shape_cast %33 : vector<1x8x1x8x1x4xf32> to vector<8x8x4xf32>
    %c20 = arith.constant 20 : index
    %c0_49 = arith.constant 0 : index
    %35 = vector.load %arg2[%c20, %c0_49] : memref<36x16xf32, #tpu.memory_space<vmem>>, vector<4x16xf32>
    %36 = vector.shape_cast %34 : vector<8x8x4xf32> to vector<64x4xf32>
    %cst_50 = arith.constant dense<0.000000e+00> : vector<64x16xf32>
    %37 = tpu.matmul %36, %35, %cst_50 {dimension_numbers = #tpu.dot_dimension_numbers<[1], [0], [0], [1], [0, 0, 1, 1], [], []>, precision = #tpu.contract_precision<fp32>} : vector<64x4xf32>, vector<4x16xf32>, vector<64x16xf32> -> vector<64x16xf32>
    %38 = arith.addf %32, %37 : vector<64x16xf32>
    %c0_51 = arith.constant 0 : index
    %c1_52 = arith.constant 1 : index
    %c0_53 = arith.constant 0 : index
    %c0_54 = arith.constant 0 : index
    %c0_55 = arith.constant 0 : index
    %c0_56 = arith.constant 0 : index
    %39 = vector.load %arg1[%c0_51, %c1_52, %c0_53, %c0_54, %c0_55, %c0_56] : memref<1x9x2x9x2x4xf32, #tpu.memory_space<vmem>>, vector<1x8x1x8x1x4xf32>
    %40 = vector.shape_cast %39 : vector<1x8x1x8x1x4xf32> to vector<8x8x4xf32>
    %c24 = arith.constant 24 : index
    %c0_57 = arith.constant 0 : index
    %41 = vector.load %arg2[%c24, %c0_57] : memref<36x16xf32, #tpu.memory_space<vmem>>, vector<4x16xf32>
    %42 = vector.shape_cast %40 : vector<8x8x4xf32> to vector<64x4xf32>
    %cst_58 = arith.constant dense<0.000000e+00> : vector<64x16xf32>
    %43 = tpu.matmul %42, %41, %cst_58 {dimension_numbers = #tpu.dot_dimension_numbers<[1], [0], [0], [1], [0, 0, 1, 1], [], []>, precision = #tpu.contract_precision<fp32>} : vector<64x4xf32>, vector<4x16xf32>, vector<64x16xf32> -> vector<64x16xf32>
    %44 = arith.addf %38, %43 : vector<64x16xf32>
    %c0_59 = arith.constant 0 : index
    %c1_60 = arith.constant 1 : index
    %c0_61 = arith.constant 0 : index
    %c0_62 = arith.constant 0 : index
    %c1_63 = arith.constant 1 : index
    %c0_64 = arith.constant 0 : index
    %45 = vector.load %arg1[%c0_59, %c1_60, %c0_61, %c0_62, %c1_63, %c0_64] : memref<1x9x2x9x2x4xf32, #tpu.memory_space<vmem>>, vector<1x8x1x8x1x4xf32>
    %46 = vector.shape_cast %45 : vector<1x8x1x8x1x4xf32> to vector<8x8x4xf32>
    %c28 = arith.constant 28 : index
    %c0_65 = arith.constant 0 : index
    %47 = vector.load %arg2[%c28, %c0_65] : memref<36x16xf32, #tpu.memory_space<vmem>>, vector<4x16xf32>
    %48 = vector.shape_cast %46 : vector<8x8x4xf32> to vector<64x4xf32>
    %cst_66 = arith.constant dense<0.000000e+00> : vector<64x16xf32>
    %49 = tpu.matmul %48, %47, %cst_66 {dimension_numbers = #tpu.dot_dimension_numbers<[1], [0], [0], [1], [0, 0, 1, 1], [], []>, precision = #tpu.contract_precision<fp32>} : vector<64x4xf32>, vector<4x16xf32>, vector<64x16xf32> -> vector<64x16xf32>
    %50 = arith.addf %44, %49 : vector<64x16xf32>
    %c0_67 = arith.constant 0 : index
    %c1_68 = arith.constant 1 : index
    %c0_69 = arith.constant 0 : index
    %c1_70 = arith.constant 1 : index
    %c0_71 = arith.constant 0 : index
    %c0_72 = arith.constant 0 : index
    %51 = vector.load %arg1[%c0_67, %c1_68, %c0_69, %c1_70, %c0_71, %c0_72] : memref<1x9x2x9x2x4xf32, #tpu.memory_space<vmem>>, vector<1x8x1x8x1x4xf32>
    %52 = vector.shape_cast %51 : vector<1x8x1x8x1x4xf32> to vector<8x8x4xf32>
    %c32 = arith.constant 32 : index
    %c0_73 = arith.constant 0 : index
    %53 = vector.load %arg2[%c32, %c0_73] : memref<36x16xf32, #tpu.memory_space<vmem>>, vector<4x16xf32>
    %54 = vector.shape_cast %52 : vector<8x8x4xf32> to vector<64x4xf32>
    %cst_74 = arith.constant dense<0.000000e+00> : vector<64x16xf32>
    %55 = tpu.matmul %54, %53, %cst_74 {dimension_numbers = #tpu.dot_dimension_numbers<[1], [0], [0], [1], [0, 0, 1, 1], [], []>, precision = #tpu.contract_precision<fp32>} : vector<64x4xf32>, vector<4x16xf32>, vector<64x16xf32> -> vector<64x16xf32>
    %56 = arith.addf %50, %55 : vector<64x16xf32>
    %c0_75 = arith.constant 0 : index
    %c0_76 = arith.constant 0 : index
    %57 = vector.load %arg3[%c0_75, %c0_76] : memref<1x16xf32, #tpu.memory_space<vmem>>, vector<1x16xf32>
    %58 = vector.shape_cast %57 : vector<1x16xf32> to vector<16xf32>
    %59 = vector.shape_cast %58 : vector<16xf32> to vector<1x16xf32>
    %60 = vector.broadcast %59 : vector<1x16xf32> to vector<64x16xf32>
    %61 = arith.addf %56, %60 : vector<64x16xf32>
    %62 = vector.shape_cast %61 : vector<64x16xf32> to vector<8x8x16xf32>
    %c1_77 = arith.constant 1 : index
    %c1_78 = arith.constant 1 : index
    %c0_79 = arith.constant 0 : index
    %63 = vector.load %arg12[%c1_77, %c1_78, %c0_79] : memref<10x10x16xf32, #tpu.memory_space<vmem>>, vector<8x8x16xf32>
    tpu.vector_store %arg12[%c1_77, %c1_78, %c0_79], %62 {strides = array<i32>} : memref<10x10x16xf32, #tpu.memory_space<vmem>>, vector<8x8x16xf32>,
    %cst_80 = arith.constant 0.000000e+00 : f32
    %64 = vector.broadcast %cst_80 : f32 to vector<8x8x16xf32>
    %c0_81 = arith.constant 0 : index
    %c0_82 = arith.constant 0 : index
    %c0_83 = arith.constant 0 : index
    %65 = vector.load %arg12[%c0_81, %c0_82, %c0_83] : memref<10x10x16xf32, #tpu.memory_space<vmem>>, vector<8x8x16xf32>
    %c0_84 = arith.constant 0 : index
    %c0_85 = arith.constant 0 : index
    %66 = vector.load %arg4[%c0_84, %c0_85] : memref<9x16xf32, #tpu.memory_space<vmem>>, vector<1x16xf32>
    %67 = vector.shape_cast %66 : vector<1x16xf32> to vector<16xf32>
    %68 = vector.shape_cast %67 : vector<16xf32> to vector<1x1x16xf32>
    %69 = vector.broadcast %68 : vector<1x1x16xf32> to vector<8x8x16xf32>
    %70 = arith.mulf %65, %69 : vector<8x8x16xf32>
    %71 = arith.addf %64, %70 : vector<8x8x16xf32>
    %c0_86 = arith.constant 0 : index
    %c1_87 = arith.constant 1 : index
    %c0_88 = arith.constant 0 : index
    %72 = vector.load %arg12[%c0_86, %c1_87, %c0_88] : memref<10x10x16xf32, #tpu.memory_space<vmem>>, vector<8x8x16xf32>
    %c1_89 = arith.constant 1 : index
    %c0_90 = arith.constant 0 : index
    %73 = vector.load %arg4[%c1_89, %c0_90] : memref<9x16xf32, #tpu.memory_space<vmem>>, vector<1x16xf32>
    %74 = vector.shape_cast %73 : vector<1x16xf32> to vector<16xf32>
    %75 = vector.shape_cast %74 : vector<16xf32> to vector<1x1x16xf32>
    %76 = vector.broadcast %75 : vector<1x1x16xf32> to vector<8x8x16xf32>
    %77 = arith.mulf %72, %76 : vector<8x8x16xf32>
    %78 = arith.addf %71, %77 : vector<8x8x16xf32>
    %c0_91 = arith.constant 0 : index
    %c2 = arith.constant 2 : index
    %c0_92 = arith.constant 0 : index
    %79 = vector.load %arg12[%c0_91, %c2, %c0_92] : memref<10x10x16xf32, #tpu.memory_space<vmem>>, vector<8x8x16xf32>
    %c2_93 = arith.constant 2 : index
    %c0_94 = arith.constant 0 : index
    %80 = vector.load %arg4[%c2_93, %c0_94] : memref<9x16xf32, #tpu.memory_space<vmem>>, vector<1x16xf32>
    %81 = vector.shape_cast %80 : vector<1x16xf32> to vector<16xf32>
    %82 = vector.shape_cast %81 : vector<16xf32> to vector<1x1x16xf32>
    %83 = vector.broadcast %82 : vector<1x1x16xf32> to vector<8x8x16xf32>
    %84 = arith.mulf %79, %83 : vector<8x8x16xf32>
    %85 = arith.addf %78, %84 : vector<8x8x16xf32>
    %c1_95 = arith.constant 1 : index
    %c0_96 = arith.constant 0 : index
    %c0_97 = arith.constant 0 : index
    %86 = vector.load %arg12[%c1_95, %c0_96, %c0_97] : memref<10x10x16xf32, #tpu.memory_space<vmem>>, vector<8x8x16xf32>
    %c3 = arith.constant 3 : index
    %c0_98 = arith.constant 0 : index
    %87 = vector.load %arg4[%c3, %c0_98] : memref<9x16xf32, #tpu.memory_space<vmem>>, vector<1x16xf32>
    %88 = vector.shape_cast %87 : vector<1x16xf32> to vector<16xf32>
    %89 = vector.shape_cast %88 : vector<16xf32> to vector<1x1x16xf32>
    %90 = vector.broadcast %89 : vector<1x1x16xf32> to vector<8x8x16xf32>
    %91 = arith.mulf %86, %90 : vector<8x8x16xf32>
    %92 = arith.addf %85, %91 : vector<8x8x16xf32>
    %c1_99 = arith.constant 1 : index
    %c1_100 = arith.constant 1 : index
    %c0_101 = arith.constant 0 : index
    %93 = vector.load %arg12[%c1_99, %c1_100, %c0_101] : memref<10x10x16xf32, #tpu.memory_space<vmem>>, vector<8x8x16xf32>
    %c4_102 = arith.constant 4 : index
    %c0_103 = arith.constant 0 : index
    %94 = vector.load %arg4[%c4_102, %c0_103] : memref<9x16xf32, #tpu.memory_space<vmem>>, vector<1x16xf32>
    %95 = vector.shape_cast %94 : vector<1x16xf32> to vector<16xf32>
    %96 = vector.shape_cast %95 : vector<16xf32> to vector<1x1x16xf32>
    %97 = vector.broadcast %96 : vector<1x1x16xf32> to vector<8x8x16xf32>
    %98 = arith.mulf %93, %97 : vector<8x8x16xf32>
    %99 = arith.addf %92, %98 : vector<8x8x16xf32>
    %c1_104 = arith.constant 1 : index
    %c2_105 = arith.constant 2 : index
    %c0_106 = arith.constant 0 : index
    %100 = vector.load %arg12[%c1_104, %c2_105, %c0_106] : memref<10x10x16xf32, #tpu.memory_space<vmem>>, vector<8x8x16xf32>
    %c5 = arith.constant 5 : index
    %c0_107 = arith.constant 0 : index
    %101 = vector.load %arg4[%c5, %c0_107] : memref<9x16xf32, #tpu.memory_space<vmem>>, vector<1x16xf32>
    %102 = vector.shape_cast %101 : vector<1x16xf32> to vector<16xf32>
    %103 = vector.shape_cast %102 : vector<16xf32> to vector<1x1x16xf32>
    %104 = vector.broadcast %103 : vector<1x1x16xf32> to vector<8x8x16xf32>
    %105 = arith.mulf %100, %104 : vector<8x8x16xf32>
    %106 = arith.addf %99, %105 : vector<8x8x16xf32>
    %c2_108 = arith.constant 2 : index
    %c0_109 = arith.constant 0 : index
    %c0_110 = arith.constant 0 : index
    %107 = vector.load %arg12[%c2_108, %c0_109, %c0_110] : memref<10x10x16xf32, #tpu.memory_space<vmem>>, vector<8x8x16xf32>
    %c6 = arith.constant 6 : index
    %c0_111 = arith.constant 0 : index
    %108 = vector.load %arg4[%c6, %c0_111] : memref<9x16xf32, #tpu.memory_space<vmem>>, vector<1x16xf32>
    %109 = vector.shape_cast %108 : vector<1x16xf32> to vector<16xf32>
    %110 = vector.shape_cast %109 : vector<16xf32> to vector<1x1x16xf32>
    %111 = vector.broadcast %110 : vector<1x1x16xf32> to vector<8x8x16xf32>
    %112 = arith.mulf %107, %111 : vector<8x8x16xf32>
    %113 = arith.addf %106, %112 : vector<8x8x16xf32>
    %c2_112 = arith.constant 2 : index
    %c1_113 = arith.constant 1 : index
    %c0_114 = arith.constant 0 : index
    %114 = vector.load %arg12[%c2_112, %c1_113, %c0_114] : memref<10x10x16xf32, #tpu.memory_space<vmem>>, vector<8x8x16xf32>
    %c7 = arith.constant 7 : index
    %c0_115 = arith.constant 0 : index
    %115 = vector.load %arg4[%c7, %c0_115] : memref<9x16xf32, #tpu.memory_space<vmem>>, vector<1x16xf32>
    %116 = vector.shape_cast %115 : vector<1x16xf32> to vector<16xf32>
    %117 = vector.shape_cast %116 : vector<16xf32> to vector<1x1x16xf32>
    %118 = vector.broadcast %117 : vector<1x1x16xf32> to vector<8x8x16xf32>
    %119 = arith.mulf %114, %118 : vector<8x8x16xf32>
    %120 = arith.addf %113, %119 : vector<8x8x16xf32>
    %c2_116 = arith.constant 2 : index
    %c2_117 = arith.constant 2 : index
    %c0_118 = arith.constant 0 : index
    %121 = vector.load %arg12[%c2_116, %c2_117, %c0_118] : memref<10x10x16xf32, #tpu.memory_space<vmem>>, vector<8x8x16xf32>
    %c8_119 = arith.constant 8 : index
    %c0_120 = arith.constant 0 : index
    %122 = vector.load %arg4[%c8_119, %c0_120] : memref<9x16xf32, #tpu.memory_space<vmem>>, vector<1x16xf32>
    %123 = vector.shape_cast %122 : vector<1x16xf32> to vector<16xf32>
    %124 = vector.shape_cast %123 : vector<16xf32> to vector<1x1x16xf32>
    %125 = vector.broadcast %124 : vector<1x1x16xf32> to vector<8x8x16xf32>
    %126 = arith.mulf %121, %125 : vector<8x8x16xf32>
    %127 = arith.addf %120, %126 : vector<8x8x16xf32>
    %c0_121 = arith.constant 0 : index
    %c0_122 = arith.constant 0 : index
    %128 = vector.load %arg5[%c0_121, %c0_122] : memref<1x16xf32, #tpu.memory_space<vmem>>, vector<1x16xf32>
    %129 = vector.shape_cast %128 : vector<1x16xf32> to vector<16xf32>
    %130 = vector.shape_cast %129 : vector<16xf32> to vector<1x1x16xf32>
    %131 = vector.broadcast %130 : vector<1x1x16xf32> to vector<8x8x16xf32>
    %132 = arith.addf %127, %131 : vector<8x8x16xf32>
    %133 = arith.maximumf %62, %132 : vector<8x8x16xf32>
    %134 = vector.shape_cast %133 : vector<8x8x16xf32> to vector<4x2x8x16xf32>
    %cst_123 = arith.constant dense<0xFF800000> : vector<4x8x16xf32>
    %135 = vector.multi_reduction <maximumf>, %134, %cst_123 [1] : vector<4x2x8x16xf32> to vector<4x8x16xf32>
    %c0_124 = arith.constant 0 : index
    %c0_125 = arith.constant 0 : index
    %c0_126 = arith.constant 0 : index
    %c0_127 = arith.constant 0 : index
    %136 = vector.load %arg11[%c0_124, %c0_125, %c0_126, %c0_127] : memref<1x4x8x16xf32, #tpu.memory_space<vmem>>, vector<1x4x8x16xf32>
    %137 = vector.shape_cast %136 : vector<1x4x8x16xf32> to vector<4x8x16xf32>
    %138 = vector.shape_cast %135 : vector<4x8x16xf32> to vector<1x4x8x16xf32>
    tpu.vector_store %arg11[%c0_124, %c0_125, %c0_126, %c0_127], %138 {strides = array<i32>} : memref<1x4x8x16xf32, #tpu.memory_space<vmem>>, vector<1x4x8x16xf32>,
    %139 = vector.shape_cast %133 : vector<8x8x16xf32> to vector<64x16xf32>
    %c0_128 = arith.constant 0 : index
    %c0_129 = arith.constant 0 : index
    %140 = vector.load %arg6[%c0_128, %c0_129] : memref<16x16xf32, #tpu.memory_space<vmem>>, vector<16x16xf32>
    %cst_130 = arith.constant dense<0.000000e+00> : vector<64x16xf32>
    %141 = tpu.matmul %139, %140, %cst_130 {dimension_numbers = #tpu.dot_dimension_numbers<[1], [0], [0], [1], [0, 0, 1, 1], [], []>, precision = #tpu.contract_precision<fp32>} : vector<64x16xf32>, vector<16x16xf32>, vector<64x16xf32> -> vector<64x16xf32>
    %c0_131 = arith.constant 0 : index
    %c0_132 = arith.constant 0 : index
    %142 = vector.load %arg7[%c0_131, %c0_132] : memref<1x16xf32, #tpu.memory_space<vmem>>, vector<1x16xf32>
    %143 = vector.shape_cast %142 : vector<1x16xf32> to vector<16xf32>
    %144 = vector.shape_cast %143 : vector<16xf32> to vector<1x16xf32>
    %145 = vector.broadcast %144 : vector<1x16xf32> to vector<64x16xf32>
    %146 = arith.addf %141, %145 : vector<64x16xf32>
    %147 = vector.shape_cast %146 : vector<64x16xf32> to vector<8x8x16xf32>
    %c1_133 = arith.constant 1 : index
    %c1_134 = arith.constant 1 : index
    %c0_135 = arith.constant 0 : index
    %148 = vector.load %arg12[%c1_133, %c1_134, %c0_135] : memref<10x10x16xf32, #tpu.memory_space<vmem>>, vector<8x8x16xf32>
    tpu.vector_store %arg12[%c1_133, %c1_134, %c0_135], %147 {strides = array<i32>} : memref<10x10x16xf32, #tpu.memory_space<vmem>>, vector<8x8x16xf32>,
    %cst_136 = arith.constant 0.000000e+00 : f32
    %149 = vector.broadcast %cst_136 : f32 to vector<8x8x16xf32>
    %c0_137 = arith.constant 0 : index
    %c0_138 = arith.constant 0 : index
    %c0_139 = arith.constant 0 : index
    %150 = vector.load %arg12[%c0_137, %c0_138, %c0_139] : memref<10x10x16xf32, #tpu.memory_space<vmem>>, vector<8x8x16xf32>
    %c0_140 = arith.constant 0 : index
    %c0_141 = arith.constant 0 : index
    %151 = vector.load %arg8[%c0_140, %c0_141] : memref<9x16xf32, #tpu.memory_space<vmem>>, vector<1x16xf32>
    %152 = vector.shape_cast %151 : vector<1x16xf32> to vector<16xf32>
    %153 = vector.shape_cast %152 : vector<16xf32> to vector<1x1x16xf32>
    %154 = vector.broadcast %153 : vector<1x1x16xf32> to vector<8x8x16xf32>
    %155 = arith.mulf %150, %154 : vector<8x8x16xf32>
    %156 = arith.addf %149, %155 : vector<8x8x16xf32>
    %c0_142 = arith.constant 0 : index
    %c1_143 = arith.constant 1 : index
    %c0_144 = arith.constant 0 : index
    %157 = vector.load %arg12[%c0_142, %c1_143, %c0_144] : memref<10x10x16xf32, #tpu.memory_space<vmem>>, vector<8x8x16xf32>
    %c1_145 = arith.constant 1 : index
    %c0_146 = arith.constant 0 : index
    %158 = vector.load %arg8[%c1_145, %c0_146] : memref<9x16xf32, #tpu.memory_space<vmem>>, vector<1x16xf32>
    %159 = vector.shape_cast %158 : vector<1x16xf32> to vector<16xf32>
    %160 = vector.shape_cast %159 : vector<16xf32> to vector<1x1x16xf32>
    %161 = vector.broadcast %160 : vector<1x1x16xf32> to vector<8x8x16xf32>
    %162 = arith.mulf %157, %161 : vector<8x8x16xf32>
    %163 = arith.addf %156, %162 : vector<8x8x16xf32>
    %c0_147 = arith.constant 0 : index
    %c2_148 = arith.constant 2 : index
    %c0_149 = arith.constant 0 : index
    %164 = vector.load %arg12[%c0_147, %c2_148, %c0_149] : memref<10x10x16xf32, #tpu.memory_space<vmem>>, vector<8x8x16xf32>
    %c2_150 = arith.constant 2 : index
    %c0_151 = arith.constant 0 : index
    %165 = vector.load %arg8[%c2_150, %c0_151] : memref<9x16xf32, #tpu.memory_space<vmem>>, vector<1x16xf32>
    %166 = vector.shape_cast %165 : vector<1x16xf32> to vector<16xf32>
    %167 = vector.shape_cast %166 : vector<16xf32> to vector<1x1x16xf32>
    %168 = vector.broadcast %167 : vector<1x1x16xf32> to vector<8x8x16xf32>
    %169 = arith.mulf %164, %168 : vector<8x8x16xf32>
    %170 = arith.addf %163, %169 : vector<8x8x16xf32>
    %c1_152 = arith.constant 1 : index
    %c0_153 = arith.constant 0 : index
    %c0_154 = arith.constant 0 : index
    %171 = vector.load %arg12[%c1_152, %c0_153, %c0_154] : memref<10x10x16xf32, #tpu.memory_space<vmem>>, vector<8x8x16xf32>
    %c3_155 = arith.constant 3 : index
    %c0_156 = arith.constant 0 : index
    %172 = vector.load %arg8[%c3_155, %c0_156] : memref<9x16xf32, #tpu.memory_space<vmem>>, vector<1x16xf32>
    %173 = vector.shape_cast %172 : vector<1x16xf32> to vector<16xf32>
    %174 = vector.shape_cast %173 : vector<16xf32> to vector<1x1x16xf32>
    %175 = vector.broadcast %174 : vector<1x1x16xf32> to vector<8x8x16xf32>
    %176 = arith.mulf %171, %175 : vector<8x8x16xf32>
    %177 = arith.addf %170, %176 : vector<8x8x16xf32>
    %c1_157 = arith.constant 1 : index
    %c1_158 = arith.constant 1 : index
    %c0_159 = arith.constant 0 : index
    %178 = vector.load %arg12[%c1_157, %c1_158, %c0_159] : memref<10x10x16xf32, #tpu.memory_space<vmem>>, vector<8x8x16xf32>
    %c4_160 = arith.constant 4 : index
    %c0_161 = arith.constant 0 : index
    %179 = vector.load %arg8[%c4_160, %c0_161] : memref<9x16xf32, #tpu.memory_space<vmem>>, vector<1x16xf32>
    %180 = vector.shape_cast %179 : vector<1x16xf32> to vector<16xf32>
    %181 = vector.shape_cast %180 : vector<16xf32> to vector<1x1x16xf32>
    %182 = vector.broadcast %181 : vector<1x1x16xf32> to vector<8x8x16xf32>
    %183 = arith.mulf %178, %182 : vector<8x8x16xf32>
    %184 = arith.addf %177, %183 : vector<8x8x16xf32>
    %c1_162 = arith.constant 1 : index
    %c2_163 = arith.constant 2 : index
    %c0_164 = arith.constant 0 : index
    %185 = vector.load %arg12[%c1_162, %c2_163, %c0_164] : memref<10x10x16xf32, #tpu.memory_space<vmem>>, vector<8x8x16xf32>
    %c5_165 = arith.constant 5 : index
    %c0_166 = arith.constant 0 : index
    %186 = vector.load %arg8[%c5_165, %c0_166] : memref<9x16xf32, #tpu.memory_space<vmem>>, vector<1x16xf32>
    %187 = vector.shape_cast %186 : vector<1x16xf32> to vector<16xf32>
    %188 = vector.shape_cast %187 : vector<16xf32> to vector<1x1x16xf32>
    %189 = vector.broadcast %188 : vector<1x1x16xf32> to vector<8x8x16xf32>
    %190 = arith.mulf %185, %189 : vector<8x8x16xf32>
    %191 = arith.addf %184, %190 : vector<8x8x16xf32>
    %c2_167 = arith.constant 2 : index
    %c0_168 = arith.constant 0 : index
    %c0_169 = arith.constant 0 : index
    %192 = vector.load %arg12[%c2_167, %c0_168, %c0_169] : memref<10x10x16xf32, #tpu.memory_space<vmem>>, vector<8x8x16xf32>
    %c6_170 = arith.constant 6 : index
    %c0_171 = arith.constant 0 : index
    %193 = vector.load %arg8[%c6_170, %c0_171] : memref<9x16xf32, #tpu.memory_space<vmem>>, vector<1x16xf32>
    %194 = vector.shape_cast %193 : vector<1x16xf32> to vector<16xf32>
    %195 = vector.shape_cast %194 : vector<16xf32> to vector<1x1x16xf32>
    %196 = vector.broadcast %195 : vector<1x1x16xf32> to vector<8x8x16xf32>
    %197 = arith.mulf %192, %196 : vector<8x8x16xf32>
    %198 = arith.addf %191, %197 : vector<8x8x16xf32>
    %c2_172 = arith.constant 2 : index
    %c1_173 = arith.constant 1 : index
    %c0_174 = arith.constant 0 : index
    %199 = vector.load %arg12[%c2_172, %c1_173, %c0_174] : memref<10x10x16xf32, #tpu.memory_space<vmem>>, vector<8x8x16xf32>
    %c7_175 = arith.constant 7 : index
    %c0_176 = arith.constant 0 : index
    %200 = vector.load %arg8[%c7_175, %c0_176] : memref<9x16xf32, #tpu.memory_space<vmem>>, vector<1x16xf32>
    %201 = vector.shape_cast %200 : vector<1x16xf32> to vector<16xf32>
    %202 = vector.shape_cast %201 : vector<16xf32> to vector<1x1x16xf32>
    %203 = vector.broadcast %202 : vector<1x1x16xf32> to vector<8x8x16xf32>
    %204 = arith.mulf %199, %203 : vector<8x8x16xf32>
    %205 = arith.addf %198, %204 : vector<8x8x16xf32>
    %c2_177 = arith.constant 2 : index
    %c2_178 = arith.constant 2 : index
    %c0_179 = arith.constant 0 : index
    %206 = vector.load %arg12[%c2_177, %c2_178, %c0_179] : memref<10x10x16xf32, #tpu.memory_space<vmem>>, vector<8x8x16xf32>
    %c8_180 = arith.constant 8 : index
    %c0_181 = arith.constant 0 : index
    %207 = vector.load %arg8[%c8_180, %c0_181] : memref<9x16xf32, #tpu.memory_space<vmem>>, vector<1x16xf32>
    %208 = vector.shape_cast %207 : vector<1x16xf32> to vector<16xf32>
    %209 = vector.shape_cast %208 : vector<16xf32> to vector<1x1x16xf32>
    %210 = vector.broadcast %209 : vector<1x1x16xf32> to vector<8x8x16xf32>
    %211 = arith.mulf %206, %210 : vector<8x8x16xf32>
    %212 = arith.addf %205, %211 : vector<8x8x16xf32>
    %c0_182 = arith.constant 0 : index
    %c0_183 = arith.constant 0 : index
    %213 = vector.load %arg9[%c0_182, %c0_183] : memref<1x16xf32, #tpu.memory_space<vmem>>, vector<1x16xf32>
    %214 = vector.shape_cast %213 : vector<1x16xf32> to vector<16xf32>
    %215 = vector.shape_cast %214 : vector<16xf32> to vector<1x1x16xf32>
    %216 = vector.broadcast %215 : vector<1x1x16xf32> to vector<8x8x16xf32>
    %217 = arith.addf %212, %216 : vector<8x8x16xf32>
    %218 = arith.maximumf %147, %217 : vector<8x8x16xf32>
    %c0_184 = arith.constant 0 : index
    %c0_185 = arith.constant 0 : index
    %c0_186 = arith.constant 0 : index
    %c0_187 = arith.constant 0 : index
    %219 = vector.load %arg10[%c0_184, %c0_185, %c0_186, %c0_187] : memref<1x8x8x16xf32, #tpu.memory_space<vmem>>, vector<1x8x8x16xf32>
    %220 = vector.shape_cast %219 : vector<1x8x8x16xf32> to vector<8x8x16xf32>
    %221 = vector.shape_cast %218 : vector<8x8x16xf32> to vector<1x8x8x16xf32>
    tpu.vector_store %arg10[%c0_184, %c0_185, %c0_186, %c0_187], %221 {strides = array<i32>} : memref<1x8x8x16xf32, #tpu.memory_space<vmem>>, vector<1x8x8x16xf32>,
    return
  }
  func.func @transform_0(%arg0: i32) -> (i32, i32, i32, i32, i32, i32) {
    %c0_i32 = arith.constant 0 : i32
    %c0_i32_0 = arith.constant 0 : i32
    %c0_i32_1 = arith.constant 0 : i32
    %c0_i32_2 = arith.constant 0 : i32
    %c0_i32_3 = arith.constant 0 : i32
    %c0_i32_4 = arith.constant 0 : i32
    return %arg0, %c0_i32, %c0_i32_0, %c0_i32_1, %c0_i32_2, %c0_i32_3 : i32, i32, i32, i32, i32, i32
  }
  func.func @transform_1(%arg0: i32) -> (i32, i32) {
    %c0_i32 = arith.constant 0 : i32
    %c0_i32_0 = arith.constant 0 : i32
    %c0_i32_1 = arith.constant 0 : i32
    return %c0_i32, %c0_i32_0 : i32, i32
  }
  func.func @transform_2(%arg0: i32) -> (i32, i32) {
    %c0_i32 = arith.constant 0 : i32
    %c0_i32_0 = arith.constant 0 : i32
    %c0_i32_1 = arith.constant 0 : i32
    return %c0_i32, %c0_i32_0 : i32, i32
  }
  func.func @transform_3(%arg0: i32) -> (i32, i32) {
    %c0_i32 = arith.constant 0 : i32
    %c0_i32_0 = arith.constant 0 : i32
    %c0_i32_1 = arith.constant 0 : i32
    return %c0_i32, %c0_i32_0 : i32, i32
  }
  func.func @transform_4(%arg0: i32) -> (i32, i32) {
    %c0_i32 = arith.constant 0 : i32
    %c0_i32_0 = arith.constant 0 : i32
    %c0_i32_1 = arith.constant 0 : i32
    return %c0_i32, %c0_i32_0 : i32, i32
  }
  func.func @transform_5(%arg0: i32) -> (i32, i32) {
    %c0_i32 = arith.constant 0 : i32
    %c0_i32_0 = arith.constant 0 : i32
    %c0_i32_1 = arith.constant 0 : i32
    return %c0_i32, %c0_i32_0 : i32, i32
  }
  func.func @transform_6(%arg0: i32) -> (i32, i32) {
    %c0_i32 = arith.constant 0 : i32
    %c0_i32_0 = arith.constant 0 : i32
    %c0_i32_1 = arith.constant 0 : i32
    return %c0_i32, %c0_i32_0 : i32, i32
  }
  func.func @transform_7(%arg0: i32) -> (i32, i32) {
    %c0_i32 = arith.constant 0 : i32
    %c0_i32_0 = arith.constant 0 : i32
    %c0_i32_1 = arith.constant 0 : i32
    return %c0_i32, %c0_i32_0 : i32, i32
  }
  func.func @transform_8(%arg0: i32) -> (i32, i32) {
    %c0_i32 = arith.constant 0 : i32
    %c0_i32_0 = arith.constant 0 : i32
    %c0_i32_1 = arith.constant 0 : i32
    return %c0_i32, %c0_i32_0 : i32, i32
  }
  func.func @transform_9(%arg0: i32) -> (i32, i32, i32, i32) {
    %c0_i32 = arith.constant 0 : i32
    %c0_i32_0 = arith.constant 0 : i32
    %c0_i32_1 = arith.constant 0 : i32
    %c0_i32_2 = arith.constant 0 : i32
    return %arg0, %c0_i32, %c0_i32_0, %c0_i32_1 : i32, i32, i32, i32
  }
  func.func @transform_10(%arg0: i32) -> (i32, i32, i32, i32) {
    %c0_i32 = arith.constant 0 : i32
    %c0_i32_0 = arith.constant 0 : i32
    %c0_i32_1 = arith.constant 0 : i32
    %c0_i32_2 = arith.constant 0 : i32
    return %arg0, %c0_i32, %c0_i32_0, %c0_i32_1 : i32, i32, i32, i32
  }
}

module attributes {stable_mosaic.version = 11 : i64} {
  func.func @_conv3x3s2_bn_frelu_kernel(%arg0: i32, %arg1: memref<1x5x2x5x2x16xf32, #tpu.memory_space<vmem>>, %arg2: memref<144x16xf32, #tpu.memory_space<vmem>>, %arg3: memref<1x16xf32, #tpu.memory_space<vmem>>, %arg4: memref<9x16xf32, #tpu.memory_space<vmem>>, %arg5: memref<1x16xf32, #tpu.memory_space<vmem>>, %arg6: memref<1x4x4x16xf32, #tpu.memory_space<vmem>>, %arg7: memref<6x6x16xf32, #tpu.memory_space<vmem>>) attributes {dimension_semantics = [#tpu.dimension_semantics<parallel>], iteration_bounds = array<i64: 2>, scalar_prefetch = 0 : i64, scratch_operands = 1 : i64, tpu.core_type = #tpu.core_type<tc>, window_params = [{transform_indices = @transform_0, window_bounds = array<i64: 1, 5, 2, 5, 2, 16>}, {pipeline_mode = #tpu.pipeline_mode<synchronous>, transform_indices = @transform_1, window_bounds = array<i64: 144, 16>}, {pipeline_mode = #tpu.pipeline_mode<synchronous>, transform_indices = @transform_2, window_bounds = array<i64: 1, 16>}, {pipeline_mode = #tpu.pipeline_mode<synchronous>, transform_indices = @transform_3, window_bounds = array<i64: 9, 16>}, {pipeline_mode = #tpu.pipeline_mode<synchronous>, transform_indices = @transform_4, window_bounds = array<i64: 1, 16>}, {transform_indices = @transform_5, window_bounds = array<i64: 1, 4, 4, 16>}]} {
    %cst = arith.constant 0.000000e+00 : f32
    %0 = vector.broadcast %cst : f32 to vector<6x6x16xf32>
    %c0 = arith.constant 0 : index
    %c0_0 = arith.constant 0 : index
    %c0_1 = arith.constant 0 : index
    %1 = vector.load %arg7[%c0, %c0_0, %c0_1] : memref<6x6x16xf32, #tpu.memory_space<vmem>>, vector<6x6x16xf32>
    tpu.vector_store %arg7[%c0, %c0_0, %c0_1], %0 {strides = array<i32>} : memref<6x6x16xf32, #tpu.memory_space<vmem>>, vector<6x6x16xf32>,
    %cst_2 = arith.constant 0.000000e+00 : f32
    %2 = vector.broadcast %cst_2 : f32 to vector<16x16xf32>
    %c0_3 = arith.constant 0 : index
    %c0_4 = arith.constant 0 : index
    %c0_5 = arith.constant 0 : index
    %c0_6 = arith.constant 0 : index
    %c0_7 = arith.constant 0 : index
    %c0_8 = arith.constant 0 : index
    %3 = vector.load %arg1[%c0_3, %c0_4, %c0_5, %c0_6, %c0_7, %c0_8] : memref<1x5x2x5x2x16xf32, #tpu.memory_space<vmem>>, vector<1x4x1x4x1x16xf32>
    %4 = vector.shape_cast %3 : vector<1x4x1x4x1x16xf32> to vector<4x4x16xf32>
    %c0_9 = arith.constant 0 : index
    %c0_10 = arith.constant 0 : index
    %5 = vector.load %arg2[%c0_9, %c0_10] : memref<144x16xf32, #tpu.memory_space<vmem>>, vector<16x16xf32>
    %6 = vector.shape_cast %4 : vector<4x4x16xf32> to vector<16x16xf32>
    %cst_11 = arith.constant dense<0.000000e+00> : vector<16x16xf32>
    %7 = tpu.matmul %6, %5, %cst_11 {dimension_numbers = #tpu.dot_dimension_numbers<[1], [0], [0], [1], [0, 0, 1, 1], [], []>, precision = #tpu.contract_precision<fp32>} : vector<16x16xf32>, vector<16x16xf32>, vector<16x16xf32> -> vector<16x16xf32>
    %8 = arith.addf %2, %7 : vector<16x16xf32>
    %c0_12 = arith.constant 0 : index
    %c0_13 = arith.constant 0 : index
    %c0_14 = arith.constant 0 : index
    %c0_15 = arith.constant 0 : index
    %c1 = arith.constant 1 : index
    %c0_16 = arith.constant 0 : index
    %9 = vector.load %arg1[%c0_12, %c0_13, %c0_14, %c0_15, %c1, %c0_16] : memref<1x5x2x5x2x16xf32, #tpu.memory_space<vmem>>, vector<1x4x1x4x1x16xf32>
    %10 = vector.shape_cast %9 : vector<1x4x1x4x1x16xf32> to vector<4x4x16xf32>
    %c16 = arith.constant 16 : index
    %c0_17 = arith.constant 0 : index
    %11 = vector.load %arg2[%c16, %c0_17] : memref<144x16xf32, #tpu.memory_space<vmem>>, vector<16x16xf32>
    %12 = vector.shape_cast %10 : vector<4x4x16xf32> to vector<16x16xf32>
    %cst_18 = arith.constant dense<0.000000e+00> : vector<16x16xf32>
    %13 = tpu.matmul %12, %11, %cst_18 {dimension_numbers = #tpu.dot_dimension_numbers<[1], [0], [0], [1], [0, 0, 1, 1], [], []>, precision = #tpu.contract_precision<fp32>} : vector<16x16xf32>, vector<16x16xf32>, vector<16x16xf32> -> vector<16x16xf32>
    %14 = arith.addf %8, %13 : vector<16x16xf32>
    %c0_19 = arith.constant 0 : index
    %c0_20 = arith.constant 0 : index
    %c0_21 = arith.constant 0 : index
    %c1_22 = arith.constant 1 : index
    %c0_23 = arith.constant 0 : index
    %c0_24 = arith.constant 0 : index
    %15 = vector.load %arg1[%c0_19, %c0_20, %c0_21, %c1_22, %c0_23, %c0_24] : memref<1x5x2x5x2x16xf32, #tpu.memory_space<vmem>>, vector<1x4x1x4x1x16xf32>
    %16 = vector.shape_cast %15 : vector<1x4x1x4x1x16xf32> to vector<4x4x16xf32>
    %c32 = arith.constant 32 : index
    %c0_25 = arith.constant 0 : index
    %17 = vector.load %arg2[%c32, %c0_25] : memref<144x16xf32, #tpu.memory_space<vmem>>, vector<16x16xf32>
    %18 = vector.shape_cast %16 : vector<4x4x16xf32> to vector<16x16xf32>
    %cst_26 = arith.constant dense<0.000000e+00> : vector<16x16xf32>
    %19 = tpu.matmul %18, %17, %cst_26 {dimension_numbers = #tpu.dot_dimension_numbers<[1], [0], [0], [1], [0, 0, 1, 1], [], []>, precision = #tpu.contract_precision<fp32>} : vector<16x16xf32>, vector<16x16xf32>, vector<16x16xf32> -> vector<16x16xf32>
    %20 = arith.addf %14, %19 : vector<16x16xf32>
    %c0_27 = arith.constant 0 : index
    %c0_28 = arith.constant 0 : index
    %c1_29 = arith.constant 1 : index
    %c0_30 = arith.constant 0 : index
    %c0_31 = arith.constant 0 : index
    %c0_32 = arith.constant 0 : index
    %21 = vector.load %arg1[%c0_27, %c0_28, %c1_29, %c0_30, %c0_31, %c0_32] : memref<1x5x2x5x2x16xf32, #tpu.memory_space<vmem>>, vector<1x4x1x4x1x16xf32>
    %22 = vector.shape_cast %21 : vector<1x4x1x4x1x16xf32> to vector<4x4x16xf32>
    %c48 = arith.constant 48 : index
    %c0_33 = arith.constant 0 : index
    %23 = vector.load %arg2[%c48, %c0_33] : memref<144x16xf32, #tpu.memory_space<vmem>>, vector<16x16xf32>
    %24 = vector.shape_cast %22 : vector<4x4x16xf32> to vector<16x16xf32>
    %cst_34 = arith.constant dense<0.000000e+00> : vector<16x16xf32>
    %25 = tpu.matmul %24, %23, %cst_34 {dimension_numbers = #tpu.dot_dimension_numbers<[1], [0], [0], [1], [0, 0, 1, 1], [], []>, precision = #tpu.contract_precision<fp32>} : vector<16x16xf32>, vector<16x16xf32>, vector<16x16xf32> -> vector<16x16xf32>
    %26 = arith.addf %20, %25 : vector<16x16xf32>
    %c0_35 = arith.constant 0 : index
    %c0_36 = arith.constant 0 : index
    %c1_37 = arith.constant 1 : index
    %c0_38 = arith.constant 0 : index
    %c1_39 = arith.constant 1 : index
    %c0_40 = arith.constant 0 : index
    %27 = vector.load %arg1[%c0_35, %c0_36, %c1_37, %c0_38, %c1_39, %c0_40] : memref<1x5x2x5x2x16xf32, #tpu.memory_space<vmem>>, vector<1x4x1x4x1x16xf32>
    %28 = vector.shape_cast %27 : vector<1x4x1x4x1x16xf32> to vector<4x4x16xf32>
    %c64 = arith.constant 64 : index
    %c0_41 = arith.constant 0 : index
    %29 = vector.load %arg2[%c64, %c0_41] : memref<144x16xf32, #tpu.memory_space<vmem>>, vector<16x16xf32>
    %30 = vector.shape_cast %28 : vector<4x4x16xf32> to vector<16x16xf32>
    %cst_42 = arith.constant dense<0.000000e+00> : vector<16x16xf32>
    %31 = tpu.matmul %30, %29, %cst_42 {dimension_numbers = #tpu.dot_dimension_numbers<[1], [0], [0], [1], [0, 0, 1, 1], [], []>, precision = #tpu.contract_precision<fp32>} : vector<16x16xf32>, vector<16x16xf32>, vector<16x16xf32> -> vector<16x16xf32>
    %32 = arith.addf %26, %31 : vector<16x16xf32>
    %c0_43 = arith.constant 0 : index
    %c0_44 = arith.constant 0 : index
    %c1_45 = arith.constant 1 : index
    %c1_46 = arith.constant 1 : index
    %c0_47 = arith.constant 0 : index
    %c0_48 = arith.constant 0 : index
    %33 = vector.load %arg1[%c0_43, %c0_44, %c1_45, %c1_46, %c0_47, %c0_48] : memref<1x5x2x5x2x16xf32, #tpu.memory_space<vmem>>, vector<1x4x1x4x1x16xf32>
    %34 = vector.shape_cast %33 : vector<1x4x1x4x1x16xf32> to vector<4x4x16xf32>
    %c80 = arith.constant 80 : index
    %c0_49 = arith.constant 0 : index
    %35 = vector.load %arg2[%c80, %c0_49] : memref<144x16xf32, #tpu.memory_space<vmem>>, vector<16x16xf32>
    %36 = vector.shape_cast %34 : vector<4x4x16xf32> to vector<16x16xf32>
    %cst_50 = arith.constant dense<0.000000e+00> : vector<16x16xf32>
    %37 = tpu.matmul %36, %35, %cst_50 {dimension_numbers = #tpu.dot_dimension_numbers<[1], [0], [0], [1], [0, 0, 1, 1], [], []>, precision = #tpu.contract_precision<fp32>} : vector<16x16xf32>, vector<16x16xf32>, vector<16x16xf32> -> vector<16x16xf32>
    %38 = arith.addf %32, %37 : vector<16x16xf32>
    %c0_51 = arith.constant 0 : index
    %c1_52 = arith.constant 1 : index
    %c0_53 = arith.constant 0 : index
    %c0_54 = arith.constant 0 : index
    %c0_55 = arith.constant 0 : index
    %c0_56 = arith.constant 0 : index
    %39 = vector.load %arg1[%c0_51, %c1_52, %c0_53, %c0_54, %c0_55, %c0_56] : memref<1x5x2x5x2x16xf32, #tpu.memory_space<vmem>>, vector<1x4x1x4x1x16xf32>
    %40 = vector.shape_cast %39 : vector<1x4x1x4x1x16xf32> to vector<4x4x16xf32>
    %c96 = arith.constant 96 : index
    %c0_57 = arith.constant 0 : index
    %41 = vector.load %arg2[%c96, %c0_57] : memref<144x16xf32, #tpu.memory_space<vmem>>, vector<16x16xf32>
    %42 = vector.shape_cast %40 : vector<4x4x16xf32> to vector<16x16xf32>
    %cst_58 = arith.constant dense<0.000000e+00> : vector<16x16xf32>
    %43 = tpu.matmul %42, %41, %cst_58 {dimension_numbers = #tpu.dot_dimension_numbers<[1], [0], [0], [1], [0, 0, 1, 1], [], []>, precision = #tpu.contract_precision<fp32>} : vector<16x16xf32>, vector<16x16xf32>, vector<16x16xf32> -> vector<16x16xf32>
    %44 = arith.addf %38, %43 : vector<16x16xf32>
    %c0_59 = arith.constant 0 : index
    %c1_60 = arith.constant 1 : index
    %c0_61 = arith.constant 0 : index
    %c0_62 = arith.constant 0 : index
    %c1_63 = arith.constant 1 : index
    %c0_64 = arith.constant 0 : index
    %45 = vector.load %arg1[%c0_59, %c1_60, %c0_61, %c0_62, %c1_63, %c0_64] : memref<1x5x2x5x2x16xf32, #tpu.memory_space<vmem>>, vector<1x4x1x4x1x16xf32>
    %46 = vector.shape_cast %45 : vector<1x4x1x4x1x16xf32> to vector<4x4x16xf32>
    %c112 = arith.constant 112 : index
    %c0_65 = arith.constant 0 : index
    %47 = vector.load %arg2[%c112, %c0_65] : memref<144x16xf32, #tpu.memory_space<vmem>>, vector<16x16xf32>
    %48 = vector.shape_cast %46 : vector<4x4x16xf32> to vector<16x16xf32>
    %cst_66 = arith.constant dense<0.000000e+00> : vector<16x16xf32>
    %49 = tpu.matmul %48, %47, %cst_66 {dimension_numbers = #tpu.dot_dimension_numbers<[1], [0], [0], [1], [0, 0, 1, 1], [], []>, precision = #tpu.contract_precision<fp32>} : vector<16x16xf32>, vector<16x16xf32>, vector<16x16xf32> -> vector<16x16xf32>
    %50 = arith.addf %44, %49 : vector<16x16xf32>
    %c0_67 = arith.constant 0 : index
    %c1_68 = arith.constant 1 : index
    %c0_69 = arith.constant 0 : index
    %c1_70 = arith.constant 1 : index
    %c0_71 = arith.constant 0 : index
    %c0_72 = arith.constant 0 : index
    %51 = vector.load %arg1[%c0_67, %c1_68, %c0_69, %c1_70, %c0_71, %c0_72] : memref<1x5x2x5x2x16xf32, #tpu.memory_space<vmem>>, vector<1x4x1x4x1x16xf32>
    %52 = vector.shape_cast %51 : vector<1x4x1x4x1x16xf32> to vector<4x4x16xf32>
    %c128 = arith.constant 128 : index
    %c0_73 = arith.constant 0 : index
    %53 = vector.load %arg2[%c128, %c0_73] : memref<144x16xf32, #tpu.memory_space<vmem>>, vector<16x16xf32>
    %54 = vector.shape_cast %52 : vector<4x4x16xf32> to vector<16x16xf32>
    %cst_74 = arith.constant dense<0.000000e+00> : vector<16x16xf32>
    %55 = tpu.matmul %54, %53, %cst_74 {dimension_numbers = #tpu.dot_dimension_numbers<[1], [0], [0], [1], [0, 0, 1, 1], [], []>, precision = #tpu.contract_precision<fp32>} : vector<16x16xf32>, vector<16x16xf32>, vector<16x16xf32> -> vector<16x16xf32>
    %56 = arith.addf %50, %55 : vector<16x16xf32>
    %c0_75 = arith.constant 0 : index
    %c0_76 = arith.constant 0 : index
    %57 = vector.load %arg3[%c0_75, %c0_76] : memref<1x16xf32, #tpu.memory_space<vmem>>, vector<1x16xf32>
    %58 = vector.shape_cast %57 : vector<1x16xf32> to vector<16xf32>
    %59 = vector.shape_cast %58 : vector<16xf32> to vector<1x16xf32>
    %60 = vector.broadcast %59 : vector<1x16xf32> to vector<16x16xf32>
    %61 = arith.addf %56, %60 : vector<16x16xf32>
    %62 = vector.shape_cast %61 : vector<16x16xf32> to vector<4x4x16xf32>
    %c1_77 = arith.constant 1 : index
    %c1_78 = arith.constant 1 : index
    %c0_79 = arith.constant 0 : index
    %63 = vector.load %arg7[%c1_77, %c1_78, %c0_79] : memref<6x6x16xf32, #tpu.memory_space<vmem>>, vector<4x4x16xf32>
    tpu.vector_store %arg7[%c1_77, %c1_78, %c0_79], %62 {strides = array<i32>} : memref<6x6x16xf32, #tpu.memory_space<vmem>>, vector<4x4x16xf32>,
    %cst_80 = arith.constant 0.000000e+00 : f32
    %64 = vector.broadcast %cst_80 : f32 to vector<4x4x16xf32>
    %c0_81 = arith.constant 0 : index
    %c0_82 = arith.constant 0 : index
    %c0_83 = arith.constant 0 : index
    %65 = vector.load %arg7[%c0_81, %c0_82, %c0_83] : memref<6x6x16xf32, #tpu.memory_space<vmem>>, vector<4x4x16xf32>
    %c0_84 = arith.constant 0 : index
    %c0_85 = arith.constant 0 : index
    %66 = vector.load %arg4[%c0_84, %c0_85] : memref<9x16xf32, #tpu.memory_space<vmem>>, vector<1x16xf32>
    %67 = vector.shape_cast %66 : vector<1x16xf32> to vector<16xf32>
    %68 = vector.shape_cast %67 : vector<16xf32> to vector<1x1x16xf32>
    %69 = vector.broadcast %68 : vector<1x1x16xf32> to vector<4x4x16xf32>
    %70 = arith.mulf %65, %69 : vector<4x4x16xf32>
    %71 = arith.addf %64, %70 : vector<4x4x16xf32>
    %c0_86 = arith.constant 0 : index
    %c1_87 = arith.constant 1 : index
    %c0_88 = arith.constant 0 : index
    %72 = vector.load %arg7[%c0_86, %c1_87, %c0_88] : memref<6x6x16xf32, #tpu.memory_space<vmem>>, vector<4x4x16xf32>
    %c1_89 = arith.constant 1 : index
    %c0_90 = arith.constant 0 : index
    %73 = vector.load %arg4[%c1_89, %c0_90] : memref<9x16xf32, #tpu.memory_space<vmem>>, vector<1x16xf32>
    %74 = vector.shape_cast %73 : vector<1x16xf32> to vector<16xf32>
    %75 = vector.shape_cast %74 : vector<16xf32> to vector<1x1x16xf32>
    %76 = vector.broadcast %75 : vector<1x1x16xf32> to vector<4x4x16xf32>
    %77 = arith.mulf %72, %76 : vector<4x4x16xf32>
    %78 = arith.addf %71, %77 : vector<4x4x16xf32>
    %c0_91 = arith.constant 0 : index
    %c2 = arith.constant 2 : index
    %c0_92 = arith.constant 0 : index
    %79 = vector.load %arg7[%c0_91, %c2, %c0_92] : memref<6x6x16xf32, #tpu.memory_space<vmem>>, vector<4x4x16xf32>
    %c2_93 = arith.constant 2 : index
    %c0_94 = arith.constant 0 : index
    %80 = vector.load %arg4[%c2_93, %c0_94] : memref<9x16xf32, #tpu.memory_space<vmem>>, vector<1x16xf32>
    %81 = vector.shape_cast %80 : vector<1x16xf32> to vector<16xf32>
    %82 = vector.shape_cast %81 : vector<16xf32> to vector<1x1x16xf32>
    %83 = vector.broadcast %82 : vector<1x1x16xf32> to vector<4x4x16xf32>
    %84 = arith.mulf %79, %83 : vector<4x4x16xf32>
    %85 = arith.addf %78, %84 : vector<4x4x16xf32>
    %c1_95 = arith.constant 1 : index
    %c0_96 = arith.constant 0 : index
    %c0_97 = arith.constant 0 : index
    %86 = vector.load %arg7[%c1_95, %c0_96, %c0_97] : memref<6x6x16xf32, #tpu.memory_space<vmem>>, vector<4x4x16xf32>
    %c3 = arith.constant 3 : index
    %c0_98 = arith.constant 0 : index
    %87 = vector.load %arg4[%c3, %c0_98] : memref<9x16xf32, #tpu.memory_space<vmem>>, vector<1x16xf32>
    %88 = vector.shape_cast %87 : vector<1x16xf32> to vector<16xf32>
    %89 = vector.shape_cast %88 : vector<16xf32> to vector<1x1x16xf32>
    %90 = vector.broadcast %89 : vector<1x1x16xf32> to vector<4x4x16xf32>
    %91 = arith.mulf %86, %90 : vector<4x4x16xf32>
    %92 = arith.addf %85, %91 : vector<4x4x16xf32>
    %c1_99 = arith.constant 1 : index
    %c1_100 = arith.constant 1 : index
    %c0_101 = arith.constant 0 : index
    %93 = vector.load %arg7[%c1_99, %c1_100, %c0_101] : memref<6x6x16xf32, #tpu.memory_space<vmem>>, vector<4x4x16xf32>
    %c4 = arith.constant 4 : index
    %c0_102 = arith.constant 0 : index
    %94 = vector.load %arg4[%c4, %c0_102] : memref<9x16xf32, #tpu.memory_space<vmem>>, vector<1x16xf32>
    %95 = vector.shape_cast %94 : vector<1x16xf32> to vector<16xf32>
    %96 = vector.shape_cast %95 : vector<16xf32> to vector<1x1x16xf32>
    %97 = vector.broadcast %96 : vector<1x1x16xf32> to vector<4x4x16xf32>
    %98 = arith.mulf %93, %97 : vector<4x4x16xf32>
    %99 = arith.addf %92, %98 : vector<4x4x16xf32>
    %c1_103 = arith.constant 1 : index
    %c2_104 = arith.constant 2 : index
    %c0_105 = arith.constant 0 : index
    %100 = vector.load %arg7[%c1_103, %c2_104, %c0_105] : memref<6x6x16xf32, #tpu.memory_space<vmem>>, vector<4x4x16xf32>
    %c5 = arith.constant 5 : index
    %c0_106 = arith.constant 0 : index
    %101 = vector.load %arg4[%c5, %c0_106] : memref<9x16xf32, #tpu.memory_space<vmem>>, vector<1x16xf32>
    %102 = vector.shape_cast %101 : vector<1x16xf32> to vector<16xf32>
    %103 = vector.shape_cast %102 : vector<16xf32> to vector<1x1x16xf32>
    %104 = vector.broadcast %103 : vector<1x1x16xf32> to vector<4x4x16xf32>
    %105 = arith.mulf %100, %104 : vector<4x4x16xf32>
    %106 = arith.addf %99, %105 : vector<4x4x16xf32>
    %c2_107 = arith.constant 2 : index
    %c0_108 = arith.constant 0 : index
    %c0_109 = arith.constant 0 : index
    %107 = vector.load %arg7[%c2_107, %c0_108, %c0_109] : memref<6x6x16xf32, #tpu.memory_space<vmem>>, vector<4x4x16xf32>
    %c6 = arith.constant 6 : index
    %c0_110 = arith.constant 0 : index
    %108 = vector.load %arg4[%c6, %c0_110] : memref<9x16xf32, #tpu.memory_space<vmem>>, vector<1x16xf32>
    %109 = vector.shape_cast %108 : vector<1x16xf32> to vector<16xf32>
    %110 = vector.shape_cast %109 : vector<16xf32> to vector<1x1x16xf32>
    %111 = vector.broadcast %110 : vector<1x1x16xf32> to vector<4x4x16xf32>
    %112 = arith.mulf %107, %111 : vector<4x4x16xf32>
    %113 = arith.addf %106, %112 : vector<4x4x16xf32>
    %c2_111 = arith.constant 2 : index
    %c1_112 = arith.constant 1 : index
    %c0_113 = arith.constant 0 : index
    %114 = vector.load %arg7[%c2_111, %c1_112, %c0_113] : memref<6x6x16xf32, #tpu.memory_space<vmem>>, vector<4x4x16xf32>
    %c7 = arith.constant 7 : index
    %c0_114 = arith.constant 0 : index
    %115 = vector.load %arg4[%c7, %c0_114] : memref<9x16xf32, #tpu.memory_space<vmem>>, vector<1x16xf32>
    %116 = vector.shape_cast %115 : vector<1x16xf32> to vector<16xf32>
    %117 = vector.shape_cast %116 : vector<16xf32> to vector<1x1x16xf32>
    %118 = vector.broadcast %117 : vector<1x1x16xf32> to vector<4x4x16xf32>
    %119 = arith.mulf %114, %118 : vector<4x4x16xf32>
    %120 = arith.addf %113, %119 : vector<4x4x16xf32>
    %c2_115 = arith.constant 2 : index
    %c2_116 = arith.constant 2 : index
    %c0_117 = arith.constant 0 : index
    %121 = vector.load %arg7[%c2_115, %c2_116, %c0_117] : memref<6x6x16xf32, #tpu.memory_space<vmem>>, vector<4x4x16xf32>
    %c8 = arith.constant 8 : index
    %c0_118 = arith.constant 0 : index
    %122 = vector.load %arg4[%c8, %c0_118] : memref<9x16xf32, #tpu.memory_space<vmem>>, vector<1x16xf32>
    %123 = vector.shape_cast %122 : vector<1x16xf32> to vector<16xf32>
    %124 = vector.shape_cast %123 : vector<16xf32> to vector<1x1x16xf32>
    %125 = vector.broadcast %124 : vector<1x1x16xf32> to vector<4x4x16xf32>
    %126 = arith.mulf %121, %125 : vector<4x4x16xf32>
    %127 = arith.addf %120, %126 : vector<4x4x16xf32>
    %c0_119 = arith.constant 0 : index
    %c0_120 = arith.constant 0 : index
    %128 = vector.load %arg5[%c0_119, %c0_120] : memref<1x16xf32, #tpu.memory_space<vmem>>, vector<1x16xf32>
    %129 = vector.shape_cast %128 : vector<1x16xf32> to vector<16xf32>
    %130 = vector.shape_cast %129 : vector<16xf32> to vector<1x1x16xf32>
    %131 = vector.broadcast %130 : vector<1x1x16xf32> to vector<4x4x16xf32>
    %132 = arith.addf %127, %131 : vector<4x4x16xf32>
    %133 = arith.maximumf %62, %132 : vector<4x4x16xf32>
    %c0_121 = arith.constant 0 : index
    %c0_122 = arith.constant 0 : index
    %c0_123 = arith.constant 0 : index
    %c0_124 = arith.constant 0 : index
    %134 = vector.load %arg6[%c0_121, %c0_122, %c0_123, %c0_124] : memref<1x4x4x16xf32, #tpu.memory_space<vmem>>, vector<1x4x4x16xf32>
    %135 = vector.shape_cast %134 : vector<1x4x4x16xf32> to vector<4x4x16xf32>
    %136 = vector.shape_cast %133 : vector<4x4x16xf32> to vector<1x4x4x16xf32>
    tpu.vector_store %arg6[%c0_121, %c0_122, %c0_123, %c0_124], %136 {strides = array<i32>} : memref<1x4x4x16xf32, #tpu.memory_space<vmem>>, vector<1x4x4x16xf32>,
    return
  }
  func.func @transform_0(%arg0: i32) -> (i32, i32, i32, i32, i32, i32) {
    %c0_i32 = arith.constant 0 : i32
    %c0_i32_0 = arith.constant 0 : i32
    %c0_i32_1 = arith.constant 0 : i32
    %c0_i32_2 = arith.constant 0 : i32
    %c0_i32_3 = arith.constant 0 : i32
    %c0_i32_4 = arith.constant 0 : i32
    return %arg0, %c0_i32, %c0_i32_0, %c0_i32_1, %c0_i32_2, %c0_i32_3 : i32, i32, i32, i32, i32, i32
  }
  func.func @transform_1(%arg0: i32) -> (i32, i32) {
    %c0_i32 = arith.constant 0 : i32
    %c0_i32_0 = arith.constant 0 : i32
    %c0_i32_1 = arith.constant 0 : i32
    return %c0_i32, %c0_i32_0 : i32, i32
  }
  func.func @transform_2(%arg0: i32) -> (i32, i32) {
    %c0_i32 = arith.constant 0 : i32
    %c0_i32_0 = arith.constant 0 : i32
    %c0_i32_1 = arith.constant 0 : i32
    return %c0_i32, %c0_i32_0 : i32, i32
  }
  func.func @transform_3(%arg0: i32) -> (i32, i32) {
    %c0_i32 = arith.constant 0 : i32
    %c0_i32_0 = arith.constant 0 : i32
    %c0_i32_1 = arith.constant 0 : i32
    return %c0_i32, %c0_i32_0 : i32, i32
  }
  func.func @transform_4(%arg0: i32) -> (i32, i32) {
    %c0_i32 = arith.constant 0 : i32
    %c0_i32_0 = arith.constant 0 : i32
    %c0_i32_1 = arith.constant 0 : i32
    return %c0_i32, %c0_i32_0 : i32, i32
  }
  func.func @transform_5(%arg0: i32) -> (i32, i32, i32, i32) {
    %c0_i32 = arith.constant 0 : i32
    %c0_i32_0 = arith.constant 0 : i32
    %c0_i32_1 = arith.constant 0 : i32
    %c0_i32_2 = arith.constant 0 : i32
    return %arg0, %c0_i32, %c0_i32_0, %c0_i32_1 : i32, i32, i32, i32
  }
}

module attributes {stable_mosaic.version = 11 : i64} {
  func.func @_pool_cat_cv4_kernel(%arg0: i32, %arg1: memref<1x4x4x16xf32, #tpu.memory_space<vmem>>, %arg2: memref<1x4x4x2x16xf32, #tpu.memory_space<vmem>>, %arg3: memref<16x32xf32, #tpu.memory_space<vmem>>, %arg4: memref<16x32xf32, #tpu.memory_space<vmem>>, %arg5: memref<1x32xf32, #tpu.memory_space<vmem>>, %arg6: memref<9x32xf32, #tpu.memory_space<vmem>>, %arg7: memref<1x32xf32, #tpu.memory_space<vmem>>, %arg8: memref<1x4x4x32xf32, #tpu.memory_space<vmem>>, %arg9: memref<6x6x32xf32, #tpu.memory_space<vmem>>) attributes {dimension_semantics = [#tpu.dimension_semantics<parallel>], iteration_bounds = array<i64: 2>, scalar_prefetch = 0 : i64, scratch_operands = 1 : i64, tpu.core_type = #tpu.core_type<tc>, window_params = [{transform_indices = @transform_0, window_bounds = array<i64: 1, 4, 4, 16>}, {transform_indices = @transform_1, window_bounds = array<i64: 1, 4, 4, 2, 16>}, {pipeline_mode = #tpu.pipeline_mode<synchronous>, transform_indices = @transform_2, window_bounds = array<i64: 16, 32>}, {pipeline_mode = #tpu.pipeline_mode<synchronous>, transform_indices = @transform_3, window_bounds = array<i64: 16, 32>}, {pipeline_mode = #tpu.pipeline_mode<synchronous>, transform_indices = @transform_4, window_bounds = array<i64: 1, 32>}, {pipeline_mode = #tpu.pipeline_mode<synchronous>, transform_indices = @transform_5, window_bounds = array<i64: 9, 32>}, {pipeline_mode = #tpu.pipeline_mode<synchronous>, transform_indices = @transform_6, window_bounds = array<i64: 1, 32>}, {transform_indices = @transform_7, window_bounds = array<i64: 1, 4, 4, 32>}]} {
    %cst = arith.constant 0.000000e+00 : f32
    %0 = vector.broadcast %cst : f32 to vector<6x6x32xf32>
    %c0 = arith.constant 0 : index
    %c0_0 = arith.constant 0 : index
    %c0_1 = arith.constant 0 : index
    %1 = vector.load %arg9[%c0, %c0_0, %c0_1] : memref<6x6x32xf32, #tpu.memory_space<vmem>>, vector<6x6x32xf32>
    tpu.vector_store %arg9[%c0, %c0_0, %c0_1], %0 {strides = array<i32>} : memref<6x6x32xf32, #tpu.memory_space<vmem>>, vector<6x6x32xf32>,
    %c0_2 = arith.constant 0 : index
    %c0_3 = arith.constant 0 : index
    %c0_4 = arith.constant 0 : index
    %c0_5 = arith.constant 0 : index
    %c0_6 = arith.constant 0 : index
    %2 = vector.load %arg2[%c0_2, %c0_3, %c0_4, %c0_5, %c0_6] : memref<1x4x4x2x16xf32, #tpu.memory_space<vmem>>, vector<1x4x4x2x16xf32>
    %3 = vector.shape_cast %2 : vector<1x4x4x2x16xf32> to vector<4x4x2x16xf32>
    %cst_7 = arith.constant dense<0xFF800000> : vector<4x4x16xf32>
    %4 = vector.multi_reduction <maximumf>, %3, %cst_7 [2] : vector<4x4x2x16xf32> to vector<4x4x16xf32>
    %c0_8 = arith.constant 0 : index
    %c0_9 = arith.constant 0 : index
    %c0_10 = arith.constant 0 : index
    %c0_11 = arith.constant 0 : index
    %5 = vector.load %arg1[%c0_8, %c0_9, %c0_10, %c0_11] : memref<1x4x4x16xf32, #tpu.memory_space<vmem>>, vector<1x4x4x16xf32>
    %6 = vector.shape_cast %5 : vector<1x4x4x16xf32> to vector<4x4x16xf32>
    %7 = vector.shape_cast %6 : vector<4x4x16xf32> to vector<16x16xf32>
    %c0_12 = arith.constant 0 : index
    %c0_13 = arith.constant 0 : index
    %8 = vector.load %arg3[%c0_12, %c0_13] : memref<16x32xf32, #tpu.memory_space<vmem>>, vector<16x32xf32>
    %cst_14 = arith.constant dense<0.000000e+00> : vector<16x32xf32>
    %9 = tpu.matmul %7, %8, %cst_14 {dimension_numbers = #tpu.dot_dimension_numbers<[1], [0], [0], [1], [0, 0, 1, 1], [], []>, precision = #tpu.contract_precision<fp32>} : vector<16x16xf32>, vector<16x32xf32>, vector<16x32xf32> -> vector<16x32xf32>
    %10 = vector.shape_cast %4 : vector<4x4x16xf32> to vector<16x16xf32>
    %c0_15 = arith.constant 0 : index
    %c0_16 = arith.constant 0 : index
    %11 = vector.load %arg4[%c0_15, %c0_16] : memref<16x32xf32, #tpu.memory_space<vmem>>, vector<16x32xf32>
    %cst_17 = arith.constant dense<0.000000e+00> : vector<16x32xf32>
    %12 = tpu.matmul %10, %11, %cst_17 {dimension_numbers = #tpu.dot_dimension_numbers<[1], [0], [0], [1], [0, 0, 1, 1], [], []>, precision = #tpu.contract_precision<fp32>} : vector<16x16xf32>, vector<16x32xf32>, vector<16x32xf32> -> vector<16x32xf32>
    %13 = arith.addf %9, %12 : vector<16x32xf32>
    %c0_18 = arith.constant 0 : index
    %c0_19 = arith.constant 0 : index
    %14 = vector.load %arg5[%c0_18, %c0_19] : memref<1x32xf32, #tpu.memory_space<vmem>>, vector<1x32xf32>
    %15 = vector.shape_cast %14 : vector<1x32xf32> to vector<32xf32>
    %16 = vector.shape_cast %15 : vector<32xf32> to vector<1x32xf32>
    %17 = vector.broadcast %16 : vector<1x32xf32> to vector<16x32xf32>
    %18 = arith.addf %13, %17 : vector<16x32xf32>
    %19 = vector.shape_cast %18 : vector<16x32xf32> to vector<4x4x32xf32>
    %c1 = arith.constant 1 : index
    %c1_20 = arith.constant 1 : index
    %c0_21 = arith.constant 0 : index
    %20 = vector.load %arg9[%c1, %c1_20, %c0_21] : memref<6x6x32xf32, #tpu.memory_space<vmem>>, vector<4x4x32xf32>
    tpu.vector_store %arg9[%c1, %c1_20, %c0_21], %19 {strides = array<i32>} : memref<6x6x32xf32, #tpu.memory_space<vmem>>, vector<4x4x32xf32>,
    %cst_22 = arith.constant 0.000000e+00 : f32
    %21 = vector.broadcast %cst_22 : f32 to vector<4x4x32xf32>
    %c0_23 = arith.constant 0 : index
    %c0_24 = arith.constant 0 : index
    %c0_25 = arith.constant 0 : index
    %22 = vector.load %arg9[%c0_23, %c0_24, %c0_25] : memref<6x6x32xf32, #tpu.memory_space<vmem>>, vector<4x4x32xf32>
    %c0_26 = arith.constant 0 : index
    %c0_27 = arith.constant 0 : index
    %23 = vector.load %arg6[%c0_26, %c0_27] : memref<9x32xf32, #tpu.memory_space<vmem>>, vector<1x32xf32>
    %24 = vector.shape_cast %23 : vector<1x32xf32> to vector<32xf32>
    %25 = vector.shape_cast %24 : vector<32xf32> to vector<1x1x32xf32>
    %26 = vector.broadcast %25 : vector<1x1x32xf32> to vector<4x4x32xf32>
    %27 = arith.mulf %22, %26 : vector<4x4x32xf32>
    %28 = arith.addf %21, %27 : vector<4x4x32xf32>
    %c0_28 = arith.constant 0 : index
    %c1_29 = arith.constant 1 : index
    %c0_30 = arith.constant 0 : index
    %29 = vector.load %arg9[%c0_28, %c1_29, %c0_30] : memref<6x6x32xf32, #tpu.memory_space<vmem>>, vector<4x4x32xf32>
    %c1_31 = arith.constant 1 : index
    %c0_32 = arith.constant 0 : index
    %30 = vector.load %arg6[%c1_31, %c0_32] : memref<9x32xf32, #tpu.memory_space<vmem>>, vector<1x32xf32>
    %31 = vector.shape_cast %30 : vector<1x32xf32> to vector<32xf32>
    %32 = vector.shape_cast %31 : vector<32xf32> to vector<1x1x32xf32>
    %33 = vector.broadcast %32 : vector<1x1x32xf32> to vector<4x4x32xf32>
    %34 = arith.mulf %29, %33 : vector<4x4x32xf32>
    %35 = arith.addf %28, %34 : vector<4x4x32xf32>
    %c0_33 = arith.constant 0 : index
    %c2 = arith.constant 2 : index
    %c0_34 = arith.constant 0 : index
    %36 = vector.load %arg9[%c0_33, %c2, %c0_34] : memref<6x6x32xf32, #tpu.memory_space<vmem>>, vector<4x4x32xf32>
    %c2_35 = arith.constant 2 : index
    %c0_36 = arith.constant 0 : index
    %37 = vector.load %arg6[%c2_35, %c0_36] : memref<9x32xf32, #tpu.memory_space<vmem>>, vector<1x32xf32>
    %38 = vector.shape_cast %37 : vector<1x32xf32> to vector<32xf32>
    %39 = vector.shape_cast %38 : vector<32xf32> to vector<1x1x32xf32>
    %40 = vector.broadcast %39 : vector<1x1x32xf32> to vector<4x4x32xf32>
    %41 = arith.mulf %36, %40 : vector<4x4x32xf32>
    %42 = arith.addf %35, %41 : vector<4x4x32xf32>
    %c1_37 = arith.constant 1 : index
    %c0_38 = arith.constant 0 : index
    %c0_39 = arith.constant 0 : index
    %43 = vector.load %arg9[%c1_37, %c0_38, %c0_39] : memref<6x6x32xf32, #tpu.memory_space<vmem>>, vector<4x4x32xf32>
    %c3 = arith.constant 3 : index
    %c0_40 = arith.constant 0 : index
    %44 = vector.load %arg6[%c3, %c0_40] : memref<9x32xf32, #tpu.memory_space<vmem>>, vector<1x32xf32>
    %45 = vector.shape_cast %44 : vector<1x32xf32> to vector<32xf32>
    %46 = vector.shape_cast %45 : vector<32xf32> to vector<1x1x32xf32>
    %47 = vector.broadcast %46 : vector<1x1x32xf32> to vector<4x4x32xf32>
    %48 = arith.mulf %43, %47 : vector<4x4x32xf32>
    %49 = arith.addf %42, %48 : vector<4x4x32xf32>
    %c1_41 = arith.constant 1 : index
    %c1_42 = arith.constant 1 : index
    %c0_43 = arith.constant 0 : index
    %50 = vector.load %arg9[%c1_41, %c1_42, %c0_43] : memref<6x6x32xf32, #tpu.memory_space<vmem>>, vector<4x4x32xf32>
    %c4 = arith.constant 4 : index
    %c0_44 = arith.constant 0 : index
    %51 = vector.load %arg6[%c4, %c0_44] : memref<9x32xf32, #tpu.memory_space<vmem>>, vector<1x32xf32>
    %52 = vector.shape_cast %51 : vector<1x32xf32> to vector<32xf32>
    %53 = vector.shape_cast %52 : vector<32xf32> to vector<1x1x32xf32>
    %54 = vector.broadcast %53 : vector<1x1x32xf32> to vector<4x4x32xf32>
    %55 = arith.mulf %50, %54 : vector<4x4x32xf32>
    %56 = arith.addf %49, %55 : vector<4x4x32xf32>
    %c1_45 = arith.constant 1 : index
    %c2_46 = arith.constant 2 : index
    %c0_47 = arith.constant 0 : index
    %57 = vector.load %arg9[%c1_45, %c2_46, %c0_47] : memref<6x6x32xf32, #tpu.memory_space<vmem>>, vector<4x4x32xf32>
    %c5 = arith.constant 5 : index
    %c0_48 = arith.constant 0 : index
    %58 = vector.load %arg6[%c5, %c0_48] : memref<9x32xf32, #tpu.memory_space<vmem>>, vector<1x32xf32>
    %59 = vector.shape_cast %58 : vector<1x32xf32> to vector<32xf32>
    %60 = vector.shape_cast %59 : vector<32xf32> to vector<1x1x32xf32>
    %61 = vector.broadcast %60 : vector<1x1x32xf32> to vector<4x4x32xf32>
    %62 = arith.mulf %57, %61 : vector<4x4x32xf32>
    %63 = arith.addf %56, %62 : vector<4x4x32xf32>
    %c2_49 = arith.constant 2 : index
    %c0_50 = arith.constant 0 : index
    %c0_51 = arith.constant 0 : index
    %64 = vector.load %arg9[%c2_49, %c0_50, %c0_51] : memref<6x6x32xf32, #tpu.memory_space<vmem>>, vector<4x4x32xf32>
    %c6 = arith.constant 6 : index
    %c0_52 = arith.constant 0 : index
    %65 = vector.load %arg6[%c6, %c0_52] : memref<9x32xf32, #tpu.memory_space<vmem>>, vector<1x32xf32>
    %66 = vector.shape_cast %65 : vector<1x32xf32> to vector<32xf32>
    %67 = vector.shape_cast %66 : vector<32xf32> to vector<1x1x32xf32>
    %68 = vector.broadcast %67 : vector<1x1x32xf32> to vector<4x4x32xf32>
    %69 = arith.mulf %64, %68 : vector<4x4x32xf32>
    %70 = arith.addf %63, %69 : vector<4x4x32xf32>
    %c2_53 = arith.constant 2 : index
    %c1_54 = arith.constant 1 : index
    %c0_55 = arith.constant 0 : index
    %71 = vector.load %arg9[%c2_53, %c1_54, %c0_55] : memref<6x6x32xf32, #tpu.memory_space<vmem>>, vector<4x4x32xf32>
    %c7 = arith.constant 7 : index
    %c0_56 = arith.constant 0 : index
    %72 = vector.load %arg6[%c7, %c0_56] : memref<9x32xf32, #tpu.memory_space<vmem>>, vector<1x32xf32>
    %73 = vector.shape_cast %72 : vector<1x32xf32> to vector<32xf32>
    %74 = vector.shape_cast %73 : vector<32xf32> to vector<1x1x32xf32>
    %75 = vector.broadcast %74 : vector<1x1x32xf32> to vector<4x4x32xf32>
    %76 = arith.mulf %71, %75 : vector<4x4x32xf32>
    %77 = arith.addf %70, %76 : vector<4x4x32xf32>
    %c2_57 = arith.constant 2 : index
    %c2_58 = arith.constant 2 : index
    %c0_59 = arith.constant 0 : index
    %78 = vector.load %arg9[%c2_57, %c2_58, %c0_59] : memref<6x6x32xf32, #tpu.memory_space<vmem>>, vector<4x4x32xf32>
    %c8 = arith.constant 8 : index
    %c0_60 = arith.constant 0 : index
    %79 = vector.load %arg6[%c8, %c0_60] : memref<9x32xf32, #tpu.memory_space<vmem>>, vector<1x32xf32>
    %80 = vector.shape_cast %79 : vector<1x32xf32> to vector<32xf32>
    %81 = vector.shape_cast %80 : vector<32xf32> to vector<1x1x32xf32>
    %82 = vector.broadcast %81 : vector<1x1x32xf32> to vector<4x4x32xf32>
    %83 = arith.mulf %78, %82 : vector<4x4x32xf32>
    %84 = arith.addf %77, %83 : vector<4x4x32xf32>
    %c0_61 = arith.constant 0 : index
    %c0_62 = arith.constant 0 : index
    %85 = vector.load %arg7[%c0_61, %c0_62] : memref<1x32xf32, #tpu.memory_space<vmem>>, vector<1x32xf32>
    %86 = vector.shape_cast %85 : vector<1x32xf32> to vector<32xf32>
    %87 = vector.shape_cast %86 : vector<32xf32> to vector<1x1x32xf32>
    %88 = vector.broadcast %87 : vector<1x1x32xf32> to vector<4x4x32xf32>
    %89 = arith.addf %84, %88 : vector<4x4x32xf32>
    %90 = arith.maximumf %19, %89 : vector<4x4x32xf32>
    %c0_63 = arith.constant 0 : index
    %c0_64 = arith.constant 0 : index
    %c0_65 = arith.constant 0 : index
    %c0_66 = arith.constant 0 : index
    %91 = vector.load %arg8[%c0_63, %c0_64, %c0_65, %c0_66] : memref<1x4x4x32xf32, #tpu.memory_space<vmem>>, vector<1x4x4x32xf32>
    %92 = vector.shape_cast %91 : vector<1x4x4x32xf32> to vector<4x4x32xf32>
    %93 = vector.shape_cast %90 : vector<4x4x32xf32> to vector<1x4x4x32xf32>
    tpu.vector_store %arg8[%c0_63, %c0_64, %c0_65, %c0_66], %93 {strides = array<i32>} : memref<1x4x4x32xf32, #tpu.memory_space<vmem>>, vector<1x4x4x32xf32>,
    return
  }
  func.func @transform_0(%arg0: i32) -> (i32, i32, i32, i32) {
    %c0_i32 = arith.constant 0 : i32
    %c0_i32_0 = arith.constant 0 : i32
    %c0_i32_1 = arith.constant 0 : i32
    %c0_i32_2 = arith.constant 0 : i32
    return %arg0, %c0_i32, %c0_i32_0, %c0_i32_1 : i32, i32, i32, i32
  }
  func.func @transform_1(%arg0: i32) -> (i32, i32, i32, i32, i32) {
    %c0_i32 = arith.constant 0 : i32
    %c0_i32_0 = arith.constant 0 : i32
    %c0_i32_1 = arith.constant 0 : i32
    %c0_i32_2 = arith.constant 0 : i32
    %c0_i32_3 = arith.constant 0 : i32
    return %arg0, %c0_i32, %c0_i32_0, %c0_i32_1, %c0_i32_2 : i32, i32, i32, i32, i32
  }
  func.func @transform_2(%arg0: i32) -> (i32, i32) {
    %c0_i32 = arith.constant 0 : i32
    %c0_i32_0 = arith.constant 0 : i32
    %c0_i32_1 = arith.constant 0 : i32
    return %c0_i32, %c0_i32_0 : i32, i32
  }
  func.func @transform_3(%arg0: i32) -> (i32, i32) {
    %c0_i32 = arith.constant 0 : i32
    %c0_i32_0 = arith.constant 0 : i32
    %c0_i32_1 = arith.constant 0 : i32
    return %c0_i32, %c0_i32_0 : i32, i32
  }
  func.func @transform_4(%arg0: i32) -> (i32, i32) {
    %c0_i32 = arith.constant 0 : i32
    %c0_i32_0 = arith.constant 0 : i32
    %c0_i32_1 = arith.constant 0 : i32
    return %c0_i32, %c0_i32_0 : i32, i32
  }
  func.func @transform_5(%arg0: i32) -> (i32, i32) {
    %c0_i32 = arith.constant 0 : i32
    %c0_i32_0 = arith.constant 0 : i32
    %c0_i32_1 = arith.constant 0 : i32
    return %c0_i32, %c0_i32_0 : i32, i32
  }
  func.func @transform_6(%arg0: i32) -> (i32, i32) {
    %c0_i32 = arith.constant 0 : i32
    %c0_i32_0 = arith.constant 0 : i32
    %c0_i32_1 = arith.constant 0 : i32
    return %c0_i32, %c0_i32_0 : i32, i32
  }
  func.func @transform_7(%arg0: i32) -> (i32, i32, i32, i32) {
    %c0_i32 = arith.constant 0 : i32
    %c0_i32_0 = arith.constant 0 : i32
    %c0_i32_1 = arith.constant 0 : i32
    %c0_i32_2 = arith.constant 0 : i32
    return %arg0, %c0_i32, %c0_i32_0, %c0_i32_1 : i32, i32, i32, i32
  }
}

</mosaic_0001>

<bundles_post_ra>
// kernel: stem_forward.5
= control target key start
LH: loop header
LB: loop body
LE: loop exit
PB: predicated region body
PF: predicated region fallthrough
CT: control target
= control target key end

     0   :  { %12 = vsyncpa [#allocation4], 0  ;;  %s2447_s0 = inlined_call_operand.vmem [shape: f32[2,4,4,16], index: 0, kind: input, shape index: {}]   ;;  %s2448_s1 = inlined_call_operand.vmem [shape: f32[2,4,4,2,16], index: 1, kind: input, shape index: {}]   ;;  %s2449_s2 = inlined_call_operand.vmem [shape: f32[16,32], index: 2, kind: input, shape index: {}]   ;;  %s2450_s3 = inlined_call_operand.vmem [shape: f32[16,32], index: 3, kind: input, shape index: {}]   ;;  %s2451_s4 = inlined_call_operand.vmem [shape: f32[1,32], index: 4, kind: input, shape index: {}]   ;;  %s2452_s5 = inlined_call_operand.vmem [shape: f32[9,32], index: 5, kind: input, shape index: {}]   ;;  %s2453_s6 = inlined_call_operand.vmem [shape: f32[1,32], index: 6, kind: input, shape index: {}]   ;;  %s2454_s7 = inlined_call_operand.hbm [shape: f32[2,4,4,32], index: 7, kind: output, shape index: {}]  }
   0x1   :  { %14 = vsyncpa [#allocation4 + $0x1], 0  ;;  %s2089_s24 = smov 0   ;;  %s2091_s25 = smov 0  }
   0x2   :  { %s2093_s26 = smov 0   ;;  %s2095_s27 = smov 0  }
   0x3 LB: > { %s2110_s28 = sadd.s32 4294967295, %s2043_s27   ;;  %s1779_s29 = sadd.s32 4294967294, %s2043_s27   ;;  %s2043_s27 = sphi %s2095_s27, %s2460_s27   ;;  %s2039_s26 = sphi %s2093_s26, %s2459_s26   ;;  %s2035_s25 = sphi %s2091_s25, %s2458_s25   ;;  %s2031_s24 = sphi %s2089_s24, %s2457_s24  }
   0x4   : > { %s2114_s30 = sadd.s32 1, %s2043_s27   ;;  %s184_s8 = sadd.s32 1, %s2039_s26 }
   0x5   : > { %s181_s9 = ssub.s32 %s2043_s27, %s2114_s30  ;;  %p194_p0 = scmp.ne.s32.totalorder %s2039_s26, %s2035_s25 }
   0x6   : > { %p182_p1 = scmp.eq.s32.totalorder %s181_s9, 0  ;;  %p195_p2 = scmp.eq.s32.totalorder %s2110_s28, 1 }
   0x7   : > { %p200_p3 = scmp.ne.s32.totalorder %s2035_s25, %s2031_s24  ;;  %p201_p4 = scmp.eq.s32.totalorder %s1779_s29, 1 }
   0x8   : > { %s2125_s10 = scalar_select %p182_p1, %s2039_s26, %s184_s8  }
   0x9   : > { %p2127_p5 = por %p195_p2, %p194_p0  ;;  %p2131_p6 = por %p201_p4, %p200_p3 }
   0xa   : > { %p1782_p7 = scmp.ge.s32.totalorder %s2043_s27, 1  ;;  %p250_p8 = scmp.lt.s32.totalorder %s2043_s27, 3 }
   0xc   : > { %p251_p9 = pnand %p1782_p7, %p250_p8 }
   0xd   : > { %p287_p10 = scmp.lt.s32.totalorder (!%p251_p9), %s2110_s28, 1  ;;  %s1806_s13 = sshll.u32 (!%p251_p9), %s2110_s28, 8 }
   0xe   : > { %254 = sbr.rel (%p251_p9) target bundleno = 351 (0x15f), region = 48  ;;  %s2046_s19 = smov (!%p251_p9), [#allocation3]  }
   0xf   : > { %s1987_s20 = sshll.u32 (!%p251_p9), %s2046_s19, 4  ;;  %s1988_s20 = int_to_ptr.vmem [resolvable:$false] %s1987_s20 }
  0x13   : > { %v440_v0 = vld [vmem:[%s2450_s3 + $0x8] sm:$0xff]  ;;  %v439_v1 = vld [vmem:[%s2450_s3] sm:$0xff]  ;;  %s2149_s17 = scalar_select %p287_p10, %s2110_s28, 1  ;;  %vm320_vm0 = vcmask 123904   ;;  %vm457_vm1 = vcmask 1041409   ;;  %vm459_vm2 = vcmask 1042434  }
  0x14   : > { %v2144_v2 = vand.u32 4294901760, %v440_v0  ;;  %v2146_v3 = vand.u32 4294901760, %v439_v1  ;;  %vm461_vm3 = vcmask 1043459   ;;  %vm463_vm4 = vcmask 1044484  }
  0x15   : > { %s1805_s18 = sshll.u32 %s2149_s17, 5  ;;  %s1804_s22 = sshll.u32 %s2149_s17, 4  ;;  %vm465_vm5 = vcmask 1045509   ;;  %vm467_vm6 = vcmask 1046534   ;;  %vm469_vm7 = vcmask 1047559   ;;  %vm478_vm8 = vcmask 130048  }
  0x16   : > { %1855 = vmatprep.subr.mxu0 %v2144_v2  ;;  %v2153_v4 = vsub.f32 %v440_v0, %v2144_v2  ;;  %v2156_v5 = vsub.f32 %v439_v1, %v2146_v3  ;;  %s2170_s21 = scalar_lea.vmem %s2448_s1, %s1805_s18  ;;  %s2198_s8 = scalar_lea.vmem %s2447_s0, %s1804_s22  ;;  %vm297_vm9 = vcmask 259072   ;;  %vm1513_vm10 = vcmask 257024  }
  0x17   : > { %1856 = vmatpush3.msra.mxu0 %v2144_v2  ;;  %v304_v8 = vld [vmem:[%s2170_s21] sm:$0x3]  ;;  %v305_v9 = vld [vmem:[%s2170_s21 + $0x2] sm:$0x3]  ;;  %v306_v10 = vld [vmem:[%s2170_s21 + $0x4] sm:$0x3]  ;;  %s2399_s17 = scalar_lea.hbm %s2454_s7, %s1806_s13 }
  0x18   : > { %v2161_v6 = vand.u32 4294901760, %v2153_v4  ;;  %1857 = vmatprep.subr.mxu0 %v2146_v3  ;;  %v2165_v7 = vand.u32 4294901760, %v2156_v5  ;;  %v307_v13 = vld [vmem:[%s2170_s21 + $0x6] sm:$0x3]  ;;  %v308_v14 = vld [vmem:[%s2170_s21 + $0x8] sm:$0x3] }
  0x19   : > { %1858 = vmatpush3.msra.mxu0 %v2146_v3  ;;  %v309_v15 = vld [vmem:[%s2170_s21 + $0xa] sm:$0x3]  ;;  %v310_v16 = vld [vmem:[%s2170_s21 + $0xc] sm:$0x3]  ;;  %v321_v17 = vsel %vm320_vm0, %v304_v8, -inf  ;;  %v328_v18 = vsel %vm320_vm0, %v305_v9, -inf }
  0x1a   : > { %v602_v11 = vsub.f32 %v2153_v4, %v2161_v6  ;;  %v609_v12 = vsub.f32 %v2156_v5, %v2165_v7  ;;  %1869 = vmatprep.subr.mxu0 %v2153_v4  ;;  %v311_v21 = vld [vmem:[%s2170_s21 + $0xe] sm:$0x3]  ;;  %v322_v22 = vrot.slane %v321_v17, 4  ;;  %v329_v23 = vrot.slane %v328_v18, 4  ;;  %v312_v60 = vld [vmem:[%s2170_s21 + $0x10] sm:$0x3] }
  0x1b   : > { %v335_v24 = vsel %vm320_vm0, %v306_v10, -inf  ;;  %v342_v25 = vsel %vm320_vm0, %v307_v13, -inf  ;;  %v349_v26 = vsel %vm320_vm0, %v308_v14, -inf  ;;  %v356_v27 = vsel %vm320_vm0, %v309_v15, -inf  ;;  %s284_s22 = sand.u32 1, %s2035_s25  }
  0x1c   : > { %v603_v19 = vand.u32 4294901760, %v602_v11  ;;  %v610_v20 = vand.u32 4294901760, %v609_v12  ;;  %v323_v28 = vmax.f32 %v321_v17, %v322_v22  ;;  %v330_v29 = vmax.f32 %v328_v18, %v329_v23  ;;  %v313_v11 = vld [vmem:[%s2170_s21 + $0x12] sm:$0x3]  ;;  %v314_v12 = vld [vmem:[%s2170_s21 + $0x14] sm:$0x3] }
  0x1d   : > { %v336_v30 = vrot.slane %v335_v24, 4  ;;  %v343_v31 = vrot.slane %v342_v25, 4  ;;  %v350_v32 = vrot.slane %v349_v26, 4  ;;  %v357_v33 = vrot.slane %v356_v27, 4  ;;  %v316_v23 = vld [vmem:[%s2170_s21 + $0x18] sm:$0x3] }
  0x1e   : > { %1862 = vmatprep.subr.mxu1 %v603_v19  ;;  %v363_v34 = vsel %vm320_vm0, %v310_v16, -inf  ;;  %v370_v35 = vsel %vm320_vm0, %v311_v21, -inf  ;;  %v324_v36 = vrot.slane %v323_v28, 2  ;;  %v331_v37 = vrot.slane %v330_v29, 2  ;;  %v315_v21 = vld [vmem:[%s2170_s21 + $0x16] sm:$0x3] }
  0x1f   : > { %1863 = vmatpush3.msra.mxu1 %v603_v19  ;;  %v337_v38 = vmax.f32 %v335_v24, %v336_v30  ;;  %v344_v39 = vmax.f32 %v342_v25, %v343_v31  ;;  %v351_v40 = vmax.f32 %v349_v26, %v350_v32  ;;  %v358_v41 = vmax.f32 %v356_v27, %v357_v33  ;;  %v317_v32 = vld [vmem:[%s2170_s21 + $0x1a] sm:$0x3]  ;;  %s2407_s28 = scalar_lea.sflag [#allocation4], %s284_s22 }
  0x20   : > { %1864 = vmatprep.subr.mxu1 %v610_v20  ;;  %v364_v42 = vrot.slane %v363_v34, 4  ;;  %v371_v43 = vrot.slane %v370_v35, 4  ;;  %v325_v44 = vmax.f32 %v323_v28, %v324_v36  ;;  %v332_v45 = vmax.f32 %v330_v29, %v331_v37 }
  0x21   : > { %1865 = vmatpush3.msra.mxu1 %v610_v20  ;;  %v338_v46 = vrot.slane %v337_v38, 2  ;;  %v345_v47 = vrot.slane %v344_v39, 2  ;;  %v352_v48 = vrot.slane %v351_v40, 2  ;;  %v359_v49 = vrot.slane %v358_v41, 2 }
  0x22   : > { %1876 = vmatprep.subr.mxu1 %v2144_v2  ;;  %v365_v50 = vmax.f32 %v363_v34, %v364_v42  ;;  %v372_v51 = vmax.f32 %v370_v35, %v371_v43  ;;  %v326_v52 = vrot.slane %v325_v44, 1  ;;  %v333_v53 = vrot.slane %v332_v45, 1 }
  0x23   : > { %v339_v54 = vmax.f32 %v337_v38, %v338_v46  ;;  %v346_v55 = vmax.f32 %v344_v39, %v345_v47  ;;  %v353_v56 = vmax.f32 %v351_v40, %v352_v48  ;;  %v360_v57 = vmax.f32 %v358_v41, %v359_v49 }
  0x24   : > { %v366_v58 = vrot.slane %v365_v50, 2  ;;  %v373_v59 = vrot.slane %v372_v51, 2  ;;  %v327_v61 = vmax.f32 %v325_v44, %v326_v52  ;;  %v334_v62 = vmax.f32 %v332_v45, %v333_v53  ;;  %v318_v45 = vld [vmem:[%s2170_s21 + $0x1c] sm:$0x3] }
  0x25   : > { %v340_v63 = vrot.slane %v339_v54, 1  ;;  %v347_v0 = vrot.slane %v346_v55, 1  ;;  %v354_v1 = vrot.slane %v353_v56, 1  ;;  %v361_v8 = vrot.slane %v360_v57, 1 }
  0x26   : > { %v367_v9 = vmax.f32 %v365_v50, %v366_v58  ;;  %v374_v10 = vmax.f32 %v372_v51, %v373_v59  ;;  %v458_v15 = vsel %vm457_vm1, %v334_v62, %v327_v61  ;;  %v377_v16 = vsel %vm320_vm0, %v312_v60, -inf  ;;  %v319_v62 = vld [vmem:[%s2170_s21 + $0x1e] sm:$0x3]  ;;  %s1989_s21 = scalar_lea.vmem %s1988_s20, 512 }
  0x27   : > { %v341_v13 = vmax.f32 %v339_v54, %v340_v63  ;;  %v348_v14 = vmax.f32 %v346_v55, %v347_v0  ;;  %v355_v17 = vmax.f32 %v353_v56, %v354_v1  ;;  %v362_v18 = vmax.f32 %v360_v57, %v361_v8 }
  0x28   : > { %v368_v19 = vrot.slane %v367_v9, 1  ;;  %v375_v20 = vrot.slane %v374_v10, 1  ;;  %v378_v24 = vrot.slane %v377_v16, 4  ;;  %v384_v25 = vsel %vm320_vm0, %v313_v11, -inf }
  0x29   : > { %v460_v22 = vsel %vm459_vm2, %v341_v13, %v458_v15  ;;  %v391_v26 = vsel %vm320_vm0, %v314_v12, -inf  ;;  %v385_v30 = vrot.slane %v384_v25, 4  ;;  %v398_v35 = vsel %vm320_vm0, %v315_v21, -inf }
  0x2a   : > { %v369_v27 = vmax.f32 %v367_v9, %v368_v19  ;;  %v376_v28 = vmax.f32 %v374_v10, %v375_v20  ;;  %v462_v29 = vsel %vm461_vm3, %v348_v14, %v460_v22  ;;  %v379_v33 = vmax.f32 %v377_v16, %v378_v24 }
  0x2b   : > { %v464_v31 = vsel %vm463_vm4, %v355_v17, %v462_v29  ;;  %v392_v34 = vrot.slane %v391_v26, 4  ;;  %v386_v37 = vmax.f32 %v384_v25, %v385_v30  ;;  %v399_v38 = vrot.slane %v398_v35, 4 }
  0x2c   : > { %v466_v36 = vsel %vm465_vm5, %v362_v18, %v464_v31  ;;  %v405_v39 = vsel %vm320_vm0, %v316_v23, -inf  ;;  %v380_v41 = vrot.slane %v379_v33, 2  ;;  %v412_v48 = vsel %vm320_vm0, %v317_v32, -inf }
  0x2d   : > { %v468_v40 = vsel %vm467_vm6, %v369_v27, %v466_v36  ;;  %v393_v42 = vmax.f32 %v391_v26, %v392_v34  ;;  %v406_v43 = vrot.slane %v405_v39, 4  ;;  %v387_v46 = vrot.slane %v386_v37, 2 }
  0x2e   : > { %v470_v44 = vsel %vm469_vm7, %v376_v28, %v468_v40  ;;  %v400_v47 = vmax.f32 %v398_v35, %v399_v38  ;;  %v381_v50 = vmax.f32 %v379_v33, %v380_v41  ;;  %v413_v56 = vrot.slane %v412_v48, 4  ;;  %v438_v33 = vld [vmem:[%s2449_s2 + $0x8] sm:$0xff]  ;;  %v1981_v41 = vld [vmem:[%s2198_s8] sm:$0xff]  }
  0x2f   : > { %v479_v49 = vsel %vm478_vm8, %v470_v44, 0  ;;  %v394_v51 = vrot.slane %v393_v42, 2  ;;  %v407_v52 = vmax.f32 %v405_v39, %v406_v43  ;;  %v388_v54 = vmax.f32 %v386_v37, %v387_v46  ;;  %v437_v43 = vld [vmem:[%s2449_s2] sm:$0xff]  ;;  %v1982_v46 = vld [vmem:[%s2198_s8 + $0x8] sm:$0xff]   ;;  %s1783_s8 = sshll.u32 %s284_s22, 4 }
  0x30   : > { %v2222_v53 = vand.u32 4294901760, %v479_v49  ;;  %v401_v55 = vrot.slane %v400_v47, 2  ;;  %v382_v57 = vrot.slane %v381_v50, 1  ;;  %v419_v60 = vsel %vm320_vm0, %v318_v45, -inf  ;;  %s286_s9 = scalar_lea.vmem [#allocation3], %s1783_s8 }
  0x31   : > { %v395_v58 = vmax.f32 %v393_v42, %v394_v51  ;;  %v408_v59 = vrot.slane %v407_v52, 2  ;;  %v389_v63 = vrot.slane %v388_v54, 1  ;;  %v414_v1 = vmax.f32 %v412_v48, %v413_v56  ;;  %s1705_s14 = sshll.u32 %s286_s9, 4  ;;  %s2401_s14 = int_to_ptr.vmem [resolvable:$true] %s1705_s14 }
  0x32   : > { %v2226_v61 = vsub.f32 %v479_v49, %v2222_v53  ;;  %1866 = vmatprep.mubr.f32.mxu1 %v2222_v53  ;;  %v402_v0 = vmax.f32 %v400_v47, %v401_v55  ;;  %v383_v8 = vmax.f32 %v381_v50, %v382_v57  ;;  %v420_v11 = vrot.slane %v419_v60, 4  ;;  %s1983_s18 = scalar_lea.vmem %s2401_s14, 256  ;;  %p1990_p0 = scmp.lt.s32.totalorder %s2401_s14, %s1988_s20 }
  0x33   : > { %v396_v9 = vrot.slane %v395_v58, 1  ;;  %v409_v10 = vmax.f32 %v407_v52, %v408_v59  ;;  %v390_v13 = vmax.f32 %v388_v54, %v389_v63  ;;  %v415_v15 = vrot.slane %v414_v1, 2  ;;  %p1984_p11 = scmp.ne.s32.totalorder %s2401_s14, %s1983_s18  ;;  %p1991_p1 = scmp.lt.s32.totalorder %s1989_s21, %s1983_s18 }
  0x34   : > { %v552_v12 = vand.u32 4294901760, %v2226_v61  ;;  %v403_v14 = vrot.slane %v402_v0, 1  ;;  %v421_v18 = vmax.f32 %v419_v60, %v420_v11  ;;  %v426_v19 = vsel %vm320_vm0, %v319_v62, -inf }
  0x35   : > { %v397_v16 = vmax.f32 %v395_v58, %v396_v9  ;;  %v410_v17 = vrot.slane %v409_v10, 1  ;;  %v416_v22 = vmax.f32 %v414_v1, %v415_v15  ;;  %v427_v23 = vrot.slane %v426_v19, 4  ;;  %p1985_p12 = pnand %p1984_p11, %p2127_p5  ;;  %p1992_p2 = por %p1991_p1, %p1990_p0 }
  0x36   : > { %v553_v20 = vsub.f32 %v2226_v61, %v552_v12  ;;  %v404_v21 = vmax.f32 %v402_v0, %v403_v14  ;;  %v422_v25 = vrot.slane %v421_v18, 2  ;;  %v471_v26 = vsel %vm457_vm1, %v390_v13, %v383_v8 }
  0x37   : > { %v411_v24 = vmax.f32 %v409_v10, %v410_v17  ;;  %v417_v28 = vrot.slane %v416_v22, 1  ;;  %v428_v29 = vmax.f32 %v426_v19, %v427_v23  ;;  %v472_v30 = vsel %vm459_vm2, %v397_v16, %v471_v26  ;;  %p1986_p13 = pneg %p1985_p12 }
  0x38   : > { %v554_v27 = vand.u32 4294901760, %v553_v20  ;;  %v423_v31 = vmax.f32 %v421_v18, %v422_v25  ;;  %v473_v32 = vsel %vm461_vm3, %v404_v21, %v472_v30  ;;  %v2241_v40 = vand.u32 4294901760, %v438_v33 }
  0x39   : > { %v418_v34 = vmax.f32 %v416_v22, %v417_v28  ;;  %v429_v35 = vrot.slane %v428_v29, 2  ;;  %v474_v36 = vsel %vm463_vm4, %v411_v24, %v473_v32  ;;  %v2252_v49 = vand.u32 4294901760, %v437_v43  ;;  %p1993_p3 = pnand %p1992_p2, %p1986_p13 }
  0x3a   : > { %1859 = vmatprep.mubr.f32.mxu0 %v554_v27  ;;  %v424_v37 = vrot.slane %v423_v31, 1  ;;  %v2250_v48 = vsub.f32 %v438_v33, %v2241_v40  ;;  %v991_v50 = vsel %vm478_vm8, %v1981_v41, 0  ;;  %v993_v55 = vsel %vm478_vm8, %v1982_v46, 0 }
  0x3b   : > { %v430_v38 = vmax.f32 %v428_v29, %v429_v35  ;;  %v475_v39 = vsel %vm465_vm5, %v418_v34, %v474_v36  ;;  %v2257_v54 = vand.u32 4294901760, %v991_v50  ;;  %v1119_v58 = vsub.f32 %v437_v43, %v2252_v49 }
  0x3c   : > { %v425_v42 = vmax.f32 %v423_v31, %v424_v37  ;;  %v2261_v57 = vand.u32 4294901760, %v2250_v48  ;;  %v2264_v60 = vand.u32 4294901760, %v993_v55 }
  0x3d   : > { %v431_v44 = vrot.slane %v430_v38, 1  ;;  %v1063_v62 = vsub.f32 %v991_v50, %v2257_v54  ;;  %v1120_v1 = vand.u32 4294901760, %v1119_v58 }
  0x3e   : > { %v476_v45 = vsel %vm467_vm6, %v425_v42, %v475_v39  ;;  %v1114_v0 = vsub.f32 %v2250_v48, %v2261_v57  ;;  %v1073_v9 = vsub.f32 %v993_v55, %v2264_v60  ;;  %v1788_v55 = vld [vmem:[%s2451_s4] ss:$0 sm:$0xff] }
  0x3f   : > { %v432_v47 = vmax.f32 %v430_v38, %v431_v44  ;;  %v1064_v10 = vand.u32 4294901760, %v1063_v62  ;;  %v1121_v13 = vsub.f32 %v1119_v58, %v1120_v1 }
  0x40   : > { %v1074_v14 = vand.u32 4294901760, %v1073_v9 }
  0x41   : > { %v477_v51 = vsel %vm469_vm7, %v432_v47, %v476_v45  ;;  %v1065_v15 = vsub.f32 %v1063_v62, %v1064_v10 }
  0x42   : > { %v481_v52 = vsel %vm478_vm8, %v477_v51, 0  ;;  %v1075_v16 = vsub.f32 %v1073_v9, %v1074_v14 }
  0x43   : > { %v560_v56 = vand.u32 4294901760, %v481_v52 }
  0x45   : > { %v561_v59 = vsub.f32 %v481_v52, %v560_v56  ;;  %1867 = vmatmul.mubr.f32.vlgmr.msra.gmra.mxu1 %v560_v56 }
  0x46   : > { %1877 = vmatpush3.msra.mxu1 %v2144_v2  ;;  %1880 = vmatprep.mubr.f32.mxu1 %v552_v12  ;;  %v1115_v12 = vand.u32 4294901760, %v1114_v0 }
  0x47   : > { %v562_v63 = vand.u32 4294901760, %v561_v59  ;;  %1878 = vmatprep.subr.mxu1 %v2146_v3 }
  0x48   : > { %1879 = vmatpush3.msra.mxu1 %v2146_v3 }
  0x49   : > { %v563_v8 = vsub.f32 %v561_v59, %v562_v63  ;;  %1881 = vmatmul.mubr.f32.vlgmr.msra.gmra.mxu1 %v562_v63  ;;  %1890 = vmatprep.subr.mxu1 %v2144_v2  ;;  %v1789_v63 = vld [vmem:[%s2452_s5] ss:$0 sm:$0xff] }
  0x4a   : > { %1891 = vmatpush3.msra.mxu1 %v2144_v2  ;;  %1894 = vmatprep.mubr.f32.mxu1 %v2222_v53  ;;  %v1122_v2 = vand.u32 4294901760, %v1121_v13 }
  0x4b   : > { %v564_v11 = vand.u32 4294901760, %v563_v8  ;;  %1892 = vmatprep.subr.mxu1 %v2146_v3 }
  0x4c   : > { %1893 = vmatpush3.msra.mxu1 %v2146_v3  ;;  %v1066_v3 = vand.u32 4294901760, %v1065_v15 }
  0x4d   : > { %1860 = vmatmul.mubr.f32.vlgmr.msra.gmra.mxu0 %v564_v11  ;;  %1895 = vmatmul.mubr.f32.vlgmr.msra.gmra.mxu1 %v560_v56 }
  0x4e   : > { %1870 = vmatpush3.msra.mxu0 %v2153_v4  ;;  %1873 = vmatprep.mubr.f32.mxu0 %v2226_v61  ;;  %v1076_v4 = vand.u32 4294901760, %v1075_v16 }
  0x4f   : > { %1871 = vmatprep.subr.mxu0 %v2156_v5  ;;  %1904 = vmatprep.subr.mxu1 %v1115_v12 }
  0x50   : > { %1872 = vmatpush3.msra.mxu0 %v2156_v5  ;;  %1905 = vmatpush3.msra.mxu1 %v1115_v12  ;;  %v2045_v5 = vmov 0.0  }
  0x51   : > { %1883 = vmatprep.subr.mxu0 %v2161_v6  ;;  %1874 = vmatmul.mubr.f32.vlgmr.msra.gmra.mxu0 %v561_v59  ;;  %298 = vst.msk [vmem:[#allocation2] sm:$0x3f] %vm297_vm9, %v2045_v5  ;;  %301 = vst.msk [vmem:[#allocation2 + $0x18] sm:$0x3f] %vm297_vm9, %v2045_v5 }
  0x52   : > { %1884 = vmatpush3.msra.mxu0 %v2161_v6  ;;  %1887 = vmatprep.mubr.f32.mxu0 %v2222_v53  ;;  %302 = vst.msk [vmem:[#allocation2 + $0x20] sm:$0x3f] %vm297_vm9, %v2045_v5  ;;  %303 = vst.msk [vmem:[#allocation2 + $0x28] sm:$0x3f] %vm297_vm9, %v2045_v5 }
  0x53   : > { %1885 = vmatprep.subr.mxu0 %v2165_v7  ;;  %1906 = vmatprep.subr.mxu1 %v1122_v2  ;;  %299 = vst.msk [vmem:[#allocation2 + $0x8] sm:$0x3f] %vm297_vm9, %v2045_v5  ;;  %300 = vst.msk [vmem:[#allocation2 + $0x10] sm:$0x3f] %vm297_vm9, %v2045_v5 }
  0x54   : > { %1886 = vmatpush3.msra.mxu0 %v2165_v7  ;;  %1907 = vmatpush3.msra.mxu1 %v1122_v2 }
  0x55   : > { %1897 = vmatprep.subr.mxu0 %v2241_v40  ;;  %1888 = vmatmul.mubr.f32.vlgmr.msra.gmra.mxu0 %v560_v56 }
  0x56   : > { %1898 = vmatpush3.msra.mxu0 %v2241_v40  ;;  %1901 = vmatprep.mubr.f32.mxu0 %v1066_v3 }
  0x57   : > { %1899 = vmatprep.subr.mxu0 %v2252_v49  ;;  %1908 = vmatprep.mubr.f32.mxu1 %v2257_v54 }
  0x58   : > { %1900 = vmatpush3.msra.mxu0 %v2252_v49  ;;  %1909 = vmatmul.mubr.f32.vlgmr.msra.gmra.mxu1 %v2264_v60  ;;  %v1552_v15 = vld [vmem:[#allocation2 + $0x2] sm:$0xf] }
  0x59   : > { %1911 = vmatprep.subr.mxu0 %v2250_v48  ;;  %1902 = vmatmul.mubr.f32.vlgmr.msra.gmra.mxu0 %v1076_v4 }
  0x5a   : > { %1912 = vmatpush3.msra.mxu0 %v2250_v48  ;;  %1918 = vmatprep.subr.mxu1 %v2241_v40 }
  0x5b   : > { %1913 = vmatprep.subr.mxu0 %v1119_v58  ;;  %1919 = vmatpush3.msra.mxu1 %v2241_v40 }
  0x5c   : > { %1914 = vmatpush3.msra.mxu0 %v1119_v58  ;;  %1920 = vmatprep.subr.mxu1 %v2252_v49 }
  0x5d   : > { %1915 = vmatprep.mubr.f32.mxu0 %v1063_v62  ;;  %1921 = vmatpush3.msra.mxu1 %v2252_v49 }
  0x5e   : > { %1922 = vmatprep.mubr.f32.mxu1 %v1064_v10  ;;  %1925 = vmatprep.subr.mxu0 %v2261_v57  ;;  %v1535_v10 = vld [vmem:[#allocation2 + $0x1] sm:$0xf] }
  0x5f   : > { %1916 = vmatmul.mubr.f32.vlgmr.msra.gmra.mxu0 %v1073_v9  ;;  %1923 = vmatmul.mubr.f32.vlgmr.msra.gmra.mxu1 %v1074_v14  ;;  %v1518_v9 = vld [vmem:[#allocation2] sm:$0xf] }
  0x60   : > { %1926 = vmatpush3.msra.mxu0 %v2261_v57  ;;  %1932 = vmatprep.subr.mxu1 %v2241_v40  ;;  %v1527_v12 = vmul.f32 %v1789_v63, %v1518_v9  ;;  %v2339_v14 = vld [vmem:[%s2452_s5 + $0x2] ss:$0 sm:$0xff] }
  0x61   : > { %1927 = vmatprep.subr.mxu0 %v1120_v1  ;;  %1933 = vmatpush3.msra.mxu1 %v2241_v40  ;;  %v1561_v5 = vmul.f32 %v2339_v14, %v1552_v15 }
  0x62   : > { %1928 = vmatpush3.msra.mxu0 %v1120_v1  ;;  %1934 = vmatprep.subr.mxu1 %v2252_v49  ;;  %v1790_v1 = vld [vmem:[%s2452_s5 + $0x1] ss:$0 sm:$0xff] }
  0x63   : > { %1929 = vmatprep.mubr.f32.mxu0 %v2257_v54  ;;  %1935 = vmatpush3.msra.mxu1 %v2252_v49  ;;  %v1544_v13 = vmul.f32 %v1790_v1, %v1535_v10 }
  0x64   : > { %1936 = vmatprep.mubr.f32.mxu1 %v2257_v54  ;;  %1930 = vmatmul.mubr.f32.vlgmr.msra.gmra.mxu0 %v2264_v60 }
  0x65   : > { %1937 = vmatmul.mubr.f32.vlgmr.msra.gmra.mxu1 %v2264_v60  ;;  %v1548_v4 = vadd.f32 %v1544_v13, %v1527_v12 }
 0x105   : > { %v1868_v6 = vpop.f32.mrf.mxu1 }
 0x107   : > { %v647_v7 = vpop.f32.mrf.mxu1 }
 0x109   : > { %v1882_v53 = vpop.f32.mrf.mxu1 }
 0x10b   : > { %v811_v61 = vpop.f32.mrf.mxu1 }
 0x10d   : > { %v1861_v17 = vpop.f32.mrf.mxu0  ;;  %v1896_v20 = vpop.f32.mrf.mxu1 }
 0x10e   : > { %v654_v19 = vadd.f32 %v1868_v6, %v1861_v17 }
 0x10f   : > { %v556_v18 = vpop.f32.mrf.mxu0  ;;  %v975_v27 = vpop.f32.mrf.mxu1 }
 0x110   : > { %v648_v22 = vadd.f32 %v647_v7, %v556_v18 }
 0x111   : > { %v1875_v21 = vpop.f32.mrf.mxu0 }
 0x112   : > { %v737_v23 = vadd.f32 %v1875_v21, %v654_v19  ;;  %v1624_v21 = vld [vmem:[#allocation2 + $0x28] sm:$0xf] }
 0x113   : > { %v729_v24 = vpop.f32.mrf.mxu0 }
 0x114   : > { %v820_v25 = vadd.f32 %v1882_v53, %v737_v23  ;;  %v730_v26 = vadd.f32 %v729_v24, %v648_v22 }
 0x115   : > { %v1889_v28 = vpop.f32.mrf.mxu0 }
 0x116   : > { %v812_v29 = vadd.f32 %v811_v61, %v730_v26  ;;  %v903_v30 = vadd.f32 %v1889_v28, %v820_v25  ;;  %v2347_v61 = vld [vmem:[%s2452_s5 + $0x3] ss:$0 sm:$0xff]  ;;  %v1565_v25 = vadd.f32 %v1561_v5, %v1548_v4 }
 0x117   : > { %v896_v31 = vpop.f32.mrf.mxu0 }
 0x118   : > { %v982_v32 = vadd.f32 %v1896_v20, %v903_v30  ;;  %v897_v33 = vadd.f32 %v896_v31, %v812_v29  ;;  %v1910_v34 = vpop.f32.mrf.mxu1  ;;  %v2353_v20 = vld [vmem:[%s2452_s5 + $0x4] ss:$0 sm:$0xff] }
 0x119   : > { %v1903_v35 = vpop.f32.mrf.mxu0 }
 0x11a   : > { %v976_v36 = vadd.f32 %v975_v27, %v897_v33  ;;  %v1079_v37 = vadd.f32 %v1903_v35, %v982_v32  ;;  %v1159_v39 = vpop.f32.mrf.mxu1 }
 0x11b   : > { %v1068_v38 = vpop.f32.mrf.mxu0 }
 0x11c   : > { %v1166_v40 = vadd.f32 %v1910_v34, %v1079_v37  ;;  %v1069_v41 = vadd.f32 %v1068_v38, %v976_v36 }
 0x11e   : > { %v1160_v42 = vadd.f32 %v1159_v39, %v1069_v41  ;;  %v1641_v41 = vld [vmem:[#allocation2 + $0x29] sm:$0xf] }
 0x11f   : > { %v1917_v43 = vpop.f32.mrf.mxu0  ;;  %v1924_v44 = vpop.f32.mrf.mxu1 }
 0x120   : > { %v1249_v45 = vadd.f32 %v1917_v43, %v1166_v40  ;;  %v2361_v40 = vld [vmem:[%s2452_s5 + $0x6] ss:$0 sm:$0xff] }
 0x121   : > { %v1241_v46 = vpop.f32.mrf.mxu0  ;;  %v1323_v47 = vpop.f32.mrf.mxu1 }
 0x122   : > { %v1332_v48 = vadd.f32 %v1924_v44, %v1249_v45  ;;  %v1242_v49 = vadd.f32 %v1241_v46, %v1160_v42  ;;  %v1794_v46 = vld [vmem:[%s2452_s5 + $0x5] ss:$0 sm:$0xff] }
 0x124   : > { %v1324_v50 = vadd.f32 %v1323_v47, %v1242_v49  ;;  %v1931_v51 = vpop.f32.mrf.mxu0  ;;  %v1633_v47 = vmul.f32 %v2361_v40, %v1624_v21 }
 0x125   : > { %v1415_v52 = vadd.f32 %v1931_v51, %v1332_v48  ;;  %v1938_v54 = vpop.f32.mrf.mxu1 }
 0x126   : > { %v1408_v56 = vpop.f32.mrf.mxu0 }
 0x127   : > { %v1494_v57 = vadd.f32 %v1938_v54, %v1415_v52  ;;  %v1409_v58 = vadd.f32 %v1408_v56, %v1324_v50  ;;  %v1487_v59 = vpop.f32.mrf.mxu1  ;;  %v1796_v54 = vld [vmem:[%s2452_s5 + $0x7] ss:$0 sm:$0xff] }
 0x129   : > { %v2312_v60 = vadd.f32 %v1788_v55, %v1494_v57  ;;  %v1488_v62 = vadd.f32 %v1487_v59, %v1409_v58  ;;  %v1650_v59 = vmul.f32 %v1796_v54, %v1641_v41 }
 0x12b   : > { %v2319_v0 = vcombine.high %v2312_v60, %v2312_v60  ;;  %1516 = vst.msk [vmem:[#allocation2 + $0x19] sm:$0xf] %vm1513_vm10, %v2312_v60  ;;  %v2326_v8 = vadd.f32 %v1788_v55, %v1488_v62  ;;  %v1658_v62 = vld [vmem:[#allocation2 + $0x2a] sm:$0xf] }
 0x12d   : > { %1517 = vst.msk [vmem:[#allocation2 + $0x21] sm:$0xf] %vm1513_vm10, %v2319_v0  ;;  %v2332_v11 = vcombine.high %v2326_v8, %v2326_v8  ;;  %1514 = vst.msk [vmem:[#allocation2 + $0x9] sm:$0xf] %vm1513_vm10, %v2326_v8 }
 0x12f   : > { %1515 = vst.msk [vmem:[#allocation2 + $0x11] sm:$0xf] %vm1513_vm10, %v2332_v11 }
 0x132   : > { %v1521_v2 = vld [vmem:[#allocation2 + $0x18] sm:$0xf] }
 0x133   : > { %v1538_v16 = vld [vmem:[#allocation2 + $0x19] sm:$0xf]  ;;  %v1530_v6 = vmul.f32 %v1789_v63, %v1521_v2 }
 0x134   : > { %v1555_v3 = vld [vmem:[#allocation2 + $0x1a] sm:$0xf]  ;;  %v1547_v7 = vmul.f32 %v1790_v1, %v1538_v16  ;;  %v1572_v53 = vld [vmem:[#allocation2 + $0x20] sm:$0xf]  ;;  %v1519_v22 = vld [vmem:[#allocation2 + $0x8] sm:$0xf] }
 0x135   : > { %v1564_v18 = vmul.f32 %v2339_v14, %v1555_v3  ;;  %v1589_v19 = vld [vmem:[#allocation2 + $0x21] sm:$0xf]  ;;  %v1536_v24 = vld [vmem:[#allocation2 + $0x9] sm:$0xf]  ;;  %v1581_v27 = vmul.f32 %v2347_v61, %v1572_v53  ;;  %v1528_v28 = vmul.f32 %v1789_v63, %v1519_v22  ;;  %v1571_v10 = vld [vmem:[#allocation2 + $0x18] sm:$0xf] }
 0x136   : > { %v1551_v17 = vadd.f32 %v1547_v7, %v1530_v6  ;;  %v1520_v23 = vld [vmem:[#allocation2 + $0x10] sm:$0xf]  ;;  %v1545_v30 = vmul.f32 %v1790_v1, %v1536_v24  ;;  %v1553_v31 = vld [vmem:[#allocation2 + $0xa] sm:$0xf]  ;;  %v1598_v33 = vmul.f32 %v2353_v20, %v1589_v19  ;;  %v1606_v34 = vld [vmem:[#allocation2 + $0x22] sm:$0xf] }
 0x137   : > { %v1537_v29 = vld [vmem:[#allocation2 + $0x11] sm:$0xf]  ;;  %v1569_v32 = vld [vmem:[#allocation2 + $0x8] sm:$0xf]  ;;  %v1529_v38 = vmul.f32 %v1789_v63, %v1520_v23  ;;  %v1562_v43 = vmul.f32 %v2339_v14, %v1553_v31  ;;  %v1615_v52 = vmul.f32 %v1794_v46, %v1606_v34  ;;  %v1622_v5 = vld [vmem:[#allocation2 + $0x18] sm:$0xf]  ;;  %v1580_v23 = vmul.f32 %v2347_v61, %v1571_v10 }
 0x138   : > { %v1568_v26 = vadd.f32 %v1564_v18, %v1551_v17  ;;  %v1570_v35 = vld [vmem:[#allocation2 + $0x10] sm:$0xf]  ;;  %v1578_v36 = vmul.f32 %v2347_v61, %v1569_v32  ;;  %v1586_v37 = vld [vmem:[#allocation2 + $0x9] sm:$0xf]  ;;  %v1549_v42 = vadd.f32 %v1545_v30, %v1528_v28  ;;  %v1546_v45 = vmul.f32 %v1790_v1, %v1537_v29  ;;  %v1797_v3 = vld [vmem:[%s2452_s5 + $0x8] ss:$0 sm:$0xff] }
 0x139   : > { %v1603_v44 = vld [vmem:[#allocation2 + $0xa] sm:$0xf]  ;;  %v1587_v49 = vld [vmem:[#allocation2 + $0x11] sm:$0xf]  ;;  %v1595_v50 = vmul.f32 %v2353_v20, %v1586_v37  ;;  %v1579_v56 = vmul.f32 %v2347_v61, %v1570_v35  ;;  %v1588_v53 = vld [vmem:[#allocation2 + $0x19] sm:$0xf]  ;;  %v1667_v18 = vmul.f32 %v1797_v3, %v1658_v62  ;;  %v1631_v31 = vmul.f32 %v2361_v40, %v1622_v5 }
 0x13a   : > { %v1585_v39 = vadd.f32 %v1581_v27, %v1568_v26  ;;  %v1582_v48 = vadd.f32 %v1578_v36, %v1565_v25  ;;  %v1566_v55 = vadd.f32 %v1562_v43, %v1549_v42  ;;  %v1621_v57 = vld [vmem:[#allocation2 + $0x10] sm:$0xf]  ;;  %v1612_v9 = vmul.f32 %v1794_v46, %v1603_v44  ;;  %v1639_v25 = vld [vmem:[#allocation2 + $0x19] sm:$0xf]  ;;  %v1623_v36 = vld [vmem:[#allocation2 + $0x20] sm:$0xf] }
 0x13b   : > { %v1554_v58 = vld [vmem:[#allocation2 + $0x12] sm:$0xf]  ;;  %v1596_v15 = vmul.f32 %v2353_v20, %v1587_v49  ;;  %v1550_v16 = vadd.f32 %v1546_v45, %v1529_v38  ;;  %v1630_v6 = vmul.f32 %v2361_v40, %v1621_v57  ;;  %v1605_v28 = vld [vmem:[#allocation2 + $0x1a] sm:$0xf]  ;;  %v1798_v61 = vld [vmem:[%s2453_s6] ss:$0 sm:$0xff] }
 0x13c   : > { %v1602_v51 = vadd.f32 %v1598_v33, %v1585_v39  ;;  %v1599_v63 = vadd.f32 %v1595_v50, %v1582_v48  ;;  %v1604_v1 = vld [vmem:[#allocation2 + $0x12] sm:$0xf]  ;;  %v1583_v13 = vadd.f32 %v1579_v56, %v1566_v55  ;;  %v1563_v7 = vmul.f32 %v2339_v14, %v1554_v58  ;;  %v1656_v33 = vld [vmem:[#allocation2 + $0x1a] sm:$0xf]  ;;  %v1640_v44 = vld [vmem:[#allocation2 + $0x21] sm:$0xf] }
 0x13d   : > { %v1638_v2 = vld [vmem:[#allocation2 + $0x11] sm:$0xf]  ;;  %v1613_v21 = vmul.f32 %v1794_v46, %v1604_v1  ;;  %v1597_v14 = vmul.f32 %v2353_v20, %v1588_v53  ;;  %v1648_v39 = vmul.f32 %v1796_v54, %v1639_v25  ;;  %v1614_v41 = vmul.f32 %v1794_v46, %v1605_v28 }
 0x13e   : > { %v1619_v12 = vadd.f32 %v1615_v52, %v1602_v51  ;;  %v1616_v4 = vadd.f32 %v1612_v9, %v1599_v63  ;;  %v1600_v19 = vadd.f32 %v1596_v15, %v1583_v13  ;;  %v1655_v22 = vld [vmem:[#allocation2 + $0x12] sm:$0xf]  ;;  %v1647_v26 = vmul.f32 %v1796_v54, %v1638_v2  ;;  %v1657_v51 = vld [vmem:[#allocation2 + $0x22] sm:$0xf] }
 0x13f   : > { %v1567_v27 = vadd.f32 %v1563_v7, %v1550_v16  ;;  %v1664_v34 = vmul.f32 %v1797_v3, %v1655_v22  ;;  %v1632_v48 = vmul.f32 %v2361_v40, %v1623_v36  ;;  %v1649_v56 = vmul.f32 %v1796_v54, %v1640_v44 }
 0x140   : > { %v1637_v17 = vadd.f32 %v1633_v47, %v1619_v12  ;;  %v1634_v24 = vadd.f32 %v1630_v6, %v1616_v4  ;;  %v1617_v30 = vadd.f32 %v1613_v21, %v1600_v19  ;;  %v1665_v47 = vmul.f32 %v1797_v3, %v1656_v33 }
 0x141   : > { %v1584_v35 = vadd.f32 %v1580_v23, %v1567_v27 }
 0x142   : > { %v1654_v29 = vadd.f32 %v1650_v59, %v1637_v17  ;;  %v1651_v32 = vadd.f32 %v1647_v26, %v1634_v24  ;;  %v1635_v38 = vadd.f32 %v1631_v31, %v1617_v30  ;;  %v1666_v59 = vmul.f32 %v1797_v3, %v1657_v51 }
 0x143   : > { %v1601_v43 = vadd.f32 %v1597_v14, %v1584_v35 }
 0x144   : > { %v1671_v37 = vadd.f32 %v1667_v18, %v1654_v29  ;;  %v1668_v42 = vadd.f32 %v1664_v34, %v1651_v32  ;;  %v1652_v20 = vadd.f32 %v1648_v39, %v1635_v38 }
 0x145   : > { %v1618_v50 = vadd.f32 %v1614_v41, %v1601_v43 }
 0x146   : > { %v1682_v45 = vadd.f32 %v1798_v61, %v1671_v37  ;;  %v1679_v49 = vadd.f32 %v1798_v61, %v1668_v42  ;;  %v1669_v55 = vadd.f32 %v1665_v47, %v1652_v20 }
 0x147   : > { %v1636_v58 = vadd.f32 %v1632_v48, %v1618_v50 }
 0x148   : > { %v1686_v52 = vmax.f32 %v2319_v0, %v1682_v45  ;;  %v1683_v57 = vmax.f32 %v2326_v8, %v1679_v49  ;;  %v1680_v46 = vadd.f32 %v1798_v61, %v1669_v55 }
 0x149   : > { %v1653_v40 = vadd.f32 %v1649_v56, %v1636_v58 }
 0x14a   : > { %1690 = vst.msk [vmem:[%s286_s9 + $0xc] sm:$0xf] %vm1513_vm10, %v1686_v52  ;;  %1687 = vst.msk [vmem:[%s286_s9] sm:$0xf] %vm1513_vm10, %v1683_v57  ;;  %v1684_v62 = vmax.f32 %v2332_v11, %v1680_v46 }
 0x14b   : > { %v1670_v63 = vadd.f32 %v1666_v59, %v1653_v40 }
 0x14c   : > { %1688 = vst.msk [vmem:[%s286_s9 + $0x4] sm:$0xf] %vm1513_vm10, %v1684_v62 }
 0x14d   : > { %v1681_v0 = vadd.f32 %v1798_v61, %v1670_v63 }
 0x14f   : > { %v1685_v8 = vmax.f32 %v2312_v60, %v1681_v0 }
 0x151   : > { %1689 = vst.msk [vmem:[%s286_s9 + $0x8] sm:$0xf] %vm1513_vm10, %v1685_v8 }
 0x152   : > { %1996 = shalt.err (!%p1993_p3)
}
 0x153   : > { %s1997_s22 = scalar_lea.hbm %s2399_s17, 256  ;;  %s2001_s8 = scalar_lea.hbm %s2454_s7, 512 }
 0x154   : > { %p1998_p4 = scmp.ne.s32.totalorder %s2399_s17, %s1997_s22  ;;  %p2002_p9 = scmp.lt.s32.totalorder %s2399_s17, %s2454_s7 }
 0x155   : > { %p2003_p10 = scmp.lt.s32.totalorder %s2001_s8, %s1997_s22 }
 0x156   : > { %p1999_p7 = pnand %p1998_p4, %p2127_p5 }
 0x157   : > { %p2004_p11 = por %p2003_p10, %p2002_p9 }
 0x158   : > { %p2000_p8 = pneg %p1999_p7 }
 0x15a   : > { %p2005_p12 = pnand %p2004_p11, %p2000_p8 }
 0x15c   : > { %2008 = shalt.err (!%p2005_p12)
}
 0x15d   : > { %s2047_s15 = smov 64   ;;  %s2048_s16 = smov 4  }
 0x15e   : > { %1939 = dma.vmem_to_hbm [thread:$0]  (%p2127_p5), %s2401_s14, 256, %s2399_s17, %s2407_s28, %s2047_s15, %s2047_s15, %s2048_s16  }
 0x15f PF: > { %p1945_p13 = scmp.ge.s32.totalorder %s2043_s27, 2  ;;  %s1720_s18 = sand.u32 1, %s2031_s24  }
 0x160   : > { %s1721_s19 = scalar_lea.sflag [#allocation4], %s1720_s18 }
 0x161   : > { %p1942_p0 = pnand %p1945_p13, %p2131_p6 }
 0x163   : > { %p1943_p1 = pneg %p1942_p0 }
 0x165   : > { %2026 = dma.done.wait (%p1943_p1), %s1721_s19, 256  }
 0x166   : > { %2028 = vsyncadd (%p1943_p1), %s1721_s19, 4294967040  ;;  %p17_p2 = scmp.ge.s32.totalorder %s2114_s30, 4   ;;  %s2457_s24 = smov %s2035_s25 }
 0x167   : > { %s2458_s25 = smov %s2039_s26  ;;  %s2459_s26 = smov %s2125_s10 }
 0x168   : > { %s2460_s27 = smov %s2114_s30  ;;  %19 = sbr.rel (!%p17_p2) target bundleno = 3 (0x3), region = 88 }
 0x16d   :  { %1726 = vsyncpa [#allocation4], 1 }
 0x16e   :  { %1728 = vsyncpa [#allocation4 + $0x1], 1 }

// kernel: stem_forward.4
= control target key start
LH: loop header
LB: loop body
LE: loop exit
PB: predicated region body
PF: predicated region fallthrough
CT: control target
= control target key end

     0   :  { %s6397_s18 = smov 0   ;;  %s7522_s0 = inlined_call_operand.vmem [shape: f32[2,5,2,5,2,16], index: 0, kind: input, shape index: {}]   ;;  %s7523_s1 = inlined_call_operand.vmem [shape: f32[144,16], index: 1, kind: input, shape index: {}]   ;;  %s7524_s2 = inlined_call_operand.vmem [shape: f32[1,16], index: 2, kind: input, shape index: {}]   ;;  %s7525_s3 = inlined_call_operand.vmem [shape: f32[9,16], index: 3, kind: input, shape index: {}]   ;;  %s7526_s4 = inlined_call_operand.vmem [shape: f32[1,16], index: 4, kind: input, shape index: {}]   ;;  %s7527_s5 = inlined_call_operand.vmem [shape: f32[2,4,4,16], index: 5, kind: output, shape index: {}]  }
   0x1 LB: > { %s5620_s19 = sadd.s32 4294967295, %s6364_s18   ;;  %p5624_p0 = scmp.ge.s32.totalorder %s6364_s18, 1  ;;  %s6364_s18 = sphi %s6397_s18, %s15_s18  }
   0x2   : > { %p187_p1 = scmp.lt.s32.totalorder %s6364_s18, 3 }
   0x4   : > { %p188_p2 = pnand %p5624_p0, %p187_p1 }
   0x6   : > { %191 = sbr.rel (%p188_p2) target bundleno = 429 (0x1ad), region = 40 }
   0xb   : > { %v267_v0 = vld [vmem:[%s7523_s1 + $0x18] sm:$0xff]  ;;  %v266_v1 = vld [vmem:[%s7523_s1 + $0x10] sm:$0xff]  ;;  %p215_p3 = scmp.lt.s32.totalorder %s5620_s19, 1  ;;  %v249_v4 = vld [vmem:[%s7523_s1 + $0x8] sm:$0xff]  ;;  %vm285_vm0 = vcmask 1041409   ;;  %vm288_vm1 = vcmask 1042434  }
   0xc   : > { %v6411_v2 = vand.u32 4294901760, %v267_v0  ;;  %v6413_v3 = vand.u32 4294901760, %v266_v1  ;;  %v6427_v7 = vand.u32 4294901760, %v249_v4  ;;  %vm291_vm2 = vcmask 1043459   ;;  %v248_v15 = vld [vmem:[%s7523_s1] sm:$0xff]  ;;  %v6466_v27 = vld [vmem:[%s7523_s1 + $0x28] sm:$0xff] }
   0xd   : > { %s7565_s19 = smov (!%p215_p3, %s5620_s19), 1  ;;  %vm294_vm3 = vcmask 1044484   ;;  %vm297_vm4 = vcmask 1045509   ;;  %vm300_vm5 = vcmask 1046534   ;;  %vm303_vm6 = vcmask 1047559  }
   0xe   : > { %5970 = vmatprep.subr.mxu0 %v6411_v2  ;;  %v6422_v5 = vsub.f32 %v267_v0, %v6411_v2  ;;  %v6425_v6 = vsub.f32 %v266_v1, %v6413_v3  ;;  %s6348_s26 = smul.u32 100, %s7565_s19  ;;  %v6452_v14 = vsub.f32 %v249_v4, %v6427_v7  ;;  %vm319_vm7 = vcmask 130048   ;;  %s5753_s11 = sshll.u32 %s7565_s19, 4 }
   0xf   : > { %5971 = vmatpush3.msra.mxu0 %v6411_v2  ;;  %v6472_v32 = vand.u32 4294901760, %v248_v15  ;;  %v6488_v51 = vand.u32 4294901760, %v6466_v27  ;;  %vm225_vm8 = vcmask 128000   ;;  %vm5387_vm9 = vcmask 125952   ;;  %s224_s14 = scalar_lea.vmem %s7527_s5, %s5753_s11 }
  0x10   : > { %v6432_v8 = vand.u32 4294901760, %v6422_v5  ;;  %5972 = vmatprep.subr.mxu0 %v6413_v3  ;;  %v6436_v9 = vand.u32 4294901760, %v6425_v6  ;;  %s6442_s29 = scalar_lea.vmem %s7522_s0, %s6348_s26  ;;  %v6470_v31 = vand.u32 4294901760, %v6452_v14 }
  0x11   : > { %5973 = vmatpush3.msra.mxu0 %v6413_v3  ;;  %v251_v12 = vld [vmem:[%s6442_s29 + $0x3] sm:$0x1]  ;;  %v252_v13 = vld [vmem:[%s6442_s29 + $0x5] sm:$0x1]  ;;  %v253_v16 = vld [vmem:[%s6442_s29 + $0x7] sm:$0x1]  ;;  %v6493_v55 = vsub.f32 %v248_v15, %v6472_v32 }
  0x12   : > { %v443_v10 = vsub.f32 %v6422_v5, %v6432_v8  ;;  %v450_v11 = vsub.f32 %v6425_v6, %v6436_v9  ;;  %5984 = vmatprep.subr.mxu0 %v6422_v5  ;;  %v254_v17 = vld [vmem:[%s6442_s29 + $0x15] sm:$0x1]  ;;  %v255_v18 = vld [vmem:[%s6442_s29 + $0x17] sm:$0x1]  ;;  %v250_v21 = vld [vmem:[%s6442_s29 + $0x1] sm:$0x1]  ;;  %v993_v61 = vsub.f32 %v6452_v14, %v6470_v31 }
  0x13   : > { %v256_v22 = vld [vmem:[%s6442_s29 + $0x19] sm:$0x1]  ;;  %v257_v23 = vld [vmem:[%s6442_s29 + $0x1b] sm:$0x1]  ;;  %v284_v24 = vrot.slane %v251_v12, 7  ;;  %v287_v25 = vrot.slane %v252_v13, 6 }
  0x14   : > { %v444_v19 = vand.u32 4294901760, %v443_v10  ;;  %v451_v20 = vand.u32 4294901760, %v450_v11  ;;  %v290_v26 = vrot.slane %v253_v16, 5  ;;  %v293_v28 = vrot.slane %v254_v17, 4  ;;  %v259_v30 = vld [vmem:[%s6442_s29 + $0x2b] sm:$0x1] }
  0x15   : > { %v296_v29 = vrot.slane %v255_v18, 3  ;;  %v286_v33 = vsel %vm285_vm0, %v284_v24, %v250_v21  ;;  %v260_v34 = vld [vmem:[%s6442_s29 + $0x2d] sm:$0x1]  ;;  %v261_v35 = vld [vmem:[%s6442_s29 + $0x2f] sm:$0x1]  ;;  %v299_v38 = vrot.slane %v256_v22, 2 }
  0x16   : > { %5977 = vmatprep.subr.mxu1 %v444_v19  ;;  %v262_v36 = vld [vmem:[%s6442_s29 + $0x3d] sm:$0x1]  ;;  %v289_v37 = vsel %vm288_vm1, %v287_v25, %v286_v33  ;;  %v302_v39 = vrot.slane %v257_v23, 1  ;;  %v258_v40 = vld [vmem:[%s6442_s29 + $0x29] sm:$0x1]  ;;  %v305_v44 = vrot.slane %v259_v30, 7 }
  0x17   : > { %5978 = vmatpush3.msra.mxu1 %v444_v19  ;;  %v263_v41 = vld [vmem:[%s6442_s29 + $0x3f] sm:$0x1]  ;;  %v292_v42 = vsel %vm291_vm2, %v290_v26, %v289_v37  ;;  %v264_v43 = vld [vmem:[%s6442_s29 + $0x41] sm:$0x1]  ;;  %v307_v45 = vrot.slane %v260_v34, 6  ;;  %v309_v46 = vrot.slane %v261_v35, 5 }
  0x18   : > { %5979 = vmatprep.subr.mxu1 %v451_v20  ;;  %v295_v47 = vsel %vm294_vm3, %v293_v28, %v292_v42  ;;  %v265_v48 = vld [vmem:[%s6442_s29 + $0x43] sm:$0x1]  ;;  %v311_v49 = vrot.slane %v262_v36, 4  ;;  %v233_v50 = vld [vmem:[%s6442_s29 + $0x2] sm:$0x1]  ;;  %v306_v53 = vsel %vm285_vm0, %v305_v44, %v258_v40  ;;  %v313_v54 = vrot.slane %v263_v41, 3 }
  0x19   : > { %5980 = vmatpush3.msra.mxu1 %v451_v20  ;;  %v298_v52 = vsel %vm297_vm4, %v296_v29, %v295_v47  ;;  %v234_v56 = vld [vmem:[%s6442_s29 + $0x4] sm:$0x1]  ;;  %v235_v57 = vld [vmem:[%s6442_s29 + $0x6] sm:$0x1]  ;;  %v308_v59 = vsel %vm288_vm1, %v307_v45, %v306_v53  ;;  %v315_v60 = vrot.slane %v264_v43, 2  ;;  %v317_v1 = vrot.slane %v265_v48, 1 }
  0x1a   : > { %5991 = vmatprep.subr.mxu1 %v6411_v2  ;;  %v301_v58 = vsel %vm300_vm5, %v299_v38, %v298_v52  ;;  %v232_v62 = vld [vmem:[%s6442_s29] sm:$0x1]  ;;  %v310_v0 = vsel %vm291_vm2, %v309_v46, %v308_v59  ;;  %v236_v4 = vld [vmem:[%s6442_s29 + $0x14] sm:$0x1]  ;;  %v237_v10 = vld [vmem:[%s6442_s29 + $0x16] sm:$0x1] }
  0x1b   : > { %v304_v63 = vsel %vm303_vm6, %v302_v39, %v301_v58  ;;  %v842_v11 = vrot.slane %v233_v50, 7  ;;  %v312_v13 = vsel %vm294_vm3, %v311_v49, %v310_v0  ;;  %v238_v15 = vld [vmem:[%s6442_s29 + $0x18] sm:$0x1]  ;;  %v844_v16 = vrot.slane %v234_v56, 6  ;;  %v239_v21 = vld [vmem:[%s6442_s29 + $0x1a] sm:$0x1] }
  0x1c   : > { %v320_v12 = vsel %vm319_vm7, %v304_v63, 0  ;;  %v846_v17 = vrot.slane %v235_v57, 5  ;;  %v314_v19 = vsel %vm297_vm4, %v313_v54, %v312_v13  ;;  %v6513_v20 = vand.u32 4294901760, %v6493_v55  ;;  %v241_v23 = vld [vmem:[%s6442_s29 + $0x2a] sm:$0x1] }
  0x1d   : > { %v6509_v18 = vand.u32 4294901760, %v320_v12  ;;  %v843_v22 = vsel %vm285_vm0, %v842_v11, %v232_v62  ;;  %v316_v24 = vsel %vm300_vm5, %v315_v60, %v314_v19  ;;  %v848_v26 = vrot.slane %v236_v4, 4  ;;  %v240_v29 = vld [vmem:[%s6442_s29 + $0x28] sm:$0x1]  ;;  %v242_v30 = vld [vmem:[%s6442_s29 + $0x2c] sm:$0x1] }
  0x1e   : > { %v845_v25 = vsel %vm288_vm1, %v844_v16, %v843_v22  ;;  %v850_v28 = vrot.slane %v237_v10, 3  ;;  %v318_v34 = vsel %vm303_vm6, %v317_v1, %v316_v24  ;;  %v852_v36 = vrot.slane %v238_v15, 2  ;;  %v243_v37 = vld [vmem:[%s6442_s29 + $0x2e] sm:$0x1]  ;;  %v244_v38 = vld [vmem:[%s6442_s29 + $0x3c] sm:$0x1] }
  0x1f   : > { %v6523_v33 = vsub.f32 %v320_v12, %v6509_v18  ;;  %5981 = vmatprep.mubr.f32.mxu1 %v6509_v18  ;;  %v847_v35 = vsel %vm291_vm2, %v846_v17, %v845_v25  ;;  %v322_v39 = vsel %vm319_vm7, %v318_v34, 0  ;;  %v854_v41 = vrot.slane %v239_v21, 1  ;;  %v245_v42 = vld [vmem:[%s6442_s29 + $0x3e] sm:$0x1]  ;;  %v246_v47 = vld [vmem:[%s6442_s29 + $0x40] sm:$0x1] }
  0x20   : > { %v849_v40 = vsel %vm294_vm3, %v848_v26, %v847_v35  ;;  %v856_v43 = vrot.slane %v241_v23, 7  ;;  %v6534_v45 = vand.u32 4294901760, %v322_v39  ;;  %v858_v48 = vrot.slane %v242_v30, 6  ;;  %v247_v58 = vld [vmem:[%s6442_s29 + $0x42] sm:$0x1] }
  0x21   : > { %v393_v44 = vand.u32 4294901760, %v6523_v33  ;;  %v851_v46 = vsel %vm297_vm4, %v850_v28, %v849_v40  ;;  %v860_v52 = vrot.slane %v243_v37, 5  ;;  %v862_v53 = vrot.slane %v244_v38, 4  ;;  %v6551_v60 = vld [vmem:[%s7523_s1 + $0x20] sm:$0xff]  ;;  %v5631_v23 = vld [vmem:[%s6442_s29 + $0x8] sm:$0x1] }
  0x22   : > { %v853_v49 = vsel %vm300_vm5, %v852_v36, %v851_v46  ;;  %v857_v50 = vsel %vm285_vm0, %v856_v43, %v240_v29  ;;  %v6542_v56 = vsub.f32 %v322_v39, %v6534_v45  ;;  %5982 = vmatmul.mubr.f32.vlgmr.msra.gmra.mxu1 %v6534_v45  ;;  %v864_v0 = vrot.slane %v245_v42, 3  ;;  %v5628_v4 = vld [vmem:[%s6442_s29 + $0x2] sm:$0x1]  ;;  %v5629_v10 = vld [vmem:[%s6442_s29 + $0x4] sm:$0x1] }
  0x23   : > { %v394_v54 = vsub.f32 %v6523_v33, %v393_v44  ;;  %v855_v57 = vsel %vm303_vm6, %v854_v41, %v853_v49  ;;  %v859_v59 = vsel %vm288_vm1, %v858_v48, %v857_v50  ;;  %5992 = vmatpush3.msra.mxu1 %v6411_v2  ;;  %5995 = vmatprep.mubr.f32.mxu1 %v393_v44  ;;  %v866_v1 = vrot.slane %v246_v47, 2  ;;  %v5630_v16 = vld [vmem:[%s6442_s29 + $0x6] sm:$0x1]  ;;  %v5632_v24 = vld [vmem:[%s6442_s29 + $0x16] sm:$0x1] }
  0x24   : > { %v870_v62 = vsel %vm319_vm7, %v855_v57, 0  ;;  %v861_v63 = vsel %vm291_vm2, %v860_v52, %v859_v59  ;;  %v403_v12 = vand.u32 4294901760, %v6542_v56  ;;  %5993 = vmatprep.subr.mxu1 %v6413_v3  ;;  %v1000_v17 = vsub.f32 %v6493_v55, %v6513_v20  ;;  %v5633_v29 = vld [vmem:[%s6442_s29 + $0x18] sm:$0x1]  ;;  %v5634_v30 = vld [vmem:[%s6442_s29 + $0x1a] sm:$0x1] }
  0x25   : > { %v395_v11 = vand.u32 4294901760, %v394_v54  ;;  %v6560_v13 = vand.u32 4294901760, %v870_v62  ;;  %v863_v15 = vsel %vm294_vm3, %v862_v53, %v861_v63  ;;  %5994 = vmatpush3.msra.mxu1 %v6413_v3  ;;  %v868_v21 = vrot.slane %v247_v58, 1  ;;  %v5635_v37 = vld [vmem:[%s6442_s29 + $0x1c] sm:$0x1] }
  0x26   : > { %v865_v19 = vsel %vm297_vm4, %v864_v0, %v863_v15  ;;  %v6569_v22 = vand.u32 4294901760, %v6551_v60  ;;  %v404_v25 = vsub.f32 %v6542_v56, %v403_v12  ;;  %5996 = vmatmul.mubr.f32.vlgmr.msra.gmra.mxu1 %v403_v12  ;;  %v1411_v34 = vrot.slane %v5629_v10, 7  ;;  %6005 = vmatprep.subr.mxu1 %v6411_v2  ;;  %v5637_v39 = vld [vmem:[%s6442_s29 + $0x2c] sm:$0x1]  ;;  %v5636_v44 = vld [vmem:[%s6442_s29 + $0x2a] sm:$0x1] }
  0x27   : > { %5974 = vmatprep.mubr.f32.mxu0 %v395_v11  ;;  %v6575_v26 = vsub.f32 %v870_v62, %v6560_v13  ;;  %v867_v28 = vsel %vm300_vm5, %v866_v1, %v865_v19  ;;  %6009 = vmatprep.mubr.f32.mxu1 %v6509_v18  ;;  %v994_v35 = vand.u32 4294901760, %v993_v61  ;;  %v1413_v38 = vrot.slane %v5630_v16, 6  ;;  %v5638_v46 = vld [vmem:[%s6442_s29 + $0x2e] sm:$0x1]  ;;  %v5639_v49 = vld [vmem:[%s6442_s29 + $0x30] sm:$0x1] }
  0x28   : > { %v869_v36 = vsel %vm303_vm6, %v868_v21, %v867_v28  ;;  %v405_v40 = vand.u32 4294901760, %v404_v25  ;;  %6006 = vmatpush3.msra.mxu1 %v6411_v2  ;;  %v1412_v43 = vsel %vm285_vm0, %v1411_v34, %v5628_v4  ;;  %v6595_v61 = vand.u32 4294901760, %v1000_v17  ;;  %v5640_v2 = vld [vmem:[%s6442_s29 + $0x3e] sm:$0x1]  ;;  %v5641_v57 = vld [vmem:[%s6442_s29 + $0x40] sm:$0x1] }
  0x29   : > { %v943_v41 = vand.u32 4294901760, %v6575_v26  ;;  %v872_v42 = vsel %vm319_vm7, %v869_v36, 0  ;;  %6007 = vmatprep.subr.mxu1 %v6413_v3  ;;  %v1414_v48 = vsel %vm288_vm1, %v1413_v38, %v1412_v43  ;;  %v1415_v52 = vrot.slane %v5631_v23, 5  ;;  %v5642_v63 = vld [vmem:[%s6442_s29 + $0x42] sm:$0x1] }
  0x2a   : > { %v6597_v47 = vand.u32 4294901760, %v872_v42  ;;  %5975 = vmatmul.mubr.f32.vlgmr.msra.gmra.mxu0 %v405_v40  ;;  %6008 = vmatpush3.msra.mxu1 %v6413_v3  ;;  %v1417_v53 = vrot.slane %v5632_v24, 4  ;;  %v1419_v54 = vrot.slane %v5633_v29, 3  ;;  %v1421_v59 = vrot.slane %v5634_v30, 2  ;;  %v5643_v4 = vld [vmem:[%s6442_s29 + $0x44] sm:$0x1] }
  0x2b   : > { %v944_v50 = vsub.f32 %v6575_v26, %v943_v41  ;;  %5985 = vmatpush3.msra.mxu0 %v6422_v5  ;;  %5988 = vmatprep.mubr.f32.mxu0 %v6523_v33  ;;  %v1423_v62 = vrot.slane %v5635_v37, 1  ;;  %v1425_v3 = vrot.slane %v5637_v39, 7  ;;  %v1416_v1 = vsel %vm291_vm2, %v1415_v52, %v1414_v48  ;;  %v5645_v21 = vld [vmem:[%s6442_s29 + $0xc] sm:$0x1]  ;;  %v5644_v29 = vld [vmem:[%s6442_s29 + $0xa] sm:$0x1] }
  0x2c   : > { %v6610_v58 = vsub.f32 %v872_v42, %v6597_v47  ;;  %5986 = vmatprep.subr.mxu0 %v6425_v6  ;;  %6010 = vmatmul.mubr.f32.vlgmr.msra.gmra.mxu1 %v6534_v45  ;;  %v1427_v10 = vrot.slane %v5638_v46, 6  ;;  %v1429_v5 = vrot.slane %v5639_v49, 5  ;;  %v1418_v11 = vsel %vm294_vm3, %v1417_v53, %v1416_v1  ;;  %v5646_v30 = vld [vmem:[%s6442_s29 + $0xe] sm:$0x1]  ;;  %v5647_v34 = vld [vmem:[%s6442_s29 + $0x10] sm:$0x1] }
  0x2d   : > { %v945_v0 = vand.u32 4294901760, %v944_v50  ;;  %5987 = vmatpush3.msra.mxu0 %v6425_v6  ;;  %6019 = vmatprep.subr.mxu1 %v994_v35  ;;  %v1426_v12 = vsel %vm285_vm0, %v1425_v3, %v5636_v44  ;;  %v1431_v15 = vrot.slane %v5640_v2, 4  ;;  %v1420_v16 = vsel %vm297_vm4, %v1419_v54, %v1418_v11  ;;  %v5648_v40 = vld [vmem:[%s6442_s29 + $0x1e] sm:$0x1]  ;;  %v5650_v43 = vld [vmem:[%s6442_s29 + $0x22] sm:$0x1] }
  0x2e   : > { %v953_v33 = vand.u32 4294901760, %v6610_v58  ;;  %5998 = vmatprep.subr.mxu0 %v6432_v8  ;;  %5989 = vmatmul.mubr.f32.vlgmr.msra.gmra.mxu0 %v6542_v56  ;;  %v1428_v17 = vsel %vm288_vm1, %v1427_v10, %v1426_v12  ;;  %v1433_v19 = vrot.slane %v5641_v57, 3  ;;  %v1435_v6 = vrot.slane %v5642_v63, 2  ;;  %v5653_v48 = vld [vmem:[%s6442_s29 + $0x34] sm:$0x1] }
  0x2f   : > { %5999 = vmatpush3.msra.mxu0 %v6432_v8  ;;  %6002 = vmatprep.mubr.f32.mxu0 %v6509_v18  ;;  %v1422_v56 = vsel %vm300_vm5, %v1421_v59, %v1420_v16  ;;  %v1430_v24 = vsel %vm291_vm2, %v1429_v5, %v1428_v17  ;;  %v1437_v25 = vrot.slane %v5643_v4, 1  ;;  %v6636_v28 = vsub.f32 %v6466_v27, %v6488_v51  ;;  %v5654_v52 = vld [vmem:[%s6442_s29 + $0x36] sm:$0x1]  ;;  %v5655_v53 = vld [vmem:[%s6442_s29 + $0x38] sm:$0x1] }
  0x30   : > { %v954_v23 = vsub.f32 %v6610_v58, %v953_v33  ;;  %6000 = vmatprep.subr.mxu0 %v6436_v9  ;;  %6020 = vmatpush3.msra.mxu1 %v994_v35  ;;  %v1424_v8 = vsel %vm303_vm6, %v1423_v62, %v1422_v56  ;;  %v1432_v18 = vsel %vm294_vm3, %v1431_v15, %v1430_v24  ;;  %v1982_v27 = vrot.slane %v5645_v21, 7  ;;  %v5656_v62 = vld [vmem:[%s6442_s29 + $0x46] sm:$0x1]  ;;  %v5651_v63 = vld [vmem:[%s6442_s29 + $0x24] sm:$0x1] }
  0x31   : > { %6001 = vmatpush3.msra.mxu0 %v6436_v9  ;;  %6021 = vmatprep.subr.mxu1 %v6595_v61  ;;  %v1439_v35 = vsel %vm319_vm7, %v1424_v8, 0  ;;  %v1434_v36 = vsel %vm297_vm4, %v1433_v19, %v1432_v18  ;;  %v5649_v9 = vld [vmem:[%s6442_s29 + $0x20] sm:$0x1]  ;;  %v1984_v46 = vrot.slane %v5646_v30, 6  ;;  %v6662_v49 = vand.u32 4294901760, %v6636_v28 }
  0x32   : > { %6012 = vmatprep.subr.mxu0 %v6427_v7  ;;  %6003 = vmatmul.mubr.f32.vlgmr.msra.gmra.mxu0 %v6534_v45  ;;  %v955_v37 = vand.u32 4294901760, %v954_v23  ;;  %v6649_v38 = vand.u32 4294901760, %v1439_v35  ;;  %v1436_v39 = vsel %vm300_vm5, %v1435_v6, %v1434_v36  ;;  %v1983_v44 = vsel %vm285_vm0, %v1982_v27, %v5644_v29  ;;  %v5657_v1 = vld [vmem:[%s6442_s29 + $0x48] sm:$0x1]  ;;  %v5658_v5 = vld [vmem:[%s6442_s29 + $0x4a] sm:$0x1] }
  0x33   : > { %6013 = vmatpush3.msra.mxu0 %v6427_v7  ;;  %6016 = vmatprep.mubr.f32.mxu0 %v945_v0  ;;  %v1438_v42 = vsel %vm303_vm6, %v1437_v25, %v1436_v39  ;;  %v1986_v45 = vrot.slane %v5647_v34, 5  ;;  %v6666_v2 = vsub.f32 %v6551_v60, %v6569_v22  ;;  %v1988_v57 = vrot.slane %v5648_v40, 4  ;;  %v5652_v0 = vld [vmem:[%s6442_s29 + $0x32] sm:$0x1]  ;;  %v5659_v17 = vld [vmem:[%s6442_s29 + $0x4c] sm:$0x1] }
  0x34   : > { %6014 = vmatprep.subr.mxu0 %v6472_v32  ;;  %6022 = vmatpush3.msra.mxu1 %v6595_v61  ;;  %v1441_v50 = vsel %vm319_vm7, %v1438_v42, 0  ;;  %v1985_v61 = vsel %vm288_vm1, %v1984_v46, %v1983_v44  ;;  %v1990_v59 = vrot.slane %v5649_v9, 3  ;;  %v6679_v60 = vsub.f32 %v1439_v35, %v6649_v38  ;;  %v5661_v56 = vld [vmem:[%s6442_s29 + $0xd] sm:$0x1]  ;;  %v5662_v29 = vld [vmem:[%s6442_s29 + $0xf] sm:$0x1] }
  0x35   : > { %6015 = vmatpush3.msra.mxu0 %v6472_v32  ;;  %6023 = vmatprep.mubr.f32.mxu1 %v6560_v13  ;;  %v6673_v54 = vand.u32 4294901760, %v1441_v50  ;;  %v1987_v3 = vsel %vm291_vm2, %v1986_v45, %v1985_v61  ;;  %v1992_v10 = vrot.slane %v5650_v43, 2  ;;  %v1996_v11 = vrot.slane %v5653_v48, 7  ;;  %v5663_v40 = vld [vmem:[%s6442_s29 + $0x11] sm:$0x1] }
  0x36   : > { %6026 = vmatprep.subr.mxu0 %v6452_v14  ;;  %6017 = vmatmul.mubr.f32.vlgmr.msra.gmra.mxu0 %v955_v37  ;;  %v1989_v4 = vsel %vm294_vm3, %v1988_v57, %v1987_v3  ;;  %v1998_v12 = vrot.slane %v5654_v52, 6  ;;  %v2000_v19 = vrot.slane %v5655_v53, 5  ;;  %v6699_v6 = vand.u32 4294901760, %v6666_v2  ;;  %v5660_v37 = vld [vmem:[%s6442_s29 + $0xb] sm:$0x1] }
  0x37   : > { %6024 = vmatmul.mubr.f32.vlgmr.msra.gmra.mxu1 %v6597_v47  ;;  %6027 = vmatpush3.msra.mxu0 %v6452_v14  ;;  %v6692_v15 = vsub.f32 %v1441_v50, %v6673_v54  ;;  %v1991_v16 = vsel %vm297_vm4, %v1990_v59, %v1989_v4  ;;  %v2002_v14 = vrot.slane %v5656_v62, 4  ;;  %v1997_v21 = vsel %vm285_vm0, %v1996_v11, %v5652_v0  ;;  %v5665_v61 = vld [vmem:[%s6442_s29 + $0x21] sm:$0x1]  ;;  %v5669_v59 = vld [vmem:[%s6442_s29 + $0x35] sm:$0x1] }
  0x38   : > { %6033 = vmatprep.subr.mxu1 %v6427_v7  ;;  %6028 = vmatprep.subr.mxu0 %v6493_v55  ;;  %v2004_v23 = vrot.slane %v5657_v1, 3  ;;  %v1512_v24 = vand.u32 4294901760, %v6679_v60  ;;  %v1994_v25 = vrot.slane %v5651_v63, 1  ;;  %v1999_v8 = vsel %vm288_vm1, %v1998_v12, %v1997_v21  ;;  %v5668_v3 = vld [vmem:[%s6442_s29 + $0x33] sm:$0x1] }
  0x39   : > { %6034 = vmatpush3.msra.mxu1 %v6427_v7  ;;  %6029 = vmatpush3.msra.mxu0 %v6493_v55  ;;  %v2006_v18 = vrot.slane %v5658_v5, 2  ;;  %v1993_v55 = vsel %vm300_vm5, %v1992_v10, %v1991_v16  ;;  %v2001_v30 = vsel %vm291_vm2, %v2000_v19, %v1999_v8  ;;  %v2008_v34 = vrot.slane %v5659_v17, 1  ;;  %v5671_v1 = vld [vmem:[%s6442_s29 + $0x39] sm:$0x1]  ;;  %v5672_v4 = vld [vmem:[%s6442_s29 + $0x47] sm:$0x1] }
  0x3a   : > { %6035 = vmatprep.subr.mxu1 %v6472_v32  ;;  %6030 = vmatprep.mubr.f32.mxu0 %v6575_v26  ;;  %v1562_v35 = vsub.f32 %v6636_v28, %v6662_v49  ;;  %v1522_v36 = vand.u32 4294901760, %v6692_v15  ;;  %v2003_v27 = vsel %vm294_vm3, %v2002_v14, %v2001_v30  ;;  %v1569_v26 = vsub.f32 %v6666_v2, %v6699_v6  ;;  %v5673_v17 = vld [vmem:[%s6442_s29 + $0x49] sm:$0x1]  ;;  %v5666_v14 = vld [vmem:[%s6442_s29 + $0x23] sm:$0x1] }
  0x3b   : > { %6036 = vmatpush3.msra.mxu1 %v6472_v32  ;;  %6037 = vmatprep.mubr.f32.mxu1 %v943_v41  ;;  %v1965_v41 = vld [vmem:[%s7523_s1 + $0x38] sm:$0xff]  ;;  %v2005_v39 = vsel %vm297_vm4, %v2004_v23, %v2003_v27  ;;  %v2552_v9 = vrot.slane %v5661_v56, 7  ;;  %v2554_v42 = vrot.slane %v5662_v29, 6  ;;  %v2556_v50 = vrot.slane %v5663_v40, 5  ;;  %v5674_v30 = vld [vmem:[%s6442_s29 + $0x4b] sm:$0x1] }
  0x3c   : > { %6040 = vmatprep.subr.mxu0 %v6470_v31  ;;  %6031 = vmatmul.mubr.f32.vlgmr.msra.gmra.mxu0 %v6610_v58  ;;  %v1995_v58 = vsel %vm303_vm6, %v1994_v25, %v1993_v55  ;;  %v1563_v46 = vand.u32 4294901760, %v1562_v35  ;;  %v1523_v45 = vsub.f32 %v6692_v15, %v1522_v36  ;;  %v6746_v48 = vand.u32 4294901760, %v1965_v41  ;;  %v5667_v27 = vld [vmem:[%s6442_s29 + $0x25] sm:$0x1] }
  0x3d   : > { %6038 = vmatmul.mubr.f32.vlgmr.msra.gmra.mxu1 %v953_v33  ;;  %6041 = vmatpush3.msra.mxu0 %v6470_v31  ;;  %v1513_v31 = vsub.f32 %v6679_v60, %v1512_v24  ;;  %v2007_v33 = vsel %vm300_vm5, %v2006_v18, %v2005_v39  ;;  %v2553_v44 = vsel %vm285_vm0, %v2552_v9, %v5660_v37  ;;  %v1570_v52 = vand.u32 4294901760, %v1569_v26 }
  0x3e   : > { %6047 = vmatprep.subr.mxu1 %v6427_v7  ;;  %6042 = vmatprep.subr.mxu0 %v6513_v20  ;;  %v2009_v43 = vsel %vm303_vm6, %v2008_v34, %v2007_v33  ;;  %v2010_v53 = vsel %vm319_vm7, %v1995_v58, 0  ;;  %v2555_v57 = vsel %vm288_vm1, %v2554_v42, %v2553_v44  ;;  %v1524_v10 = vand.u32 4294901760, %v1523_v45  ;;  %v5675_v42 = vld [vmem:[%s6442_s29 + $0x4d] sm:$0x1]  ;;  %v5678_v44 = vld [vmem:[%s6442_s29 + $0x10] sm:$0x1] }
  0x3f   : > { %6048 = vmatpush3.msra.mxu1 %v6427_v7  ;;  %6043 = vmatpush3.msra.mxu0 %v6513_v20  ;;  %v1964_v7 = vld [vmem:[%s7523_s1 + $0x30] sm:$0xff]  ;;  %v5664_v20 = vld [vmem:[%s6442_s29 + $0x1f] sm:$0x1]  ;;  %v1514_v62 = vand.u32 4294901760, %v1513_v31  ;;  %v2012_v63 = vsel %vm319_vm7, %v2009_v43, 0  ;;  %v6770_v5 = vand.u32 4294901760, %v2010_v53  ;;  %v2557_v11 = vsel %vm291_vm2, %v2556_v50, %v2555_v57 }
  0x40   : > { %6049 = vmatprep.subr.mxu1 %v6472_v32  ;;  %6044 = vmatprep.mubr.f32.mxu0 %v6560_v13  ;;  %v2558_v0 = vrot.slane %v5664_v20, 4  ;;  %v2566_v12 = vrot.slane %v5669_v59, 7  ;;  %v6777_v16 = vand.u32 4294901760, %v2012_v63  ;;  %v2560_v21 = vrot.slane %v5665_v61, 3  ;;  %v5676_v45 = vld [vmem:[%s6442_s29 + $0xc] sm:$0x1] }
  0x41   : > { %6050 = vmatpush3.msra.mxu1 %v6472_v32  ;;  %6051 = vmatprep.mubr.f32.mxu1 %v6560_v13  ;;  %v5670_v32 = vld [vmem:[%s6442_s29 + $0x37] sm:$0x1]  ;;  %v6765_v13 = vand.u32 4294901760, %v1964_v7  ;;  %v2570_v56 = vrot.slane %v5671_v1, 5  ;;  %v2572_v25 = vrot.slane %v5672_v4, 4  ;;  %v6790_v55 = vsub.f32 %v2010_v53, %v6770_v5  ;;  %v2534_v4 = vld [vmem:[%s7523_s1 + $0x40] sm:$0xff] }
  0x42   : > { %6054 = vmatprep.subr.mxu0 %v6488_v51  ;;  %6045 = vmatmul.mubr.f32.vlgmr.msra.gmra.mxu0 %v6597_v47  ;;  %v2568_v19 = vrot.slane %v5670_v32, 6  ;;  %v2567_v23 = vsel %vm285_vm0, %v2566_v12, %v5668_v3  ;;  %v2559_v18 = vsel %vm294_vm3, %v2558_v0, %v2557_v11  ;;  %v2574_v35 = vrot.slane %v5673_v17, 3  ;;  %v5686_v53 = vld [vmem:[%s6442_s29 + $0x38] sm:$0x1]  ;;  %v5679_v61 = vld [vmem:[%s6442_s29 + $0x12] sm:$0x1] }
  0x43   : > { %6052 = vmatmul.mubr.f32.vlgmr.msra.gmra.mxu1 %v6597_v47  ;;  %6055 = vmatpush3.msra.mxu0 %v6488_v51  ;;  %v6775_v47 = vsub.f32 %v1965_v41, %v6746_v48  ;;  %v6784_v8 = vsub.f32 %v1964_v7, %v6765_v13  ;;  %v2562_v37 = vrot.slane %v5666_v14, 2  ;;  %v5677_v41 = vld [vmem:[%s6442_s29 + $0xe] sm:$0x1]  ;;  %v6805_v40 = vsub.f32 %v2012_v63, %v6777_v16  ;;  %v5687_v63 = vld [vmem:[%s6442_s29 + $0x3a] sm:$0x1] }
  0x44   : > { %6061 = vmatprep.subr.mxu1 %v1563_v46  ;;  %6056 = vmatprep.subr.mxu0 %v6569_v22  ;;  %v2569_v29 = vsel %vm288_vm1, %v2568_v19, %v2567_v23  ;;  %v2561_v9 = vsel %vm297_vm4, %v2560_v21, %v2559_v18  ;;  %v2576_v31 = vrot.slane %v5674_v30, 2  ;;  %v2083_v58 = vand.u32 4294901760, %v6790_v55  ;;  %v5688_v23 = vld [vmem:[%s6442_s29 + $0x48] sm:$0x1] }
  0x45   : > { %6062 = vmatpush3.msra.mxu1 %v1563_v46  ;;  %6057 = vmatpush3.msra.mxu0 %v6569_v22  ;;  %v2571_v34 = vsel %vm291_vm2, %v2570_v56, %v2569_v29  ;;  %v6802_v39 = vand.u32 4294901760, %v6775_v47  ;;  %v2564_v33 = vrot.slane %v5667_v27, 1  ;;  %v3123_v46 = vrot.slane %v5677_v41, 7  ;;  %v5689_v27 = vld [vmem:[%s6442_s29 + $0x4a] sm:$0x1] }
  0x46   : > { %6063 = vmatprep.subr.mxu1 %v1570_v52  ;;  %6058 = vmatprep.mubr.f32.mxu0 %v1514_v62  ;;  %v2573_v26 = vsel %vm294_vm3, %v2572_v25, %v2571_v34  ;;  %v2093_v20 = vand.u32 4294901760, %v6805_v40  ;;  %v2578_v50 = vrot.slane %v5675_v42, 1  ;;  %v3125_v57 = vrot.slane %v5678_v44, 6  ;;  %v5684_v62 = vld [vmem:[%s6442_s29 + $0x34] sm:$0x1] }
  0x47   : > { %6064 = vmatpush3.msra.mxu1 %v1570_v52  ;;  %6065 = vmatprep.mubr.f32.mxu1 %v6649_v38  ;;  %v2575_v43 = vsel %vm297_vm4, %v2574_v35, %v2573_v26  ;;  %v2133_v7 = vsub.f32 %v6775_v47, %v6802_v39  ;;  %v5685_v52 = vld [vmem:[%s6442_s29 + $0x36] sm:$0x1]  ;;  %v2084_v59 = vsub.f32 %v6790_v55, %v2083_v58  ;;  %v3139_v32 = vrot.slane %v5686_v53, 6  ;;  %v5681_v25 = vld [vmem:[%s6442_s29 + $0x22] sm:$0x1] }
  0x48   : > { %6068 = vmatprep.subr.mxu0 %v6636_v28  ;;  %6059 = vmatmul.mubr.f32.vlgmr.msra.gmra.mxu0 %v1524_v10  ;;  %v3137_v3 = vrot.slane %v5685_v52, 7  ;;  %v2094_v1 = vsub.f32 %v6805_v40, %v2093_v20  ;;  %v3127_v10 = vrot.slane %v5679_v61, 5  ;;  %v3141_v56 = vrot.slane %v5687_v63, 5  ;;  %v5682_v41 = vld [vmem:[%s6442_s29 + $0x24] sm:$0x1] }
  0x49   : > { %6066 = vmatmul.mubr.f32.vlgmr.msra.gmra.mxu1 %v6673_v54  ;;  %6069 = vmatpush3.msra.mxu0 %v6636_v28  ;;  %v6811_v28 = vand.u32 4294901760, %v6784_v8  ;;  %v2134_v0 = vand.u32 4294901760, %v2133_v7  ;;  %v2085_v21 = vand.u32 4294901760, %v2084_v59  ;;  %v5690_v44 = vld [vmem:[%s6442_s29 + $0x4c] sm:$0x1]  ;;  %v3133_v7 = vrot.slane %v5682_v41, 2 }
  0x4a   : > { %6075 = vmatprep.subr.mxu1 %v6488_v51  ;;  %6070 = vmatprep.subr.mxu0 %v6666_v2  ;;  %v3138_v19 = vsel %vm285_vm0, %v3137_v3, %v5684_v62  ;;  %v2095_v30 = vand.u32 4294901760, %v2094_v1  ;;  %v5693_v52 = vld [vmem:[%s6442_s29 + $0x16] sm:$0x1]  ;;  %v3147_v61 = vrot.slane %v5690_v44, 2  ;;  %v5692_v3 = vld [vmem:[%s6442_s29 + $0x14] sm:$0x1] }
  0x4b   : > { %6076 = vmatpush3.msra.mxu1 %v6488_v51  ;;  %6071 = vmatpush3.msra.mxu0 %v6666_v2  ;;  %v2563_v2 = vsel %vm300_vm5, %v2562_v37, %v2561_v9  ;;  %v3140_v29 = vsel %vm288_vm1, %v3139_v32, %v3138_v19  ;;  %v3143_v37 = vrot.slane %v5688_v23, 4  ;;  %v3131_v9 = vrot.slane %v5681_v25, 3  ;;  %v5702_v1 = vld [vmem:[%s6442_s29 + $0x40] sm:$0x1]  ;;  %v5703_v19 = vld [vmem:[%s6442_s29 + $0x42] sm:$0x1] }
  0x4c   : > { %6077 = vmatprep.subr.mxu1 %v6569_v22  ;;  %6072 = vmatprep.mubr.f32.mxu0 %v6679_v60  ;;  %v2140_v60 = vsub.f32 %v6784_v8, %v6811_v28  ;;  %v3142_v42 = vsel %vm291_vm2, %v3141_v56, %v3140_v29  ;;  %v3694_v62 = vrot.slane %v5693_v52, 7  ;;  %v3105_v23 = vld [vmem:[%s7523_s1 + $0x50] sm:$0xff]  ;;  %v5696_v56 = vld [vmem:[%s6442_s29 + $0x28] sm:$0x1]  ;;  %v5697_v41 = vld [vmem:[%s6442_s29 + $0x2a] sm:$0x1] }
  0x4d   : > { %6078 = vmatpush3.msra.mxu1 %v6569_v22  ;;  %6079 = vmatprep.mubr.f32.mxu1 %v1512_v24  ;;  %v2577_v24 = vsel %vm300_vm5, %v2576_v31, %v2575_v43  ;;  %v5698_v52 = vld [vmem:[%s6442_s29 + $0x2c] sm:$0x1] }
  0x4e   : > { %6082 = vmatprep.subr.mxu0 %v6662_v49  ;;  %6073 = vmatmul.mubr.f32.vlgmr.msra.gmra.mxu0 %v6692_v15  ;;  %v2565_v15 = vsel %vm303_vm6, %v2564_v33, %v2563_v2  ;;  %v2141_v14 = vand.u32 4294901760, %v2140_v60 }
  0x4f   : > { %6080 = vmatmul.mubr.f32.vlgmr.msra.gmra.mxu1 %v1522_v36  ;;  %6083 = vmatpush3.msra.mxu0 %v6662_v49  ;;  %v2535_v49 = vld [vmem:[%s7523_s1 + $0x48] sm:$0xff]  ;;  %v3124_v36 = vsel %vm285_vm0, %v3123_v46, %v5676_v45  ;;  %v2580_v12 = vsel %vm319_vm7, %v2565_v15, 0  ;;  %v3145_v46 = vrot.slane %v5689_v27, 3  ;;  %v5683_v45 = vld [vmem:[%s6442_s29 + $0x26] sm:$0x1] }
  0x50   : > { %6089 = vmatprep.subr.mxu1 %v6488_v51  ;;  %6084 = vmatprep.subr.mxu0 %v6699_v6  ;;  %v6864_v11 = vand.u32 4294901760, %v2535_v49  ;;  %v3126_v17 = vsel %vm288_vm1, %v3125_v57, %v3124_v36  ;;  %v6880_v34 = vand.u32 4294901760, %v2580_v12  ;;  %v5701_v57 = vld [vmem:[%s6442_s29 + $0x3e] sm:$0x1]  ;;  %v5694_v36 = vld [vmem:[%s6442_s29 + $0x18] sm:$0x1] }
  0x51   : > { %6090 = vmatpush3.msra.mxu1 %v6488_v51  ;;  %6085 = vmatpush3.msra.mxu0 %v6699_v6  ;;  %v2579_v51 = vsel %vm303_vm6, %v2578_v50, %v2577_v24  ;;  %v5680_v6 = vld [vmem:[%s6442_s29 + $0x20] sm:$0x1]  ;;  %v3128_v35 = vsel %vm291_vm2, %v3127_v10, %v3126_v17  ;;  %v3144_v50 = vsel %vm294_vm3, %v3143_v37, %v3142_v42  ;;  %v5691_v24 = vld [vmem:[%s6442_s29 + $0x4e] sm:$0x1]  ;;  %v5700_v10 = vld [vmem:[%s6442_s29 + $0x3c] sm:$0x1] }
  0x52   : > { %6091 = vmatprep.subr.mxu1 %v6569_v22  ;;  %6086 = vmatprep.mubr.f32.mxu0 %v6649_v38  ;;  %v3129_v18 = vrot.slane %v5680_v6, 4  ;;  %v6899_v43 = vsub.f32 %v2580_v12, %v6880_v34  ;;  %v3146_v15 = vsel %vm297_vm4, %v3145_v46, %v3144_v50  ;;  %v3696_v6 = vrot.slane %v5694_v36, 6  ;;  %v5704_v27 = vld [vmem:[%s6442_s29 + $0x50] sm:$0x1] }
  0x53   : > { %6092 = vmatpush3.msra.mxu1 %v6569_v22  ;;  %6093 = vmatprep.mubr.f32.mxu1 %v6649_v38  ;;  %v6874_v22 = vand.u32 4294901760, %v2534_v4  ;;  %v2582_v38 = vsel %vm319_vm7, %v2579_v51, 0  ;;  %v5695_v51 = vld [vmem:[%s6442_s29 + $0x1a] sm:$0x1]  ;;  %v3695_v12 = vsel %vm285_vm0, %v3694_v62, %v5692_v3  ;;  %v3712_v37 = vrot.slane %v5703_v19, 5 }
  0x54   : > { %6096 = vmatprep.subr.mxu0 %v6746_v48  ;;  %6087 = vmatmul.mubr.f32.vlgmr.msra.gmra.mxu0 %v6673_v54  ;;  %v6888_v26 = vand.u32 4294901760, %v2582_v38  ;;  %v3130_v33 = vsel %vm294_vm3, %v3129_v18, %v3128_v35  ;;  %v2653_v59 = vand.u32 4294901760, %v6899_v43  ;;  %v3697_v29 = vsel %vm288_vm1, %v3696_v6, %v3695_v12 }
  0x55   : > { %6094 = vmatmul.mubr.f32.vlgmr.msra.gmra.mxu1 %v6673_v54  ;;  %6097 = vmatpush3.msra.mxu0 %v6746_v48  ;;  %v6885_v54 = vsub.f32 %v2535_v49, %v6864_v11  ;;  %v6894_v31 = vsub.f32 %v2534_v4, %v6874_v22  ;;  %v3132_v60 = vsel %vm297_vm4, %v3131_v9, %v3130_v33  ;;  %v3135_v49 = vrot.slane %v5683_v45, 1  ;;  %v5705_v45 = vld [vmem:[%s6442_s29 + $0x52] sm:$0x1] }
  0x56   : > { %6103 = vmatprep.subr.mxu1 %v2134_v0  ;;  %6098 = vmatprep.subr.mxu0 %v6765_v13  ;;  %v6913_v53 = vsub.f32 %v2582_v38, %v6888_v26  ;;  %v3134_v63 = vsel %vm300_vm5, %v3133_v7, %v3132_v60  ;;  %v3708_v4 = vrot.slane %v5701_v57, 7  ;;  %v3700_v9 = vrot.slane %v5696_v56, 4 }
  0x57   : > { %6104 = vmatpush3.msra.mxu1 %v2134_v0  ;;  %6099 = vmatpush3.msra.mxu0 %v6765_v13  ;;  %v6905_v2 = vand.u32 4294901760, %v6885_v54  ;;  %v3149_v0 = vrot.slane %v5691_v24, 1  ;;  %v3714_v7 = vrot.slane %v5704_v27, 4  ;;  %v3702_v60 = vrot.slane %v5697_v41, 3  ;;  %v3676_v27 = vld [vmem:[%s7523_s1 + $0x60] sm:$0xff] }
  0x58   : > { %6105 = vmatprep.subr.mxu1 %v2141_v14  ;;  %6100 = vmatprep.mubr.f32.mxu0 %v2085_v21  ;;  %v2663_v32 = vand.u32 4294901760, %v6913_v53  ;;  %v3709_v38 = vsel %vm285_vm0, %v3708_v4, %v5700_v10  ;;  %v3716_v36 = vrot.slane %v5705_v45, 3  ;;  %v5720_v45 = vld [vmem:[%s6442_s29 + $0x51] sm:$0x1] }
  0x59   : > { %6106 = vmatpush3.msra.mxu1 %v2141_v14  ;;  %6107 = vmatprep.mubr.f32.mxu1 %v6770_v5  ;;  %v3710_v14 = vrot.slane %v5702_v1, 6 }
  0x5a   : > { %6110 = vmatprep.subr.mxu0 %v6775_v47  ;;  %6101 = vmatmul.mubr.f32.vlgmr.msra.gmra.mxu0 %v2095_v30  ;;  %v2664_v21 = vsub.f32 %v6913_v53, %v2663_v32 }
  0x5b   : > { %6108 = vmatmul.mubr.f32.vlgmr.msra.gmra.mxu1 %v6777_v16  ;;  %6111 = vmatpush3.msra.mxu0 %v6775_v47  ;;  %v6919_v47 = vand.u32 4294901760, %v6894_v31  ;;  %v3711_v42 = vsel %vm288_vm1, %v3710_v14, %v3709_v38 }
  0x5c   : > { %6117 = vmatprep.subr.mxu1 %v6746_v48  ;;  %6112 = vmatprep.subr.mxu0 %v6784_v8  ;;  %v2665_v33 = vand.u32 4294901760, %v2664_v21  ;;  %v3713_v24 = vsel %vm291_vm2, %v3712_v37, %v3711_v42  ;;  %v5718_v21 = vld [vmem:[%s6442_s29 + $0x41] sm:$0x1]  ;;  %v5712_v37 = vld [vmem:[%s6442_s29 + $0x29] sm:$0x1] }
  0x5d   : > { %6118 = vmatpush3.msra.mxu1 %v6746_v48  ;;  %6113 = vmatpush3.msra.mxu0 %v6784_v8  ;;  %v2703_v8 = vsub.f32 %v6885_v54, %v6905_v2  ;;  %v3715_v3 = vsel %vm294_vm3, %v3714_v7, %v3713_v24 }
  0x5e   : > { %6119 = vmatprep.subr.mxu1 %v6765_v13  ;;  %6114 = vmatprep.mubr.f32.mxu0 %v6790_v55  ;;  %v2710_v55 = vsub.f32 %v6894_v31, %v6919_v47 }
  0x5f   : > { %6120 = vmatpush3.msra.mxu1 %v6765_v13  ;;  %6121 = vmatprep.mubr.f32.mxu1 %v2083_v58  ;;  %v3148_v58 = vsel %vm300_vm5, %v3147_v61, %v3146_v15  ;;  %v2704_v17 = vand.u32 4294901760, %v2703_v8  ;;  %v5706_v15 = vld [vmem:[%s6442_s29 + $0x54] sm:$0x1]  ;;  %v5699_v8 = vld [vmem:[%s6442_s29 + $0x2e] sm:$0x1] }
  0x60   : > { %6124 = vmatprep.subr.mxu0 %v6802_v39  ;;  %6115 = vmatmul.mubr.f32.vlgmr.msra.gmra.mxu0 %v6805_v40  ;;  %v2654_v40 = vsub.f32 %v6899_v43, %v2653_v59  ;;  %v2711_v30 = vand.u32 4294901760, %v2710_v55  ;;  %v5707_v55 = vld [vmem:[%s6442_s29 + $0x56] sm:$0x1]  ;;  %v3706_v10 = vrot.slane %v5699_v8, 1  ;;  %v5721_v8 = vld [vmem:[%s6442_s29 + $0x53] sm:$0x1] }
  0x61   : > { %6122 = vmatmul.mubr.f32.vlgmr.msra.gmra.mxu1 %v2093_v20  ;;  %6125 = vmatpush3.msra.mxu0 %v6802_v39  ;;  %v3106_v39 = vld [vmem:[%s7523_s1 + $0x58] sm:$0xff]  ;;  %v3136_v20 = vsel %vm303_vm6, %v3135_v49, %v3134_v63  ;;  %v3704_v63 = vrot.slane %v5698_v52, 2  ;;  %v3720_v14 = vrot.slane %v5707_v55, 1  ;;  %v5713_v52 = vld [vmem:[%s6442_s29 + $0x2b] sm:$0x1] }
  0x62   : > { %6131 = vmatprep.subr.mxu1 %v6746_v48  ;;  %6126 = vmatprep.subr.mxu0 %v6811_v28  ;;  %v6973_v25 = vand.u32 4294901760, %v3106_v39  ;;  %v3151_v18 = vsel %vm319_vm7, %v3136_v20, 0  ;;  %v2655_v35 = vand.u32 4294901760, %v2654_v40  ;;  %v3717_v40 = vsel %vm297_vm4, %v3716_v36, %v3715_v3 }
  0x63   : > { %6132 = vmatpush3.msra.mxu1 %v6746_v48  ;;  %6127 = vmatpush3.msra.mxu0 %v6811_v28  ;;  %v3150_v48 = vsel %vm303_vm6, %v3149_v0, %v3148_v58  ;;  %v3698_v28 = vrot.slane %v5695_v51, 5  ;;  %v6988_v44 = vand.u32 4294901760, %v3151_v18  ;;  %v5709_v0 = vld [vmem:[%s6442_s29 + $0x17] sm:$0x1]  ;;  %v3718_v58 = vrot.slane %v5706_v15, 2 }
  0x64   : > { %6133 = vmatprep.subr.mxu1 %v6765_v13  ;;  %6128 = vmatprep.mubr.f32.mxu0 %v6770_v5  ;;  %v5717_v51 = vld [vmem:[%s6442_s29 + $0x3f] sm:$0x1]  ;;  %v4264_v20 = vrot.slane %v5709_v0, 7  ;;  %v5714_v0 = vld [vmem:[%s6442_s29 + $0x2d] sm:$0x1] }
  0x65   : > { %6134 = vmatpush3.msra.mxu1 %v6765_v13  ;;  %6135 = vmatprep.mubr.f32.mxu1 %v6770_v5  ;;  %v6982_v13 = vand.u32 4294901760, %v3105_v23  ;;  %v3153_v5 = vsel %vm319_vm7, %v3150_v48, 0  ;;  %v3699_v46 = vsel %vm291_vm2, %v3698_v28, %v3697_v29  ;;  %v7007_v49 = vsub.f32 %v3151_v18, %v6988_v44  ;;  %v5711_v48 = vld [vmem:[%s6442_s29 + $0x1b] sm:$0x1]  ;;  %v5716_v28 = vld [vmem:[%s6442_s29 + $0x3d] sm:$0x1] }
  0x66   : > { %6138 = vmatprep.subr.mxu0 %v6864_v11  ;;  %6129 = vmatmul.mubr.f32.vlgmr.msra.gmra.mxu0 %v6777_v16  ;;  %v6996_v50 = vand.u32 4294901760, %v3153_v5  ;;  %v3701_v57 = vsel %vm294_vm3, %v3700_v9, %v3699_v46  ;;  %v5719_v29 = vld [vmem:[%s6442_s29 + $0x43] sm:$0x1] }
  0x67   : > { %6136 = vmatmul.mubr.f32.vlgmr.msra.gmra.mxu1 %v6777_v16  ;;  %6139 = vmatpush3.msra.mxu0 %v6864_v11  ;;  %v6993_v16 = vsub.f32 %v3106_v39, %v6973_v25  ;;  %v7002_v61 = vsub.f32 %v3105_v23, %v6982_v13  ;;  %v3703_v4 = vsel %vm297_vm4, %v3702_v60, %v3701_v57  ;;  %v3224_v6 = vand.u32 4294901760, %v7007_v49  ;;  %v5710_v39 = vld [vmem:[%s6442_s29 + $0x19] sm:$0x1] }
  0x68   : > { %6145 = vmatprep.subr.mxu1 %v2704_v17  ;;  %6140 = vmatprep.subr.mxu0 %v6874_v22  ;;  %v7021_v1 = vsub.f32 %v3153_v5, %v6996_v50  ;;  %v3705_v12 = vsel %vm300_vm5, %v3704_v63, %v3703_v4  ;;  %v4278_v23 = vrot.slane %v5717_v51, 7  ;;  %v4266_v56 = vrot.slane %v5710_v39, 6 }
  0x69   : > { %6146 = vmatpush3.msra.mxu1 %v2704_v17  ;;  %6141 = vmatpush3.msra.mxu0 %v6874_v22  ;;  %v7013_v62 = vand.u32 4294901760, %v6993_v16  ;;  %v5708_v17 = vld [vmem:[%s6442_s29 + $0x15] sm:$0x1]  ;;  %v4282_v7 = vrot.slane %v5719_v29, 5  ;;  %v4270_v60 = vrot.slane %v5712_v37, 4  ;;  %v4284_v63 = vrot.slane %v5720_v45, 4 }
  0x6a   : > { %6147 = vmatprep.subr.mxu1 %v2711_v30  ;;  %6142 = vmatprep.mubr.f32.mxu0 %v2655_v35  ;;  %v3234_v19 = vand.u32 4294901760, %v7021_v1  ;;  %v4265_v38 = vsel %vm285_vm0, %v4264_v20, %v5708_v17  ;;  %v4279_v5 = vsel %vm285_vm0, %v4278_v23, %v5716_v28  ;;  %v4272_v4 = vrot.slane %v5713_v52, 3  ;;  %v5728_v45 = vld [vmem:[%s6442_s29 + $0x2a] sm:$0x1] }
  0x6b   : > { %6148 = vmatpush3.msra.mxu1 %v2711_v30  ;;  %6149 = vmatprep.mubr.f32.mxu1 %v6880_v34  ;;  %v4280_v30 = vrot.slane %v5718_v21, 6  ;;  %v4267_v42 = vsel %vm288_vm1, %v4266_v56, %v4265_v38  ;;  %v4286_v39 = vrot.slane %v5721_v8, 3  ;;  %v5736_v8 = vld [vmem:[%s6442_s29 + $0x52] sm:$0x1] }
  0x6c   : > { %6152 = vmatprep.subr.mxu0 %v6885_v54  ;;  %6143 = vmatmul.mubr.f32.vlgmr.msra.gmra.mxu0 %v2665_v33  ;;  %v3235_v35 = vsub.f32 %v7021_v1, %v3234_v19 }
  0x6d   : > { %6150 = vmatmul.mubr.f32.vlgmr.msra.gmra.mxu1 %v6888_v26  ;;  %6153 = vmatpush3.msra.mxu0 %v6885_v54  ;;  %v7027_v54 = vand.u32 4294901760, %v7002_v61  ;;  %v4281_v24 = vsel %vm288_vm1, %v4280_v30, %v4279_v5 }
  0x6e   : > { %6159 = vmatprep.subr.mxu1 %v6864_v11  ;;  %6154 = vmatprep.subr.mxu0 %v6894_v31  ;;  %v3236_v57 = vand.u32 4294901760, %v3235_v35  ;;  %v4283_v55 = vsel %vm291_vm2, %v4282_v7, %v4281_v24  ;;  %v5734_v35 = vld [vmem:[%s6442_s29 + $0x42] sm:$0x1] }
  0x6f   : > { %6160 = vmatpush3.msra.mxu1 %v6864_v11  ;;  %6155 = vmatpush3.msra.mxu0 %v6894_v31  ;;  %v3274_v31 = vsub.f32 %v6993_v16, %v7013_v62  ;;  %v4285_v17 = vsel %vm294_vm3, %v4284_v63, %v4283_v55  ;;  %v5729_v63 = vld [vmem:[%s6442_s29 + $0x2c] sm:$0x1] }
  0x70   : > { %6161 = vmatprep.subr.mxu1 %v6874_v22  ;;  %6156 = vmatprep.mubr.f32.mxu0 %v6899_v43  ;;  %v3281_v43 = vsub.f32 %v7002_v61, %v7027_v54 }
  0x71   : > { %6162 = vmatpush3.msra.mxu1 %v6874_v22  ;;  %6163 = vmatprep.mubr.f32.mxu1 %v2653_v59  ;;  %v3719_v59 = vsel %vm300_vm5, %v3718_v58, %v3717_v40  ;;  %v3275_v18 = vand.u32 4294901760, %v3274_v31  ;;  %v5722_v40 = vld [vmem:[%s6442_s29 + $0x55] sm:$0x1]  ;;  %v5715_v31 = vld [vmem:[%s6442_s29 + $0x2f] sm:$0x1] }
  0x72   : > { %6166 = vmatprep.subr.mxu0 %v6905_v2  ;;  %6157 = vmatmul.mubr.f32.vlgmr.msra.gmra.mxu0 %v6913_v53  ;;  %v3225_v53 = vsub.f32 %v7007_v49, %v3224_v6  ;;  %v3282_v33 = vand.u32 4294901760, %v3281_v43  ;;  %v5723_v43 = vld [vmem:[%s6442_s29 + $0x57] sm:$0x1]  ;;  %v4276_v28 = vrot.slane %v5715_v31, 1  ;;  %v4855_v31 = vrot.slane %v5736_v8, 4 }
  0x73   : > { %6164 = vmatmul.mubr.f32.vlgmr.msra.gmra.mxu1 %v2663_v32  ;;  %6167 = vmatpush3.msra.mxu0 %v6905_v2  ;;  %v3677_v2 = vld [vmem:[%s7523_s1 + $0x68] sm:$0xff]  ;;  %v3707_v32 = vsel %vm303_vm6, %v3706_v10, %v3705_v12  ;;  %v4274_v12 = vrot.slane %v5714_v0, 2  ;;  %v4290_v30 = vrot.slane %v5723_v43, 1  ;;  %v4841_v0 = vrot.slane %v5728_v45, 4 }
  0x74   : > { %6173 = vmatprep.subr.mxu1 %v6864_v11  ;;  %6168 = vmatprep.subr.mxu0 %v6919_v47  ;;  %v7081_v41 = vand.u32 4294901760, %v3677_v2  ;;  %v3722_v9 = vsel %vm319_vm7, %v3707_v32, 0  ;;  %v3226_v46 = vand.u32 4294901760, %v3225_v53  ;;  %v4287_v53 = vsel %vm297_vm4, %v4286_v39, %v4285_v17 }
  0x75   : > { %6174 = vmatpush3.msra.mxu1 %v6864_v11  ;;  %6169 = vmatpush3.msra.mxu0 %v6919_v47  ;;  %v3721_v11 = vsel %vm303_vm6, %v3720_v14, %v3719_v59  ;;  %v4268_v47 = vrot.slane %v5711_v48, 5  ;;  %v7096_v15 = vand.u32 4294901760, %v3722_v9  ;;  %v5725_v14 = vld [vmem:[%s6442_s29 + $0x18] sm:$0x1]  ;;  %v4288_v59 = vrot.slane %v5722_v40, 2 }
  0x76   : > { %6175 = vmatprep.subr.mxu1 %v6874_v22  ;;  %6170 = vmatprep.mubr.f32.mxu0 %v6880_v34  ;;  %v5733_v48 = vld [vmem:[%s6442_s29 + $0x40] sm:$0x1]  ;;  %v4835_v32 = vrot.slane %v5725_v14, 7  ;;  %v5730_v14 = vld [vmem:[%s6442_s29 + $0x2e] sm:$0x1] }
  0x77   : > { %6176 = vmatpush3.msra.mxu1 %v6874_v22  ;;  %6177 = vmatprep.mubr.f32.mxu1 %v6880_v34  ;;  %v7090_v22 = vand.u32 4294901760, %v3676_v27  ;;  %v3724_v34 = vsel %vm319_vm7, %v3721_v11, 0  ;;  %v4269_v36 = vsel %vm291_vm2, %v4268_v47, %v4267_v42  ;;  %v7115_v10 = vsub.f32 %v3722_v9, %v7096_v15  ;;  %v5727_v11 = vld [vmem:[%s6442_s29 + $0x1c] sm:$0x1]  ;;  %v5732_v47 = vld [vmem:[%s6442_s29 + $0x3e] sm:$0x1] }
  0x78   : > { %6180 = vmatprep.subr.mxu0 %v6973_v25  ;;  %6171 = vmatmul.mubr.f32.vlgmr.msra.gmra.mxu0 %v6888_v26  ;;  %v7104_v3 = vand.u32 4294901760, %v3724_v34  ;;  %v4271_v51 = vsel %vm294_vm3, %v4270_v60, %v4269_v36  ;;  %v4247_v9 = vld [vmem:[%s7523_s1 + $0x78] sm:$0xff]  ;;  %v5735_v42 = vld [vmem:[%s6442_s29 + $0x44] sm:$0x1] }
  0x79   : > { %6178 = vmatmul.mubr.f32.vlgmr.msra.gmra.mxu1 %v6888_v26  ;;  %6181 = vmatpush3.msra.mxu0 %v6973_v25  ;;  %v7101_v26 = vsub.f32 %v3677_v2, %v7081_v41  ;;  %v7110_v58 = vsub.f32 %v3676_v27, %v7090_v22  ;;  %v4273_v23 = vsel %vm297_vm4, %v4272_v4, %v4271_v51  ;;  %v3795_v56 = vand.u32 4294901760, %v7115_v10  ;;  %v5726_v2 = vld [vmem:[%s6442_s29 + $0x1a] sm:$0x1] }
  0x7a   : > { %6187 = vmatprep.subr.mxu1 %v3275_v18  ;;  %6182 = vmatprep.subr.mxu0 %v6982_v13  ;;  %v7129_v21 = vsub.f32 %v3724_v34, %v7104_v3  ;;  %v4275_v38 = vsel %vm300_vm5, %v4274_v12, %v4273_v23  ;;  %v4849_v27 = vrot.slane %v5733_v48, 7  ;;  %v4837_v37 = vrot.slane %v5726_v2, 6  ;;  %v4246_v34 = vld [vmem:[%s7523_s1 + $0x70] sm:$0xff] }
  0x7b   : > { %6188 = vmatpush3.msra.mxu1 %v3275_v18  ;;  %6183 = vmatpush3.msra.mxu0 %v6982_v13  ;;  %v7121_v20 = vand.u32 4294901760, %v7101_v26  ;;  %v5724_v18 = vld [vmem:[%s6442_s29 + $0x16] sm:$0x1]  ;;  %v7193_v36 = vand.u32 4294901760, %v4247_v9  ;;  %v7202_v51 = vand.u32 4294901760, %v4246_v34  ;;  %v4843_v23 = vrot.slane %v5729_v63, 3 }
  0x7c   : > { %6189 = vmatprep.subr.mxu1 %v3282_v33  ;;  %6184 = vmatprep.mubr.f32.mxu0 %v3226_v46  ;;  %v3805_v29 = vand.u32 4294901760, %v7129_v21  ;;  %v4850_v7 = vsel %vm285_vm0, %v4849_v27, %v5732_v47 }
  0x7d   : > { %6190 = vmatpush3.msra.mxu1 %v3282_v33  ;;  %6191 = vmatprep.mubr.f32.mxu1 %v6988_v44  ;;  %v4851_v33 = vrot.slane %v5734_v35, 6  ;;  %v7210_v12 = vsub.f32 %v4247_v9, %v7193_v36  ;;  %v7220_v48 = vsub.f32 %v4246_v34, %v7202_v51 }
  0x7e   : > { %6194 = vmatprep.subr.mxu0 %v6993_v16  ;;  %6185 = vmatmul.mubr.f32.vlgmr.msra.gmra.mxu0 %v3236_v57  ;;  %v3806_v46 = vsub.f32 %v7129_v21, %v3805_v29 }
  0x7f   : > { %6192 = vmatmul.mubr.f32.vlgmr.msra.gmra.mxu1 %v6996_v50  ;;  %6195 = vmatpush3.msra.mxu0 %v6993_v16  ;;  %v7135_v16 = vand.u32 4294901760, %v7110_v58  ;;  %v4852_v4 = vsel %vm288_vm1, %v4851_v33, %v4850_v7 }
  0x80   : > { %6201 = vmatprep.subr.mxu1 %v6973_v25  ;;  %6196 = vmatprep.subr.mxu0 %v7002_v61  ;;  %v3807_v55 = vand.u32 4294901760, %v3806_v46 }
  0x81   : > { %6202 = vmatpush3.msra.mxu1 %v6973_v25  ;;  %6197 = vmatpush3.msra.mxu0 %v7002_v61  ;;  %v3845_v61 = vsub.f32 %v7101_v26, %v7121_v20 }
  0x82   : > { %6203 = vmatprep.subr.mxu1 %v6982_v13  ;;  %6198 = vmatprep.mubr.f32.mxu0 %v7007_v49  ;;  %v3852_v49 = vsub.f32 %v7110_v58, %v7135_v16 }
  0x83   : > { %6204 = vmatpush3.msra.mxu1 %v6982_v13  ;;  %6205 = vmatprep.mubr.f32.mxu1 %v3224_v6  ;;  %v4289_v6 = vsel %vm300_vm5, %v4288_v59, %v4287_v53  ;;  %v3846_v5 = vand.u32 4294901760, %v3845_v61  ;;  %v5738_v53 = vld [vmem:[%s6442_s29 + $0x56] sm:$0x1]  ;;  %v4845_v61 = vrot.slane %v5730_v14, 2 }
  0x84   : > { %6208 = vmatprep.subr.mxu0 %v7013_v62  ;;  %6199 = vmatmul.mubr.f32.vlgmr.msra.gmra.mxu0 %v7021_v1  ;;  %v3796_v1 = vsub.f32 %v7115_v10, %v3795_v56  ;;  %v3853_v24 = vand.u32 4294901760, %v3852_v49  ;;  %v4859_v27 = vrot.slane %v5738_v53, 2  ;;  %v7245_v49 = vand.u32 4294901760, %v7220_v48 }
  0x85   : > { %6206 = vmatmul.mubr.f32.vlgmr.msra.gmra.mxu1 %v3234_v19  ;;  %6209 = vmatpush3.msra.mxu0 %v7013_v62  ;;  %v4277_v19 = vsel %vm303_vm6, %v4276_v28, %v4275_v38  ;;  %v4836_v62 = vsel %vm285_vm0, %v4835_v32, %v5724_v18  ;;  %v5731_v32 = vld [vmem:[%s6442_s29 + $0x30] sm:$0x1]  ;;  %v7233_v18 = vand.u32 4294901760, %v7210_v12 }
  0x86   : > { %6215 = vmatprep.subr.mxu1 %v6973_v25  ;;  %6210 = vmatprep.subr.mxu0 %v7027_v54  ;;  %v4292_v52 = vsel %vm319_vm7, %v4277_v19, 0  ;;  %v4838_v60 = vsel %vm288_vm1, %v4837_v37, %v4836_v62  ;;  %v3797_v57 = vand.u32 4294901760, %v3796_v1 }
  0x87   : > { %6216 = vmatpush3.msra.mxu1 %v6973_v25  ;;  %6211 = vmatpush3.msra.mxu0 %v7027_v54  ;;  %v4291_v25 = vsel %vm303_vm6, %v4290_v30, %v4289_v6  ;;  %v4839_v54 = vrot.slane %v5727_v11, 5  ;;  %v7204_v40 = vand.u32 4294901760, %v4292_v52  ;;  %v4847_v11 = vrot.slane %v5731_v32, 1 }
  0x88   : > { %6217 = vmatprep.subr.mxu1 %v6982_v13  ;;  %6212 = vmatprep.mubr.f32.mxu0 %v6988_v44  ;;  %v4415_v47 = vsub.f32 %v7210_v12, %v7233_v18 }
  0x89   : > { %6218 = vmatpush3.msra.mxu1 %v6982_v13  ;;  %6219 = vmatprep.mubr.f32.mxu1 %v6988_v44  ;;  %v4853_v13 = vrot.slane %v5735_v42, 5  ;;  %v4294_v44 = vsel %vm319_vm7, %v4291_v25, 0  ;;  %v4840_v39 = vsel %vm291_vm2, %v4839_v54, %v4838_v60  ;;  %v7223_v28 = vsub.f32 %v4292_v52, %v7204_v40 }
  0x8a   : > { %6222 = vmatprep.subr.mxu0 %v7081_v41  ;;  %6213 = vmatmul.mubr.f32.vlgmr.msra.gmra.mxu0 %v6996_v50  ;;  %v7212_v17 = vand.u32 4294901760, %v4294_v44  ;;  %v4842_v59 = vsel %vm294_vm3, %v4841_v0, %v4840_v39 }
  0x8b   : > { %6220 = vmatmul.mubr.f32.vlgmr.msra.gmra.mxu1 %v6996_v50  ;;  %6223 = vmatpush3.msra.mxu0 %v7081_v41  ;;  %v5737_v50 = vld [vmem:[%s6442_s29 + $0x54] sm:$0x1]  ;;  %v4854_v43 = vsel %vm291_vm2, %v4853_v13, %v4852_v4  ;;  %v4844_v35 = vsel %vm297_vm4, %v4843_v23, %v4842_v59  ;;  %v4365_v6 = vand.u32 4294901760, %v7223_v28 }
  0x8c   : > { %6229 = vmatprep.subr.mxu1 %v3846_v5  ;;  %6224 = vmatprep.subr.mxu0 %v7090_v22  ;;  %v4857_v2 = vrot.slane %v5737_v50, 3  ;;  %v4856_v38 = vsel %vm294_vm3, %v4855_v31, %v4854_v43  ;;  %v7236_v30 = vsub.f32 %v4294_v44, %v7212_v17 }
  0x8d   : > { %6230 = vmatpush3.msra.mxu1 %v3846_v5  ;;  %6225 = vmatpush3.msra.mxu0 %v7090_v22  ;;  %v4366_v62 = vsub.f32 %v7223_v28, %v4365_v6 }
  0x8e   : > { %6231 = vmatprep.subr.mxu1 %v3853_v24  ;;  %6226 = vmatprep.mubr.f32.mxu0 %v3797_v57  ;;  %v4858_v37 = vsel %vm297_vm4, %v4857_v2, %v4856_v38  ;;  %v4375_v1 = vand.u32 4294901760, %v7236_v30 }
  0x8f   : > { %6232 = vmatpush3.msra.mxu1 %v3853_v24  ;;  %6233 = vmatprep.mubr.f32.mxu1 %v7096_v15  ;;  %v4367_v33 = vand.u32 4294901760, %v4366_v62 }
  0x90   : > { %6236 = vmatprep.subr.mxu0 %v7101_v26  ;;  %6227 = vmatmul.mubr.f32.vlgmr.msra.gmra.mxu0 %v3807_v55 }
  0x91   : > { %6234 = vmatmul.mubr.f32.vlgmr.msra.gmra.mxu1 %v7104_v3  ;;  %6237 = vmatpush3.msra.mxu0 %v7101_v26  ;;  %v5739_v26 = vld [vmem:[%s6442_s29 + $0x58] sm:$0x1] }
  0x92   : > { %6243 = vmatprep.subr.mxu1 %v7081_v41  ;;  %6238 = vmatprep.subr.mxu0 %v7110_v58  ;;  %v4861_v19 = vrot.slane %v5739_v26, 1 }
  0x93   : > { %6244 = vmatpush3.msra.mxu1 %v7081_v41  ;;  %6239 = vmatpush3.msra.mxu0 %v7110_v58  ;;  %v4846_v58 = vsel %vm300_vm5, %v4845_v61, %v4844_v35 }
  0x94   : > { %6245 = vmatprep.subr.mxu1 %v7090_v22  ;;  %6240 = vmatprep.mubr.f32.mxu0 %v7115_v10  ;;  %v4860_v10 = vsel %vm300_vm5, %v4859_v27, %v4858_v37  ;;  %v4848_v5 = vsel %vm303_vm6, %v4847_v11, %v4846_v58 }
  0x95   : > { %6246 = vmatpush3.msra.mxu1 %v7090_v22  ;;  %6247 = vmatprep.mubr.f32.mxu1 %v3795_v56  ;;  %v4422_v56 = vsub.f32 %v7220_v48, %v7245_v49  ;;  %v4862_v9 = vsel %vm303_vm6, %v4861_v19, %v4860_v10 }
  0x96   : > { %6250 = vmatprep.subr.mxu0 %v7121_v20  ;;  %6241 = vmatmul.mubr.f32.vlgmr.msra.gmra.mxu0 %v7129_v21  ;;  %v4416_v21 = vand.u32 4294901760, %v4415_v47 }
  0x97   : > { %6248 = vmatmul.mubr.f32.vlgmr.msra.gmra.mxu1 %v3805_v29  ;;  %6251 = vmatpush3.msra.mxu0 %v7121_v20  ;;  %v4818_v20 = vld [vmem:[%s7523_s1 + $0x88] sm:$0xff]  ;;  %v4376_v29 = vsub.f32 %v7236_v30, %v4375_v1  ;;  %v4423_v42 = vand.u32 4294901760, %v4422_v56 }
  0x98   : > { %6257 = vmatprep.subr.mxu1 %v7081_v41  ;;  %6252 = vmatprep.subr.mxu0 %v7135_v16  ;;  %v7289_v46 = vand.u32 4294901760, %v4818_v20 }
  0x99   : > { %6258 = vmatpush3.msra.mxu1 %v7081_v41  ;;  %6253 = vmatpush3.msra.mxu0 %v7135_v16  ;;  %v4817_v41 = vld [vmem:[%s7523_s1 + $0x80] sm:$0xff]  ;;  %v4863_v16 = vsel %vm319_vm7, %v4848_v5, 0 }
  0x9a   : > { %6259 = vmatprep.subr.mxu1 %v7090_v22  ;;  %6254 = vmatprep.mubr.f32.mxu0 %v7096_v15  ;;  %v7295_v25 = vand.u32 4294901760, %v4817_v41  ;;  %v7297_v45 = vand.u32 4294901760, %v4863_v16  ;;  %v4984_v54 = vsub.f32 %v4818_v20, %v7289_v46 }
  0x9b   : > { %6260 = vmatpush3.msra.mxu1 %v7090_v22  ;;  %6261 = vmatprep.mubr.f32.mxu1 %v7096_v15  ;;  %v4865_v22 = vsel %vm319_vm7, %v4862_v9, 0  ;;  %v4377_v15 = vand.u32 4294901760, %v4376_v29 }
  0x9c   : > { %6264 = vmatprep.subr.mxu0 %v7193_v36  ;;  %6255 = vmatmul.mubr.f32.vlgmr.msra.gmra.mxu0 %v7104_v3  ;;  %v4991_v7 = vsub.f32 %v4817_v41, %v7295_v25  ;;  %v4935_v34 = vsub.f32 %v4863_v16, %v7297_v45  ;;  %v4985_v52 = vand.u32 4294901760, %v4984_v54  ;;  %v6366_v16 = vmov 0.0  }
  0x9d   : > { %6262 = vmatmul.mubr.f32.vlgmr.msra.gmra.mxu1 %v7104_v3  ;;  %6265 = vmatpush3.msra.mxu0 %v7193_v36  ;;  %v7301_v3 = vand.u32 4294901760, %v4865_v22  ;;  %226 = vst.msk [vmem:[#allocation2] sm:$0x3f] %vm225_vm8, %v6366_v16  ;;  %229 = vst.msk [vmem:[#allocation2 + $0x18] sm:$0x3f] %vm225_vm8, %v6366_v16 }
  0x9e   : > { %6271 = vmatprep.subr.mxu1 %v4416_v21  ;;  %6266 = vmatprep.subr.mxu0 %v7202_v51  ;;  %v4992_v24 = vand.u32 4294901760, %v4991_v7  ;;  %v4936_v57 = vand.u32 4294901760, %v4935_v34  ;;  %v4986_v8 = vsub.f32 %v4984_v54, %v4985_v52  ;;  %230 = vst.msk [vmem:[#allocation2 + $0x20] sm:$0x3f] %vm225_vm8, %v6366_v16  ;;  %231 = vst.msk [vmem:[#allocation2 + $0x28] sm:$0x3f] %vm225_vm8, %v6366_v16 }
  0x9f   : > { %6272 = vmatpush3.msra.mxu1 %v4416_v21  ;;  %6267 = vmatpush3.msra.mxu0 %v7202_v51  ;;  %v4945_v60 = vsub.f32 %v4865_v22, %v7301_v3  ;;  %227 = vst.msk [vmem:[#allocation2 + $0x8] sm:$0x3f] %vm225_vm8, %v6366_v16  ;;  %228 = vst.msk [vmem:[#allocation2 + $0x10] sm:$0x3f] %vm225_vm8, %v6366_v16 }
  0xa0   : > { %6273 = vmatprep.subr.mxu1 %v4423_v42  ;;  %6268 = vmatprep.mubr.f32.mxu0 %v4367_v33  ;;  %v4993_v44 = vsub.f32 %v4991_v7, %v4992_v24  ;;  %v4937_v63 = vsub.f32 %v4935_v34, %v4936_v57  ;;  %v4987_v0 = vand.u32 4294901760, %v4986_v8 }
  0xa1   : > { %6274 = vmatpush3.msra.mxu1 %v4423_v42  ;;  %6275 = vmatprep.mubr.f32.mxu1 %v7204_v40  ;;  %v4946_v13 = vand.u32 4294901760, %v4945_v60 }
  0xa2   : > { %6278 = vmatprep.subr.mxu0 %v7210_v12  ;;  %6269 = vmatmul.mubr.f32.vlgmr.msra.gmra.mxu0 %v4377_v15  ;;  %v4994_v55 = vand.u32 4294901760, %v4993_v44  ;;  %v4938_v39 = vand.u32 4294901760, %v4937_v63 }
  0xa3   : > { %6276 = vmatmul.mubr.f32.vlgmr.msra.gmra.mxu1 %v7212_v17  ;;  %6279 = vmatpush3.msra.mxu0 %v7210_v12  ;;  %v4947_v4 = vsub.f32 %v4945_v60, %v4946_v13 }
  0xa4   : > { %6285 = vmatprep.subr.mxu1 %v7193_v36  ;;  %6280 = vmatprep.subr.mxu0 %v7220_v48 }
  0xa5   : > { %6286 = vmatpush3.msra.mxu1 %v7193_v36  ;;  %6281 = vmatpush3.msra.mxu0 %v7220_v48 }
  0xa6   : > { %6287 = vmatprep.subr.mxu1 %v7202_v51  ;;  %6282 = vmatprep.mubr.f32.mxu0 %v7223_v28 }
  0xa7   : > { %6288 = vmatpush3.msra.mxu1 %v7202_v51  ;;  %6289 = vmatprep.mubr.f32.mxu1 %v4365_v6 }
  0xa8   : > { %6292 = vmatprep.subr.mxu0 %v7233_v18  ;;  %6283 = vmatmul.mubr.f32.vlgmr.msra.gmra.mxu0 %v7236_v30 }
  0xa9   : > { %6290 = vmatmul.mubr.f32.vlgmr.msra.gmra.mxu1 %v4375_v1  ;;  %6293 = vmatpush3.msra.mxu0 %v7233_v18 }
  0xaa   : > { %6299 = vmatprep.subr.mxu1 %v7193_v36  ;;  %6294 = vmatprep.subr.mxu0 %v7245_v49 }
  0xab   : > { %6300 = vmatpush3.msra.mxu1 %v7193_v36  ;;  %6295 = vmatpush3.msra.mxu0 %v7245_v49  ;;  %v4948_v36 = vand.u32 4294901760, %v4947_v4 }
  0xac   : > { %6301 = vmatprep.subr.mxu1 %v7202_v51  ;;  %6296 = vmatprep.mubr.f32.mxu0 %v7204_v40 }
  0xad   : > { %6302 = vmatpush3.msra.mxu1 %v7202_v51  ;;  %6303 = vmatprep.mubr.f32.mxu1 %v7204_v40 }
  0xae   : > { %6306 = vmatprep.subr.mxu0 %v7289_v46  ;;  %6297 = vmatmul.mubr.f32.vlgmr.msra.gmra.mxu0 %v7212_v17 }
  0xaf   : > { %6304 = vmatmul.mubr.f32.vlgmr.msra.gmra.mxu1 %v7212_v17  ;;  %6307 = vmatpush3.msra.mxu0 %v7289_v46 }
  0xb0   : > { %6313 = vmatprep.subr.mxu1 %v4987_v0  ;;  %6308 = vmatprep.subr.mxu0 %v7295_v25 }
  0xb1   : > { %6314 = vmatpush3.msra.mxu1 %v4987_v0  ;;  %6309 = vmatpush3.msra.mxu0 %v7295_v25 }
  0xb2   : > { %6315 = vmatprep.subr.mxu1 %v4994_v55  ;;  %6310 = vmatprep.mubr.f32.mxu0 %v4938_v39 }
  0xb3   : > { %6316 = vmatpush3.msra.mxu1 %v4994_v55  ;;  %6317 = vmatprep.mubr.f32.mxu1 %v7297_v45 }
  0xb4   : > { %6320 = vmatprep.subr.mxu0 %v4984_v54  ;;  %6311 = vmatmul.mubr.f32.vlgmr.msra.gmra.mxu0 %v4948_v36 }
  0xb5   : > { %6318 = vmatmul.mubr.f32.vlgmr.msra.gmra.mxu1 %v7301_v3  ;;  %6321 = vmatpush3.msra.mxu0 %v4984_v54 }
  0xb6   : > { %6327 = vmatprep.subr.mxu1 %v7289_v46  ;;  %6322 = vmatprep.subr.mxu0 %v4991_v7 }
  0xb7   : > { %6328 = vmatpush3.msra.mxu1 %v7289_v46  ;;  %6323 = vmatpush3.msra.mxu0 %v4991_v7 }
  0xb8   : > { %6329 = vmatprep.subr.mxu1 %v7295_v25  ;;  %6324 = vmatprep.mubr.f32.mxu0 %v4935_v34 }
  0xb9   : > { %6330 = vmatpush3.msra.mxu1 %v7295_v25  ;;  %6331 = vmatprep.mubr.f32.mxu1 %v4936_v57 }
  0xba   : > { %6334 = vmatprep.subr.mxu0 %v4985_v52  ;;  %6325 = vmatmul.mubr.f32.vlgmr.msra.gmra.mxu0 %v4945_v60 }
  0xbb   : > { %6332 = vmatmul.mubr.f32.vlgmr.msra.gmra.mxu1 %v4946_v13  ;;  %6335 = vmatpush3.msra.mxu0 %v4985_v52 }
  0xbc   : > { %6341 = vmatprep.subr.mxu1 %v7289_v46  ;;  %6336 = vmatprep.subr.mxu0 %v4992_v24 }
  0xbd   : > { %6342 = vmatpush3.msra.mxu1 %v7289_v46  ;;  %6337 = vmatpush3.msra.mxu0 %v4992_v24 }
  0xbe   : > { %6343 = vmatprep.subr.mxu1 %v7295_v25  ;;  %6338 = vmatprep.mubr.f32.mxu0 %v7297_v45 }
  0xbf   : > { %6344 = vmatpush3.msra.mxu1 %v7295_v25  ;;  %6345 = vmatprep.mubr.f32.mxu1 %v7297_v45 }
  0xc0   : > { %6339 = vmatmul.mubr.f32.vlgmr.msra.gmra.mxu0 %v7301_v3  ;;  %6346 = vmatmul.mubr.f32.vlgmr.msra.gmra.mxu1 %v7301_v3 }
  0xe2   : > { %v5983_v51 = vpop.f32.mrf.mxu1 }
  0xe4   : > { %v488_v40 = vpop.f32.mrf.mxu1 }
  0xe6   : > { %v5997_v50 = vpop.f32.mrf.mxu1 }
  0xe8   : > { %v652_v17 = vpop.f32.mrf.mxu1 }
  0xea   : > { %v5976_v31 = vpop.f32.mrf.mxu0 }
  0xeb   : > { %v495_v12 = vadd.f32 %v5983_v51, %v5976_v31 }
  0xec   : > { %v397_v14 = vpop.f32.mrf.mxu0  ;;  %v6011_v48 = vpop.f32.mrf.mxu1 }
  0xed   : > { %v489_v23 = vadd.f32 %v488_v40, %v397_v14 }
  0xee   : > { %v5990_v43 = vpop.f32.mrf.mxu0  ;;  %v816_v18 = vpop.f32.mrf.mxu1 }
  0xef   : > { %v578_v59 = vadd.f32 %v5990_v43, %v495_v12 }
  0xf0   : > { %v570_v28 = vpop.f32.mrf.mxu0 }
  0xf1   : > { %v661_v53 = vadd.f32 %v5997_v50, %v578_v59  ;;  %v571_v2 = vadd.f32 %v570_v28, %v489_v23 }
  0xf2   : > { %v6004_v32 = vpop.f32.mrf.mxu0 }
  0xf3   : > { %v653_v61 = vadd.f32 %v652_v17, %v571_v2  ;;  %v744_v38 = vadd.f32 %v6004_v32, %v661_v53 }
  0xf4   : > { %v737_v30 = vpop.f32.mrf.mxu0 }
  0xf5   : > { %v823_v35 = vadd.f32 %v6011_v48, %v744_v38  ;;  %v738_v26 = vadd.f32 %v737_v30, %v653_v61 }
  0xf6   : > { %v6018_v27 = vpop.f32.mrf.mxu0 }
  0xf7   : > { %v817_v49 = vadd.f32 %v816_v18, %v738_v26  ;;  %v958_v6 = vadd.f32 %v6018_v27, %v823_v35  ;;  %v6025_v11 = vpop.f32.mrf.mxu1 }
  0xf8   : > { %v947_v37 = vpop.f32.mrf.mxu0 }
  0xf9   : > { %v1045_v58 = vadd.f32 %v6025_v11, %v958_v6  ;;  %v948_v47 = vadd.f32 %v947_v37, %v817_v49  ;;  %v1038_v1 = vpop.f32.mrf.mxu1 }
  0xfb   : > { %v1039_v19 = vadd.f32 %v1038_v1, %v948_v47 }
  0xfc   : > { %v6032_v10 = vpop.f32.mrf.mxu0 }
  0xfd   : > { %v1128_v56 = vadd.f32 %v6032_v10, %v1045_v58  ;;  %v6039_v62 = vpop.f32.mrf.mxu1 }
  0xfe   : > { %v1120_v5 = vpop.f32.mrf.mxu0 }
  0xff   : > { %v1211_v20 = vadd.f32 %v6039_v62, %v1128_v56  ;;  %v1121_v21 = vadd.f32 %v1120_v5, %v1039_v19  ;;  %v1202_v29 = vpop.f32.mrf.mxu1 }
 0x101   : > { %v1203_v9 = vadd.f32 %v1202_v29, %v1121_v21 }
 0x102   : > { %v6046_v41 = vpop.f32.mrf.mxu0 }
 0x103   : > { %v1294_v42 = vadd.f32 %v6046_v41, %v1211_v20  ;;  %v6053_v33 = vpop.f32.mrf.mxu1 }
 0x104   : > { %v1287_v46 = vpop.f32.mrf.mxu0 }
 0x105   : > { %v7352_v22 = vadd.f32 %v6053_v33, %v1294_v42  ;;  %v1288_v15 = vadd.f32 %v1287_v46, %v1203_v9  ;;  %v1366_v25 = vpop.f32.mrf.mxu1 }
 0x107   : > { %7528 = vst [vmem:[#allocation3_spill] sm:$0xff] %v7352_v22  ;;  %v7354_v45 = vadd.f32 %v1366_v25, %v1288_v15 }
 0x108   : > { %v7356_v54 = vpop.f32.mrf.mxu0 }
 0x109   : > { %7529 = vst [vmem:[#allocation4_spill] sm:$0xff] %v7354_v45  ;;  %v6067_v3 = vpop.f32.mrf.mxu1 }
 0x10a   : > { %v7358_v7 = vpop.f32.mrf.mxu0 }
 0x10b   : > { %v1607_v34 = vpop.f32.mrf.mxu1 }
 0x10c   : > { %v1608_v45 = vadd.f32 %v1607_v34, %v7358_v7 }
 0x10e   : > { %v6074_v52 = vpop.f32.mrf.mxu0 }
 0x10f   : > { %v7360_v60 = vpop.f32.mrf.mxu1 }
 0x110   : > { %v7362_v24 = vpop.f32.mrf.mxu0 }
 0x111   : > { %v7364_v57 = vpop.f32.mrf.mxu1  ;;  %v1690_v22 = vadd.f32 %v7362_v24, %v1608_v45 }
 0x114   : > { %v7366_v8 = vpop.f32.mrf.mxu0 }
 0x115   : > { %v7368_v13 = vpop.f32.mrf.mxu1 }
 0x116   : > { %v7370_v44 = vpop.f32.mrf.mxu0 }
 0x117   : > { %v7372_v63 = vpop.f32.mrf.mxu1 }
 0x118   : > { %7530 = vst [vmem:[#allocation5_spill] sm:$0xff] %v7372_v63 }
 0x11a   : > { %v6102_v0 = vpop.f32.mrf.mxu0 }
 0x11b   : > { %v6109_v4 = vpop.f32.mrf.mxu1 }
 0x11c   : > { %v2087_v55 = vpop.f32.mrf.mxu0 }
 0x11d   : > { %v2178_v39 = vpop.f32.mrf.mxu1 }
 0x120   : > { %v6116_v36 = vpop.f32.mrf.mxu0 }
 0x121   : > { %v7374_v51 = vpop.f32.mrf.mxu1 }
 0x122   : > { %v2260_v40 = vpop.f32.mrf.mxu0 }
 0x123   : > { %v7376_v50 = vpop.f32.mrf.mxu1 }
 0x126   : > { %v7378_v31 = vpop.f32.mrf.mxu0 }
 0x127   : > { %v7380_v12 = vpop.f32.mrf.mxu1 }
 0x128   : > { %7531 = vst [vmem:[#allocation6_spill] sm:$0xff] %v7380_v12  ;;  %v7382_v17 = vpop.f32.mrf.mxu0 }
 0x129   : > { %v7384_v14 = vpop.f32.mrf.mxu1 }
 0x12a   : > { %7532 = vst [vmem:[#allocation7_spill] sm:$0xff] %v7384_v14 }
 0x12c   : > { %v6144_v23 = vpop.f32.mrf.mxu0 }
 0x12d   : > { %v6151_v43 = vpop.f32.mrf.mxu1 }
 0x12e   : > { %v2657_v59 = vpop.f32.mrf.mxu0 }
 0x12f   : > { %v2748_v48 = vpop.f32.mrf.mxu1 }
 0x130   : > { %v2749_v63 = vadd.f32 %v2748_v48, %v2657_v59 }
 0x132   : > { %v6158_v28 = vpop.f32.mrf.mxu0 }
 0x133   : > { %v6165_v53 = vpop.f32.mrf.mxu1 }
 0x134   : > { %v2830_v2 = vpop.f32.mrf.mxu0 }
 0x135   : > { %v7386_v32 = vpop.f32.mrf.mxu1  ;;  %v2831_v34 = vadd.f32 %v2830_v2, %v2749_v63 }
 0x137   : > { %v2913_v63 = vadd.f32 %v7386_v32, %v2831_v34 }
 0x138   : > { %v7388_v61 = vpop.f32.mrf.mxu0 }
 0x139   : > { %v7390_v38 = vpop.f32.mrf.mxu1 }
 0x13a   : > { %7533 = vst [vmem:[#allocation8_spill] sm:$0xff] %v7390_v38  ;;  %v7392_v18 = vpop.f32.mrf.mxu0  ;;  %v2185_v38 = vadd.f32 %v6109_v4, %v6102_v0 }
 0x13b   : > { %7534 = vst [vmem:[#allocation9_spill] sm:$0xff] %v7392_v18  ;;  %v7394_v30 = vpop.f32.mrf.mxu1 }
 0x13c   : > { %7535 = vst [vmem:[#allocation10_spill] sm:$0xff] %v7394_v30 }
 0x13e   : > { %v6186_v35 = vpop.f32.mrf.mxu0 }
 0x13f   : > { %v6193_v26 = vpop.f32.mrf.mxu1 }
 0x140   : > { %v3228_v27 = vpop.f32.mrf.mxu0 }
 0x141   : > { %v3319_v49 = vpop.f32.mrf.mxu1 }
 0x144   : > { %v6200_v6 = vpop.f32.mrf.mxu0 }
 0x145   : > { %v6207_v11 = vpop.f32.mrf.mxu1 }
 0x146   : > { %v3401_v37 = vpop.f32.mrf.mxu0 }
 0x147   : > { %v7396_v58 = vpop.f32.mrf.mxu1 }
 0x148   : > { %7536 = vst [vmem:[#allocation11_spill] sm:$0xff] %v7396_v58 }
 0x14a   : > { %v7398_v47 = vpop.f32.mrf.mxu0 }
 0x14b   : > { %7537 = vst [vmem:[#allocation12_spill] sm:$0xff] %v7398_v47  ;;  %v7400_v1 = vpop.f32.mrf.mxu1  ;;  %v2755_v47 = vadd.f32 %v6151_v43, %v6144_v23 }
 0x14c   : > { %7538 = vst [vmem:[#allocation13_spill] sm:$0xff] %v7400_v1  ;;  %v7402_v19 = vpop.f32.mrf.mxu0  ;;  %v1614_v1 = vadd.f32 %v6067_v3, %v7356_v54  ;;  %v3326_v54 = vadd.f32 %v6193_v26, %v6186_v35  ;;  %v1772_v3 = vadd.f32 %v7364_v57, %v1690_v22 }
 0x14d   : > { %7539 = vst [vmem:[#allocation14_spill] sm:$0xff] %v7402_v19  ;;  %v7404_v10 = vpop.f32.mrf.mxu1  ;;  %v2838_v58 = vadd.f32 %v6158_v28, %v2755_v47 }
 0x14e   : > { %7540 = vst [vmem:[#allocation15_spill] sm:$0xff] %v7404_v10  ;;  %v1697_v19 = vadd.f32 %v6074_v52, %v1614_v1  ;;  %v3320_v52 = vadd.f32 %v3319_v49, %v3228_v27  ;;  %v3409_v0 = vadd.f32 %v6200_v6, %v3326_v54  ;;  %v1857_v22 = vadd.f32 %v7370_v44, %v1772_v3  ;;  %v7547_v6 = vld [vmem:[#allocation5_spill] sm:$0xff]  ;;  %v7558_v54 = vld [vmem:[#allocation10_spill] sm:$0xff] }
 0x150   : > { %v6228_v56 = vpop.f32.mrf.mxu0 }
 0x151   : > { %v6235_v62 = vpop.f32.mrf.mxu1 }
 0x152   : > { %v3799_v5 = vpop.f32.mrf.mxu0  ;;  %v3897_v24 = vadd.f32 %v6235_v62, %v6228_v56  ;;  %v7553_v56 = vld [vmem:[#allocation7_spill] sm:$0xff] }
 0x153   : > { %v3890_v20 = vpop.f32.mrf.mxu1 }
 0x154   : > { %v3891_v23 = vadd.f32 %v3890_v20, %v3799_v5  ;;  %v7554_v5 = vld [vmem:[#allocation8_spill] sm:$0xff] }
 0x156   : > { %v6242_v21 = vpop.f32.mrf.mxu0 }
 0x157   : > { %v6249_v29 = vpop.f32.mrf.mxu1  ;;  %v3980_v43 = vadd.f32 %v6242_v21, %v3897_v24  ;;  %v7555_v21 = vld [vmem:[#allocation14_spill] sm:$0xff] }
 0x158   : > { %v3972_v9 = vpop.f32.mrf.mxu0 }
 0x159   : > { %v7406_v41 = vpop.f32.mrf.mxu1  ;;  %v3973_v28 = vadd.f32 %v3972_v9, %v3891_v23  ;;  %v4063_v27 = vadd.f32 %v6249_v29, %v3980_v43  ;;  %v7561_v43 = vld [vmem:[#allocation15_spill] sm:$0xff] }
 0x15a   : > { %7541 = vst [vmem:[#allocation16_spill] sm:$0xff] %v7406_v41  ;;  %v2179_v41 = vadd.f32 %v2178_v39, %v2087_v55 }
 0x15c   : > { %v7408_v16 = vpop.f32.mrf.mxu0  ;;  %v2261_v12 = vadd.f32 %v2260_v40, %v2179_v41 }
 0x15d   : > { %7542 = vst [vmem:[#allocation17_spill] sm:$0xff] %v7408_v16  ;;  %v7410_v42 = vpop.f32.mrf.mxu1 }
 0x15e   : > { %7543 = vst [vmem:[#allocation18_spill] sm:$0xff] %v7410_v42  ;;  %v7412_v33 = vpop.f32.mrf.mxu0  ;;  %v2268_v42 = vadd.f32 %v6116_v36, %v2185_v38  ;;  %v2343_v39 = vadd.f32 %v7376_v50, %v2261_v12  ;;  %v3402_v36 = vadd.f32 %v3401_v37, %v3320_v52  ;;  %v7548_v37 = vld [vmem:[#allocation6_spill] sm:$0xff] }
 0x15f   : > { %7544 = vst [vmem:[#allocation19_spill] sm:$0xff] %v7412_v33  ;;  %v7414_v46 = vpop.f32.mrf.mxu1 }
 0x160   : > { %7545 = vst [vmem:[#allocation20_spill] sm:$0xff] %v7414_v46  ;;  %v1780_v46 = vadd.f32 %v7360_v60, %v1697_v19  ;;  %v2351_v7 = vadd.f32 %v7374_v51, %v2268_v42  ;;  %v2921_v60 = vadd.f32 %v6165_v53, %v2838_v58  ;;  %v3492_v51 = vadd.f32 %v6207_v11, %v3409_v0  ;;  %v7546_v53 = vld [vmem:[#allocation11_spill] sm:$0xff]  ;;  %v7549_v11 = vld [vmem:[#allocation9_spill] sm:$0xff] }
 0x161   : > { %v2428_v50 = vadd.f32 %v7382_v17, %v2343_v39  ;;  %v3484_v35 = vadd.f32 %v7546_v53, %v3402_v36  ;;  %v2998_v58 = vadd.f32 %v7549_v11, %v2913_v63 }
 0x162   : > { %v6270_v15 = vpop.f32.mrf.mxu0  ;;  %v1863_v55 = vadd.f32 %v7366_v8, %v1780_v46  ;;  %v2434_v57 = vadd.f32 %v7378_v31, %v2351_v7  ;;  %v3004_v12 = vadd.f32 %v7388_v61, %v2921_v60  ;;  %v1936_v31 = vadd.f32 %v7547_v6, %v1857_v22  ;;  %v7552_v61 = vld [vmem:[#allocation3_spill] sm:$0xff]  ;;  %v7557_v46 = vld [vmem:[#allocation4_spill] sm:$0xff]  ;;  %v7559_v7 = vld [vmem:[#allocation13_spill] sm:$0xff] }
 0x163   : > { %v6277_v25 = vpop.f32.mrf.mxu1  ;;  %v2507_v62 = vadd.f32 %v7553_v56, %v2428_v50  ;;  %v3569_v29 = vadd.f32 %v7555_v21, %v3484_v35  ;;  %v3077_v3 = vadd.f32 %v7558_v54, %v2998_v58  ;;  %v5740_v58 = vld [vmem:[%s7524_s2] ss:$0 sm:$0xff]  ;;  %v5409_v56 = vld [vmem:[#allocation2 + $0x1] sm:$0xf] }
 0x164   : > { %v4369_v10 = vpop.f32.mrf.mxu0  ;;  %v4467_v59 = vadd.f32 %v6277_v25, %v6270_v15  ;;  %v1942_v8 = vadd.f32 %v7368_v13, %v1863_v55  ;;  %v2513_v32 = vadd.f32 %v7548_v37, %v2434_v57  ;;  %v7551_v13 = vld [vmem:[#allocation16_spill] sm:$0xff]  ;;  %v3083_v20 = vadd.f32 %v7554_v5, %v3004_v12  ;;  %v7556_v9 = vld [vmem:[#allocation17_spill] sm:$0xff] }
 0x165   : > { %v4460_v30 = vpop.f32.mrf.mxu1  ;;  %v4055_v1 = vadd.f32 %v7551_v13, %v3973_v28  ;;  %v4146_v41 = vadd.f32 %v7556_v9, %v4063_v27  ;;  %v1945_v15 = vadd.f32 %v1936_v31, %v7557_v46  ;;  %v7562_v22 = vld [vmem:[#allocation18_spill] sm:$0xff]  ;;  %v5743_v21 = vld [vmem:[%s7525_s3 + $0x2] ss:$0 sm:$0xff] }
 0x166   : > { %v4461_v2 = vadd.f32 %v4460_v30, %v4369_v10  ;;  %v7550_v30 = vld [vmem:[#allocation12_spill] sm:$0xff]  ;;  %v1946_v10 = vadd.f32 %v1942_v8, %v7552_v61  ;;  %v7560_v52 = vld [vmem:[#allocation19_spill] sm:$0xff] }
 0x167   : > { %v4140_v0 = vadd.f32 %v7560_v52, %v4055_v1  ;;  %v2516_v36 = vadd.f32 %v2507_v62, %v1945_v15  ;;  %v4225_v57 = vadd.f32 %v7562_v22, %v4146_v41  ;;  %v7563_v50 = vld [vmem:[#allocation20_spill] sm:$0xff]  ;;  %v5745_v52 = vld [vmem:[%s7525_s3 + $0x4] ss:$0 sm:$0xff] }
 0x168   : > { %v6284_v14 = vpop.f32.mrf.mxu0  ;;  %v2517_v25 = vadd.f32 %v2513_v32, %v1946_v10  ;;  %v5392_v10 = vld [vmem:[#allocation2] sm:$0xf] }
 0x169   : > { %v6291_v16 = vpop.f32.mrf.mxu1  ;;  %v4550_v38 = vadd.f32 %v6284_v14, %v4467_v59  ;;  %v3575_v14 = vadd.f32 %v7550_v30, %v3492_v51  ;;  %v3648_v59 = vadd.f32 %v7561_v43, %v3569_v29  ;;  %v4219_v12 = vadd.f32 %v7563_v50, %v4140_v0  ;;  %v5426_v29 = vld [vmem:[#allocation2 + $0x2] sm:$0xf] }
 0x16a   : > { %v4542_v33 = vpop.f32.mrf.mxu0  ;;  %v3087_v23 = vadd.f32 %v3083_v20, %v2517_v25  ;;  %v5435_v46 = vmul.f32 %v5743_v21, %v5426_v29 }
 0x16b   : > { %v4624_v18 = vpop.f32.mrf.mxu1  ;;  %v4543_v49 = vadd.f32 %v4542_v33, %v4461_v2  ;;  %v4633_v17 = vadd.f32 %v6291_v16, %v4550_v38  ;;  %v3654_v16 = vadd.f32 %v7559_v7, %v3575_v14  ;;  %v3086_v38 = vadd.f32 %v3077_v3, %v2516_v36  ;;  %v5744_v3 = vld [vmem:[%s7525_s3 + $0x3] ss:$0 sm:$0xff] }
 0x16d   : > { %v4625_v42 = vadd.f32 %v4624_v18, %v4543_v49  ;;  %v3658_v8 = vadd.f32 %v3654_v16, %v3087_v23  ;;  %v3657_v27 = vadd.f32 %v3648_v59, %v3086_v38 }
 0x16e   : > { %v6298_v45 = vpop.f32.mrf.mxu0 }
 0x16f   : > { %v6305_v4 = vpop.f32.mrf.mxu1  ;;  %v4716_v24 = vadd.f32 %v6298_v45, %v4633_v17  ;;  %v4229_v49 = vadd.f32 %v4225_v57, %v3658_v8  ;;  %v4228_v37 = vadd.f32 %v4219_v12, %v3657_v27  ;;  %v5515_v27 = vld [vmem:[#allocation2 + $0x29] sm:$0xf] }
 0x170   : > { %v4709_v40 = vpop.f32.mrf.mxu0 }
 0x171   : > { %v4788_v48 = vpop.f32.mrf.mxu1  ;;  %v4710_v63 = vadd.f32 %v4709_v40, %v4625_v42  ;;  %v4795_v53 = vadd.f32 %v6305_v4, %v4716_v24  ;;  %v5498_v24 = vld [vmem:[#allocation2 + $0x28] sm:$0xf] }
 0x173   : > { %v4799_v32 = vadd.f32 %v4795_v53, %v4229_v49 }
 0x174   : > { %v6312_v26 = vpop.f32.mrf.mxu0 }
 0x175   : > { %v6319_v44 = vpop.f32.mrf.mxu1 }
 0x176   : > { %v4940_v47 = vpop.f32.mrf.mxu0  ;;  %v5038_v33 = vadd.f32 %v6319_v44, %v6312_v26  ;;  %v4789_v44 = vadd.f32 %v4788_v48, %v4710_v63  ;;  %v5741_v48 = vld [vmem:[%s7525_s3] ss:$0 sm:$0xff] }
 0x177   : > { %v5031_v19 = vpop.f32.mrf.mxu1  ;;  %v5401_v5 = vmul.f32 %v5741_v48, %v5392_v10 }
 0x178   : > { %v5032_v55 = vadd.f32 %v5031_v19, %v4940_v47  ;;  %v4798_v14 = vadd.f32 %v4789_v44, %v4228_v37  ;;  %v5742_v19 = vld [vmem:[%s7525_s3 + $0x1] ss:$0 sm:$0xff] }
 0x179   : > { %v5418_v20 = vmul.f32 %v5742_v19, %v5409_v56 }
 0x17a   : > { %v6326_v34 = vpop.f32.mrf.mxu0 }
 0x17b   : > { %v5121_v39 = vadd.f32 %v6326_v34, %v5038_v33  ;;  %v6333_v60 = vpop.f32.mrf.mxu1  ;;  %v5422_v33 = vadd.f32 %v5418_v20, %v5401_v5 }
 0x17c   : > { %v5113_v18 = vpop.f32.mrf.mxu0 }
 0x17d   : > { %v5204_v51 = vadd.f32 %v6333_v60, %v5121_v39  ;;  %v5114_v28 = vadd.f32 %v5113_v18, %v5032_v55  ;;  %v5195_v2 = vpop.f32.mrf.mxu1  ;;  %v7489_v55 = vld [vmem:[%s7525_s3 + $0x6] ss:$0 sm:$0xff]  ;;  %v5439_v43 = vadd.f32 %v5435_v46, %v5422_v33  ;;  %v5746_v18 = vld [vmem:[%s7525_s3 + $0x5] ss:$0 sm:$0xff] }
 0x17e   : > { %v5507_v8 = vmul.f32 %v7489_v55, %v5498_v24 }
 0x17f   : > { %v5196_v45 = vadd.f32 %v5195_v2, %v5114_v28 }
 0x180   : > { %v6340_v35 = vpop.f32.mrf.mxu0  ;;  %v6347_v26 = vpop.f32.mrf.mxu1 }
 0x181   : > { %v5287_v6 = vadd.f32 %v6340_v35, %v5204_v51 }
 0x182   : > { %v5280_v31 = vpop.f32.mrf.mxu0  ;;  %v5359_v30 = vpop.f32.mrf.mxu1 }
 0x183   : > { %v5366_v11 = vadd.f32 %v6347_v26, %v5287_v6  ;;  %v5281_v40 = vadd.f32 %v5280_v31, %v5196_v45 }
 0x185   : > { %v5370_v47 = vadd.f32 %v5366_v11, %v4799_v32  ;;  %v5360_v4 = vadd.f32 %v5359_v30, %v5281_v40  ;;  %v5748_v32 = vld [vmem:[%s7525_s3 + $0x7] ss:$0 sm:$0xff] }
 0x186   : > { %v5524_v5 = vmul.f32 %v5748_v32, %v5515_v27 }
 0x187   : > { %v7451_v13 = vadd.f32 %v5740_v58, %v5370_v47  ;;  %v5369_v1 = vadd.f32 %v5360_v4, %v4798_v14  ;;  %v5532_v4 = vld [vmem:[#allocation2 + $0x2a] sm:$0xf] }
 0x189   : > { %v7458_v17 = vcombine.high %v7451_v13, %v7451_v13  ;;  %5390 = vst.msk [vmem:[#allocation2 + $0x19] sm:$0xf] %vm5387_vm9, %v7451_v13  ;;  %v7465_v61 = vadd.f32 %v5740_v58, %v5369_v1 }
 0x18b   : > { %5391 = vst.msk [vmem:[#allocation2 + $0x21] sm:$0xf] %vm5387_vm9, %v7458_v17  ;;  %v7471_v62 = vcombine.high %v7465_v61, %v7465_v61  ;;  %5388 = vst.msk [vmem:[#allocation2 + $0x9] sm:$0xf] %vm5387_vm9, %v7465_v61 }
 0x18d   : > { %5389 = vst.msk [vmem:[#allocation2 + $0x11] sm:$0xf] %vm5387_vm9, %v7471_v62 }
 0x190   : > { %v5395_v9 = vld [vmem:[#allocation2 + $0x18] sm:$0xf] }
 0x191   : > { %v5412_v41 = vld [vmem:[#allocation2 + $0x19] sm:$0xf]  ;;  %v5404_v15 = vmul.f32 %v5741_v48, %v5395_v9 }
 0x192   : > { %v5429_v42 = vld [vmem:[#allocation2 + $0x1a] sm:$0xf]  ;;  %v5421_v25 = vmul.f32 %v5742_v19, %v5412_v41  ;;  %v5446_v54 = vld [vmem:[#allocation2 + $0x20] sm:$0xf]  ;;  %v5393_v60 = vld [vmem:[#allocation2 + $0x8] sm:$0xf] }
 0x193   : > { %v5438_v16 = vmul.f32 %v5743_v21, %v5429_v42  ;;  %v5463_v34 = vld [vmem:[#allocation2 + $0x21] sm:$0xf]  ;;  %v5455_v39 = vmul.f32 %v5744_v3, %v5446_v54  ;;  %v5410_v23 = vld [vmem:[#allocation2 + $0x9] sm:$0xf]  ;;  %v5402_v22 = vmul.f32 %v5741_v48, %v5393_v60  ;;  %v5445_v35 = vld [vmem:[#allocation2 + $0x18] sm:$0xf] }
 0x194   : > { %v5425_v7 = vadd.f32 %v5421_v25, %v5404_v15  ;;  %v5480_v0 = vld [vmem:[#allocation2 + $0x22] sm:$0xf]  ;;  %v5394_v36 = vld [vmem:[#allocation2 + $0x10] sm:$0xf]  ;;  %v5419_v51 = vmul.f32 %v5742_v19, %v5410_v23  ;;  %v5427_v28 = vld [vmem:[#allocation2 + $0xa] sm:$0xf]  ;;  %v5472_v38 = vmul.f32 %v5745_v52, %v5463_v34  ;;  %v5454_v56 = vmul.f32 %v5744_v3, %v5445_v35 }
 0x195   : > { %v5403_v57 = vmul.f32 %v5741_v48, %v5394_v36  ;;  %v5411_v63 = vld [vmem:[#allocation2 + $0x11] sm:$0xf]  ;;  %v5443_v12 = vld [vmem:[#allocation2 + $0x8] sm:$0xf]  ;;  %v5436_v44 = vmul.f32 %v5743_v21, %v5427_v28  ;;  %v5489_v37 = vmul.f32 %v5746_v18, %v5480_v0  ;;  %v5462_v14 = vld [vmem:[#allocation2 + $0x19] sm:$0xf] }
 0x196   : > { %v5442_v59 = vadd.f32 %v5438_v16, %v5425_v7  ;;  %v5428_v2 = vld [vmem:[#allocation2 + $0x12] sm:$0xf]  ;;  %v5420_v50 = vmul.f32 %v5742_v19, %v5411_v63  ;;  %v5460_v45 = vld [vmem:[#allocation2 + $0x9] sm:$0xf]  ;;  %v5423_v49 = vadd.f32 %v5419_v51, %v5402_v22  ;;  %v5452_v6 = vmul.f32 %v5744_v3, %v5443_v12  ;;  %v5479_v41 = vld [vmem:[#allocation2 + $0x1a] sm:$0xf] }
 0x197   : > { %v5444_v53 = vld [vmem:[#allocation2 + $0x10] sm:$0xf]  ;;  %v5437_v40 = vmul.f32 %v5743_v21, %v5428_v2  ;;  %v5477_v30 = vld [vmem:[#allocation2 + $0xa] sm:$0xf]  ;;  %v5469_v19 = vmul.f32 %v5745_v52, %v5460_v45  ;;  %v5749_v21 = vld [vmem:[%s7525_s3 + $0x8] ss:$0 sm:$0xff]  ;;  %v5471_v54 = vmul.f32 %v5745_v52, %v5462_v14 }
 0x198   : > { %v5459_v26 = vadd.f32 %v5455_v39, %v5442_v59  ;;  %v5461_v31 = vld [vmem:[#allocation2 + $0x11] sm:$0xf]  ;;  %v5424_v11 = vadd.f32 %v5420_v50, %v5403_v57  ;;  %v5453_v58 = vmul.f32 %v5744_v3, %v5444_v53  ;;  %v5440_v1 = vadd.f32 %v5436_v44, %v5423_v49  ;;  %v5496_v25 = vld [vmem:[#allocation2 + $0x18] sm:$0xf]  ;;  %v5497_v3 = vld [vmem:[#allocation2 + $0x20] sm:$0xf] }
 0x199   : > { %v5456_v48 = vadd.f32 %v5452_v6, %v5439_v43  ;;  %v5478_v10 = vld [vmem:[#allocation2 + $0x12] sm:$0xf]  ;;  %v5470_v29 = vmul.f32 %v5745_v52, %v5461_v31  ;;  %v5486_v15 = vmul.f32 %v5746_v18, %v5477_v30  ;;  %v5541_v7 = vmul.f32 %v5749_v21, %v5532_v4  ;;  %v5513_v23 = vld [vmem:[#allocation2 + $0x19] sm:$0xf]  ;;  %v5514_v63 = vld [vmem:[#allocation2 + $0x21] sm:$0xf] }
 0x19a   : > { %v5476_v47 = vadd.f32 %v5472_v38, %v5459_v26  ;;  %v5441_v20 = vadd.f32 %v5437_v40, %v5424_v11  ;;  %v5495_v9 = vld [vmem:[#allocation2 + $0x10] sm:$0xf]  ;;  %v5457_v33 = vadd.f32 %v5453_v58, %v5440_v1  ;;  %v5487_v34 = vmul.f32 %v5746_v18, %v5478_v10  ;;  %v5530_v12 = vld [vmem:[#allocation2 + $0x1a] sm:$0xf]  ;;  %v5531_v53 = vld [vmem:[#allocation2 + $0x22] sm:$0xf] }
 0x19b   : > { %v5473_v46 = vadd.f32 %v5469_v19, %v5456_v48  ;;  %v5512_v0 = vld [vmem:[#allocation2 + $0x11] sm:$0xf]  ;;  %v5504_v36 = vmul.f32 %v7489_v55, %v5495_v9  ;;  %v5488_v43 = vmul.f32 %v5746_v18, %v5479_v41  ;;  %v5505_v22 = vmul.f32 %v7489_v55, %v5496_v25  ;;  %v5750_v49 = vld [vmem:[%s7526_s4] ss:$0 sm:$0xff] }
 0x19c   : > { %v5493_v42 = vadd.f32 %v5489_v37, %v5476_v47  ;;  %v5458_v16 = vadd.f32 %v5454_v56, %v5441_v20  ;;  %v5474_v39 = vadd.f32 %v5470_v29, %v5457_v33  ;;  %v5529_v57 = vld [vmem:[#allocation2 + $0x12] sm:$0xf]  ;;  %v5521_v2 = vmul.f32 %v5748_v32, %v5512_v0 }
 0x19d   : > { %v5490_v60 = vadd.f32 %v5486_v15, %v5473_v46  ;;  %v5506_v38 = vmul.f32 %v7489_v55, %v5497_v3  ;;  %v5538_v18 = vmul.f32 %v5749_v21, %v5529_v57  ;;  %v5523_v27 = vmul.f32 %v5748_v32, %v5514_v63 }
 0x19e   : > { %v5511_v24 = vadd.f32 %v5507_v8, %v5493_v42  ;;  %v5475_v59 = vadd.f32 %v5471_v54, %v5458_v16  ;;  %v5491_v52 = vadd.f32 %v5487_v34, %v5474_v39  ;;  %v5522_v8 = vmul.f32 %v5748_v32, %v5513_v23 }
 0x19f   : > { %v5508_v28 = vadd.f32 %v5504_v36, %v5490_v60  ;;  %v5539_v37 = vmul.f32 %v5749_v21, %v5530_v12  ;;  %v5540_v55 = vmul.f32 %v5749_v21, %v5531_v53 }
 0x1a0   : > { %v5528_v51 = vadd.f32 %v5524_v5, %v5511_v24  ;;  %v5492_v50 = vadd.f32 %v5488_v43, %v5475_v59  ;;  %v5509_v35 = vadd.f32 %v5505_v22, %v5491_v52 }
 0x1a1   : > { %v5525_v26 = vadd.f32 %v5521_v2, %v5508_v28 }
 0x1a2   : > { %v5545_v45 = vadd.f32 %v5541_v7, %v5528_v51  ;;  %v5510_v44 = vadd.f32 %v5506_v38, %v5492_v50  ;;  %v5526_v31 = vadd.f32 %v5522_v8, %v5509_v35 }
 0x1a3   : > { %v5542_v11 = vadd.f32 %v5538_v18, %v5525_v26 }
 0x1a4   : > { %v5556_v6 = vadd.f32 %v5750_v49, %v5545_v45  ;;  %v5527_v40 = vadd.f32 %v5523_v27, %v5510_v44  ;;  %v5543_v30 = vadd.f32 %v5539_v37, %v5526_v31 }
 0x1a5   : > { %v5553_v14 = vadd.f32 %v5750_v49, %v5542_v11 }
 0x1a6   : > { %v5560_v58 = vmax.f32 %v7458_v17, %v5556_v6  ;;  %v5544_v32 = vadd.f32 %v5540_v55, %v5527_v40  ;;  %v5554_v47 = vadd.f32 %v5750_v49, %v5543_v30 }
 0x1a7   : > { %v5557_v4 = vmax.f32 %v7465_v61, %v5553_v14 }
 0x1a8   : > { %5564 = vst.msk [vmem:[%s224_s14 + $0xc] sm:$0xf] %vm5387_vm9, %v5560_v58  ;;  %v5555_v1 = vadd.f32 %v5750_v49, %v5544_v32  ;;  %v5558_v48 = vmax.f32 %v7471_v62, %v5554_v47 }
 0x1a9   : > { %5561 = vst.msk [vmem:[%s224_s14] sm:$0xf] %vm5387_vm9, %v5557_v4 }
 0x1aa   : > { %v5559_v19 = vmax.f32 %v7451_v13, %v5555_v1  ;;  %5562 = vst.msk [vmem:[%s224_s14 + $0x4] sm:$0xf] %vm5387_vm9, %v5558_v48 }
 0x1ac   : > { %5563 = vst.msk [vmem:[%s224_s14 + $0x8] sm:$0xf] %vm5387_vm9, %v5559_v19 }
 0x1ad PF: > { %s15_s18 = sadd.s32 1, %s6364_s18  }
 0x1ae   : > { %p12_p4 = scmp.ge.s32.totalorder %s15_s18, 4  }
 0x1b0   :  { %14 = sbr.rel (!%p12_p4) target bundleno = 1 (0x1), region = 77 }

// kernel: stem_forward.3
= control target key start
LH: loop header
LB: loop body
LE: loop exit
PB: predicated region body
PF: predicated region fallthrough
CT: control target
= control target key end

     0   :  { %s12993_s13 = smov 0   ;;  %s17209_s0 = inlined_call_operand.vmem [shape: f32[2,9,2,9,2,4], index: 0, kind: input, shape index: {}]   ;;  %s17210_s1 = inlined_call_operand.vmem [shape: f32[36,16], index: 1, kind: input, shape index: {}]   ;;  %s17211_s2 = inlined_call_operand.vmem [shape: f32[1,16], index: 2, kind: input, shape index: {}]   ;;  %s17212_s3 = inlined_call_operand.vmem [shape: f32[9,16], index: 3, kind: input, shape index: {}]   ;;  %s17213_s4 = inlined_call_operand.vmem [shape: f32[1,16], index: 4, kind: input, shape index: {}]   ;;  %s17214_s5 = inlined_call_operand.vmem [shape: f32[16,16], index: 5, kind: input, shape index: {}]   ;;  %s17215_s6 = inlined_call_operand.vmem [shape: f32[1,16], index: 6, kind: input, shape index: {}]   ;;  %s17216_s7 = inlined_call_operand.vmem [shape: f32[9,16], index: 7, kind: input, shape index: {}]   ;;  %s17217_s8 = inlined_call_operand.vmem [shape: f32[1,16], index: 8, kind: input, shape index: {}]   ;;  %s17218_s9 = inlined_call_operand.vmem [shape: f32[2,8,8,16], index: 9, kind: output, shape index: {0}]   ;;  %s17219_s10 = inlined_call_operand.vmem [shape: f32[2,4,8,16], index: 10, kind: output, shape index: {1}]  }
   0x1 LB: > { %s11034_s14 = sadd.s32 4294967295, %s12935_s13   ;;  %p11038_p0 = scmp.ge.s32.totalorder %s12935_s13, 1  ;;  %s12935_s13 = sphi %s12993_s13, %s21_s13  }
   0x2   : > { %p315_p1 = scmp.lt.s32.totalorder %s12935_s13, 3 }
   0x4   : > { %p316_p2 = pnand %p11038_p0, %p315_p1 }
   0x6   : > { %319 = sbr.rel (%p316_p2) target bundleno = 1038 (0x40e), region = 56 }
   0xb   : > { %v524_v0 = vld [vmem:[%s17210_s1 + $0x4] sm:$0xf]  ;;  %vm725_vm0 = vcmask 1043456   ;;  %p358_p3 = scmp.lt.s32.totalorder %s11034_s14, 1  ;;  %v459_v2 = vld [vmem:[%s17210_s1] sm:$0xf] }
   0xc   : > { %v727_v1 = vsel %vm725_vm0, %v524_v0, 0  ;;  %v13013_v4 = vsel %vm725_vm0, %v459_v2, 0  ;;  %v2483_v5 = vld [vmem:[%s17210_s1 + $0x8] sm:$0xf]  ;;  %vm590_vm1 = vcmask 1041409   ;;  %vm593_vm2 = vcmask 1042434  }
   0xd   : > { %v13008_v3 = vand.u32 4294901760, %v727_v1  ;;  %s17485_s14 = smov (!%p358_p3, %s11034_s14), 1  ;;  %v13024_v7 = vsel %vm725_vm0, %v2483_v5, 0  ;;  %vm596_vm3 = vcmask 1043459   ;;  %vm599_vm4 = vcmask 1044484  }
   0xe   : > { %s12916_s21 = smul.u32 324, %s17485_s14  ;;  %vm602_vm5 = vcmask 1045509   ;;  %vm605_vm6 = vcmask 1046534   ;;  %vm608_vm7 = vcmask 1047559   ;;  %v13037_v9 = vand.u32 4294901760, %v13013_v4  ;;  %s11517_s27 = sshll.u32 %s17485_s14, 5 }
   0xf   : > { %12064 = vmatprep.subr.mxu0 %v13008_v3  ;;  %v13020_v6 = vsub.f32 %v727_v1, %v13008_v3  ;;  %v13040_v10 = vand.u32 4294901760, %v13024_v7  ;;  %vm708_vm8 = vcmask 31744   ;;  %vm373_vm9 = vcmask 130048   ;;  %s16852_s30 = scalar_lea.vmem %s17219_s10, %s11517_s27  ;;  %s11516_s17 = sshll.u32 %s17485_s14, 6 }
  0x10   : > { %12065 = vmatpush3.msra.mxu0 %v13008_v3  ;;  %s13033_s24 = scalar_lea.vmem %s17209_s0, %s12916_s21  ;;  %v13077_v57 = vsub.f32 %v13013_v4, %v13037_v9  ;;  %vm375_vm10 = vcmask 123904   ;;  %s17126_s19 = scalar_lea.vmem %s17218_s9, %s11516_s17 }
  0x11   : > { %v13028_v8 = vand.u32 4294901760, %v13020_v6  ;;  %12092 = vmatprep.subr.mxu0 %v13020_v6  ;;  %v460_v11 = vld [vmem:[%s13033_s24 + $0x1] sm:$0x1]  ;;  %v461_v12 = vld [vmem:[%s13033_s24 + $0x3] sm:$0x1] }
  0x12   : > { %v462_v13 = vld [vmem:[%s13033_s24 + $0x5] sm:$0x1]  ;;  %v463_v15 = vld [vmem:[%s13033_s24 + $0x7] sm:$0x1]  ;;  %v464_v16 = vld [vmem:[%s13033_s24 + $0x9] sm:$0x1] }
  0x13   : > { %v909_v14 = vsub.f32 %v13020_v6, %v13028_v8  ;;  %v465_v17 = vld [vmem:[%s13033_s24 + $0xb] sm:$0x1]  ;;  %v466_v18 = vld [vmem:[%s13033_s24 + $0xd] sm:$0x1]  ;;  %v467_v19 = vld [vmem:[%s13033_s24 + $0xf] sm:$0x1] }
  0x14   : > { %v589_v20 = vrot.slane %v461_v12, 7  ;;  %v592_v21 = vrot.slane %v462_v13, 6  ;;  %v595_v23 = vrot.slane %v463_v15, 5  ;;  %v598_v24 = vrot.slane %v464_v16, 4  ;;  %v468_v26 = vld [vmem:[%s13033_s24 + $0x25] sm:$0x1] }
  0x15   : > { %v910_v22 = vand.u32 4294901760, %v909_v14  ;;  %v601_v25 = vrot.slane %v465_v17, 3  ;;  %v604_v28 = vrot.slane %v466_v18, 2  ;;  %v607_v29 = vrot.slane %v467_v19, 1  ;;  %v469_v30 = vld [vmem:[%s13033_s24 + $0x27] sm:$0x1] }
  0x16   : > { %v591_v27 = vsel %vm590_vm1, %v589_v20, %v460_v11  ;;  %v470_v31 = vld [vmem:[%s13033_s24 + $0x29] sm:$0x1]  ;;  %v471_v33 = vld [vmem:[%s13033_s24 + $0x2b] sm:$0x1]  ;;  %v472_v34 = vld [vmem:[%s13033_s24 + $0x2d] sm:$0x1] }
  0x17   : > { %12078 = vmatprep.subr.mxu1 %v910_v22  ;;  %v594_v32 = vsel %vm593_vm2, %v592_v21, %v591_v27  ;;  %v473_v35 = vld [vmem:[%s13033_s24 + $0x2f] sm:$0x1]  ;;  %v474_v37 = vld [vmem:[%s13033_s24 + $0x31] sm:$0x1]  ;;  %v475_v38 = vld [vmem:[%s13033_s24 + $0x33] sm:$0x1]  ;;  %v13097_v21 = vsub.f32 %v13024_v7, %v13040_v10 }
  0x18   : > { %v597_v36 = vsel %vm596_vm3, %v595_v23, %v594_v32  ;;  %12079 = vmatpush3.msra.mxu1 %v910_v22  ;;  %v610_v39 = vrot.slane %v469_v30, 7  ;;  %v612_v40 = vrot.slane %v470_v31, 6  ;;  %v614_v42 = vrot.slane %v471_v33, 5  ;;  %v476_v45 = vld [vmem:[%s13033_s24 + $0x49] sm:$0x1] }
  0x19   : > { %v600_v41 = vsel %vm599_vm4, %v598_v24, %v597_v36  ;;  %v616_v43 = vrot.slane %v472_v34, 4  ;;  %v618_v44 = vrot.slane %v473_v35, 3  ;;  %12106 = vmatprep.subr.mxu1 %v13008_v3  ;;  %v620_v48 = vrot.slane %v474_v37, 2  ;;  %v477_v50 = vld [vmem:[%s13033_s24 + $0x4b] sm:$0x1] }
  0x1a   : > { %v603_v46 = vsel %vm602_vm5, %v601_v25, %v600_v41  ;;  %v611_v47 = vsel %vm590_vm1, %v610_v39, %v468_v26  ;;  %v622_v49 = vrot.slane %v475_v38, 1  ;;  %v478_v51 = vld [vmem:[%s13033_s24 + $0x4d] sm:$0x1]  ;;  %v479_v54 = vld [vmem:[%s13033_s24 + $0x4f] sm:$0x1]  ;;  %v624_v61 = vrot.slane %v477_v50, 7 }
  0x1b   : > { %v606_v52 = vsel %vm605_vm6, %v604_v28, %v603_v46  ;;  %v613_v53 = vsel %vm593_vm2, %v612_v40, %v611_v47  ;;  %v480_v55 = vld [vmem:[%s13033_s24 + $0x51] sm:$0x1]  ;;  %v481_v56 = vld [vmem:[%s13033_s24 + $0x53] sm:$0x1]  ;;  %v482_v60 = vld [vmem:[%s13033_s24 + $0x55] sm:$0x1] }
  0x1c   : > { %v609_v58 = vsel %vm608_vm7, %v607_v29, %v606_v52  ;;  %v615_v59 = vsel %vm596_vm3, %v614_v42, %v613_v53  ;;  %v626_v62 = vrot.slane %v478_v51, 6  ;;  %v483_v1 = vld [vmem:[%s13033_s24 + $0x57] sm:$0x1]  ;;  %v628_v2 = vrot.slane %v479_v54, 5  ;;  %v485_v14 = vld [vmem:[%s13033_s24 + $0x6f] sm:$0x1] }
  0x1d   : > { %v709_v63 = vsel %vm708_vm8, %v609_v58, 0  ;;  %v617_v0 = vsel %vm599_vm4, %v616_v43, %v615_v59  ;;  %v630_v5 = vrot.slane %v480_v55, 4  ;;  %v625_v12 = vsel %vm590_vm1, %v624_v61, %v476_v45  ;;  %v486_v15 = vld [vmem:[%s13033_s24 + $0x71] sm:$0x1]  ;;  %v484_v19 = vld [vmem:[%s13033_s24 + $0x6d] sm:$0x1] }
  0x1e   : > { %v13085_v11 = vand.u32 4294901760, %v709_v63  ;;  %v619_v4 = vsel %vm602_vm5, %v618_v44, %v617_v0  ;;  %v632_v13 = vrot.slane %v481_v56, 3  ;;  %v627_v17 = vsel %vm593_vm2, %v626_v62, %v625_v12  ;;  %v487_v20 = vld [vmem:[%s13033_s24 + $0x73] sm:$0x1]  ;;  %v488_v26 = vld [vmem:[%s13033_s24 + $0x75] sm:$0x1] }
  0x1f   : > { %v621_v16 = vsel %vm605_vm6, %v620_v48, %v619_v4  ;;  %v634_v18 = vrot.slane %v482_v60, 2  ;;  %v629_v24 = vsel %vm596_vm3, %v628_v2, %v627_v17  ;;  %v636_v25 = vrot.slane %v483_v1, 1  ;;  %v489_v27 = vld [vmem:[%s13033_s24 + $0x77] sm:$0x1]  ;;  %v490_v7 = vld [vmem:[%s13033_s24 + $0x79] sm:$0x1] }
  0x20   : > { %v13100_v22 = vsub.f32 %v709_v63, %v13085_v11  ;;  %12080 = vmatprep.mubr.f32.mxu1 %v13085_v11  ;;  %v623_v23 = vsel %vm608_vm7, %v622_v49, %v621_v16  ;;  %v631_v29 = vsel %vm599_vm4, %v630_v5, %v629_v24  ;;  %v638_v30 = vrot.slane %v485_v14, 7  ;;  %v491_v35 = vld [vmem:[%s13033_s24 + $0x7b] sm:$0x1]  ;;  %v493_v41 = vld [vmem:[%s13033_s24 + $0x93] sm:$0x1] }
  0x21   : > { %v711_v28 = vsel %vm708_vm8, %v623_v23, 0  ;;  %v640_v31 = vrot.slane %v486_v15, 6  ;;  %v633_v34 = vsel %vm602_vm5, %v632_v13, %v631_v29  ;;  %v642_v36 = vrot.slane %v487_v20, 5  ;;  %v492_v46 = vld [vmem:[%s13033_s24 + $0x91] sm:$0x1] }
  0x22   : > { %v797_v32 = vand.u32 4294901760, %v13100_v22  ;;  %v13111_v33 = vand.u32 4294901760, %v711_v28  ;;  %v635_v37 = vsel %vm605_vm6, %v634_v18, %v633_v34  ;;  %v639_v38 = vsel %vm590_vm1, %v638_v30, %v484_v19  ;;  %v494_v47 = vld [vmem:[%s13033_s24 + $0x95] sm:$0x1]  ;;  %v495_v48 = vld [vmem:[%s13033_s24 + $0x97] sm:$0x1] }
  0x23   : > { %v644_v39 = vrot.slane %v488_v26, 4  ;;  %v646_v40 = vrot.slane %v489_v27, 3  ;;  %v637_v44 = vsel %vm608_vm7, %v636_v25, %v635_v37  ;;  %v641_v45 = vsel %vm593_vm2, %v640_v31, %v639_v38  ;;  %v496_v49 = vld [vmem:[%s13033_s24 + $0x99] sm:$0x1]  ;;  %v497_v54 = vld [vmem:[%s13033_s24 + $0x9b] sm:$0x1] }
  0x24   : > { %v798_v42 = vsub.f32 %v13100_v22, %v797_v32  ;;  %v13122_v43 = vsub.f32 %v711_v28, %v13111_v33  ;;  %12081 = vmatmul.mubr.f32.vlgmr.msra.gmra.mxu1 %v13111_v33  ;;  %v713_v50 = vsel %vm708_vm8, %v637_v44, 0  ;;  %v643_v51 = vsel %vm596_vm3, %v642_v36, %v641_v45  ;;  %v498_v60 = vld [vmem:[%s13033_s24 + $0x9d] sm:$0x1]  ;;  %v499_v62 = vld [vmem:[%s13033_s24 + $0x9f] sm:$0x1] }
  0x25   : > { %12107 = vmatpush3.msra.mxu1 %v13008_v3  ;;  %v648_v52 = vrot.slane %v490_v7, 2  ;;  %v650_v53 = vrot.slane %v491_v35, 1  ;;  %v13136_v58 = vand.u32 4294901760, %v713_v50  ;;  %v645_v59 = vsel %vm599_vm4, %v644_v39, %v643_v51  ;;  %v500_v13 = vld [vmem:[%s13033_s24 + $0xb5] sm:$0x1] }
  0x26   : > { %v799_v55 = vand.u32 4294901760, %v798_v42  ;;  %v807_v56 = vand.u32 4294901760, %v13122_v43  ;;  %12134 = vmatprep.subr.mxu1 %v13008_v3  ;;  %v647_v61 = vsel %vm602_vm5, %v646_v40, %v645_v59  ;;  %v652_v63 = vrot.slane %v493_v41, 7  ;;  %v501_v14 = vld [vmem:[%s13033_s24 + $0xb7] sm:$0x1] }
  0x27   : > { %v654_v0 = vrot.slane %v494_v47, 6  ;;  %v656_v1 = vrot.slane %v495_v48, 5  ;;  %v13147_v5 = vsub.f32 %v713_v50, %v13136_v58  ;;  %12083 = vmatprep.mubr.f32.mxu1 %v13136_v58  ;;  %v649_v4 = vsel %vm605_vm6, %v648_v52, %v647_v61  ;;  %v502_v19 = vld [vmem:[%s13033_s24 + $0xb9] sm:$0x1]  ;;  %v503_v20 = vld [vmem:[%s13033_s24 + $0xbb] sm:$0x1] }
  0x28   : > { %12066 = vmatprep.mubr.f32.mxu0 %v799_v55  ;;  %v808_v2 = vsub.f32 %v13122_v43, %v807_v56  ;;  %v658_v12 = vrot.slane %v496_v49, 4  ;;  %v651_v15 = vsel %vm608_vm7, %v650_v53, %v649_v4  ;;  %v653_v16 = vsel %vm590_vm1, %v652_v63, %v492_v46  ;;  %v504_v27 = vld [vmem:[%s13033_s24 + $0xbd] sm:$0x1]  ;;  %v505_v30 = vld [vmem:[%s13033_s24 + $0xbf] sm:$0x1] }
  0x29   : > { %v660_v17 = vrot.slane %v497_v54, 3  ;;  %v662_v18 = vrot.slane %v498_v60, 2  ;;  %v817_v24 = vand.u32 4294901760, %v13147_v5  ;;  %v715_v25 = vsel %vm708_vm8, %v651_v15, 0  ;;  %v506_v36 = vld [vmem:[%s13033_s24 + $0xc1] sm:$0x1] }
  0x2a   : > { %v809_v23 = vand.u32 4294901760, %v808_v2  ;;  %v655_v26 = vsel %vm593_vm2, %v654_v0, %v653_v16  ;;  %v13161_v28 = vand.u32 4294901760, %v715_v25  ;;  %v664_v7 = vrot.slane %v499_v62, 1  ;;  %v507_v41 = vld [vmem:[%s13033_s24 + $0xc3] sm:$0x1] }
  0x2b   : > { %v657_v29 = vsel %vm596_vm3, %v656_v1, %v655_v26  ;;  %v666_v31 = vrot.slane %v501_v14, 7  ;;  %v818_v34 = vsub.f32 %v13147_v5, %v817_v24  ;;  %v668_v37 = vrot.slane %v502_v19, 6  ;;  %v509_v45 = vld [vmem:[%s13033_s24 + $0xdb] sm:$0x1]  ;;  %v508_v49 = vld [vmem:[%s13033_s24 + $0xd9] sm:$0x1] }
  0x2c   : > { %12067 = vmatmul.mubr.f32.vlgmr.msra.gmra.mxu0 %v809_v23  ;;  %v659_v35 = vsel %vm599_vm4, %v658_v12, %v657_v29  ;;  %v670_v38 = vrot.slane %v503_v20, 5  ;;  %v13172_v39 = vsub.f32 %v715_v25, %v13161_v28  ;;  %12084 = vmatmul.mubr.f32.gmra.mxu1 %v13161_v28  ;;  %v672_v44 = vrot.slane %v504_v27, 4  ;;  %v510_v50 = vld [vmem:[%s13033_s24 + $0xdd] sm:$0x1]  ;;  %v511_v55 = vld [vmem:[%s13033_s24 + $0xdf] sm:$0x1] }
  0x2d   : > { %12093 = vmatpush3.msra.mxu0 %v13020_v6  ;;  %v661_v40 = vsel %vm602_vm5, %v660_v17, %v659_v35  ;;  %v667_v42 = vsel %vm590_vm1, %v666_v31, %v500_v13  ;;  %v819_v46 = vand.u32 4294901760, %v818_v34  ;;  %v674_v48 = vrot.slane %v505_v30, 3  ;;  %v512_v59 = vld [vmem:[%s13033_s24 + $0xe1] sm:$0x1]  ;;  %v513_v63 = vld [vmem:[%s13033_s24 + $0xe3] sm:$0x1] }
  0x2e   : > { %v663_v47 = vsel %vm605_vm6, %v662_v18, %v661_v40  ;;  %v669_v6 = vsel %vm593_vm2, %v668_v37, %v667_v42  ;;  %12120 = vmatprep.subr.mxu0 %v13028_v8  ;;  %v827_v51 = vand.u32 4294901760, %v13172_v39  ;;  %v676_v54 = vrot.slane %v506_v36, 2  ;;  %v514_v12 = vld [vmem:[%s13033_s24 + $0xe5] sm:$0x1]  ;;  %v515_v13 = vld [vmem:[%s13033_s24 + $0xe7] sm:$0x1] }
  0x2f   : > { %v665_v52 = vsel %vm608_vm7, %v664_v7, %v663_v47  ;;  %v671_v53 = vsel %vm596_vm3, %v670_v38, %v669_v6  ;;  %12069 = vmatprep.mubr.f32.mxu0 %v819_v46  ;;  %v678_v62 = vrot.slane %v507_v41, 1  ;;  %v680_v0 = vrot.slane %v509_v45, 7  ;;  %v517_v19 = vld [vmem:[%s13033_s24 + $0xff] sm:$0x1]  ;;  %v518_v20 = vld [vmem:[%s13033_s24 + $0x101] sm:$0x1] }
  0x30   : > { %v717_v60 = vsel %vm708_vm8, %v665_v52, 0  ;;  %v673_v61 = vsel %vm599_vm4, %v672_v44, %v671_v53  ;;  %v828_v1 = vsub.f32 %v13172_v39, %v827_v51  ;;  %v682_v14 = vrot.slane %v510_v50, 6  ;;  %v516_v29 = vld [vmem:[%s13033_s24 + $0xfd] sm:$0x1]  ;;  %v519_v7 = vld [vmem:[%s13033_s24 + $0x103] sm:$0x1] }
  0x31   : > { %v13195_v2 = vand.u32 4294901760, %v717_v60  ;;  %v675_v4 = vsel %vm602_vm5, %v674_v48, %v673_v61  ;;  %v681_v16 = vsel %vm590_vm1, %v680_v0, %v508_v49  ;;  %v684_v17 = vrot.slane %v511_v55, 5  ;;  %v520_v30 = vld [vmem:[%s13033_s24 + $0x105] sm:$0x1]  ;;  %v521_v37 = vld [vmem:[%s13033_s24 + $0x107] sm:$0x1] }
  0x32   : > { %v677_v15 = vsel %vm605_vm6, %v676_v54, %v675_v4  ;;  %v686_v18 = vrot.slane %v512_v59, 4  ;;  %v829_v23 = vand.u32 4294901760, %v828_v1  ;;  %v683_v27 = vsel %vm593_vm2, %v682_v14, %v681_v16  ;;  %v522_v44 = vld [vmem:[%s13033_s24 + $0x109] sm:$0x1]  ;;  %v523_v52 = vld [vmem:[%s13033_s24 + $0x10b] sm:$0x1] }
  0x33   : > { %v13205_v25 = vsub.f32 %v717_v60, %v13195_v2  ;;  %12086 = vmatprep.mubr.f32.mxu1 %v13195_v2  ;;  %v679_v26 = vsel %vm608_vm7, %v678_v62, %v677_v15  ;;  %v685_v34 = vsel %vm596_vm3, %v684_v17, %v683_v27  ;;  %v688_v35 = vrot.slane %v513_v63, 3  ;;  %v395_v61 = vld [vmem:[%s13033_s24] sm:$0x1]  ;;  %v396_v62 = vld [vmem:[%s13033_s24 + $0x2] sm:$0x1] }
  0x34   : > { %v719_v31 = vsel %vm708_vm8, %v679_v26, 0  ;;  %v690_v36 = vrot.slane %v514_v12, 2  ;;  %12070 = vmatmul.mubr.f32.gmra.mxu0 %v829_v23  ;;  %v687_v41 = vsel %vm599_vm4, %v686_v18, %v685_v34  ;;  %v692_v42 = vrot.slane %v515_v13, 1  ;;  %v397_v63 = vld [vmem:[%s13033_s24 + $0x4] sm:$0x1] }
  0x35   : > { %v837_v38 = vand.u32 4294901760, %v13205_v25  ;;  %v13217_v40 = vand.u32 4294901760, %v719_v31  ;;  %v689_v45 = vsel %vm602_vm5, %v688_v35, %v687_v41  ;;  %v694_v46 = vrot.slane %v517_v19, 7  ;;  %v398_v13 = vld [vmem:[%s13033_s24 + $0x6] sm:$0x1] }
  0x36   : > { %v696_v47 = vrot.slane %v518_v20, 6  ;;  %v698_v6 = vrot.slane %v519_v7, 5  ;;  %v691_v50 = vsel %vm605_vm6, %v690_v36, %v689_v45  ;;  %v700_v53 = vrot.slane %v520_v30, 4  ;;  %v399_v18 = vld [vmem:[%s13033_s24 + $0x8] sm:$0x1] }
  0x37   : > { %v838_v48 = vsub.f32 %v13205_v25, %v837_v38  ;;  %v13226_v49 = vsub.f32 %v719_v31, %v13217_v40  ;;  %12087 = vmatmul.mubr.f32.gmra.mxu1 %v13217_v40  ;;  %v693_v54 = vsel %vm608_vm7, %v692_v42, %v691_v50  ;;  %v695_v55 = vsel %vm590_vm1, %v694_v46, %v516_v29  ;;  %v400_v30 = vld [vmem:[%s13033_s24 + $0xa] sm:$0x1]  ;;  %v401_v31 = vld [vmem:[%s13033_s24 + $0xc] sm:$0x1]  ;;  %v405_v50 = vld [vmem:[%s13033_s24 + $0x28] sm:$0x1] }
  0x38   : > { %v702_v59 = vrot.slane %v521_v37, 3  ;;  %v704_v60 = vrot.slane %v522_v44, 2  ;;  %v721_v4 = vsel %vm708_vm8, %v693_v54, 0  ;;  %v697_v12 = vsel %vm593_vm2, %v696_v47, %v695_v55  ;;  %v402_v37 = vld [vmem:[%s13033_s24 + $0xe] sm:$0x1] }
  0x39   : > { %v839_v0 = vand.u32 4294901760, %v838_v48  ;;  %v847_v1 = vand.u32 4294901760, %v13226_v49  ;;  %v13240_v14 = vand.u32 4294901760, %v721_v4  ;;  %v699_v15 = vsel %vm596_vm3, %v698_v6, %v697_v12  ;;  %v404_v44 = vld [vmem:[%s13033_s24 + $0x26] sm:$0x1] }
  0x3a   : > { %v706_v16 = vrot.slane %v523_v52, 1  ;;  %v13244_v17 = vand.u32 4294901760, %v13077_v57  ;;  %v701_v20 = vsel %vm599_vm4, %v700_v53, %v699_v15  ;;  %v1540_v23 = vrot.slane %v396_v62, 7  ;;  %v403_v48 = vld [vmem:[%s13033_s24 + $0x24] sm:$0x1] }
  0x3b   : > { %12072 = vmatprep.mubr.f32.mxu0 %v839_v0  ;;  %v848_v19 = vsub.f32 %v13226_v49, %v847_v1  ;;  %v1542_v26 = vrot.slane %v397_v63, 6  ;;  %v13252_v27 = vsub.f32 %v721_v4, %v13240_v14  ;;  %12089 = vmatprep.mubr.f32.mxu1 %v13240_v14  ;;  %v703_v29 = vsel %vm602_vm5, %v702_v59, %v701_v20  ;;  %v406_v52 = vld [vmem:[%s13033_s24 + $0x2a] sm:$0x1]  ;;  %v408_v4 = vld [vmem:[%s13033_s24 + $0x2e] sm:$0x1] }
  0x3c   : > { %v1851_v7 = vsub.f32 %v13077_v57, %v13244_v17  ;;  %v1544_v34 = vrot.slane %v398_v13, 5  ;;  %v705_v36 = vsel %vm605_vm6, %v704_v60, %v703_v29  ;;  %v1541_v41 = vsel %vm590_vm1, %v1540_v23, %v395_v61  ;;  %v407_v60 = vld [vmem:[%s13033_s24 + $0x2c] sm:$0x1]  ;;  %v409_v12 = vld [vmem:[%s13033_s24 + $0x30] sm:$0x1] }
  0x3d   : > { %v849_v35 = vand.u32 4294901760, %v848_v19  ;;  %v1546_v42 = vrot.slane %v399_v18, 4  ;;  %v857_v45 = vand.u32 4294901760, %v13252_v27  ;;  %v707_v46 = vsel %vm608_vm7, %v706_v16, %v705_v36  ;;  %v410_v15 = vld [vmem:[%s13033_s24 + $0x32] sm:$0x1] }
  0x3e   : > { %v13266_v47 = vand.u32 4294901760, %v1851_v7  ;;  %v1543_v6 = vsel %vm593_vm2, %v1542_v26, %v1541_v41  ;;  %v723_v53 = vsel %vm708_vm8, %v707_v46, 0  ;;  %v1548_v55 = vrot.slane %v400_v30, 3  ;;  %v411_v7 = vld [vmem:[%s13033_s24 + $0x48] sm:$0x1] }
  0x3f   : > { %12073 = vmatmul.mubr.f32.gmra.mxu0 %v849_v35  ;;  %v1545_v54 = vsel %vm596_vm3, %v1544_v34, %v1543_v6  ;;  %v1550_v59 = vrot.slane %v401_v31, 2  ;;  %v858_v61 = vsub.f32 %v13252_v27, %v857_v45  ;;  %v13278_v62 = vand.u32 4294901760, %v723_v53  ;;  %v412_v30 = vld [vmem:[%s13033_s24 + $0x4a] sm:$0x1]  ;;  %v413_v31 = vld [vmem:[%s13033_s24 + $0x4c] sm:$0x1] }
  0x40   : > { %v1547_v63 = vsel %vm599_vm4, %v1546_v42, %v1545_v54  ;;  %v1552_v0 = vrot.slane %v402_v37, 1  ;;  %v1554_v16 = vrot.slane %v404_v44, 7  ;;  %v1556_v18 = vrot.slane %v405_v50, 6  ;;  %v414_v41 = vld [vmem:[%s13033_s24 + $0x4e] sm:$0x1] }
  0x41   : > { %v1549_v13 = vsel %vm602_vm5, %v1548_v55, %v1547_v63  ;;  %v1558_v19 = vrot.slane %v406_v52, 5  ;;  %v859_v20 = vand.u32 4294901760, %v858_v61  ;;  %v13286_v23 = vsub.f32 %v723_v53, %v13278_v62  ;;  %12090 = vmatmul.mubr.f32.gmra.mxu1 %v13278_v62  ;;  %v415_v42 = vld [vmem:[%s13033_s24 + $0x50] sm:$0x1]  ;;  %v416_v52 = vld [vmem:[%s13033_s24 + $0x52] sm:$0x1] }
  0x42   : > { %v1551_v26 = vsel %vm605_vm6, %v1550_v59, %v1549_v13  ;;  %v1560_v29 = vrot.slane %v407_v60, 4  ;;  %12108 = vmatprep.mubr.f32.mxu1 %v797_v32  ;;  %v1555_v35 = vsel %vm590_vm1, %v1554_v16, %v403_v48  ;;  %v1562_v36 = vrot.slane %v408_v4, 3  ;;  %v417_v48 = vld [vmem:[%s13033_s24 + $0x54] sm:$0x1]  ;;  %v418_v61 = vld [vmem:[%s13033_s24 + $0x56] sm:$0x1] }
  0x43   : > { %v1553_v34 = vsel %vm608_vm7, %v1552_v0, %v1551_v26  ;;  %v1564_v37 = vrot.slane %v409_v12, 2  ;;  %12075 = vmatprep.mubr.f32.mxu0 %v859_v20  ;;  %v867_v44 = vand.u32 4294901760, %v13286_v23  ;;  %v1557_v6 = vsel %vm593_vm2, %v1556_v18, %v1555_v35  ;;  %v421_v16 = vld [vmem:[%s13033_s24 + $0x70] sm:$0x1]  ;;  %v419_v20 = vld [vmem:[%s13033_s24 + $0x6c] sm:$0x1] }
  0x44   : > { %v1652_v46 = vsel %vm708_vm8, %v1553_v34, 0  ;;  %v1566_v50 = vrot.slane %v410_v15, 1  ;;  %v1559_v32 = vsel %vm596_vm3, %v1558_v19, %v1557_v6  ;;  %v1568_v54 = vrot.slane %v412_v30, 7  ;;  %v420_v15 = vld [vmem:[%s13033_s24 + $0x6e] sm:$0x1] }
  0x45   : > { %v13303_v53 = vand.u32 4294901760, %v1652_v46  ;;  %v1570_v55 = vrot.slane %v413_v31, 6  ;;  %v868_v59 = vsub.f32 %v13286_v23, %v867_v44  ;;  %12109 = vmatmul.mubr.f32.vlgmr.msra.gmra.mxu1 %v807_v56  ;;  %v1561_v60 = vsel %vm599_vm4, %v1560_v29, %v1559_v32  ;;  %v422_v26 = vld [vmem:[%s13033_s24 + $0x72] sm:$0x1]  ;;  %v423_v34 = vld [vmem:[%s13033_s24 + $0x74] sm:$0x1] }
  0x46   : > { %v1572_v63 = vrot.slane %v414_v41, 5  ;;  %v1574_v0 = vrot.slane %v415_v42, 4  ;;  %12135 = vmatpush3.msra.mxu1 %v13008_v3  ;;  %12111 = vmatprep.mubr.f32.mxu1 %v817_v24  ;;  %v1563_v12 = vsel %vm602_vm5, %v1562_v36, %v1561_v60  ;;  %v1569_v56 = vsel %vm590_vm1, %v1568_v54, %v411_v7  ;;  %v424_v35 = vld [vmem:[%s13033_s24 + $0x76] sm:$0x1]  ;;  %v429_v60 = vld [vmem:[%s13033_s24 + $0x94] sm:$0x1] }
  0x47   : > { %v13318_v4 = vsub.f32 %v1652_v46, %v13303_v53  ;;  %v1576_v13 = vrot.slane %v416_v52, 3  ;;  %v869_v18 = vand.u32 4294901760, %v868_v59  ;;  %12162 = vmatprep.subr.mxu1 %v13266_v47  ;;  %v1565_v3 = vsel %vm605_vm6, %v1564_v37, %v1563_v12  ;;  %v426_v52 = vld [vmem:[%s13033_s24 + $0x7a] sm:$0x1]  ;;  %v428_v59 = vld [vmem:[%s13033_s24 + $0x92] sm:$0x1] }
  0x48   : > { %v1571_v19 = vsel %vm593_vm2, %v1570_v55, %v1569_v56  ;;  %v1578_v24 = vrot.slane %v417_v48, 2  ;;  %v1567_v30 = vsel %vm608_vm7, %v1566_v50, %v1565_v3  ;;  %v1580_v31 = vrot.slane %v418_v61, 1  ;;  %v425_v50 = vld [vmem:[%s13033_s24 + $0x78] sm:$0x1]  ;;  %v427_v55 = vld [vmem:[%s13033_s24 + $0x90] sm:$0x1] }
  0x49   : > { %v1739_v29 = vand.u32 4294901760, %v13318_v4  ;;  %v1573_v7 = vsel %vm596_vm3, %v1572_v63, %v1571_v19  ;;  %12076 = vmatmul.mubr.f32.gmra.mxu0 %v869_v18  ;;  %12112 = vmatmul.mubr.f32.gmra.mxu1 %v827_v51  ;;  %v1654_v36 = vsel %vm708_vm8, %v1567_v30, 0  ;;  %v1582_v41 = vrot.slane %v420_v15, 7  ;;  %v430_v56 = vld [vmem:[%s13033_s24 + $0x96] sm:$0x1] }
  0x4a   : > { %v1575_v37 = vsel %vm599_vm4, %v1574_v0, %v1573_v7  ;;  %v1584_v42 = vrot.slane %v421_v16, 6  ;;  %12094 = vmatprep.mubr.f32.mxu0 %v13100_v22  ;;  %12114 = vmatprep.mubr.f32.mxu1 %v837_v38  ;;  %v13346_v51 = vand.u32 4294901760, %v1654_v36  ;;  %v1586_v32 = vrot.slane %v422_v26, 5  ;;  %v432_v19 = vld [vmem:[%s13033_s24 + $0x9a] sm:$0x1] }
  0x4b   : > { %v13344_v46 = vsub.f32 %v13318_v4, %v1739_v29  ;;  %v1577_v6 = vsel %vm602_vm5, %v1576_v13, %v1575_v37  ;;  %v1583_v22 = vsel %vm590_vm1, %v1582_v41, %v419_v20  ;;  %v1588_v54 = vrot.slane %v423_v34, 4  ;;  %v431_v13 = vld [vmem:[%s13033_s24 + $0x98] sm:$0x1]  ;;  %v435_v37 = vld [vmem:[%s13033_s24 + $0xb4] sm:$0x1] }
  0x4c   : > { %v1579_v48 = vsel %vm605_vm6, %v1578_v24, %v1577_v6  ;;  %v1590_v38 = vrot.slane %v424_v35, 3  ;;  %v13358_v63 = vsub.f32 %v1654_v36, %v13346_v51  ;;  %v1585_v12 = vsel %vm593_vm2, %v1584_v42, %v1583_v22  ;;  %v436_v41 = vld [vmem:[%s13033_s24 + $0xb6] sm:$0x1] }
  0x4d   : > { %v1741_v61 = vand.u32 4294901760, %v13344_v46  ;;  %v1581_v0 = vsel %vm608_vm7, %v1580_v31, %v1579_v48  ;;  %12095 = vmatmul.mubr.f32.vlgmr.msra.gmra.mxu0 %v13122_v43  ;;  %12115 = vmatmul.mubr.f32.gmra.mxu1 %v847_v1  ;;  %v1587_v16 = vsel %vm596_vm3, %v1586_v32, %v1585_v12  ;;  %v1592_v18 = vrot.slane %v425_v50, 2  ;;  %v433_v1 = vld [vmem:[%s13033_s24 + $0x9c] sm:$0x1]  ;;  %v437_v32 = vld [vmem:[%s13033_s24 + $0xb8] sm:$0x1] }
  0x4e   : > { %v1656_v15 = vsel %vm708_vm8, %v1581_v0, 0  ;;  %v1594_v3 = vrot.slane %v426_v52, 1  ;;  %12121 = vmatpush3.msra.mxu0 %v13028_v8  ;;  %12097 = vmatprep.mubr.f32.mxu0 %v13147_v5  ;;  %v1749_v24 = vand.u32 4294901760, %v13358_v63  ;;  %v1589_v43 = vsel %vm599_vm4, %v1588_v54, %v1587_v16  ;;  %v438_v48 = vld [vmem:[%s13033_s24 + $0xba] sm:$0x1] }
  0x4f   : > { %v13373_v20 = vand.u32 4294901760, %v1656_v15  ;;  %v1596_v26 = vrot.slane %v428_v59, 7  ;;  %12117 = vmatprep.mubr.f32.mxu1 %v857_v45  ;;  %12148 = vmatprep.subr.mxu0 %v13037_v9  ;;  %v1591_v8 = vsel %vm602_vm5, %v1590_v38, %v1589_v43  ;;  %v1598_v30 = vrot.slane %v429_v60, 6  ;;  %v434_v45 = vld [vmem:[%s13033_s24 + $0x9e] sm:$0x1] }
  0x50   : > { %v1600_v5 = vrot.slane %v430_v56, 5  ;;  %v1602_v7 = vrot.slane %v431_v13, 4  ;;  %v13384_v31 = vsub.f32 %v13358_v63, %v1749_v24  ;;  %v1593_v35 = vsel %vm605_vm6, %v1592_v18, %v1591_v8  ;;  %v439_v38 = vld [vmem:[%s13033_s24 + $0xbc] sm:$0x1]  ;;  %v440_v0 = vld [vmem:[%s13033_s24 + $0xbe] sm:$0x1] }
  0x51   : > { %v13387_v34 = vsub.f32 %v1656_v15, %v13373_v20  ;;  %v1597_v36 = vsel %vm590_vm1, %v1596_v26, %v427_v55  ;;  %12098 = vmatmul.mubr.f32.gmra.mxu0 %v13172_v39  ;;  %12118 = vmatmul.mubr.f32.gmra.mxu1 %v867_v44  ;;  %v1595_v42 = vsel %vm608_vm7, %v1594_v3, %v1593_v35  ;;  %v1604_v50 = vrot.slane %v432_v19, 3  ;;  %v441_v13 = vld [vmem:[%s13033_s24 + $0xc0] sm:$0x1]  ;;  %v442_v15 = vld [vmem:[%s13033_s24 + $0xc2] sm:$0x1] }
  0x52   : > { %v1599_v6 = vsel %vm593_vm2, %v1598_v30, %v1597_v36  ;;  %v1606_v52 = vrot.slane %v433_v1, 2  ;;  %12100 = vmatprep.mubr.f32.mxu0 %v13205_v25  ;;  %12136 = vmatprep.mubr.f32.mxu1 %v13085_v11  ;;  %v1751_v39 = vand.u32 4294901760, %v13384_v31  ;;  %v1658_v44 = vsel %vm708_vm8, %v1595_v42, 0  ;;  %v443_v26 = vld [vmem:[%s13033_s24 + $0xd8] sm:$0x1] }
  0x53   : > { %v1759_v22 = vand.u32 4294901760, %v13387_v34  ;;  %v1601_v54 = vsel %vm596_vm3, %v1600_v5, %v1599_v6  ;;  %v13408_v55 = vand.u32 4294901760, %v1658_v44  ;;  %v1608_v60 = vrot.slane %v434_v45, 1  ;;  %v444_v8 = vld [vmem:[%s13033_s24 + $0xda] sm:$0x1] }
  0x54   : > { %v1603_v59 = vsel %vm599_vm4, %v1602_v7, %v1601_v54  ;;  %v1610_v25 = vrot.slane %v436_v41, 7  ;;  %v1612_v16 = vrot.slane %v437_v32, 6  ;;  %v1614_v18 = vrot.slane %v438_v48, 5  ;;  %v445_v35 = vld [vmem:[%s13033_s24 + $0xdc] sm:$0x1] }
  0x55   : > { %v13415_v12 = vsub.f32 %v13387_v34, %v1759_v22  ;;  %v1605_v56 = vsel %vm602_vm5, %v1604_v50, %v1603_v59  ;;  %12101 = vmatmul.mubr.f32.gmra.mxu0 %v13226_v49  ;;  %12137 = vmatmul.mubr.f32.vlgmr.msra.gmra.mxu1 %v13111_v33  ;;  %v13423_v3 = vsub.f32 %v1658_v44, %v13408_v55  ;;  %v1616_v1 = vrot.slane %v439_v38, 4  ;;  %v446_v45 = vld [vmem:[%s13033_s24 + $0xde] sm:$0x1]  ;;  %v447_v41 = vld [vmem:[%s13033_s24 + $0xe0] sm:$0x1] }
  0x56   : > { %v1607_v19 = vsel %vm605_vm6, %v1606_v52, %v1605_v56  ;;  %v1611_v43 = vsel %vm590_vm1, %v1610_v25, %v435_v37  ;;  %12103 = vmatprep.mubr.f32.mxu0 %v13252_v27  ;;  %12163 = vmatpush3.msra.mxu1 %v13266_v47  ;;  %v1618_v7 = vrot.slane %v440_v0, 3  ;;  %v1620_v37 = vrot.slane %v441_v13, 2  ;;  %v448_v52 = vld [vmem:[%s13033_s24 + $0xe2] sm:$0x1]  ;;  %v449_v54 = vld [vmem:[%s13033_s24 + $0xe4] sm:$0x1] }
  0x57   : > { %v1761_v30 = vand.u32 4294901760, %v13415_v12  ;;  %v1609_v49 = vsel %vm608_vm7, %v1608_v60, %v1607_v19  ;;  %v1613_v5 = vsel %vm593_vm2, %v1612_v16, %v1611_v43  ;;  %12139 = vmatprep.mubr.f32.mxu1 %v13136_v58  ;;  %12190 = vmatprep.subr.mxu1 %v13037_v9  ;;  %v1769_v27 = vand.u32 4294901760, %v13423_v3  ;;  %v450_v38 = vld [vmem:[%s13033_s24 + $0xe6] sm:$0x1]  ;;  %v451_v13 = vld [vmem:[%s13033_s24 + $0xfc] sm:$0x1] }
  0x58   : > { %v1660_v47 = vsel %vm708_vm8, %v1609_v49, 0  ;;  %v1615_v36 = vsel %vm596_vm3, %v1614_v18, %v1613_v5  ;;  %v1622_v50 = vrot.slane %v442_v15, 1  ;;  %v1624_v32 = vrot.slane %v444_v8, 7  ;;  %v452_v15 = vld [vmem:[%s13033_s24 + $0xfe] sm:$0x1] }
  0x59   : > { %v13442_v42 = vand.u32 4294901760, %v1660_v47  ;;  %v1617_v6 = vsel %vm599_vm4, %v1616_v1, %v1615_v36  ;;  %12104 = vmatmul.mubr.f32.gmra.mxu0 %v13286_v23  ;;  %12140 = vmatmul.mubr.f32.gmra.mxu1 %v13161_v28  ;;  %v13451_v48 = vsub.f32 %v13423_v3, %v1769_v27  ;;  %v1626_v59 = vrot.slane %v445_v35, 6  ;;  %v453_v43 = vld [vmem:[%s13033_s24 + $0x100] sm:$0x1]  ;;  %v454_v1 = vld [vmem:[%s13033_s24 + $0x102] sm:$0x1] }
  0x5a   : > { %v1619_v44 = vsel %vm602_vm5, %v1618_v7, %v1617_v6  ;;  %v1628_v60 = vrot.slane %v446_v45, 5  ;;  %12122 = vmatprep.mubr.f32.mxu0 %v13085_v11  ;;  %12142 = vmatprep.mubr.f32.mxu1 %v13195_v2  ;;  %v1625_v25 = vsel %vm590_vm1, %v1624_v32, %v443_v26  ;;  %v1630_v56 = vrot.slane %v447_v41, 4  ;;  %v455_v7 = vld [vmem:[%s13033_s24 + $0x104] sm:$0x1]  ;;  %v456_v36 = vld [vmem:[%s13033_s24 + $0x106] sm:$0x1] }
  0x5b   : > { %v13459_v23 = vsub.f32 %v1660_v47, %v13442_v42  ;;  %v1621_v0 = vsel %vm605_vm6, %v1620_v37, %v1619_v44  ;;  %v1771_v16 = vand.u32 4294901760, %v13451_v48  ;;  %v1627_v11 = vsel %vm593_vm2, %v1626_v59, %v1625_v25  ;;  %v457_v6 = vld [vmem:[%s13033_s24 + $0x108] sm:$0x1]  ;;  %v458_v44 = vld [vmem:[%s13033_s24 + $0x10a] sm:$0x1] }
  0x5c   : > { %v1623_v18 = vsel %vm608_vm7, %v1622_v50, %v1621_v0  ;;  %v1632_v19 = vrot.slane %v448_v52, 3  ;;  %v1629_v26 = vsel %vm596_vm3, %v1628_v60, %v1627_v11  ;;  %v1634_v5 = vrot.slane %v449_v54, 2 }
  0x5d   : > { %v1779_v8 = vand.u32 4294901760, %v13459_v23  ;;  %v1662_v49 = vsel %vm708_vm8, %v1623_v18, 0  ;;  %12123 = vmatmul.mubr.f32.vlgmr.msra.gmra.mxu0 %v13111_v33  ;;  %12143 = vmatmul.mubr.f32.gmra.mxu1 %v13217_v40  ;;  %v1631_v45 = vsel %vm599_vm4, %v1630_v56, %v1629_v26  ;;  %v1636_v47 = vrot.slane %v450_v38, 1  ;;  %v11044_v56 = vld [vmem:[%s13033_s24 + $0x2] sm:$0x1] }
  0x5e   : > { %v13476_v35 = vand.u32 4294901760, %v1662_v49  ;;  %v1638_v37 = vrot.slane %v452_v15, 7  ;;  %12149 = vmatpush3.msra.mxu0 %v13037_v9  ;;  %12125 = vmatprep.mubr.f32.mxu0 %v13136_v58  ;;  %v1633_v33 = vsel %vm602_vm5, %v1632_v19, %v1631_v45  ;;  %v1640_v50 = vrot.slane %v453_v43, 6  ;;  %v11045_v15 = vld [vmem:[%s13033_s24 + $0x4] sm:$0x1] }
  0x5f   : > { %v13485_v41 = vsub.f32 %v13459_v23, %v1779_v8  ;;  %v1642_v52 = vrot.slane %v454_v1, 5  ;;  %12145 = vmatprep.mubr.f32.mxu1 %v13240_v14  ;;  %12176 = vmatprep.subr.mxu0 %v13077_v57  ;;  %v1635_v58 = vsel %vm605_vm6, %v1634_v5, %v1633_v33  ;;  %v1644_v38 = vrot.slane %v455_v7, 4  ;;  %v11046_v18 = vld [vmem:[%s13033_s24 + $0x6] sm:$0x1]  ;;  %v11047_v1 = vld [vmem:[%s13033_s24 + $0x8] sm:$0x1] }
  0x60   : > { %v13492_v32 = vsub.f32 %v1662_v49, %v13476_v35  ;;  %v1639_v54 = vsel %vm590_vm1, %v1638_v37, %v451_v13  ;;  %v1637_v60 = vsel %vm608_vm7, %v1636_v47, %v1635_v58  ;;  %v1646_v25 = vrot.slane %v456_v36, 3  ;;  %v11048_v7 = vld [vmem:[%s13033_s24 + $0xa] sm:$0x1]  ;;  %v11051_v58 = vld [vmem:[%s13033_s24 + $0x10] sm:$0x1] }
  0x61   : > { %v1781_v59 = vand.u32 4294901760, %v13485_v41  ;;  %v1641_v0 = vsel %vm593_vm2, %v1640_v50, %v1639_v54  ;;  %12126 = vmatmul.mubr.f32.gmra.mxu0 %v13161_v28  ;;  %12146 = vmatmul.mubr.f32.gmra.mxu1 %v13278_v62  ;;  %v1664_v13 = vsel %vm708_vm8, %v1637_v60, 0  ;;  %v1648_v43 = vrot.slane %v457_v6, 2 }
  0x62   : > { %v1789_v11 = vand.u32 4294901760, %v13492_v32  ;;  %v1643_v19 = vsel %vm596_vm3, %v1642_v52, %v1641_v0  ;;  %12128 = vmatprep.mubr.f32.mxu0 %v13195_v2  ;;  %12164 = vmatprep.mubr.f32.mxu1 %v13303_v53  ;;  %v13511_v49 = vand.u32 4294901760, %v1664_v13  ;;  %v1650_v26 = vrot.slane %v458_v44, 1  ;;  %v11049_v2 = vld [vmem:[%s13033_s24 + $0xc] sm:$0x1] }
  0x63   : > { %v1645_v28 = vsel %vm599_vm4, %v1644_v38, %v1643_v19  ;;  %v13515_v5 = vand.u32 4294901760, %v13097_v21  ;;  %v2548_v36 = vrot.slane %v11045_v15, 7  ;;  %v2550_v37 = vrot.slane %v11046_v18, 6  ;;  %v11050_v52 = vld [vmem:[%s13033_s24 + $0xe] sm:$0x1] }
  0x64   : > { %v13521_v45 = vsub.f32 %v13492_v32, %v1789_v11  ;;  %v1647_v47 = vsel %vm602_vm5, %v1646_v25, %v1645_v28  ;;  %v13526_v33 = vsub.f32 %v1664_v13, %v13511_v49  ;;  %v2552_v44 = vrot.slane %v11047_v1, 5  ;;  %v11052_v25 = vld [vmem:[%s13033_s24 + $0x26] sm:$0x1]  ;;  %v11053_v15 = vld [vmem:[%s13033_s24 + $0x28] sm:$0x1] }
  0x65   : > { %v1649_v6 = vsel %vm605_vm6, %v1648_v43, %v1647_v47  ;;  %v2859_v50 = vsub.f32 %v13097_v21, %v13515_v5  ;;  %12129 = vmatmul.mubr.f32.gmra.mxu0 %v13217_v40  ;;  %12165 = vmatmul.mubr.f32.vlgmr.msra.gmra.mxu1 %v13346_v51  ;;  %v2549_v60 = vsel %vm590_vm1, %v2548_v36, %v11044_v56  ;;  %v2554_v0 = vrot.slane %v11048_v7, 4  ;;  %v11054_v18 = vld [vmem:[%s13033_s24 + $0x2a] sm:$0x1]  ;;  %v11055_v1 = vld [vmem:[%s13033_s24 + $0x2c] sm:$0x1] }
  0x66   : > { %v1791_v54 = vand.u32 4294901760, %v13521_v45  ;;  %v1651_v38 = vsel %vm608_vm7, %v1650_v26, %v1649_v6  ;;  %12131 = vmatprep.mubr.f32.mxu0 %v13240_v14  ;;  %12191 = vmatpush3.msra.mxu1 %v13037_v9  ;;  %v17220_v40 = vand.u32 4294901760, %v13526_v33  ;;  %v2551_v43 = vsel %vm593_vm2, %v2550_v37, %v2549_v60  ;;  %v11056_v7 = vld [vmem:[%s13033_s24 + $0x2e] sm:$0x1]  ;;  %v11057_v6 = vld [vmem:[%s13033_s24 + $0x30] sm:$0x1] }
  0x67   : > { %v1666_v13 = vsel %vm708_vm8, %v1651_v38, 0  ;;  %v13545_v19 = vand.u32 4294901760, %v2859_v50  ;;  %12167 = vmatprep.mubr.f32.mxu1 %v13373_v20  ;;  %12218 = vmatprep.subr.mxu1 %v13037_v9  ;;  %v2553_v14 = vsel %vm596_vm3, %v2552_v44, %v2551_v43  ;;  %v2556_v28 = vrot.slane %v11049_v2, 3  ;;  %v11058_v44 = vld [vmem:[%s13033_s24 + $0x32] sm:$0x1] }
  0x68   : > { %v13550_v56 = vand.u32 4294901760, %v1666_v13  ;;  %v2558_v26 = vrot.slane %v11050_v52, 2  ;;  %v13558_v47 = vsub.f32 %v13526_v33, %v17220_v40  ;;  %v2555_v36 = vsel %vm599_vm4, %v2554_v0, %v2553_v14  ;;  %v11059_v38 = vld [vmem:[%s13033_s24 + $0x34] sm:$0x1]  ;;  %v11061_v43 = vld [vmem:[%s13033_s24 + $0x4c] sm:$0x1] }
  0x69   : > { %v2560_v37 = vrot.slane %v11051_v58, 1  ;;  %v2562_v50 = vrot.slane %v11053_v15, 7  ;;  %12132 = vmatmul.mubr.f32.gmra.mxu0 %v13278_v62  ;;  %12168 = vmatmul.mubr.f32.gmra.mxu1 %v13408_v55  ;;  %v2557_v52 = vsel %vm602_vm5, %v2556_v28, %v2555_v36  ;;  %v2564_v60 = vrot.slane %v11054_v18, 6  ;;  %v11062_v14 = vld [vmem:[%s13033_s24 + $0x4e] sm:$0x1] }
  0x6a   : > { %v13565_v2 = vsub.f32 %v1666_v13, %v13550_v56  ;;  %v2566_v0 = vrot.slane %v11055_v1, 5  ;;  %12150 = vmatprep.mubr.f32.mxu0 %v1741_v61  ;;  %12170 = vmatprep.mubr.f32.mxu1 %v13442_v42  ;;  %v1801_v62 = vand.u32 4294901760, %v13558_v47  ;;  %v2559_v58 = vsel %vm605_vm6, %v2558_v26, %v2557_v52  ;;  %v11063_v1 = vld [vmem:[%s13033_s24 + $0x50] sm:$0x1]  ;;  %v11064_v36 = vld [vmem:[%s13033_s24 + $0x52] sm:$0x1] }
  0x6b   : > { %v2563_v15 = vsel %vm590_vm1, %v2562_v50, %v11052_v25  ;;  %v2568_v13 = vrot.slane %v11056_v7, 4  ;;  %v2561_v18 = vsel %vm608_vm7, %v2560_v37, %v2559_v58  ;;  %v2570_v61 = vrot.slane %v11057_v6, 3  ;;  %v11060_v50 = vld [vmem:[%s13033_s24 + $0x4a] sm:$0x1] }
  0x6c   : > { %v1809_v28 = vand.u32 4294901760, %v13565_v2  ;;  %v2565_v46 = vsel %vm593_vm2, %v2564_v60, %v2563_v15  ;;  %v2660_v40 = vsel %vm708_vm8, %v2561_v18, 0  ;;  %v2572_v25 = vrot.slane %v11058_v44, 2  ;;  %v11065_v60 = vld [vmem:[%s13033_s24 + $0x54] sm:$0x1] }
  0x6d   : > { %v2567_v26 = vsel %vm596_vm3, %v2566_v0, %v2565_v46  ;;  %v2574_v7 = vrot.slane %v11059_v38, 1  ;;  %12151 = vmatmul.mubr.f32.vlgmr.msra.gmra.mxu0 %v1751_v39  ;;  %12171 = vmatmul.mubr.f32.gmra.mxu1 %v13476_v35  ;;  %v13594_v6 = vand.u32 4294901760, %v2660_v40  ;;  %v11066_v44 = vld [vmem:[%s13033_s24 + $0x56] sm:$0x1]  ;;  %v2576_v38 = vrot.slane %v11061_v43, 7 }
  0x6e   : > { %v13592_v37 = vsub.f32 %v13565_v2, %v1809_v28  ;;  %v2569_v52 = vsel %vm599_vm4, %v2568_v13, %v2567_v26  ;;  %12177 = vmatpush3.msra.mxu0 %v13077_v57  ;;  %12153 = vmatprep.mubr.f32.mxu0 %v1761_v30  ;;  %v11067_v39 = vld [vmem:[%s13033_s24 + $0x58] sm:$0x1]  ;;  %v2578_v0 = vrot.slane %v11062_v14, 6  ;;  %v2580_v58 = vrot.slane %v11063_v1, 5  ;;  %v11068_v30 = vld [vmem:[%s13033_s24 + $0x6e] sm:$0x1] }
  0x6f   : > { %v2571_v31 = vsel %vm602_vm5, %v2570_v61, %v2569_v52  ;;  %v2582_v15 = vrot.slane %v11064_v36, 4  ;;  %12173 = vmatprep.mubr.f32.mxu1 %v13511_v49  ;;  %12204 = vmatprep.subr.mxu0 %v13244_v17  ;;  %v13607_v13 = vsub.f32 %v2660_v40, %v13594_v6  ;;  %v2577_v12 = vsel %vm590_vm1, %v2576_v38, %v11060_v50  ;;  %v11069_v43 = vld [vmem:[%s13033_s24 + $0x70] sm:$0x1]  ;;  %v11070_v18 = vld [vmem:[%s13033_s24 + $0x72] sm:$0x1] }
  0x70   : > { %v2573_v57 = vsel %vm605_vm6, %v2572_v25, %v2571_v31  ;;  %v2579_v46 = vsel %vm593_vm2, %v2578_v0, %v2577_v12  ;;  %v2584_v61 = vrot.slane %v11065_v60, 3  ;;  %v2586_v1 = vrot.slane %v11066_v44, 2  ;;  %v11071_v36 = vld [vmem:[%s13033_s24 + $0x74] sm:$0x1]  ;;  %v11072_v26 = vld [vmem:[%s13033_s24 + $0x76] sm:$0x1] }
  0x71   : > { %v2575_v14 = vsel %vm608_vm7, %v2574_v7, %v2573_v57  ;;  %12154 = vmatmul.mubr.f32.gmra.mxu0 %v1771_v16  ;;  %12174 = vmatmul.mubr.f32.gmra.mxu1 %v13550_v56  ;;  %v2747_v40 = vand.u32 4294901760, %v13607_v13  ;;  %v2581_v50 = vsel %vm596_vm3, %v2580_v58, %v2579_v46  ;;  %v2588_v7 = vrot.slane %v11067_v39, 1  ;;  %v11073_v52 = vld [vmem:[%s13033_s24 + $0x78] sm:$0x1]  ;;  %v11074_v60 = vld [vmem:[%s13033_s24 + $0x7a] sm:$0x1] }
  0x72   : > { %v2662_v25 = vsel %vm708_vm8, %v2575_v14, 0  ;;  %12156 = vmatprep.mubr.f32.mxu0 %v1781_v59  ;;  %12192 = vmatprep.mubr.f32.mxu1 %v1739_v29  ;;  %v2583_v16 = vsel %vm599_vm4, %v2582_v15, %v2581_v50  ;;  %v2590_v44 = vrot.slane %v11069_v43, 7  ;;  %v2592_v38 = vrot.slane %v11070_v18, 6  ;;  %v11075_v0 = vld [vmem:[%s13033_s24 + $0x7c] sm:$0x1] }
  0x73   : > { %v13629_v48 = vand.u32 4294901760, %v2662_v25  ;;  %v1811_v31 = vand.u32 4294901760, %v13592_v37  ;;  %v2585_v39 = vsel %vm602_vm5, %v2584_v61, %v2583_v16  ;;  %v2594_v41 = vrot.slane %v11071_v36, 5  ;;  %v11076_v12 = vld [vmem:[%s13033_s24 + $0x92] sm:$0x1] }
  0x74   : > { %v2596_v59 = vrot.slane %v11072_v26, 4  ;;  %v2587_v58 = vsel %vm605_vm6, %v2586_v1, %v2585_v39  ;;  %v2591_v57 = vsel %vm590_vm1, %v2590_v44, %v11068_v30  ;;  %v2598_v15 = vrot.slane %v11073_v52, 3  ;;  %v11077_v43 = vld [vmem:[%s13033_s24 + $0x94] sm:$0x1]  ;;  %v11078_v18 = vld [vmem:[%s13033_s24 + $0x96] sm:$0x1] }
  0x75   : > { %v13637_v29 = vsub.f32 %v2662_v25, %v13629_v48  ;;  %12157 = vmatmul.mubr.f32.gmra.mxu0 %v1791_v54  ;;  %12193 = vmatmul.mubr.f32.vlgmr.msra.gmra.mxu1 %v1749_v24  ;;  %v13651_v37 = vsub.f32 %v13607_v13, %v2747_v40  ;;  %v2589_v14 = vsel %vm608_vm7, %v2588_v7, %v2587_v58  ;;  %v2600_v46 = vrot.slane %v11074_v60, 2  ;;  %v11079_v61 = vld [vmem:[%s13033_s24 + $0x98] sm:$0x1]  ;;  %v11080_v1 = vld [vmem:[%s13033_s24 + $0x9a] sm:$0x1] }
  0x76   : > { %v2593_v30 = vsel %vm593_vm2, %v2592_v38, %v2591_v57  ;;  %12159 = vmatprep.mubr.f32.mxu0 %v1801_v62  ;;  %12219 = vmatpush3.msra.mxu1 %v13037_v9  ;;  %v2664_v45 = vsel %vm708_vm8, %v2589_v14, 0  ;;  %v2602_v36 = vrot.slane %v11075_v0, 1  ;;  %v11081_v26 = vld [vmem:[%s13033_s24 + $0x9c] sm:$0x1]  ;;  %v11082_v9 = vld [vmem:[%s13033_s24 + $0x9e] sm:$0x1] }
  0x77   : > { %v17226_v24 = vand.u32 4294901760, %v13637_v29  ;;  %v2595_v54 = vsel %vm596_vm3, %v2594_v41, %v2593_v30  ;;  %12195 = vmatprep.mubr.f32.mxu1 %v1759_v22  ;;  %12246 = vmatprep.subr.mxu1 %v13545_v19  ;;  %v13667_v25 = vand.u32 4294901760, %v2664_v45  ;;  %v2604_v62 = vrot.slane %v11077_v43, 7  ;;  %v11083_v22 = vld [vmem:[%s13033_s24 + $0xa0] sm:$0x1] }
  0x78   : > { %v2597_v47 = vsel %vm599_vm4, %v2596_v59, %v2595_v54  ;;  %v2606_v50 = vrot.slane %v11078_v18, 6  ;;  %v2608_v16 = vrot.slane %v11079_v61, 5  ;;  %v2610_v60 = vrot.slane %v11080_v1, 4  ;;  %v11084_v41 = vld [vmem:[%s13033_s24 + $0xb6] sm:$0x1] }
  0x79   : > { %v13674_v7 = vsub.f32 %v13637_v29, %v17226_v24  ;;  %v2599_v52 = vsel %vm602_vm5, %v2598_v15, %v2597_v47  ;;  %12160 = vmatmul.mubr.f32.gmra.mxu0 %v1811_v31  ;;  %12196 = vmatmul.mubr.f32.gmra.mxu1 %v1769_v27  ;;  %v13681_v44 = vsub.f32 %v2664_v45, %v13667_v25  ;;  %v2612_v0 = vrot.slane %v11081_v26, 3  ;;  %v11085_v59 = vld [vmem:[%s13033_s24 + $0xb8] sm:$0x1]  ;;  %v11086_v58 = vld [vmem:[%s13033_s24 + $0xba] sm:$0x1] }
  0x7a   : > { %v2601_v38 = vsel %vm605_vm6, %v2600_v46, %v2599_v52  ;;  %v2605_v39 = vsel %vm590_vm1, %v2604_v62, %v11076_v12  ;;  %12178 = vmatprep.mubr.f32.mxu0 %v13318_v4  ;;  %12198 = vmatprep.mubr.f32.mxu1 %v1779_v8  ;;  %v2749_v27 = vand.u32 4294901760, %v13651_v37  ;;  %v2614_v15 = vrot.slane %v11082_v9, 2  ;;  %v11087_v43 = vld [vmem:[%s13033_s24 + $0xbc] sm:$0x1]  ;;  %v11088_v12 = vld [vmem:[%s13033_s24 + $0xbe] sm:$0x1] }
  0x7b   : > { %v2603_v31 = vsel %vm608_vm7, %v2602_v36, %v2601_v38  ;;  %v2607_v57 = vsel %vm593_vm2, %v2606_v50, %v2605_v39  ;;  %v17225_v18 = vand.u32 4294901760, %v13681_v44  ;;  %v2616_v4 = vrot.slane %v11083_v22, 1  ;;  %v11089_v46 = vld [vmem:[%s13033_s24 + $0xc0] sm:$0x1]  ;;  %v11090_v1 = vld [vmem:[%s13033_s24 + $0xc2] sm:$0x1] }
  0x7c   : > { %v2666_v14 = vsel %vm708_vm8, %v2603_v31, 0  ;;  %v2609_v30 = vsel %vm596_vm3, %v2608_v16, %v2607_v57  ;;  %v2618_v45 = vrot.slane %v11085_v59, 7  ;;  %v2620_v54 = vrot.slane %v11086_v58, 6  ;;  %v11091_v47 = vld [vmem:[%s13033_s24 + $0xc4] sm:$0x1] }
  0x7d   : > { %v13700_v61 = vand.u32 4294901760, %v2666_v14  ;;  %v2611_v8 = vsel %vm599_vm4, %v2610_v60, %v2609_v30  ;;  %12179 = vmatmul.mubr.f32.vlgmr.msra.gmra.mxu0 %v13358_v63  ;;  %12199 = vmatmul.mubr.f32.gmra.mxu1 %v1789_v11  ;;  %v2759_v36 = vand.u32 4294901760, %v13674_v7  ;;  %v2622_v9 = vrot.slane %v11087_v43, 5  ;;  %v11092_v22 = vld [vmem:[%s13033_s24 + $0xda] sm:$0x1] }
  0x7e   : > { %v2613_v26 = vsel %vm602_vm5, %v2612_v0, %v2611_v8  ;;  %v2624_v62 = vrot.slane %v11088_v12, 4  ;;  %12205 = vmatpush3.msra.mxu0 %v13244_v17  ;;  %12181 = vmatprep.mubr.f32.mxu0 %v13387_v34  ;;  %v2619_v11 = vsel %vm590_vm1, %v2618_v45, %v11084_v41  ;;  %v2626_v52 = vrot.slane %v11089_v46, 3  ;;  %v11093_v16 = vld [vmem:[%s13033_s24 + $0xdc] sm:$0x1]  ;;  %v11094_v60 = vld [vmem:[%s13033_s24 + $0xde] sm:$0x1] }
  0x7f   : > { %v13713_v50 = vsub.f32 %v2666_v14, %v13700_v61  ;;  %v2615_v63 = vsel %vm605_vm6, %v2614_v15, %v2613_v26  ;;  %v17311_v38 = vand.u32 4294901760, %v13526_v33  ;;  %12232 = vmatprep.subr.mxu0 %v13040_v10  ;;  %v13726_v17 = vsub.f32 %v13681_v44, %v17225_v18  ;;  %v11095_v41 = vld [vmem:[%s13033_s24 + $0xe0] sm:$0x1]  ;;  %v11096_v59 = vld [vmem:[%s13033_s24 + $0xe2] sm:$0x1] }
  0x80   : > { %v2617_v34 = vsel %vm608_vm7, %v2616_v4, %v2615_v63  ;;  %v2621_v39 = vsel %vm593_vm2, %v2620_v54, %v2619_v11  ;;  %v2628_v0 = vrot.slane %v11090_v1, 2  ;;  %v2630_v15 = vrot.slane %v11091_v47, 1  ;;  %v11097_v43 = vld [vmem:[%s13033_s24 + $0xe4] sm:$0x1]  ;;  %v11098_v30 = vld [vmem:[%s13033_s24 + $0xe6] sm:$0x1] }
  0x81   : > { %12201 = vmatprep.mubr.f32.mxu1 %v17311_v38  ;;  %v17224_v58 = vand.u32 4294901760, %v13713_v50  ;;  %v2668_v31 = vsel %vm708_vm8, %v2617_v34, 0  ;;  %v2623_v57 = vsel %vm596_vm3, %v2622_v9, %v2621_v39  ;;  %12182 = vmatmul.mubr.f32.gmra.mxu0 %v13423_v3  ;;  %v2632_v4 = vrot.slane %v11093_v16, 7  ;;  %v11099_v8 = vld [vmem:[%s13033_s24 + $0xe8] sm:$0x1] }
  0x82   : > { %12202 = vmatmul.mubr.f32.gmra.mxu1 %v1809_v28  ;;  %v13739_v12 = vand.u32 4294901760, %v2668_v31  ;;  %v2625_v14 = vsel %vm599_vm4, %v2624_v62, %v2623_v57  ;;  %v2634_v46 = vrot.slane %v11094_v60, 6  ;;  %12184 = vmatprep.mubr.f32.mxu0 %v13459_v23  ;;  %v2636_v1 = vrot.slane %v11095_v41, 5  ;;  %v11100_v9 = vld [vmem:[%s13033_s24 + $0xfe] sm:$0x1] }
  0x83   : > { %12220 = vmatprep.mubr.f32.mxu1 %v13303_v53  ;;  %v13748_v3 = vsub.f32 %v13713_v50, %v17224_v58  ;;  %v2627_v28 = vsel %vm602_vm5, %v2626_v52, %v2625_v14  ;;  %v2638_v45 = vrot.slane %v11096_v59, 4  ;;  %v2633_v23 = vsel %vm590_vm1, %v2632_v4, %v11092_v22  ;;  %v11101_v62 = vld [vmem:[%s13033_s24 + $0x100] sm:$0x1]  ;;  %v11102_v63 = vld [vmem:[%s13033_s24 + $0x102] sm:$0x1] }
  0x84   : > { %v13753_v54 = vsub.f32 %v2668_v31, %v13739_v12  ;;  %v2629_v26 = vsel %vm605_vm6, %v2628_v0, %v2627_v28  ;;  %v2640_v47 = vrot.slane %v11097_v43, 3  ;;  %v2769_v11 = vand.u32 4294901760, %v13726_v17  ;;  %v11103_v38 = vld [vmem:[%s13033_s24 + $0x104] sm:$0x1]  ;;  %v11104_v34 = vld [vmem:[%s13033_s24 + $0x106] sm:$0x1] }
  0x85   : > { %v2631_v52 = vsel %vm608_vm7, %v2630_v15, %v2629_v26  ;;  %v2635_v16 = vsel %vm593_vm2, %v2634_v46, %v2633_v23  ;;  %v2642_v60 = vrot.slane %v11098_v30, 2  ;;  %12185 = vmatmul.mubr.f32.gmra.mxu0 %v13492_v32  ;;  %v2644_v41 = vrot.slane %v11099_v8, 1  ;;  %v11105_v59 = vld [vmem:[%s13033_s24 + $0x108] sm:$0x1]  ;;  %v11106_v32 = vld [vmem:[%s13033_s24 + $0x10a] sm:$0x1] }
  0x86   : > { %12221 = vmatmul.mubr.f32.vlgmr.msra.gmra.mxu1 %v13346_v51  ;;  %v17223_v22 = vand.u32 4294901760, %v13753_v54  ;;  %v2670_v39 = vsel %vm708_vm8, %v2631_v52, 0  ;;  %v2637_v0 = vsel %vm596_vm3, %v2636_v1, %v2635_v16  ;;  %12187 = vmatprep.mubr.f32.mxu0 %v13526_v33  ;;  %v2646_v15 = vrot.slane %v11101_v62, 7  ;;  %v11107_v33 = vld [vmem:[%s13033_s24 + $0x10c] sm:$0x1] }
  0x87   : > { %12247 = vmatpush3.msra.mxu1 %v13545_v19  ;;  %v13773_v31 = vand.u32 4294901760, %v2670_v39  ;;  %v2639_v57 = vsel %vm599_vm4, %v2638_v45, %v2637_v0  ;;  %v2648_v43 = vrot.slane %v11102_v63, 6  ;;  %12223 = vmatprep.mubr.f32.mxu1 %v13373_v20  ;;  %v2779_v14 = vand.u32 4294901760, %v13748_v3  ;;  %v3499_v45 = vld [vmem:[%s17210_s1 + $0xc] sm:$0xf] }
  0x88   : > { %12274 = vmatprep.subr.mxu1 %v13040_v10  ;;  %v2641_v30 = vsel %vm602_vm5, %v2640_v47, %v2639_v57  ;;  %v2650_v19 = vrot.slane %v11103_v38, 5  ;;  %v2652_v4 = vrot.slane %v11104_v34, 4  ;;  %v2647_v8 = vsel %vm590_vm1, %v2646_v15, %v11100_v9  ;;  %v11109_v26 = vld [vmem:[%s13033_s24 + $0x14] sm:$0x1]  ;;  %v11108_v63 = vld [vmem:[%s13033_s24 + $0x12] sm:$0x1] }
  0x89   : > { %v13783_v46 = vsub.f32 %v2670_v39, %v13773_v31  ;;  %v2643_v28 = vsel %vm605_vm6, %v2642_v60, %v2641_v30  ;;  %v2654_v1 = vrot.slane %v11105_v59, 3  ;;  %12188 = vmatmul.mubr.f32.gmra.mxu0 %v13565_v2  ;;  %v13796_v23 = vsub.f32 %v13753_v54, %v17223_v22  ;;  %v11110_v52 = vld [vmem:[%s13033_s24 + $0x16] sm:$0x1]  ;;  %v11111_v34 = vld [vmem:[%s13033_s24 + $0x18] sm:$0x1] }
  0x8a   : > { %12224 = vmatmul.mubr.f32.gmra.mxu1 %v13408_v55  ;;  %v2645_v47 = vsel %vm608_vm7, %v2644_v41, %v2643_v28  ;;  %v2649_v9 = vsel %vm593_vm2, %v2648_v43, %v2647_v8  ;;  %v2656_v62 = vrot.slane %v11106_v32, 2  ;;  %12206 = vmatprep.mubr.f32.mxu0 %v13303_v53  ;;  %v2658_v38 = vrot.slane %v11107_v33, 1  ;;  %v11112_v15 = vld [vmem:[%s13033_s24 + $0x1a] sm:$0x1]  ;;  %v11113_v43 = vld [vmem:[%s13033_s24 + $0x1c] sm:$0x1] }
  0x8b   : > { %12226 = vmatprep.mubr.f32.mxu1 %v13442_v42  ;;  %v17222_v2 = vand.u32 4294901760, %v13783_v46  ;;  %v2672_v16 = vsel %vm708_vm8, %v2645_v47, 0  ;;  %v2651_v60 = vsel %vm596_vm3, %v2650_v19, %v2649_v9  ;;  %v3693_v41 = vsel %vm725_vm0, %v3499_v45, 0  ;;  %v11115_v28 = vld [vmem:[%s13033_s24 + $0x20] sm:$0x1] }
  0x8c   : > { %v13808_v39 = vand.u32 4294901760, %v2672_v16  ;;  %v2653_v0 = vsel %vm599_vm4, %v2652_v4, %v2651_v60  ;;  %v3564_v59 = vrot.slane %v11109_v26, 7  ;;  %v13818_v32 = vand.u32 4294901760, %v3693_v41  ;;  %v11114_v4 = vld [vmem:[%s13033_s24 + $0x1e] sm:$0x1] }
  0x8d   : > { %v13815_v53 = vsub.f32 %v13783_v46, %v17222_v2  ;;  %v2655_v57 = vsel %vm602_vm5, %v2654_v1, %v2653_v0  ;;  %v3566_v30 = vrot.slane %v11110_v52, 6  ;;  %12207 = vmatmul.mubr.f32.vlgmr.msra.gmra.mxu0 %v13346_v51  ;;  %v3568_v1 = vrot.slane %v11111_v34, 5  ;;  %v11116_v9 = vld [vmem:[%s13033_s24 + $0x36] sm:$0x1]  ;;  %v11118_v60 = vld [vmem:[%s13033_s24 + $0x3a] sm:$0x1] }
  0x8e   : > { %12227 = vmatmul.mubr.f32.gmra.mxu1 %v13476_v35  ;;  %v13825_v33 = vsub.f32 %v2672_v16, %v13808_v39  ;;  %v2657_v19 = vsel %vm605_vm6, %v2656_v62, %v2655_v57  ;;  %v3565_v8 = vsel %vm590_vm1, %v3564_v59, %v11108_v63  ;;  %12233 = vmatpush3.msra.mxu0 %v13040_v10  ;;  %v2789_v45 = vand.u32 4294901760, %v13796_v23  ;;  %v11117_v62 = vld [vmem:[%s13033_s24 + $0x38] sm:$0x1]  ;;  %v11119_v59 = vld [vmem:[%s13033_s24 + $0x3c] sm:$0x1] }
  0x8f   : > { %12209 = vmatprep.mubr.f32.mxu0 %v13373_v20  ;;  %v2659_v51 = vsel %vm608_vm7, %v2658_v38, %v2657_v19  ;;  %v13836_v26 = vsub.f32 %v3693_v41, %v13818_v32  ;;  %v3567_v47 = vsel %vm593_vm2, %v3566_v30, %v3565_v8  ;;  %12229 = vmatprep.mubr.f32.mxu1 %v13511_v49  ;;  %v3570_v16 = vrot.slane %v11112_v15, 4  ;;  %v11120_v15 = vld [vmem:[%s13033_s24 + $0x3e] sm:$0x1]  ;;  %v11121_v19 = vld [vmem:[%s13033_s24 + $0x40] sm:$0x1] }
  0x90   : > { %12260 = vmatprep.subr.mxu0 %v13097_v21  ;;  %v17221_v20 = vand.u32 4294901760, %v13825_v33  ;;  %v2674_v63 = vsel %vm708_vm8, %v2659_v51, 0  ;;  %v3569_v52 = vsel %vm596_vm3, %v3568_v1, %v3567_v47  ;;  %v3572_v0 = vrot.slane %v11113_v43, 3  ;;  %v11123_v1 = vld [vmem:[%s13033_s24 + $0x44] sm:$0x1] }
  0x91   : > { %v13847_v38 = vand.u32 4294901760, %v2674_v63  ;;  %v13850_v34 = vand.u32 4294901760, %v13836_v26  ;;  %v3574_v41 = vrot.slane %v11114_v4, 2  ;;  %12210 = vmatmul.mubr.f32.gmra.mxu0 %v13408_v55  ;;  %v3571_v57 = vsel %vm599_vm4, %v3570_v16, %v3569_v52  ;;  %v11125_v16 = vld [vmem:[%s13033_s24 + $0x5c] sm:$0x1] }
  0x92   : > { %12230 = vmatmul.mubr.f32.gmra.mxu1 %v13550_v56  ;;  %v3576_v30 = vrot.slane %v11115_v28, 1  ;;  %v3578_v8 = vrot.slane %v11117_v62, 7  ;;  %12212 = vmatprep.mubr.f32.mxu0 %v13442_v42  ;;  %v13863_v43 = vsub.f32 %v13825_v33, %v17221_v20  ;;  %v3573_v4 = vsel %vm602_vm5, %v3572_v0, %v3571_v57  ;;  %v11122_v28 = vld [vmem:[%s13033_s24 + $0x42] sm:$0x1]  ;;  %v11126_v20 = vld [vmem:[%s13033_s24 + $0x5e] sm:$0x1] }
  0x93   : > { %12248 = vmatprep.mubr.f32.mxu1 %v13594_v6  ;;  %v13866_v55 = vsub.f32 %v2674_v63, %v13847_v38  ;;  %v3580_v51 = vrot.slane %v11118_v60, 6  ;;  %v2799_v42 = vand.u32 4294901760, %v13815_v53  ;;  %v3575_v47 = vsel %vm605_vm6, %v3574_v41, %v3573_v4  ;;  %v11124_v60 = vld [vmem:[%s13033_s24 + $0x5a] sm:$0x1]  ;;  %v11127_v22 = vld [vmem:[%s13033_s24 + $0x60] sm:$0x1] }
  0x94   : > { %v3579_v62 = vsel %vm590_vm1, %v3578_v8, %v11116_v9  ;;  %v3582_v52 = vrot.slane %v11119_v59, 5  ;;  %v3875_v2 = vsub.f32 %v13836_v26, %v13850_v34  ;;  %v3577_v0 = vsel %vm608_vm7, %v3576_v30, %v3575_v47  ;;  %v11128_v58 = vld [vmem:[%s13033_s24 + $0x62] sm:$0x1]  ;;  %v11129_v4 = vld [vmem:[%s13033_s24 + $0x64] sm:$0x1] }
  0x95   : > { %v17227_v63 = vand.u32 4294901760, %v13866_v55  ;;  %v3581_v57 = vsel %vm593_vm2, %v3580_v51, %v3579_v62  ;;  %12213 = vmatmul.mubr.f32.gmra.mxu0 %v13476_v35  ;;  %v3676_v9 = vsel %vm708_vm8, %v3577_v0, 0  ;;  %v3584_v59 = vrot.slane %v11120_v15, 4  ;;  %v11130_v62 = vld [vmem:[%s13033_s24 + $0x66] sm:$0x1] }
  0x96   : > { %12249 = vmatmul.mubr.f32.vlgmr.msra.gmra.mxu1 %v13629_v48  ;;  %v3583_v41 = vsel %vm596_vm3, %v3582_v52, %v3581_v57  ;;  %v3586_v8 = vrot.slane %v11121_v19, 3  ;;  %12215 = vmatprep.mubr.f32.mxu0 %v13511_v49  ;;  %v13892_v51 = vand.u32 4294901760, %v3676_v9  ;;  %v3588_v35 = vrot.slane %v11122_v28, 2  ;;  %v11131_v19 = vld [vmem:[%s13033_s24 + $0x68] sm:$0x1] }
  0x97   : > { %12275 = vmatpush3.msra.mxu1 %v13040_v10  ;;  %v3590_v47 = vrot.slane %v11123_v1, 1  ;;  %12251 = vmatprep.mubr.f32.mxu1 %v13667_v25  ;;  %v3585_v15 = vsel %vm599_vm4, %v3584_v59, %v3583_v41  ;;  %v3592_v49 = vrot.slane %v11125_v16, 7  ;;  %v3594_v52 = vrot.slane %v11126_v20, 6  ;;  %v11133_v30 = vld [vmem:[%s13033_s24 + $0x80] sm:$0x1] }
  0x98   : > { %12302 = vmatprep.subr.mxu1 %v13040_v10  ;;  %v3596_v0 = vrot.slane %v11127_v22, 5  ;;  %v13899_v57 = vand.u32 4294901760, %v3875_v2  ;;  %v13902_v18 = vsub.f32 %v3676_v9, %v13892_v51  ;;  %v3587_v28 = vsel %vm602_vm5, %v3586_v8, %v3585_v15  ;;  %v11134_v24 = vld [vmem:[%s13033_s24 + $0x82] sm:$0x1]  ;;  %v11135_v9 = vld [vmem:[%s13033_s24 + $0x84] sm:$0x1] }
  0x99   : > { %v3598_v1 = vrot.slane %v11128_v58, 4  ;;  %12216 = vmatmul.mubr.f32.gmra.mxu0 %v13550_v56  ;;  %v13912_v22 = vsub.f32 %v13866_v55, %v17227_v63  ;;  %v3589_v2 = vsel %vm605_vm6, %v3588_v35, %v3587_v28  ;;  %v3593_v20 = vsel %vm590_vm1, %v3592_v49, %v11124_v60  ;;  %v11132_v58 = vld [vmem:[%s13033_s24 + $0x7e] sm:$0x1]  ;;  %v11136_v15 = vld [vmem:[%s13033_s24 + $0x86] sm:$0x1] }
  0x9a   : > { %12252 = vmatmul.mubr.f32.gmra.mxu1 %v13700_v61  ;;  %v3600_v16 = vrot.slane %v11129_v4, 3  ;;  %12234 = vmatprep.mubr.f32.mxu0 %v2749_v27  ;;  %v3591_v56 = vsel %vm608_vm7, %v3590_v47, %v3589_v2  ;;  %v3595_v41 = vsel %vm593_vm2, %v3594_v52, %v3593_v20  ;;  %v3602_v59 = vrot.slane %v11130_v62, 2  ;;  %v11137_v63 = vld [vmem:[%s13033_s24 + $0x88] sm:$0x1]  ;;  %v11138_v4 = vld [vmem:[%s13033_s24 + $0x8a] sm:$0x1] }
  0x9b   : > { %12254 = vmatprep.mubr.f32.mxu1 %v13739_v12  ;;  %v3604_v8 = vrot.slane %v11131_v19, 1  ;;  %v3678_v35 = vsel %vm708_vm8, %v3591_v56, 0  ;;  %v3597_v60 = vsel %vm596_vm3, %v3596_v0, %v3595_v41  ;;  %v3606_v49 = vrot.slane %v11133_v30, 7  ;;  %v11139_v52 = vld [vmem:[%s13033_s24 + $0x8c] sm:$0x1] }
  0x9c   : > { %v3608_v37 = vrot.slane %v11134_v24, 6  ;;  %v17234_v27 = vand.u32 4294901760, %v13902_v18  ;;  %v13929_v28 = vand.u32 4294901760, %v3678_v35  ;;  %v3599_v47 = vsel %vm599_vm4, %v3598_v1, %v3597_v60  ;;  %v11141_v2 = vld [vmem:[%s13033_s24 + $0xa4] sm:$0x1] }
  0x9d   : > { %v3610_v62 = vrot.slane %v11135_v9, 5  ;;  %12235 = vmatmul.mubr.f32.vlgmr.msra.gmra.mxu0 %v2759_v36  ;;  %v3601_v19 = vsel %vm602_vm5, %v3600_v16, %v3599_v47  ;;  %v3607_v30 = vsel %vm590_vm1, %v3606_v49, %v11132_v58  ;;  %v3612_v24 = vrot.slane %v11136_v15, 4  ;;  %v11142_v16 = vld [vmem:[%s13033_s24 + $0xa6] sm:$0x1]  ;;  %v11140_v9 = vld [vmem:[%s13033_s24 + $0xa2] sm:$0x1] }
  0x9e   : > { %12255 = vmatmul.mubr.f32.gmra.mxu1 %v13773_v31  ;;  %v3614_v0 = vrot.slane %v11137_v63, 3  ;;  %12261 = vmatpush3.msra.mxu0 %v13097_v21  ;;  %v2819_v1 = vand.u32 4294901760, %v13912_v22  ;;  %v13944_v7 = vsub.f32 %v3678_v35, %v13929_v28  ;;  %v3603_v36 = vsel %vm605_vm6, %v3602_v59, %v3601_v19  ;;  %v11143_v63 = vld [vmem:[%s13033_s24 + $0xa8] sm:$0x1]  ;;  %v11144_v56 = vld [vmem:[%s13033_s24 + $0xaa] sm:$0x1] }
  0x9f   : > { %12237 = vmatprep.mubr.f32.mxu0 %v2769_v11  ;;  %v3609_v20 = vsel %vm593_vm2, %v3608_v37, %v3607_v30  ;;  %12257 = vmatprep.mubr.f32.mxu1 %v13808_v39  ;;  %v3605_v21 = vsel %vm608_vm7, %v3604_v8, %v3603_v36  ;;  %v3616_v11 = vrot.slane %v11138_v4, 2  ;;  %v3618_v58 = vrot.slane %v11139_v52, 1  ;;  %v11145_v35 = vld [vmem:[%s13033_s24 + $0xac] sm:$0x1]  ;;  %v11146_v49 = vld [vmem:[%s13033_s24 + $0xae] sm:$0x1] }
  0xa0   : > { %12288 = vmatprep.subr.mxu0 %v13515_v5  ;;  %v3611_v17 = vsel %vm596_vm3, %v3610_v62, %v3609_v20  ;;  %v13959_v41 = vsub.f32 %v13902_v18, %v17234_v27  ;;  %v3680_v59 = vsel %vm708_vm8, %v3605_v21, 0  ;;  %v3620_v60 = vrot.slane %v11141_v2, 7  ;;  %v11147_v52 = vld [vmem:[%s13033_s24 + $0xb0] sm:$0x1]  ;;  %v11149_v30 = vld [vmem:[%s13033_s24 + $0xc8] sm:$0x1] }
  0xa1   : > { %v3613_v15 = vsel %vm599_vm4, %v3612_v24, %v3611_v17  ;;  %12238 = vmatmul.mubr.f32.gmra.mxu0 %v2779_v14  ;;  %v13967_v8 = vand.u32 4294901760, %v3680_v59  ;;  %v3622_v37 = vrot.slane %v11142_v16, 6  ;;  %v3624_v47 = vrot.slane %v11143_v63, 5  ;;  %v11151_v2 = vld [vmem:[%s13033_s24 + $0xcc] sm:$0x1] }
  0xa2   : > { %12258 = vmatmul.mubr.f32.gmra.mxu1 %v13847_v38  ;;  %v3615_v4 = vsel %vm602_vm5, %v3614_v0, %v3613_v15  ;;  %12240 = vmatprep.mubr.f32.mxu0 %v2789_v45  ;;  %v17233_v3 = vand.u32 4294901760, %v13944_v7  ;;  %v3621_v62 = vsel %vm590_vm1, %v3620_v60, %v11140_v9  ;;  %v3626_v19 = vrot.slane %v11144_v56, 4  ;;  %v11150_v0 = vld [vmem:[%s13033_s24 + $0xca] sm:$0x1]  ;;  %v11148_v63 = vld [vmem:[%s13033_s24 + $0xc6] sm:$0x1] }
  0xa3   : > { %12276 = vmatprep.mubr.f32.mxu1 %v2747_v40  ;;  %v3617_v14 = vsel %vm605_vm6, %v3616_v11, %v3615_v4  ;;  %v13981_v24 = vsub.f32 %v3680_v59, %v13967_v8  ;;  %v3623_v45 = vsel %vm593_vm2, %v3622_v37, %v3621_v62  ;;  %v3628_v40 = vrot.slane %v11145_v35, 3  ;;  %v11152_v21 = vld [vmem:[%s13033_s24 + $0xce] sm:$0x1]  ;;  %v11153_v59 = vld [vmem:[%s13033_s24 + $0xd0] sm:$0x1] }
  0xa4   : > { %v3619_v23 = vsel %vm608_vm7, %v3618_v58, %v3617_v14  ;;  %v3625_v20 = vsel %vm596_vm3, %v3624_v47, %v3623_v45  ;;  %v3630_v16 = vrot.slane %v11146_v49, 2  ;;  %v17312_v17 = vand.u32 4294901760, %v13637_v29  ;;  %v11155_v47 = vld [vmem:[%s13033_s24 + $0xd4] sm:$0x1]  ;;  %v11158_v45 = vld [vmem:[%s13033_s24 + $0xee] sm:$0x1] }
  0xa5   : > { %v3682_v36 = vsel %vm708_vm8, %v3619_v23, 0  ;;  %12241 = vmatmul.mubr.f32.gmra.mxu0 %v2799_v42  ;;  %v17231_v11 = vand.u32 4294901760, %v13981_v24  ;;  %v3627_v9 = vsel %vm599_vm4, %v3626_v19, %v3625_v20  ;;  %v3632_v56 = vrot.slane %v11147_v52, 1  ;;  %v11154_v42 = vld [vmem:[%s13033_s24 + $0xd2] sm:$0x1] }
  0xa6   : > { %12277 = vmatmul.mubr.f32.vlgmr.msra.gmra.mxu1 %v17312_v17  ;;  %v13996_v58 = vand.u32 4294901760, %v3682_v36  ;;  %v17313_v15 = vand.u32 4294901760, %v13863_v43  ;;  %v3629_v53 = vsel %vm602_vm5, %v3628_v40, %v3627_v9  ;;  %v3634_v35 = vrot.slane %v11149_v30, 7  ;;  %v11157_v52 = vld [vmem:[%s13033_s24 + $0xec] sm:$0x1] }
  0xa7   : > { %12303 = vmatpush3.msra.mxu1 %v13040_v10  ;;  %v3636_v60 = vrot.slane %v11150_v0, 6  ;;  %v3638_v4 = vrot.slane %v11151_v2, 5  ;;  %v17314_v49 = vand.u32 4294901760, %v13681_v44  ;;  %v3765_v37 = vand.u32 4294901760, %v13959_v41  ;;  %v11159_v40 = vld [vmem:[%s13033_s24 + $0xf0] sm:$0x1] }
  0xa8   : > { %12243 = vmatprep.mubr.f32.mxu0 %v17313_v15  ;;  %12330 = vmatprep.subr.mxu1 %v13899_v57  ;;  %v14012_v43 = vsub.f32 %v13944_v7, %v17233_v3  ;;  %v3631_v10 = vsel %vm605_vm6, %v3630_v16, %v3629_v53  ;;  %v3640_v14 = vrot.slane %v11152_v21, 4  ;;  %v14020_v62 = vsub.f32 %v13981_v24, %v17231_v11  ;;  %v11160_v17 = vld [vmem:[%s13033_s24 + $0xf2] sm:$0x1]  ;;  %v11213_v27 = vld [vmem:[%s13033_s24 + $0xc9] sm:$0x1] }
  0xa9   : > { %12279 = vmatprep.mubr.f32.mxu1 %v17314_v49  ;;  %v3633_v19 = vsel %vm608_vm7, %v3632_v56, %v3631_v10  ;;  %v3635_v30 = vsel %vm590_vm1, %v3634_v35, %v11148_v63  ;;  %v3642_v23 = vrot.slane %v11153_v59, 3  ;;  %12244 = vmatmul.mubr.f32.gmra.mxu0 %v2819_v1  ;;  %v17315_v0 = vand.u32 4294901760, %v13713_v50  ;;  %v11156_v63 = vld [vmem:[%s13033_s24 + $0xea] sm:$0x1]  ;;  %v11161_v56 = vld [vmem:[%s13033_s24 + $0xf4] sm:$0x1] }
  0xaa   : > { %v14031_v2 = vsub.f32 %v3682_v36, %v13996_v58  ;;  %v3684_v20 = vsel %vm708_vm8, %v3633_v19, 0  ;;  %v3637_v16 = vsel %vm593_vm2, %v3636_v60, %v3635_v30  ;;  %v3644_v21 = vrot.slane %v11154_v42, 2  ;;  %12262 = vmatprep.mubr.f32.mxu0 %v13607_v13  ;;  %v11162_v42 = vld [vmem:[%s13033_s24 + $0xf6] sm:$0x1]  ;;  %v11163_v10 = vld [vmem:[%s13033_s24 + $0xf8] sm:$0x1] }
  0xab   : > { %12280 = vmatmul.mubr.f32.gmra.mxu1 %v17315_v0  ;;  %v17316_v22 = vand.u32 4294901760, %v13753_v54  ;;  %v14040_v1 = vand.u32 4294901760, %v3684_v20  ;;  %v3639_v9 = vsel %vm596_vm3, %v3638_v4, %v3637_v16  ;;  %v3646_v36 = vrot.slane %v11155_v47, 1  ;;  %v11165_v47 = vld [vmem:[%s13033_s24 + $0x110] sm:$0x1] }
  0xac   : > { %v3648_v59 = vrot.slane %v11157_v52, 7  ;;  %v3775_v15 = vand.u32 4294901760, %v14012_v43  ;;  %v3641_v53 = vsel %vm599_vm4, %v3640_v14, %v3639_v9  ;;  %v3650_v35 = vrot.slane %v11158_v45, 6  ;;  %v11166_v0 = vld [vmem:[%s13033_s24 + $0x112] sm:$0x1] }
  0xad   : > { %12282 = vmatprep.mubr.f32.mxu1 %v17316_v22  ;;  %v3652_v13 = vrot.slane %v11159_v40, 5  ;;  %v3785_v60 = vand.u32 4294901760, %v14020_v62  ;;  %v3643_v49 = vsel %vm602_vm5, %v3642_v23, %v3641_v53  ;;  %v3654_v4 = vrot.slane %v11160_v17, 4  ;;  %12263 = vmatmul.mubr.f32.vlgmr.msra.gmra.mxu0 %v13637_v29  ;;  %v11164_v23 = vld [vmem:[%s13033_s24 + $0x10e] sm:$0x1] }
  0xae   : > { %v3649_v19 = vsel %vm590_vm1, %v3648_v59, %v11156_v63  ;;  %v17317_v14 = vand.u32 4294901760, %v13783_v46  ;;  %v17230_v52 = vand.u32 4294901760, %v14031_v2  ;;  %v3645_v30 = vsel %vm605_vm6, %v3644_v21, %v3643_v49  ;;  %12289 = vmatpush3.msra.mxu0 %v13515_v5  ;;  %12265 = vmatprep.mubr.f32.mxu0 %v13681_v44  ;;  %v11167_v21 = vld [vmem:[%s13033_s24 + $0x114] sm:$0x1]  ;;  %v11168_v22 = vld [vmem:[%s13033_s24 + $0x116] sm:$0x1] }
  0xaf   : > { %v3651_v45 = vsel %vm593_vm2, %v3650_v35, %v3649_v19  ;;  %v3656_v40 = vrot.slane %v11161_v56, 3  ;;  %v14063_v29 = vsub.f32 %v3684_v20, %v14040_v1  ;;  %v3647_v16 = vsel %vm608_vm7, %v3646_v36, %v3645_v30  ;;  %12316 = vmatprep.subr.mxu0 %v13818_v32  ;;  %v11169_v53 = vld [vmem:[%s13033_s24 + $0x118] sm:$0x1]  ;;  %v11171_v19 = vld [vmem:[%s13033_s24 + $0x11c] sm:$0x1] }
  0xb0   : > { %12283 = vmatmul.mubr.f32.gmra.mxu1 %v17317_v14  ;;  %v3653_v63 = vsel %vm596_vm3, %v3652_v13, %v3651_v45  ;;  %v3658_v17 = vrot.slane %v11162_v42, 2  ;;  %v17318_v9 = vand.u32 4294901760, %v13825_v33  ;;  %v3686_v5 = vsel %vm708_vm8, %v3647_v16, 0  ;;  %v11170_v42 = vld [vmem:[%s13033_s24 + $0x11a] sm:$0x1] }
  0xb1   : > { %v3655_v44 = vsel %vm599_vm4, %v3654_v4, %v3653_v63  ;;  %v3660_v56 = vrot.slane %v11163_v10, 1  ;;  %v3662_v20 = vrot.slane %v11165_v47, 7  ;;  %v14074_v59 = vand.u32 4294901760, %v3686_v5  ;;  %12266 = vmatmul.mubr.f32.gmra.mxu0 %v13713_v50  ;;  %v4514_v14 = vld [vmem:[%s17210_s1 + $0x10] sm:$0xf] }
  0xb2   : > { %12285 = vmatprep.mubr.f32.mxu1 %v17318_v9  ;;  %v3657_v36 = vsel %vm602_vm5, %v3656_v40, %v3655_v44  ;;  %v3664_v35 = vrot.slane %v11166_v0, 6  ;;  %v17319_v13 = vand.u32 4294901760, %v13866_v55  ;;  %v3666_v4 = vrot.slane %v11167_v21, 5  ;;  %12268 = vmatprep.mubr.f32.mxu0 %v13753_v54  ;;  %v11174_v0 = vld [vmem:[%s13033_s24 + $0x17] sm:$0x1] }
  0xb3   : > { %v3659_v49 = vsel %vm605_vm6, %v3658_v17, %v3657_v36  ;;  %v3663_v10 = vsel %vm590_vm1, %v3662_v20, %v11164_v23  ;;  %v3668_v47 = vrot.slane %v11168_v22, 4  ;;  %v17229_v50 = vand.u32 4294901760, %v14063_v29  ;;  %v11173_v23 = vld [vmem:[%s13033_s24 + $0x15] sm:$0x1]  ;;  %v11172_v21 = vld [vmem:[%s13033_s24 + $0x13] sm:$0x1] }
  0xb4   : > { %12286 = vmatmul.mubr.f32.gmra.mxu1 %v17319_v13  ;;  %v14092_v30 = vsub.f32 %v3686_v5, %v14074_v59  ;;  %v3661_v45 = vsel %vm608_vm7, %v3660_v56, %v3659_v49  ;;  %v3665_v40 = vsel %vm593_vm2, %v3664_v35, %v3663_v10  ;;  %v3670_v54 = vrot.slane %v11169_v53, 3  ;;  %v11175_v56 = vld [vmem:[%s13033_s24 + $0x19] sm:$0x1]  ;;  %v11176_v20 = vld [vmem:[%s13033_s24 + $0x1b] sm:$0x1] }
  0xb5   : > { %12304 = vmatprep.mubr.f32.mxu1 %v13594_v6  ;;  %v3688_v16 = vsel %vm708_vm8, %v3661_v45, 0  ;;  %v3667_v63 = vsel %vm596_vm3, %v3666_v4, %v3665_v40  ;;  %v3672_v17 = vrot.slane %v11170_v42, 2  ;;  %v14104_v22 = vsub.f32 %v14031_v2, %v17230_v52  ;;  %12269 = vmatmul.mubr.f32.gmra.mxu0 %v13783_v46  ;;  %v11178_v10 = vld [vmem:[%s13033_s24 + $0x1f] sm:$0x1]  ;;  %v11179_v40 = vld [vmem:[%s13033_s24 + $0x21] sm:$0x1] }
  0xb6   : > { %v14106_v9 = vand.u32 4294901760, %v3688_v16  ;;  %v3669_v5 = vsel %vm599_vm4, %v3668_v47, %v3667_v63  ;;  %v3674_v44 = vrot.slane %v11171_v19, 1  ;;  %v4708_v53 = vsel %vm725_vm0, %v4514_v14, 0  ;;  %12271 = vmatprep.mubr.f32.mxu0 %v13825_v33  ;;  %v11177_v19 = vld [vmem:[%s13033_s24 + $0x1d] sm:$0x1] }
  0xb7   : > { %v3671_v36 = vsel %vm602_vm5, %v3670_v54, %v3669_v5  ;;  %v4579_v42 = vrot.slane %v11173_v23, 7  ;;  %v4581_v35 = vrot.slane %v11174_v0, 6  ;;  %v17228_v13 = vand.u32 4294901760, %v14092_v30  ;;  %v11181_v23 = vld [vmem:[%s13033_s24 + $0x39] sm:$0x1] }
  0xb8   : > { %12305 = vmatmul.mubr.f32.vlgmr.msra.gmra.mxu1 %v13629_v48  ;;  %v3673_v49 = vsel %vm605_vm6, %v3672_v17, %v3671_v36  ;;  %v14119_v46 = vand.u32 4294901760, %v4708_v53  ;;  %v4583_v47 = vrot.slane %v11175_v56, 5  ;;  %v14130_v14 = vsub.f32 %v14063_v29, %v17229_v50  ;;  %v11182_v0 = vld [vmem:[%s13033_s24 + $0x3b] sm:$0x1]  ;;  %v11183_v5 = vld [vmem:[%s13033_s24 + $0x3d] sm:$0x1] }
  0xb9   : > { %12331 = vmatpush3.msra.mxu1 %v13899_v57  ;;  %12307 = vmatprep.mubr.f32.mxu1 %v13667_v25  ;;  %v3675_v4 = vsel %vm608_vm7, %v3674_v44, %v3673_v49  ;;  %v4580_v33 = vsel %vm590_vm1, %v4579_v42, %v11172_v21  ;;  %v4585_v57 = vrot.slane %v11176_v20, 4  ;;  %v14133_v45 = vsub.f32 %v3688_v16, %v14106_v9  ;;  %v11180_v20 = vld [vmem:[%s13033_s24 + $0x37] sm:$0x1]  ;;  %v11184_v36 = vld [vmem:[%s13033_s24 + $0x3f] sm:$0x1] }
  0xba   : > { %12358 = vmatprep.subr.mxu1 %v13818_v32  ;;  %12272 = vmatmul.mubr.f32.gmra.mxu0 %v13866_v55  ;;  %v3795_v63 = vand.u32 4294901760, %v14104_v22  ;;  %v4582_v54 = vsel %vm593_vm2, %v4581_v35, %v4580_v33  ;;  %v4587_v17 = vrot.slane %v11177_v19, 3  ;;  %v4589_v21 = vrot.slane %v11178_v10, 2  ;;  %v11185_v35 = vld [vmem:[%s13033_s24 + $0x41] sm:$0x1] }
  0xbb   : > { %12290 = vmatprep.mubr.f32.mxu0 %v13594_v6  ;;  %v14148_v16 = vsub.f32 %v14092_v30, %v17228_v13  ;;  %v3690_v55 = vsel %vm708_vm8, %v3675_v4, 0  ;;  %v14152_v44 = vsub.f32 %v4708_v53, %v14119_v46  ;;  %v4584_v56 = vsel %vm596_vm3, %v4583_v47, %v4582_v54  ;;  %v11186_v53 = vld [vmem:[%s13033_s24 + $0x43] sm:$0x1]  ;;  %v11193_v50 = vld [vmem:[%s13033_s24 + $0x65] sm:$0x1] }
  0xbc   : > { %12308 = vmatmul.mubr.f32.gmra.mxu1 %v13700_v61  ;;  %v4586_v6 = vsel %vm599_vm4, %v4585_v57, %v4584_v56  ;;  %v4591_v42 = vrot.slane %v11179_v40, 1  ;;  %v4593_v49 = vrot.slane %v11181_v23, 7  ;;  %v4595_v19 = vrot.slane %v11182_v0, 6  ;;  %v11187_v23 = vld [vmem:[%s13033_s24 + $0x45] sm:$0x1] }
  0xbd   : > { %12310 = vmatprep.mubr.f32.mxu1 %v13739_v12  ;;  %v3805_v10 = vand.u32 4294901760, %v14130_v14  ;;  %v17232_v33 = vand.u32 4294901760, %v14133_v45  ;;  %v4588_v4 = vsel %vm602_vm5, %v4587_v17, %v4586_v6  ;;  %v4597_v47 = vrot.slane %v11183_v5, 5  ;;  %v11189_v56 = vld [vmem:[%s13033_s24 + $0x5d] sm:$0x1] }
  0xbe   : > { %12291 = vmatmul.mubr.f32.vlgmr.msra.gmra.mxu0 %v13629_v48  ;;  %v14165_v57 = vand.u32 4294901760, %v3690_v55  ;;  %v4590_v40 = vsel %vm605_vm6, %v4589_v21, %v4588_v4  ;;  %v4594_v0 = vsel %vm590_vm1, %v4593_v49, %v11180_v20  ;;  %v4599_v54 = vrot.slane %v11184_v36, 4  ;;  %v11190_v6 = vld [vmem:[%s13033_s24 + $0x5f] sm:$0x1]  ;;  %v11191_v21 = vld [vmem:[%s13033_s24 + $0x61] sm:$0x1] }
  0xbf   : > { %12317 = vmatpush3.msra.mxu0 %v13818_v32  ;;  %12293 = vmatprep.mubr.f32.mxu0 %v13667_v25  ;;  %v4596_v48 = vsel %vm593_vm2, %v4595_v19, %v4594_v0  ;;  %v4601_v5 = vrot.slane %v11185_v35, 3  ;;  %v14180_v20 = vand.u32 4294901760, %v14152_v44  ;;  %v4592_v36 = vsel %vm608_vm7, %v4591_v42, %v4590_v40  ;;  %v11188_v4 = vld [vmem:[%s13033_s24 + $0x5b] sm:$0x1]  ;;  %v11192_v13 = vld [vmem:[%s13033_s24 + $0x63] sm:$0x1] }
  0xc0   : > { %12311 = vmatmul.mubr.f32.gmra.mxu1 %v13773_v31  ;;  %12344 = vmatprep.subr.mxu0 %v13836_v26  ;;  %v4598_v25 = vsel %vm596_vm3, %v4597_v47, %v4596_v48  ;;  %v4603_v49 = vrot.slane %v11186_v53, 2  ;;  %v14189_v35 = vsub.f32 %v14133_v45, %v17232_v33  ;;  %v4605_v0 = vrot.slane %v11187_v23, 1  ;;  %v11194_v52 = vld [vmem:[%s13033_s24 + $0x67] sm:$0x1]  ;;  %v11195_v47 = vld [vmem:[%s13033_s24 + $0x69] sm:$0x1] }
  0xc1   : > { %12313 = vmatprep.mubr.f32.mxu1 %v13808_v39  ;;  %v4600_v19 = vsel %vm599_vm4, %v4599_v54, %v4598_v25  ;;  %v4607_v11 = vrot.slane %v11189_v56, 7  ;;  %v14197_v42 = vsub.f32 %v3690_v55, %v14165_v57  ;;  %v4609_v40 = vrot.slane %v11190_v6, 6  ;;  %v11197_v48 = vld [vmem:[%s13033_s24 + $0x81] sm:$0x1]  ;;  %v11200_v33 = vld [vmem:[%s13033_s24 + $0x87] sm:$0x1] }
  0xc2   : > { %12294 = vmatmul.mubr.f32.gmra.mxu0 %v13700_v61  ;;  %v4602_v53 = vsel %vm602_vm5, %v4601_v5, %v4600_v19  ;;  %v4611_v54 = vrot.slane %v11191_v21, 5  ;;  %v4691_v23 = vsel %vm708_vm8, %v4592_v36, 0  ;;  %v4613_v56 = vrot.slane %v11192_v13, 4  ;;  %v11198_v5 = vld [vmem:[%s13033_s24 + $0x83] sm:$0x1] }
  0xc3   : > { %12296 = vmatprep.mubr.f32.mxu0 %v13739_v12  ;;  %v4604_v61 = vsel %vm605_vm6, %v4603_v49, %v4602_v53  ;;  %v4608_v55 = vsel %vm590_vm1, %v4607_v11, %v11188_v4  ;;  %v4615_v21 = vrot.slane %v11193_v50, 3  ;;  %v4617_v19 = vrot.slane %v11194_v52, 2  ;;  %v11199_v12 = vld [vmem:[%s13033_s24 + $0x85] sm:$0x1]  ;;  %v11196_v13 = vld [vmem:[%s13033_s24 + $0x7f] sm:$0x1] }
  0xc4   : > { %12314 = vmatmul.mubr.f32.gmra.mxu1 %v13847_v38  ;;  %v4606_v25 = vsel %vm608_vm7, %v4605_v0, %v4604_v61  ;;  %v4610_v6 = vsel %vm593_vm2, %v4609_v40, %v4608_v55  ;;  %v4890_v36 = vsub.f32 %v14152_v44, %v14180_v20  ;;  %v4619_v11 = vrot.slane %v11195_v47, 1  ;;  %v11201_v4 = vld [vmem:[%s13033_s24 + $0x89] sm:$0x1]  ;;  %v11202_v40 = vld [vmem:[%s13033_s24 + $0x8b] sm:$0x1] }
  0xc5   : > { %12332 = vmatprep.mubr.f32.mxu1 %v13892_v51  ;;  %v4612_v49 = vsel %vm596_vm3, %v4611_v54, %v4610_v6  ;;  %v14220_v0 = vand.u32 4294901760, %v4691_v23  ;;  %v4621_v50 = vrot.slane %v11197_v48, 7  ;;  %v4623_v53 = vrot.slane %v11198_v5, 6  ;;  %v11205_v5 = vld [vmem:[%s13033_s24 + $0xa5] sm:$0x1] }
  0xc6   : > { %12297 = vmatmul.mubr.f32.gmra.mxu0 %v13773_v31  ;;  %v4614_v52 = vsel %vm599_vm4, %v4613_v56, %v4612_v49  ;;  %v4693_v47 = vsel %vm708_vm8, %v4606_v25, 0  ;;  %v4625_v54 = vrot.slane %v11199_v12, 5  ;;  %v4627_v61 = vrot.slane %v11200_v33, 4  ;;  %v11206_v25 = vld [vmem:[%s13033_s24 + $0xa7] sm:$0x1] }
  0xc7   : > { %17320 = vst [vmem:[#allocation3_spill] sm:$0xff] %v14220_v0  ;;  %12299 = vmatprep.mubr.f32.mxu0 %v13808_v39  ;;  %v4616_v31 = vsel %vm602_vm5, %v4615_v21, %v4614_v52  ;;  %v3833_v55 = vand.u32 4294901760, %v14197_v42  ;;  %v4622_v56 = vsel %vm590_vm1, %v4621_v50, %v11196_v13  ;;  %v4629_v48 = vrot.slane %v11201_v4, 3  ;;  %v11203_v21 = vld [vmem:[%s13033_s24 + $0x8d] sm:$0x1] }
  0xc8   : > { %12333 = vmatmul.mubr.f32.vlgmr.msra.gmra.mxu1 %v13929_v28  ;;  %v4618_v39 = vsel %vm605_vm6, %v4617_v19, %v4616_v31  ;;  %v4624_v33 = vsel %vm593_vm2, %v4623_v53, %v4622_v56  ;;  %v11207_v12 = vld [vmem:[%s13033_s24 + $0xa9] sm:$0x1]  ;;  %v11208_v49 = vld [vmem:[%s13033_s24 + $0xab] sm:$0x1]  ;;  %v14243_v19 = vsub.f32 %v4691_v23, %v14220_v0  ;;  %v14245_v13 = vand.u32 4294901760, %v4693_v47 }
  0xc9   : > { %12359 = vmatpush3.msra.mxu1 %v13818_v32  ;;  %12335 = vmatprep.mubr.f32.mxu1 %v13967_v8  ;;  %v4620_v6 = vsel %vm608_vm7, %v4619_v11, %v4618_v39  ;;  %v4626_v11 = vsel %vm596_vm3, %v4625_v54, %v4624_v33  ;;  %v11204_v52 = vld [vmem:[%s13033_s24 + $0xa3] sm:$0x1]  ;;  %v11209_v50 = vld [vmem:[%s13033_s24 + $0xad] sm:$0x1]  ;;  %v4631_v53 = vrot.slane %v11202_v40, 2  ;;  %v4635_v31 = vrot.slane %v11205_v5, 7 }
  0xca   : > { %12386 = vmatprep.subr.mxu1 %v13818_v32  ;;  %12300 = vmatmul.mubr.f32.gmra.mxu0 %v13847_v38  ;;  %v4695_v4 = vsel %vm708_vm8, %v4620_v6, 0  ;;  %v4628_v38 = vsel %vm599_vm4, %v4627_v61, %v4626_v11  ;;  %v11210_v23 = vld [vmem:[%s13033_s24 + $0xaf] sm:$0x1]  ;;  %v4637_v39 = vrot.slane %v11206_v25, 6  ;;  %v14256_v56 = vand.u32 4294901760, %v4890_v36 }
  0xcb   : > { %12318 = vmatprep.mubr.f32.mxu0 %v3765_v37  ;;  %v4630_v54 = vsel %vm602_vm5, %v4629_v48, %v4628_v38  ;;  %v11211_v6 = vld [vmem:[%s13033_s24 + $0xb1] sm:$0x1]  ;;  %v4639_v33 = vrot.slane %v11207_v12, 5  ;;  %v4641_v41 = vrot.slane %v11208_v49, 4  ;;  %v14260_v3 = vand.u32 4294901760, %v4695_v4 }
  0xcc   : > { %12336 = vmatmul.mubr.f32.gmra.mxu1 %v13996_v58  ;;  %v4636_v37 = vsel %vm590_vm1, %v4635_v31, %v11204_v52  ;;  %v4643_v17 = vrot.slane %v11209_v50, 3  ;;  %v11214_v40 = vld [vmem:[%s13033_s24 + $0xcb] sm:$0x1]  ;;  %v14271_v36 = vsub.f32 %v14197_v42, %v3833_v55  ;;  %v4633_v61 = vrot.slane %v11203_v21, 1  ;;  %v11215_v25 = vld [vmem:[%s13033_s24 + $0xcd] sm:$0x1] }
  0xcd   : > { %12338 = vmatprep.mubr.f32.mxu1 %v14040_v1  ;;  %v4638_v48 = vsel %vm593_vm2, %v4637_v39, %v4636_v37  ;;  %v4645_v5 = vrot.slane %v11210_v23, 2  ;;  %v11216_v12 = vld [vmem:[%s13033_s24 + $0xcf] sm:$0x1]  ;;  %v17241_v43 = vand.u32 4294901760, %v14243_v19  ;;  %v4632_v49 = vsel %vm605_vm6, %v4631_v53, %v4630_v54  ;;  %v11212_v11 = vld [vmem:[%s13033_s24 + $0xc7] sm:$0x1] }
  0xce   : > { %12319 = vmatmul.mubr.f32.vlgmr.msra.gmra.mxu0 %v3775_v15  ;;  %v14281_v15 = vsub.f32 %v4693_v47, %v14245_v13  ;;  %v4640_v21 = vsel %vm596_vm3, %v4639_v33, %v4638_v48  ;;  %v11217_v52 = vld [vmem:[%s13033_s24 + $0xd1] sm:$0x1]  ;;  %v4647_v62 = vrot.slane %v11211_v6, 1  ;;  %v4649_v50 = vrot.slane %v11213_v27, 7  ;;  %v11219_v23 = vld [vmem:[%s13033_s24 + $0xd5] sm:$0x1] }
  0xcf   : > { %12345 = vmatpush3.msra.mxu0 %v13836_v26  ;;  %12321 = vmatprep.mubr.f32.mxu0 %v3785_v60  ;;  %v4642_v26 = vsel %vm599_vm4, %v4641_v41, %v4640_v21  ;;  %v11218_v60 = vld [vmem:[%s13033_s24 + $0xd3] sm:$0x1]  ;;  %v4651_v38 = vrot.slane %v11214_v40, 6  ;;  %v14292_v47 = vsub.f32 %v4695_v4, %v14260_v3  ;;  %v4653_v31 = vrot.slane %v11215_v25, 5  ;;  %v11222_v33 = vld [vmem:[%s13033_s24 + $0xef] sm:$0x1] }
  0xd0   : > { %12339 = vmatmul.mubr.f32.gmra.mxu1 %v14074_v59  ;;  %12372 = vmatprep.subr.mxu0 %v13850_v34  ;;  %v4644_v53 = vsel %vm602_vm5, %v4643_v17, %v4642_v26  ;;  %v4655_v39 = vrot.slane %v11216_v12, 4  ;;  %v4634_v54 = vsel %vm608_vm7, %v4633_v61, %v4632_v49  ;;  %v4650_v6 = vsel %vm590_vm1, %v4649_v50, %v11212_v11  ;;  %v11221_v17 = vld [vmem:[%s13033_s24 + $0xed] sm:$0x1]  ;;  %v11223_v61 = vld [vmem:[%s13033_s24 + $0xf1] sm:$0x1] }
  0xd1   : > { %12341 = vmatprep.mubr.f32.mxu1 %v14106_v9  ;;  %v4646_v27 = vsel %vm605_vm6, %v4645_v5, %v4644_v53  ;;  %v4657_v4 = vrot.slane %v11217_v52, 3  ;;  %v3835_v22 = vand.u32 4294901760, %v14271_v36  ;;  %v14312_v41 = vsub.f32 %v14243_v19, %v17241_v43  ;;  %v11224_v48 = vld [vmem:[%s13033_s24 + $0xf3] sm:$0x1]  ;;  %v11220_v25 = vld [vmem:[%s13033_s24 + $0xeb] sm:$0x1] }
  0xd2   : > { %12322 = vmatmul.mubr.f32.gmra.mxu0 %v3795_v63  ;;  %v17321_v63 = vand.u32 4294901760, %v13902_v18  ;;  %v4652_v37 = vsel %vm593_vm2, %v4651_v38, %v4650_v6  ;;  %v4659_v40 = vrot.slane %v11218_v60, 2  ;;  %v17240_v14 = vand.u32 4294901760, %v14281_v15  ;;  %v11225_v12 = vld [vmem:[%s13033_s24 + $0xf5] sm:$0x1] }
  0xd3   : > { %12324 = vmatprep.mubr.f32.mxu0 %v3805_v10  ;;  %v4648_v10 = vsel %vm608_vm7, %v4647_v62, %v4646_v27  ;;  %v4654_v36 = vsel %vm596_vm3, %v4653_v31, %v4652_v37  ;;  %v4661_v5 = vrot.slane %v11219_v23, 1  ;;  %v4697_v49 = vsel %vm708_vm8, %v4634_v54, 0  ;;  %v11226_v11 = vld [vmem:[%s13033_s24 + $0xf7] sm:$0x1]  ;;  %v11227_v53 = vld [vmem:[%s13033_s24 + $0xf9] sm:$0x1] }
  0xd4   : > { %12342 = vmatmul.mubr.f32.gmra.mxu1 %v14165_v57  ;;  %v4656_v21 = vsel %vm599_vm4, %v4655_v39, %v4654_v36  ;;  %v4663_v52 = vrot.slane %v11221_v17, 7  ;;  %v4665_v26 = vrot.slane %v11222_v33, 6  ;;  %v17322_v60 = vand.u32 4294901760, %v14148_v16  ;;  %v11230_v17 = vld [vmem:[%s13033_s24 + $0x113] sm:$0x1] }
  0xd5   : > { %12360 = vmatprep.mubr.f32.mxu1 %v17321_v63  ;;  %v17323_v50 = vand.u32 4294901760, %v13944_v7  ;;  %v17239_v62 = vand.u32 4294901760, %v14292_v47  ;;  %v4658_v38 = vsel %vm602_vm5, %v4657_v4, %v4656_v21  ;;  %v4667_v23 = vrot.slane %v11223_v61, 5  ;;  %v11229_v4 = vld [vmem:[%s13033_s24 + $0x111] sm:$0x1] }
  0xd6   : > { %12325 = vmatmul.mubr.f32.gmra.mxu0 %v17322_v60  ;;  %v4669_v31 = vrot.slane %v11224_v48, 4  ;;  %v17324_v39 = vand.u32 4294901760, %v14189_v35  ;;  %v4699_v16 = vsel %vm708_vm8, %v4648_v10, 0  ;;  %v4660_v54 = vsel %vm605_vm6, %v4659_v40, %v4658_v38  ;;  %v11231_v40 = vld [vmem:[%s13033_s24 + $0x115] sm:$0x1] }
  0xd7   : > { %v4664_v27 = vsel %vm590_vm1, %v4663_v52, %v11220_v25  ;;  %v4671_v6 = vrot.slane %v11225_v12, 3  ;;  %v17325_v33 = vand.u32 4294901760, %v13981_v24  ;;  %v14343_v35 = vand.u32 4294901760, %v4697_v49  ;;  %v11232_v61 = vld [vmem:[%s13033_s24 + $0x117] sm:$0x1] }
  0xd8   : > { %12361 = vmatmul.mubr.f32.vlgmr.msra.gmra.mxu1 %v17323_v50  ;;  %12327 = vmatprep.mubr.f32.mxu0 %v17324_v39  ;;  %v4666_v63 = vsel %vm593_vm2, %v4665_v26, %v4664_v27  ;;  %v4673_v37 = vrot.slane %v11226_v11, 2  ;;  %v14352_v48 = vsub.f32 %v14281_v15, %v17240_v14  ;;  %v4675_v25 = vrot.slane %v11227_v53, 1  ;;  %v11228_v12 = vld [vmem:[%s13033_s24 + $0x10f] sm:$0x1]  ;;  %v11233_v21 = vld [vmem:[%s13033_s24 + $0x119] sm:$0x1] }
  0xd9   : > { %12387 = vmatpush3.msra.mxu1 %v13818_v32  ;;  %12363 = vmatprep.mubr.f32.mxu1 %v17325_v33  ;;  %v4662_v32 = vsel %vm608_vm7, %v4661_v5, %v4660_v54  ;;  %v4668_v36 = vsel %vm596_vm3, %v4667_v23, %v4666_v63  ;;  %v17326_v5 = vand.u32 4294901760, %v14031_v2  ;;  %v14360_v11 = vand.u32 4294901760, %v4699_v16  ;;  %v11234_v26 = vld [vmem:[%s13033_s24 + $0x11b] sm:$0x1]  ;;  %v11235_v23 = vld [vmem:[%s13033_s24 + $0x11d] sm:$0x1] }
  0xda   : > { %12414 = vmatprep.subr.mxu1 %v14256_v56  ;;  %v4701_v10 = vsel %vm708_vm8, %v4662_v32, 0  ;;  %12328 = vmatmul.mubr.f32.gmra.mxu0 %v3835_v22  ;;  %v4670_v52 = vsel %vm599_vm4, %v4669_v31, %v4668_v36  ;;  %v4677_v60 = vrot.slane %v11229_v4, 7  ;;  %v4679_v50 = vrot.slane %v11230_v17, 6  ;;  %v5530_v17 = vld [vmem:[%s17210_s1 + $0x14] sm:$0xf] }
  0xdb   : > { %12346 = vmatprep.mubr.f32.mxu0 %v13902_v18  ;;  %v17327_v38 = vand.u32 4294901760, %v14063_v29  ;;  %v14370_v22 = vsub.f32 %v14292_v47, %v17239_v62  ;;  %v4672_v53 = vsel %vm602_vm5, %v4671_v6, %v4670_v52  ;;  %v4681_v39 = vrot.slane %v11231_v40, 5  ;;  %v11237_v33 = vld [vmem:[%s13033_s24 + $0x16] sm:$0x1]  ;;  %v11257_v62 = vld [vmem:[%s13033_s24 + $0x66] sm:$0x1] }
  0xdc   : > { %12364 = vmatmul.mubr.f32.gmra.mxu1 %v17326_v5  ;;  %v4683_v31 = vrot.slane %v11232_v61, 4  ;;  %v14374_v54 = vand.u32 4294901760, %v4701_v10  ;;  %v4674_v27 = vsel %vm605_vm6, %v4673_v37, %v4672_v53  ;;  %v4678_v18 = vsel %vm590_vm1, %v4677_v60, %v11228_v12  ;;  %v11238_v61 = vld [vmem:[%s13033_s24 + $0x18] sm:$0x1]  ;;  %v11236_v5 = vld [vmem:[%s13033_s24 + $0x14] sm:$0x1] }
  0xdd   : > { %12366 = vmatprep.mubr.f32.mxu1 %v17327_v38  ;;  %v4685_v4 = vrot.slane %v11233_v21, 3  ;;  %v14383_v32 = vsub.f32 %v4697_v49, %v14343_v35  ;;  %v4676_v6 = vsel %vm608_vm7, %v4675_v25, %v4674_v27  ;;  %v4680_v63 = vsel %vm593_vm2, %v4679_v50, %v4678_v18  ;;  %v11239_v25 = vld [vmem:[%s13033_s24 + $0x1a] sm:$0x1]  ;;  %v11242_v27 = vld [vmem:[%s13033_s24 + $0x20] sm:$0x1] }
  0xde   : > { %v4687_v40 = vrot.slane %v11234_v26, 2  ;;  %12347 = vmatmul.mubr.f32.vlgmr.msra.gmra.mxu0 %v13944_v7  ;;  %v17328_v37 = vand.u32 4294901760, %v14092_v30  ;;  %v14392_v36 = vsub.f32 %v4699_v16, %v14360_v11  ;;  %v4703_v12 = vsel %vm708_vm8, %v4676_v6, 0  ;;  %v11243_v6 = vld [vmem:[%s13033_s24 + $0x22] sm:$0x1] }
  0xdf   : > { %v4682_v49 = vsel %vm596_vm3, %v4681_v39, %v4680_v63  ;;  %v4689_v21 = vrot.slane %v11235_v23, 1  ;;  %12373 = vmatpush3.msra.mxu0 %v13850_v34  ;;  %12349 = vmatprep.mubr.f32.mxu0 %v13981_v24  ;;  %v14400_v7 = vand.u32 4294901760, %v4703_v12  ;;  %v5724_v16 = vsel %vm725_vm0, %v5530_v17, 0  ;;  %v11240_v24 = vld [vmem:[%s13033_s24 + $0x1c] sm:$0x1] }
  0xe0   : > { %12367 = vmatmul.mubr.f32.gmra.mxu1 %v17328_v37  ;;  %v4684_v52 = vsel %vm599_vm4, %v4683_v31, %v4682_v49  ;;  %v5595_v26 = vrot.slane %v11237_v33, 7  ;;  %v17329_v60 = vand.u32 4294901760, %v14133_v45  ;;  %12400 = vmatprep.subr.mxu0 %v14119_v46  ;;  %v14408_v50 = vsub.f32 %v4701_v10, %v14374_v54  ;;  %v11241_v31 = vld [vmem:[%s13033_s24 + $0x1e] sm:$0x1]  ;;  %v11246_v49 = vld [vmem:[%s13033_s24 + $0x3c] sm:$0x1] }
  0xe1   : > { %v4686_v34 = vsel %vm602_vm5, %v4685_v4, %v4684_v52  ;;  %v14411_v38 = vand.u32 4294901760, %v5724_v16  ;;  %v5597_v53 = vrot.slane %v11238_v61, 6  ;;  %v17238_v23 = vand.u32 4294901760, %v14383_v32 }
  0xe2   : > { %12369 = vmatprep.mubr.f32.mxu1 %v17329_v60  ;;  %v4688_v39 = vsel %vm605_vm6, %v4687_v40, %v4686_v34  ;;  %v5596_v18 = vsel %vm590_vm1, %v5595_v26, %v11236_v5  ;;  %v5599_v17 = vrot.slane %v11239_v25, 5  ;;  %12350 = vmatmul.mubr.f32.gmra.mxu0 %v14031_v2  ;;  %v14424_v4 = vsub.f32 %v4703_v12, %v14400_v7  ;;  %v11245_v40 = vld [vmem:[%s13033_s24 + $0x3a] sm:$0x1]  ;;  %v11244_v12 = vld [vmem:[%s13033_s24 + $0x38] sm:$0x1] }
  0xe3   : > { %v4690_v33 = vsel %vm608_vm7, %v4689_v21, %v4688_v39  ;;  %v5598_v63 = vsel %vm593_vm2, %v5597_v53, %v5596_v18  ;;  %12352 = vmatprep.mubr.f32.mxu0 %v14063_v29  ;;  %v5601_v37 = vrot.slane %v11240_v24, 4  ;;  %v17237_v21 = vand.u32 4294901760, %v14392_v36  ;;  %v11247_v29 = vld [vmem:[%s13033_s24 + $0x3e] sm:$0x1] }
  0xe4   : > { %12370 = vmatmul.mubr.f32.gmra.mxu1 %v3833_v55  ;;  %v4705_v2 = vsel %vm708_vm8, %v4690_v33, 0  ;;  %v14434_v55 = vsub.f32 %v5724_v16, %v14411_v38  ;;  %v5600_v61 = vsel %vm596_vm3, %v5599_v17, %v5598_v63  ;;  %v17236_v5 = vand.u32 4294901760, %v14408_v50 }
  0xe5   : > { %12388 = vmatprep.mubr.f32.mxu1 %v13892_v51  ;;  %v5603_v25 = vrot.slane %v11241_v31, 3  ;;  %v5605_v52 = vrot.slane %v11242_v27, 2  ;;  %v14445_v26 = vsub.f32 %v14383_v32, %v17238_v23  ;;  %v5602_v16 = vsel %vm599_vm4, %v5601_v37, %v5600_v61  ;;  %v11248_v31 = vld [vmem:[%s13033_s24 + $0x40] sm:$0x1]  ;;  %v11255_v37 = vld [vmem:[%s13033_s24 + $0x62] sm:$0x1] }
  0xe6   : > { %17330 = vst [vmem:[#allocation4_spill] sm:$0xff] %v14434_v55  ;;  %v5607_v60 = vrot.slane %v11243_v6, 1  ;;  %v5609_v34 = vrot.slane %v11245_v40, 7  ;;  %12353 = vmatmul.mubr.f32.gmra.mxu0 %v14092_v30  ;;  %v17235_v24 = vand.u32 4294901760, %v14424_v4  ;;  %v14451_v53 = vand.u32 4294901760, %v4705_v2  ;;  %v12082_v6 = vpop.f32.mrf.mxu1 }
  0xe7   : > { %v5604_v39 = vsel %vm602_vm5, %v5603_v25, %v5602_v16  ;;  %v5611_v27 = vrot.slane %v11246_v49, 6  ;;  %12355 = vmatprep.mubr.f32.mxu0 %v14133_v45  ;;  %v14458_v18 = vand.u32 4294901760, %v14434_v55  ;;  %v5613_v33 = vrot.slane %v11247_v29, 5  ;;  %v11253_v40 = vld [vmem:[%s13033_s24 + $0x5e] sm:$0x1] }
  0xe8   : > { %12389 = vmatmul.mubr.f32.vlgmr.msra.gmra.mxu1 %v13929_v28  ;;  %v5606_v30 = vsel %vm605_vm6, %v5605_v52, %v5604_v39  ;;  %v5610_v17 = vsel %vm590_vm1, %v5609_v34, %v11244_v12  ;;  %v14467_v45 = vsub.f32 %v14392_v36, %v17237_v21  ;;  %v11254_v61 = vld [vmem:[%s13033_s24 + $0x60] sm:$0x1]  ;;  %v11249_v52 = vld [vmem:[%s13033_s24 + $0x42] sm:$0x1]  ;;  %v5615_v29 = vrot.slane %v11248_v31, 4  ;;  %v947_v21 = vpop.f32.mrf.mxu1 }
  0xe9   : > { %12415 = vmatpush3.msra.mxu1 %v14256_v56  ;;  %17331 = vst [vmem:[#allocation5_spill] sm:$0xff] %v14458_v18  ;;  %12391 = vmatprep.mubr.f32.mxu1 %v13967_v8  ;;  %v14472_v56 = vsub.f32 %v14408_v50, %v17236_v5  ;;  %v5612_v63 = vsel %vm593_vm2, %v5611_v27, %v5610_v17  ;;  %v14501_v31 = vld [vmem:[%s13033_s24 + $0x44] sm:$0x1]  ;;  %v5623_v17 = vrot.slane %v11253_v40, 7  ;;  %v5617_v23 = vrot.slane %v11249_v52, 3 }
  0xea   : > { %12442 = vmatprep.subr.mxu1 %v14119_v46  ;;  %v5608_v25 = vsel %vm608_vm7, %v5607_v60, %v5606_v30  ;;  %12356 = vmatmul.mubr.f32.gmra.mxu0 %v14197_v42  ;;  %v14488_v34 = vsub.f32 %v14424_v4, %v17235_v24  ;;  %v14491_v39 = vsub.f32 %v4705_v2, %v14451_v53  ;;  %v11252_v60 = vld [vmem:[%s13033_s24 + $0x5c] sm:$0x1]  ;;  %v11256_v30 = vld [vmem:[%s13033_s24 + $0x64] sm:$0x1]  ;;  %v5625_v24 = vrot.slane %v11254_v61, 6 }
  0xeb   : > { %v5614_v27 = vsel %vm596_vm3, %v5613_v33, %v5612_v63  ;;  %12374 = vmatprep.mubr.f32.mxu0 %v13892_v51  ;;  %v5906_v42 = vsub.f32 %v14434_v55, %v14458_v18  ;;  %v5627_v2 = vrot.slane %v11255_v37, 5  ;;  %v5707_v51 = vsel %vm708_vm8, %v5608_v25, 0  ;;  %v11261_v37 = vld [vmem:[%s13033_s24 + $0x82] sm:$0x1]  ;;  %v11262_v16 = vld [vmem:[%s13033_s24 + $0x84] sm:$0x1] }
  0xec   : > { %12392 = vmatmul.mubr.f32.gmra.mxu1 %v13996_v58  ;;  %v12068_v5 = vpop.f32.mrf.mxu0  ;;  %v5616_v43 = vsel %vm599_vm4, %v5615_v29, %v5614_v27  ;;  %v5624_v40 = vsel %vm590_vm1, %v5623_v17, %v11252_v60  ;;  %v5629_v61 = vrot.slane %v11256_v30, 4  ;;  %v17242_v63 = vand.u32 4294901760, %v14491_v39  ;;  %v11263_v29 = vld [vmem:[%s13033_s24 + $0x86] sm:$0x1]  ;;  %v11264_v27 = vld [vmem:[%s13033_s24 + $0x88] sm:$0x1] }
  0xed   : > { %12394 = vmatprep.mubr.f32.mxu1 %v14040_v1  ;;  %v14507_v14 = vadd.f32 %v12082_v6, %v12068_v5  ;;  %v14518_v5 = vld [vmem:[%s13033_s24 + $0x46] sm:$0x1]  ;;  %v5626_v6 = vsel %vm593_vm2, %v5625_v24, %v5624_v40  ;;  %v14527_v60 = vand.u32 4294901760, %v5906_v42  ;;  %v14529_v30 = vand.u32 4294901760, %v5707_v51  ;;  %v11258_v17 = vld [vmem:[%s13033_s24 + $0x68] sm:$0x1] }
  0xee   : > { %12375 = vmatmul.mubr.f32.vlgmr.msra.gmra.mxu0 %v13929_v28  ;;  %v801_v25 = vpop.f32.mrf.mxu0  ;;  %v5628_v52 = vsel %vm596_vm3, %v5627_v2, %v5626_v6  ;;  %v11260_v33 = vld [vmem:[%s13033_s24 + $0x80] sm:$0x1]  ;;  %v5618_v24 = vsel %vm602_vm5, %v5617_v23, %v5616_v43  ;;  %v11265_v42 = vld [vmem:[%s13033_s24 + $0x8a] sm:$0x1]  ;;  %v5637_v40 = vrot.slane %v11261_v37, 7  ;;  %v5639_v6 = vrot.slane %v11262_v16, 6 }
  0xef   : > { %12401 = vmatpush3.msra.mxu0 %v14119_v46  ;;  %12377 = vmatprep.mubr.f32.mxu0 %v13967_v8  ;;  %v14525_v28 = vadd.f32 %v947_v21, %v801_v25  ;;  %17332 = vst [vmem:[#allocation6_spill] sm:$0xff] %v14529_v30  ;;  %v5619_v8 = vrot.slane %v14501_v31, 2  ;;  %v5631_v21 = vrot.slane %v11257_v62, 3  ;;  %v12085_v25 = vpop.f32.mrf.mxu1  ;;  %v14540_v49 = vld [vmem:[%s13033_s24 + $0x6a] sm:$0x1]  ;;  %v5630_v2 = vsel %vm599_vm4, %v5629_v61, %v5628_v52 }
  0xf0   : > { %12395 = vmatmul.mubr.f32.gmra.mxu1 %v14074_v59  ;;  %12428 = vmatprep.subr.mxu0 %v14152_v44  ;;  %v5641_v12 = vrot.slane %v11263_v29, 5  ;;  %v5643_v10 = vrot.slane %v11264_v27, 4  ;;  %v14548_v43 = vsub.f32 %v14491_v39, %v17242_v63  ;;  %v11266_v62 = vld [vmem:[%s13033_s24 + $0x8c] sm:$0x1]  ;;  %v5638_v23 = vsel %vm590_vm1, %v5637_v40, %v11260_v33  ;;  %v11269_v31 = vld [vmem:[%s13033_s24 + $0xa6] sm:$0x1] }
  0xf1   : > { %12397 = vmatprep.mubr.f32.mxu1 %v14106_v9  ;;  %v11270_v61 = vld [vmem:[%s13033_s24 + $0xa8] sm:$0x1]  ;;  %v5633_v16 = vrot.slane %v11258_v17, 2  ;;  %v5640_v37 = vsel %vm593_vm2, %v5639_v6, %v5638_v23  ;;  %v5645_v52 = vrot.slane %v11265_v42, 3  ;;  %v11271_v29 = vld [vmem:[%s13033_s24 + $0xaa] sm:$0x1]  ;;  %v14560_v27 = vsub.f32 %v5707_v51, %v14529_v30 }
  0xf2   : > { %12378 = vmatmul.mubr.f32.gmra.mxu0 %v13996_v58  ;;  %v5621_v58 = vrot.slane %v14518_v5, 1  ;;  %v5620_v63 = vsel %vm605_vm6, %v5619_v8, %v5618_v24  ;;  %v5632_v33 = vsel %vm602_vm5, %v5631_v21, %v5630_v2  ;;  %v5642_v40 = vsel %vm596_vm3, %v5641_v12, %v5640_v37  ;;  %v11272_v18 = vld [vmem:[%s13033_s24 + $0xac] sm:$0x1]  ;;  %v11267_v5 = vld [vmem:[%s13033_s24 + $0x8e] sm:$0x1] }
  0xf3   : > { %12380 = vmatprep.mubr.f32.mxu0 %v14040_v1  ;;  %v11268_v1 = vld [vmem:[%s13033_s24 + $0xa4] sm:$0x1]  ;;  %v5644_v17 = vsel %vm599_vm4, %v5643_v10, %v5642_v40  ;;  %v5647_v42 = vrot.slane %v11266_v62, 2  ;;  %v5651_v6 = vrot.slane %v11269_v31, 7  ;;  %v5653_v51 = vrot.slane %v11270_v61, 6 }
  0xf4   : > { %12398 = vmatmul.mubr.f32.gmra.mxu1 %v14165_v57  ;;  %v12071_v55 = vpop.f32.mrf.mxu0  ;;  %v5635_v12 = vrot.slane %v14540_v49, 1  ;;  %v5646_v8 = vsel %vm602_vm5, %v5645_v52, %v5644_v17  ;;  %v11273_v21 = vld [vmem:[%s13033_s24 + $0xae] sm:$0x1]  ;;  %v5655_v2 = vrot.slane %v11271_v29, 5  ;;  %v5622_v62 = vsel %vm608_vm7, %v5621_v58, %v5620_v63  ;;  %v11274_v23 = vld [vmem:[%s13033_s24 + $0xb0] sm:$0x1] }
  0xf5   : > { %12416 = vmatprep.mubr.f32.mxu1 %v14220_v0  ;;  %v959_v0 = vpop.f32.mrf.mxu1  ;;  %v14571_v24 = vadd.f32 %v12085_v25, %v12071_v55  ;;  %v11275_v55 = vld [vmem:[%s13033_s24 + $0xb2] sm:$0x1]  ;;  %v5652_v49 = vsel %vm590_vm1, %v5651_v6, %v11268_v1  ;;  %v5657_v25 = vrot.slane %v11272_v18, 4  ;;  %v5649_v61 = vrot.slane %v11267_v5, 1  ;;  %v11277_v58 = vld [vmem:[%s13033_s24 + $0xca] sm:$0x1] }
  0xf6   : > { %12381 = vmatmul.mubr.f32.gmra.mxu0 %v14074_v59  ;;  %v821_v10 = vpop.f32.mrf.mxu0  ;;  %v5634_v59 = vsel %vm605_vm6, %v5633_v16, %v5632_v33  ;;  %v5654_v63 = vsel %vm593_vm2, %v5653_v51, %v5652_v49  ;;  %v11278_v16 = vld [vmem:[%s13033_s24 + $0xcc] sm:$0x1]  ;;  %v17249_v37 = vand.u32 4294901760, %v14560_v27  ;;  %v5648_v52 = vsel %vm605_vm6, %v5647_v42, %v5646_v8  ;;  %v11280_v33 = vld [vmem:[%s13033_s24 + $0xd0] sm:$0x1] }
  0xf7   : > { %12383 = vmatprep.mubr.f32.mxu0 %v14106_v9  ;;  %v14584_v31 = vadd.f32 %v959_v0, %v821_v10  ;;  %v5656_v18 = vsel %vm596_vm3, %v5655_v2, %v5654_v63  ;;  %v5659_v29 = vrot.slane %v11273_v21, 3  ;;  %v11279_v0 = vld [vmem:[%s13033_s24 + $0xce] sm:$0x1]  ;;  %v12088_v40 = vpop.f32.mrf.mxu1  ;;  %v14599_v1 = vsel %vm708_vm8, %v5622_v62, 0  ;;  %v11276_v6 = vld [vmem:[%s13033_s24 + $0xc8] sm:$0x1] }
  0xf8   : > { %12417 = vmatmul.mubr.f32.vlgmr.msra.gmra.mxu1 %v14245_v13  ;;  %v5636_v5 = vsel %vm608_vm7, %v5635_v12, %v5634_v59  ;;  %v5658_v17 = vsel %vm599_vm4, %v5657_v25, %v5656_v18  ;;  %v5661_v42 = vrot.slane %v11274_v23, 2  ;;  %v11281_v51 = vld [vmem:[%s13033_s24 + $0xd2] sm:$0x1]  ;;  %v17333_v8 = vand.u32 4294901760, %v14312_v41  ;;  %v11282_v2 = vld [vmem:[%s13033_s24 + $0xd4] sm:$0x1] }
  0xf9   : > { %12443 = vmatpush3.msra.mxu1 %v14119_v46  ;;  %12419 = vmatprep.mubr.f32.mxu1 %v14260_v3  ;;  %v5663_v21 = vrot.slane %v11275_v55, 1  ;;  %v5665_v10 = vrot.slane %v11277_v58, 7  ;;  %v5667_v62 = vrot.slane %v11278_v16, 6  ;;  %v5650_v12 = vsel %vm608_vm7, %v5649_v61, %v5648_v52  ;;  %v11285_v25 = vld [vmem:[%s13033_s24 + $0xee] sm:$0x1]  ;;  %v971_v61 = vpop.f32.mrf.mxu1 }
  0xfa   : > { %12470 = vmatprep.subr.mxu1 %v14119_v46  ;;  %12384 = vmatmul.mubr.f32.gmra.mxu0 %v14165_v57  ;;  %v5660_v57 = vsel %vm602_vm5, %v5659_v29, %v5658_v17  ;;  %v5669_v23 = vrot.slane %v11279_v0, 5  ;;  %v5671_v49 = vrot.slane %v11280_v33, 4  ;;  %v14614_v41 = vand.u32 4294901760, %v14599_v1  ;;  %v11283_v63 = vld [vmem:[%s13033_s24 + $0xd6] sm:$0x1] }
  0xfb   : > { %12402 = vmatprep.mubr.f32.mxu0 %v17333_v8  ;;  %v5662_v59 = vsel %vm605_vm6, %v5661_v42, %v5660_v57  ;;  %v5666_v18 = vsel %vm590_vm1, %v5665_v10, %v11276_v6  ;;  %v5673_v29 = vrot.slane %v11281_v51, 3  ;;  %v11286_v55 = vld [vmem:[%s13033_s24 + $0xf0] sm:$0x1]  ;;  %v17334_v58 = vand.u32 4294901760, %v14352_v48  ;;  %v11284_v33 = vld [vmem:[%s13033_s24 + $0xec] sm:$0x1] }
  0xfc   : > { %12420 = vmatmul.mubr.f32.gmra.mxu1 %v14343_v35  ;;  %v14623_v16 = vsel %vm708_vm8, %v5636_v5, 0  ;;  %v5668_v52 = vsel %vm593_vm2, %v5667_v62, %v5666_v18  ;;  %v5675_v0 = vrot.slane %v11282_v2, 2  ;;  %v11287_v17 = vld [vmem:[%s13033_s24 + $0xf2] sm:$0x1]  ;;  %v17335_v42 = vand.u32 4294901760, %v14370_v22 }
  0xfd   : > { %12422 = vmatprep.mubr.f32.mxu1 %v14360_v11  ;;  %v5713_v6 = vsel %vm708_vm8, %v5650_v12, 0  ;;  %v5664_v51 = vsel %vm608_vm7, %v5663_v21, %v5662_v59  ;;  %v5670_v5 = vsel %vm596_vm3, %v5669_v23, %v5668_v52  ;;  %v5679_v8 = vrot.slane %v11285_v25, 7  ;;  %v11288_v2 = vld [vmem:[%s13033_s24 + $0xf4] sm:$0x1]  ;;  %v11289_v59 = vld [vmem:[%s13033_s24 + $0xf6] sm:$0x1] }
  0xfe   : > { %12403 = vmatmul.mubr.f32.vlgmr.msra.gmra.mxu0 %v17334_v58  ;;  %v5677_v22 = vrot.slane %v11283_v63, 1  ;;  %v5681_v10 = vrot.slane %v11286_v55, 6  ;;  %v14641_v12 = vand.u32 4294901760, %v14623_v16  ;;  %v5683_v25 = vrot.slane %v11287_v17, 5  ;;  %v11293_v52 = vld [vmem:[%s13033_s24 + $0x112] sm:$0x1] }
  0xff   : > { %12429 = vmatpush3.msra.mxu0 %v14152_v44  ;;  %12405 = vmatprep.mubr.f32.mxu0 %v17335_v42  ;;  %v12074_v48 = vpop.f32.mrf.mxu0  ;;  %v5672_v44 = vsel %vm599_vm4, %v5671_v49, %v5670_v5  ;;  %v5680_v23 = vsel %vm590_vm1, %v5679_v8, %v11284_v33  ;;  %v17336_v18 = vand.u32 4294901760, %v14445_v26  ;;  %v5715_v55 = vsel %vm708_vm8, %v5664_v51, 0  ;;  %v11294_v33 = vld [vmem:[%s13033_s24 + $0x114] sm:$0x1]  ;;  %v14666_v42 = vld [vmem:[%s13033_s24 + $0xfa] sm:$0x1] }
 0x100   : > { %12423 = vmatmul.mubr.f32.gmra.mxu1 %v14374_v54  ;;  %v14634_v57 = vadd.f32 %v12088_v40, %v12074_v48  ;;  %12456 = vmatprep.subr.mxu0 %v14180_v20  ;;  %v5674_v21 = vsel %vm602_vm5, %v5673_v29, %v5672_v44  ;;  %v11290_v40 = vld [vmem:[%s13033_s24 + $0xf8] sm:$0x1]  ;;  %v5682_v58 = vsel %vm593_vm2, %v5681_v10, %v5680_v23  ;;  %v17337_v26 = vand.u32 4294901760, %v14467_v45  ;;  %v11295_v51 = vld [vmem:[%s13033_s24 + $0x116] sm:$0x1] }
 0x101   : > { %12425 = vmatprep.mubr.f32.mxu1 %v14400_v7  ;;  %v841_v62 = vpop.f32.mrf.mxu0  ;;  %v14651_v63 = vpop.f32.mrf.mxu1  ;;  %v5676_v29 = vsel %vm605_vm6, %v5675_v0, %v5674_v21  ;;  %v14663_v17 = vand.u32 4294901760, %v5713_v6  ;;  %v5684_v48 = vsel %vm596_vm3, %v5683_v25, %v5682_v58  ;;  %v5685_v0 = vrot.slane %v11288_v2, 4  ;;  %v11296_v5 = vld [vmem:[%s13033_s24 + $0x118] sm:$0x1]  ;;  %v11292_v21 = vld [vmem:[%s13033_s24 + $0x110] sm:$0x1] }
 0x102   : > { %12406 = vmatmul.mubr.f32.gmra.mxu0 %v17336_v18  ;;  %v14649_v49 = vadd.f32 %v971_v61, %v841_v62  ;;  %v17338_v61 = vand.u32 4294901760, %v14243_v19  ;;  %v14676_v45 = vsub.f32 %v14560_v27, %v17249_v37  ;;  %v14680_v44 = vsub.f32 %v14599_v1, %v14614_v41  ;;  %v11297_v23 = vld [vmem:[%s13033_s24 + $0x11a] sm:$0x1]  ;;  %v11298_v58 = vld [vmem:[%s13033_s24 + $0x11c] sm:$0x1] }
 0x103   : > { %12408 = vmatprep.mubr.f32.mxu0 %v17337_v26  ;;  %v14671_v8 = vpop.f32.mrf.mxu1  ;;  %v5678_v10 = vsel %vm608_vm7, %v5677_v22, %v5676_v29  ;;  %v5687_v62 = vrot.slane %v11289_v59, 3  ;;  %v14685_v25 = vand.u32 4294901760, %v5715_v55  ;;  %v5686_v2 = vsel %vm599_vm4, %v5685_v0, %v5684_v48  ;;  %v11299_v0 = vld [vmem:[%s13033_s24 + $0x11e] sm:$0x1] }
 0x104   : > { %12426 = vmatmul.mubr.f32.gmra.mxu1 %v14451_v53  ;;  %17339 = vst [vmem:[#allocation7_spill] sm:$0xff] %v14680_v44  ;;  %v5689_v18 = vrot.slane %v11290_v40, 2  ;;  %v5693_v26 = vrot.slane %v11293_v52, 7  ;;  %v17341_v1 = vand.u32 4294901760, %v14281_v15  ;;  %v5695_v59 = vrot.slane %v11294_v33, 6 }
 0x105   : > { %12444 = vmatprep.mubr.f32.mxu1 %v17338_v61  ;;  %v17340_v61 = vand.u32 4294901760, %v14472_v56  ;;  %v14691_v37 = vpop.f32.mrf.mxu1  ;;  %v5688_v22 = vsel %vm602_vm5, %v5687_v62, %v5686_v2  ;;  %v5697_v29 = vrot.slane %v11295_v51, 5  ;;  %v5699_v9 = vrot.slane %v11296_v5, 4  ;;  %v11301_v51 = vld [vmem:[%s13033_s24 + $0x26] sm:$0x1] }
 0x106   : > { %v17342_v48 = vand.u32 4294901760, %v14488_v34  ;;  %v14701_v40 = vsub.f32 %v14623_v16, %v14641_v12  ;;  %v14704_v56 = vsub.f32 %v5713_v6, %v14663_v17  ;;  %v5717_v52 = vsel %vm708_vm8, %v5678_v10, 0 }
 0x107   : > { %12409 = vmatmul.mubr.f32.gmra.mxu0 %v17340_v61  ;;  %v5694_v33 = vsel %vm590_vm1, %v5693_v26, %v11292_v21  ;;  %v14710_v5 = vpop.f32.mrf.mxu1  ;;  %v17345_v34 = vand.u32 4294901760, %v14292_v47  ;;  %v5701_v6 = vrot.slane %v11297_v23, 3  ;;  %v5703_v62 = vrot.slane %v11298_v58, 2  ;;  %v11300_v61 = vld [vmem:[%s13033_s24 + $0x24] sm:$0x1] }
 0x108   : > { %12445 = vmatmul.mubr.f32.vlgmr.msra.gmra.mxu1 %v17341_v1  ;;  %12411 = vmatprep.mubr.f32.mxu0 %v17342_v48  ;;  %17343 = vst [vmem:[#allocation8_spill] sm:$0xff] %v14701_v40  ;;  %17344 = vst [vmem:[#allocation9_spill] sm:$0xff] %v14704_v56  ;;  %v5696_v16 = vsel %vm593_vm2, %v5695_v59, %v5694_v33  ;;  %v14719_v2 = vsub.f32 %v5715_v55, %v14685_v25  ;;  %v11302_v1 = vld [vmem:[%s13033_s24 + $0x28] sm:$0x1]  ;;  %v17348_v23 = vand.u32 4294901760, %v14383_v32 }
 0x109   : > { %12471 = vmatpush3.msra.mxu1 %v14119_v46  ;;  %12447 = vmatprep.mubr.f32.mxu1 %v17345_v34  ;;  %v5691_v46 = vrot.slane %v14666_v42, 1  ;;  %v5690_v21 = vsel %vm605_vm6, %v5689_v18, %v5688_v22  ;;  %v5698_v26 = vsel %vm596_vm3, %v5697_v29, %v5696_v16  ;;  %v12077_v48 = vpop.f32.mrf.mxu0  ;;  %v17347_v34 = vand.u32 4294901760, %v14548_v43  ;;  %v14727_v42 = vpop.f32.mrf.mxu1 }
 0x10a   : > { %12498 = vmatprep.subr.mxu1 %v14527_v60  ;;  %17346 = vst [vmem:[#allocation10_spill] sm:$0xff] %v14719_v2  ;;  %v14731_v58 = vand.u32 4294901760, %v5717_v52  ;;  %v5700_v55 = vsel %vm599_vm4, %v5699_v9, %v5698_v26  ;;  %v5705_v18 = vrot.slane %v11299_v0, 1  ;;  %v6611_v22 = vrot.slane %v11301_v51, 7  ;;  %v11304_v0 = vld [vmem:[%s13033_s24 + $0x2c] sm:$0x1] }
 0x10b   : > { %12412 = vmatmul.mubr.f32.gmra.mxu0 %v17347_v34  ;;  %v14735_v59 = vadd.f32 %v14651_v63, %v12077_v48  ;;  %v17349_v43 = vand.u32 4294901760, %v14392_v36  ;;  %v17250_v29 = vand.u32 4294901760, %v14701_v40  ;;  %v5702_v16 = vsel %vm602_vm5, %v5701_v6, %v5700_v55  ;;  %v11303_v34 = vld [vmem:[%s13033_s24 + $0x2a] sm:$0x1]  ;;  %v14744_v10 = vpop.f32.mrf.mxu1 }
 0x10c   : > { %12448 = vmatmul.mubr.f32.gmra.mxu1 %v17348_v23  ;;  %12430 = vmatprep.mubr.f32.mxu0 %v14243_v19  ;;  %v861_v23 = vpop.f32.mrf.mxu0  ;;  %v5692_v9 = vsel %vm608_vm7, %v5691_v46, %v5690_v21  ;;  %v5704_v63 = vsel %vm605_vm6, %v5703_v62, %v5702_v16  ;;  %v6546_v19 = vld [vmem:[%s17210_s1 + $0x18] sm:$0xf]  ;;  %v6612_v51 = vsel %vm590_vm1, %v6611_v22, %v11300_v61  ;;  %v6613_v26 = vrot.slane %v11302_v1, 6  ;;  %v11305_v1 = vld [vmem:[%s13033_s24 + $0x2e] sm:$0x1] }
 0x10d   : > { %12450 = vmatprep.mubr.f32.mxu1 %v17349_v43  ;;  %v14754_v48 = vadd.f32 %v14671_v8, %v861_v23  ;;  %v17350_v6 = vand.u32 4294901760, %v14680_v44  ;;  %v14763_v21 = vpop.f32.mrf.mxu1  ;;  %v17351_v43 = vand.u32 4294901760, %v14408_v50  ;;  %v14768_v61 = vsub.f32 %v5717_v52, %v14731_v58  ;;  %v11309_v52 = vld [vmem:[%s13033_s24 + $0x4a] sm:$0x1] }
 0x10e   : > { %v12096_v62 = vpop.f32.mrf.mxu0  ;;  %v5706_v8 = vsel %vm608_vm7, %v5705_v18, %v5704_v63  ;;  %v6614_v22 = vsel %vm593_vm2, %v6613_v26, %v6612_v51  ;;  %v6615_v16 = vrot.slane %v11303_v34, 5  ;;  %v17353_v18 = vand.u32 4294901760, %v14424_v4  ;;  %v11306_v51 = vld [vmem:[%s13033_s24 + $0x30] sm:$0x1] }
 0x10f   : > { %v14759_v55 = vsub.f32 %v14680_v44, %v17350_v6  ;;  %12431 = vmatmul.mubr.f32.vlgmr.msra.gmra.mxu0 %v14281_v15  ;;  %17352 = vst [vmem:[#allocation11_spill] sm:$0xff] %v14768_v61  ;;  %v1071_v23 = vadd.f32 %v12096_v62, %v14507_v14  ;;  %v5719_v15 = vsel %vm708_vm8, %v5692_v9, 0  ;;  %v6740_v6 = vsel %vm725_vm0, %v6546_v19, 0  ;;  %v14779_v33 = vpop.f32.mrf.mxu1  ;;  %v11307_v14 = vld [vmem:[%s13033_s24 + $0x32] sm:$0x1] }
 0x110   : > { %12451 = vmatmul.mubr.f32.gmra.mxu1 %v17351_v43  ;;  %12457 = vmatpush3.msra.mxu0 %v14180_v20  ;;  %v6617_v43 = vrot.slane %v11304_v0, 4  ;;  %v1063_v46 = vpop.f32.mrf.mxu0  ;;  %v14788_v20 = vsub.f32 %v14701_v40, %v17250_v29  ;;  %v6616_v9 = vsel %vm596_vm3, %v6615_v16, %v6614_v22  ;;  %v5721_v0 = vsel %vm708_vm8, %v5706_v8, 0  ;;  %v11325_v44 = vld [vmem:[%s13033_s24 + $0x92] sm:$0x1] }
 0x111   : > { %12433 = vmatprep.mubr.f32.mxu0 %v14292_v47  ;;  %12453 = vmatprep.mubr.f32.mxu1 %v17353_v18  ;;  %v17354_v47 = vand.u32 4294901760, %v14704_v56  ;;  %v14797_v63 = vadd.f32 %v14691_v37, %v1071_v23  ;;  %v1064_v19 = vadd.f32 %v1063_v46, %v14525_v28  ;;  %v6619_v26 = vrot.slane %v11305_v1, 3  ;;  %v14803_v18 = vpop.f32.mrf.mxu1  ;;  %v11310_v28 = vld [vmem:[%s13033_s24 + $0x4c] sm:$0x1] }
 0x112   : > { %12484 = vmatprep.subr.mxu0 %v14411_v38  ;;  %v12099_v62 = vpop.f32.mrf.mxu0  ;;  %v14807_v29 = vand.u32 4294901760, %v5719_v15  ;;  %v14809_v22 = vand.u32 4294901760, %v6740_v6  ;;  %v6618_v37 = vsel %vm599_vm4, %v6617_v43, %v6616_v9  ;;  %v6625_v46 = vrot.slane %v11309_v52, 7  ;;  %v11308_v9 = vld [vmem:[%s13033_s24 + $0x48] sm:$0x1] }
 0x113   : > { %v14793_v34 = vsub.f32 %v14704_v56, %v17354_v47  ;;  %12434 = vmatmul.mubr.f32.gmra.mxu0 %v14383_v32  ;;  %v17355_v47 = vand.u32 4294901760, %v14491_v39  ;;  %v14814_v8 = vadd.f32 %v14710_v5, %v1064_v19  ;;  %v1085_v1 = vadd.f32 %v12099_v62, %v14571_v24  ;;  %v17357_v32 = vld [vmem:[#allocation3_spill] sm:$0xff]  ;;  %v11316_v5 = vld [vmem:[%s13033_s24 + $0x6c] sm:$0x1] }
 0x114   : > { %17356 = vst [vmem:[#allocation12_spill] sm:$0xff] %v14809_v22  ;;  %12436 = vmatprep.mubr.f32.mxu0 %v14392_v36  ;;  %v17358_v16 = vand.u32 4294901760, %v14719_v2  ;;  %v1077_v52 = vpop.f32.mrf.mxu0  ;;  %v14830_v19 = vand.u32 4294901760, %v5721_v0  ;;  %v6621_v36 = vrot.slane %v11306_v51, 2  ;;  %v6620_v43 = vsel %vm602_vm5, %v6619_v26, %v6618_v37  ;;  %v11317_v37 = vld [vmem:[%s13033_s24 + $0x6e] sm:$0x1] }
 0x115   : > { %12454 = vmatmul.mubr.f32.gmra.mxu1 %v17355_v47  ;;  %v14826_v47 = vpop.f32.mrf.mxu1  ;;  %v14833_v62 = vadd.f32 %v14727_v42, %v1085_v1  ;;  %v6627_v56 = vrot.slane %v11310_v28, 6  ;;  %v14845_v42 = vsub.f32 %v5719_v15, %v14807_v29  ;;  %v6626_v26 = vsel %vm590_vm1, %v6625_v46, %v11308_v9  ;;  %v11318_v46 = vld [vmem:[%s13033_s24 + $0x70] sm:$0x1]  ;;  %v11319_v9 = vld [vmem:[%s13033_s24 + $0x72] sm:$0x1] }
 0x116   : > { %12472 = vmatprep.mubr.f32.mxu1 %v17357_v32  ;;  %v14822_v23 = vsub.f32 %v14719_v2, %v17358_v16  ;;  %v1078_v16 = vadd.f32 %v1077_v52, %v14584_v31  ;;  %v11311_v2 = vld [vmem:[%s13033_s24 + $0x4e] sm:$0x1]  ;;  %v12102_v40 = vpop.f32.mrf.mxu0  ;;  %v14848_v31 = vsub.f32 %v6740_v6, %v14809_v22  ;;  %v17360_v15 = vand.u32 4294901760, %v14768_v61 }
 0x117   : > { %12437 = vmatmul.mubr.f32.gmra.mxu0 %v14408_v50  ;;  %v14840_v24 = vpop.f32.mrf.mxu1  ;;  %v1099_v50 = vadd.f32 %v12102_v40, %v14634_v57  ;;  %v6623_v57 = vrot.slane %v11307_v14, 1  ;;  %v11312_v40 = vld [vmem:[%s13033_s24 + $0x50] sm:$0x1]  ;;  %v6628_v1 = vsel %vm593_vm2, %v6627_v56, %v6626_v26  ;;  %v6639_v22 = vrot.slane %v11317_v37, 7  ;;  %v11313_v26 = vld [vmem:[%s13033_s24 + $0x52] sm:$0x1] }
 0x118   : > { %17359 = vst [vmem:[#allocation3_spill] sm:$0xff] %v14848_v31  ;;  %v14853_v28 = vadd.f32 %v14744_v10, %v1078_v16  ;;  %12439 = vmatprep.mubr.f32.mxu0 %v14424_v4  ;;  %v14862_v6 = vsub.f32 %v14768_v61, %v17360_v15  ;;  %v1091_v52 = vpop.f32.mrf.mxu0  ;;  %v14871_v4 = vsub.f32 %v5721_v0, %v14830_v19  ;;  %v6629_v10 = vrot.slane %v11311_v2, 5 }
 0x119   : > { %12473 = vmatmul.mubr.f32.vlgmr.msra.gmra.mxu1 %v14245_v13  ;;  %v14866_v51 = vpop.f32.mrf.mxu1  ;;  %v14876_v16 = vadd.f32 %v14763_v21, %v1099_v50  ;;  %v1092_v15 = vadd.f32 %v1091_v52, %v14649_v49  ;;  %v14887_v2 = vand.u32 4294901760, %v14848_v31  ;;  %v11320_v21 = vld [vmem:[%s13033_s24 + $0x74] sm:$0x1]  ;;  %v6641_v49 = vrot.slane %v11318_v46, 6 }
 0x11a   : > { %12499 = vmatpush3.msra.mxu1 %v14527_v60  ;;  %12475 = vmatprep.mubr.f32.mxu1 %v14260_v3  ;;  %v6622_v60 = vsel %vm605_vm6, %v6621_v36, %v6620_v43  ;;  %v12105_v61 = vpop.f32.mrf.mxu0  ;;  %v6643_v43 = vrot.slane %v11319_v9, 5  ;;  %v6631_v37 = vrot.slane %v11312_v40, 4  ;;  %v14903_v9 = vld [vmem:[%s13033_s24 + $0x54] sm:$0x1]  ;;  %v11321_v40 = vld [vmem:[%s13033_s24 + $0x76] sm:$0x1] }
 0x11b   : > { %12526 = vmatprep.subr.mxu1 %v14411_v38  ;;  %12440 = vmatmul.mubr.f32.gmra.mxu0 %v14491_v39  ;;  %v14882_v0 = vpop.f32.mrf.mxu1  ;;  %17361 = vst [vmem:[#allocation13_spill] sm:$0xff] %v14887_v2  ;;  %v14891_v56 = vadd.f32 %v14779_v33, %v1092_v15  ;;  %v1113_v36 = vadd.f32 %v12105_v61, %v14735_v59  ;;  %v6645_v14 = vrot.slane %v11320_v21, 4 }
 0x11c   : > { %12458 = vmatprep.mubr.f32.mxu0 %v17357_v32  ;;  %v1105_v50 = vpop.f32.mrf.mxu0  ;;  %v6624_v33 = vsel %vm608_vm7, %v6623_v57, %v6622_v60  ;;  %v6630_v59 = vsel %vm596_vm3, %v6629_v10, %v6628_v1  ;;  %v6640_v61 = vsel %vm590_vm1, %v6639_v22, %v11316_v5  ;;  %v17362_v22 = vand.u32 4294901760, %v14845_v42  ;;  %v11326_v57 = vld [vmem:[%s13033_s24 + $0x94] sm:$0x1] }
 0x11d   : > { %12476 = vmatmul.mubr.f32.gmra.mxu1 %v14343_v35  ;;  %v14898_v52 = vpop.f32.mrf.mxu1  ;;  %v14908_v32 = vadd.f32 %v14803_v18, %v1113_v36  ;;  %v1106_v15 = vadd.f32 %v1105_v50, %v14754_v48  ;;  %v6642_v39 = vsel %vm593_vm2, %v6641_v49, %v6640_v61  ;;  %v6922_v48 = vsub.f32 %v14848_v31, %v14887_v2  ;;  %v11324_v36 = vld [vmem:[%s13033_s24 + $0x90] sm:$0x1] }
 0x11e   : > { %12478 = vmatprep.mubr.f32.mxu1 %v14360_v11  ;;  %v12124_v46 = vpop.f32.mrf.mxu0  ;;  %v14921_v18 = vsub.f32 %v14845_v42, %v17362_v22  ;;  %v6633_v5 = vrot.slane %v11313_v26, 3  ;;  %v6644_v1 = vsel %vm596_vm3, %v6643_v43, %v6642_v39  ;;  %v6723_v21 = vsel %vm708_vm8, %v6624_v33, 0  ;;  %v11327_v26 = vld [vmem:[%s13033_s24 + $0x96] sm:$0x1] }
 0x11f   : > { %12459 = vmatmul.mubr.f32.vlgmr.msra.gmra.mxu0 %v14245_v13  ;;  %v14915_v60 = vpop.f32.mrf.mxu1  ;;  %v14928_v10 = vadd.f32 %v14826_v47, %v1106_v15  ;;  %v1323_v13 = vadd.f32 %v12124_v46, %v14797_v63  ;;  %v6632_v49 = vsel %vm599_vm4, %v6631_v37, %v6630_v59  ;;  %v17363_v47 = vld [vmem:[#allocation4_spill] sm:$0xff]  ;;  %v17364_v63 = vand.u32 4294901760, %v14871_v4  ;;  %v11322_v46 = vld [vmem:[%s13033_s24 + $0x78] sm:$0x1]  ;;  %v11315_v15 = vld [vmem:[%s13033_s24 + $0x56] sm:$0x1] }
 0x120   : > { %12485 = vmatpush3.msra.mxu0 %v14411_v38  ;;  %12461 = vmatprep.mubr.f32.mxu0 %v14260_v3  ;;  %v1316_v50 = vpop.f32.mrf.mxu0  ;;  %v6635_v3 = vrot.slane %v14903_v9, 2  ;;  %v6647_v33 = vrot.slane %v11321_v40, 3  ;;  %v6653_v37 = vrot.slane %v11325_v44, 7  ;;  %v6646_v22 = vsel %vm599_vm4, %v6645_v14, %v6644_v1 }
 0x121   : > { %12479 = vmatmul.mubr.f32.gmra.mxu1 %v14374_v54  ;;  %v14937_v43 = vpop.f32.mrf.mxu1  ;;  %12512 = vmatprep.subr.mxu0 %v17363_v47  ;;  %v14944_v39 = vsub.f32 %v14871_v4, %v17364_v63  ;;  %v14949_v59 = vadd.f32 %v14840_v24, %v1323_v13  ;;  %v1317_v61 = vadd.f32 %v1316_v50, %v14814_v8  ;;  %v6655_v2 = vrot.slane %v11326_v57, 6  ;;  %v11328_v24 = vld [vmem:[%s13033_s24 + $0x98] sm:$0x1]  ;;  %v14971_v13 = vld [vmem:[%s13033_s24 + $0x9a] sm:$0x1] }
 0x122   : > { %12481 = vmatprep.mubr.f32.mxu1 %v14400_v7  ;;  %v12127_v31 = vpop.f32.mrf.mxu0  ;;  %v14958_v9 = vand.u32 4294901760, %v6723_v21  ;;  %v6634_v44 = vsel %vm602_vm5, %v6633_v5, %v6632_v49  ;;  %v6654_v8 = vsel %vm590_vm1, %v6653_v37, %v11324_v36  ;;  %v6657_v40 = vrot.slane %v11327_v26, 5 }
 0x123   : > { %12462 = vmatmul.mubr.f32.gmra.mxu0 %v14343_v35  ;;  %v14955_v63 = vpop.f32.mrf.mxu1  ;;  %v14964_v14 = vadd.f32 %v14866_v51, %v1317_v61  ;;  %v1335_v1 = vadd.f32 %v12127_v31, %v14833_v62  ;;  %v11323_v35 = vld [vmem:[%s13033_s24 + $0x7a] sm:$0x1]  ;;  %v6649_v57 = vrot.slane %v11322_v46, 2  ;;  %v6656_v5 = vsel %vm593_vm2, %v6655_v2, %v6654_v8  ;;  %v11333_v31 = vld [vmem:[%s13033_s24 + $0xb6] sm:$0x1] }
 0x124   : > { %12464 = vmatprep.mubr.f32.mxu0 %v14360_v11  ;;  %v1328_v49 = vpop.f32.mrf.mxu0  ;;  %v5856_v51 = vand.u32 4294901760, %v14921_v18  ;;  %v14977_v26 = vand.u32 4294901760, %v6922_v48  ;;  %v6637_v62 = vrot.slane %v11315_v15, 1  ;;  %v6648_v11 = vsel %vm602_vm5, %v6647_v33, %v6646_v22  ;;  %v11334_v61 = vld [vmem:[%s13033_s24 + $0xb8] sm:$0x1] }
 0x125   : > { %12482 = vmatmul.mubr.f32.gmra.mxu1 %v14451_v53  ;;  %v14974_v36 = vpop.f32.mrf.mxu1  ;;  %v14982_v50 = vadd.f32 %v14882_v0, %v1335_v1  ;;  %v1329_v46 = vadd.f32 %v1328_v49, %v14853_v28  ;;  %v6636_v37 = vsel %vm605_vm6, %v6635_v3, %v6634_v44  ;;  %v6659_v2 = vrot.slane %v11328_v24, 4  ;;  %v11335_v8 = vld [vmem:[%s13033_s24 + $0xba] sm:$0x1]  ;;  %v11332_v15 = vld [vmem:[%s13033_s24 + $0xb4] sm:$0x1] }
 0x126   : > { %12500 = vmatprep.mubr.f32.mxu1 %v14529_v30  ;;  %v12130_v30 = vpop.f32.mrf.mxu0  ;;  %v14994_v0 = vsub.f32 %v6723_v21, %v14958_v9  ;;  %v6651_v28 = vrot.slane %v11323_v35, 1  ;;  %v6658_v3 = vsel %vm596_vm3, %v6657_v40, %v6656_v5  ;;  %v11336_v24 = vld [vmem:[%s13033_s24 + $0xbc] sm:$0x1]  ;;  %v6667_v21 = vrot.slane %v11333_v31, 7 }
 0x127   : > { %12465 = vmatmul.mubr.f32.gmra.mxu0 %v14374_v54  ;;  %v14989_v48 = vpop.f32.mrf.mxu1  ;;  %v14999_v22 = vadd.f32 %v14898_v52, %v1329_v46  ;;  %v1347_v44 = vadd.f32 %v12130_v30, %v14876_v16  ;;  %v6650_v54 = vsel %vm605_vm6, %v6649_v57, %v6648_v11  ;;  %v6638_v52 = vsel %vm608_vm7, %v6637_v62, %v6636_v37  ;;  %v11330_v30 = vld [vmem:[%s13033_s24 + $0x9c] sm:$0x1]  ;;  %v11337_v11 = vld [vmem:[%s13033_s24 + $0xbe] sm:$0x1] }
 0x128   : > { %12467 = vmatprep.mubr.f32.mxu0 %v14400_v7  ;;  %v1340_v1 = vpop.f32.mrf.mxu0  ;;  %v6661_v7 = vrot.slane %v14971_v13, 3  ;;  %v6669_v16 = vrot.slane %v11334_v61, 6  ;;  %v6671_v40 = vrot.slane %v11335_v8, 5  ;;  %v6660_v5 = vsel %vm599_vm4, %v6659_v2, %v6658_v3  ;;  %v15027_v37 = vld [vmem:[%s13033_s24 + $0x9e] sm:$0x1] }
 0x129   : > { %12501 = vmatmul.mubr.f32.vlgmr.msra.gmra.mxu1 %v14614_v41  ;;  %v15006_v49 = vpop.f32.mrf.mxu1  ;;  %v15014_v35 = vadd.f32 %v14915_v60, %v1347_v44  ;;  %v1341_v57 = vadd.f32 %v1340_v1, %v14891_v56  ;;  %v6668_v31 = vsel %vm590_vm1, %v6667_v21, %v11332_v15  ;;  %v17269_v13 = vand.u32 4294901760, %v14994_v0  ;;  %v11338_v56 = vld [vmem:[%s13033_s24 + $0xc0] sm:$0x1]  ;;  %v11341_v44 = vld [vmem:[%s13033_s24 + $0xda] sm:$0x1] }
 0x12a   : > { %12527 = vmatpush3.msra.mxu1 %v14411_v38  ;;  %12503 = vmatprep.mubr.f32.mxu1 %v14641_v12  ;;  %v12133_v46 = vpop.f32.mrf.mxu0  ;;  %v6652_v60 = vsel %vm608_vm7, %v6651_v28, %v6650_v54  ;;  %v6670_v2 = vsel %vm593_vm2, %v6669_v16, %v6668_v31  ;;  %v6673_v61 = vrot.slane %v11336_v24, 4  ;;  %v17365_v3 = vand.u32 4294901760, %v14676_v45  ;;  %v11342_v54 = vld [vmem:[%s13033_s24 + $0xdc] sm:$0x1]  ;;  %v11339_v1 = vld [vmem:[%s13033_s24 + $0xc2] sm:$0x1] }
 0x12b   : > { %12554 = vmatprep.subr.mxu1 %v14411_v38  ;;  %12468 = vmatmul.mubr.f32.gmra.mxu0 %v14451_v53  ;;  %v15021_v62 = vpop.f32.mrf.mxu1  ;;  %v15032_v8 = vadd.f32 %v14937_v43, %v1341_v57  ;;  %v1359_v53 = vadd.f32 %v12133_v46, %v14908_v32  ;;  %v6663_v15 = vrot.slane %v11330_v30, 2  ;;  %v6672_v28 = vsel %vm596_vm3, %v6671_v40, %v6670_v2  ;;  %v11343_v30 = vld [vmem:[%s13033_s24 + $0xde] sm:$0x1]  ;;  %v11340_v2 = vld [vmem:[%s13033_s24 + $0xd8] sm:$0x1] }
 0x12c   : > { %12486 = vmatprep.mubr.f32.mxu0 %v17365_v3  ;;  %v1352_v21 = vpop.f32.mrf.mxu0  ;;  %v15044_v43 = vsel %vm708_vm8, %v6638_v52, 0  ;;  %v6662_v32 = vsel %vm602_vm5, %v6661_v7, %v6660_v5  ;;  %v6674_v45 = vsel %vm599_vm4, %v6673_v61, %v6672_v28  ;;  %v6675_v16 = vrot.slane %v11337_v11, 3  ;;  %v11344_v52 = vld [vmem:[%s13033_s24 + $0xe0] sm:$0x1] }
 0x12d   : > { %12504 = vmatmul.mubr.f32.gmra.mxu1 %v14663_v17  ;;  %v15041_v24 = vpop.f32.mrf.mxu1  ;;  %v15051_v57 = vadd.f32 %v14955_v63, %v1359_v53  ;;  %v1353_v40 = vadd.f32 %v1352_v21, %v14928_v10  ;;  %v15055_v31 = vsel %vm708_vm8, %v6652_v60, 0  ;;  %v6677_v46 = vrot.slane %v11338_v56, 2  ;;  %v11345_v10 = vld [vmem:[%s13033_s24 + $0xe2] sm:$0x1] }
 0x12e   : > { %12506 = vmatprep.mubr.f32.mxu1 %v14685_v25  ;;  %v12152_v3 = vpop.f32.mrf.mxu0  ;;  %v17366_v7 = vand.u32 4294901760, %v14759_v55  ;;  %v6665_v11 = vrot.slane %v15027_v37, 1  ;;  %v6676_v63 = vsel %vm602_vm5, %v6675_v16, %v6674_v45  ;;  %v6681_v61 = vrot.slane %v11341_v44, 7  ;;  %v17368_v44 = vld [vmem:[#allocation5_spill] sm:$0xff] }
 0x12f   : > { %v15061_v5 = vpop.f32.mrf.mxu1  ;;  %v6683_v60 = vrot.slane %v11342_v54, 6  ;;  %v15068_v56 = vadd.f32 %v14974_v36, %v1353_v40  ;;  %v1754_v53 = vadd.f32 %v12152_v3, %v14949_v59  ;;  %v17367_v55 = vand.u32 4294901760, %v14788_v20  ;;  %v11346_v20 = vld [vmem:[%s13033_s24 + $0xe4] sm:$0x1]  ;;  %v11349_v40 = vld [vmem:[%s13033_s24 + $0xfe] sm:$0x1] }
 0x130   : > { %12487 = vmatmul.mubr.f32.vlgmr.msra.gmra.mxu0 %v17366_v7  ;;  %v6664_v28 = vsel %vm605_vm6, %v6663_v15, %v6662_v32  ;;  %v6685_v37 = vrot.slane %v11343_v30, 5  ;;  %v1743_v21 = vpop.f32.mrf.mxu0  ;;  %v15082_v59 = vsub.f32 %v14994_v0, %v17269_v13  ;;  %v6682_v36 = vsel %vm590_vm1, %v6681_v61, %v11340_v2  ;;  %v11350_v3 = vld [vmem:[%s13033_s24 + $0x100] sm:$0x1]  ;;  %v11347_v2 = vld [vmem:[%s13033_s24 + $0xe6] sm:$0x1] }
 0x131   : > { %12507 = vmatmul.mubr.f32.gmra.mxu1 %v14731_v58  ;;  %12513 = vmatpush3.msra.mxu0 %v17363_v47  ;;  %v15075_v45 = vpop.f32.mrf.mxu1  ;;  %v6679_v47 = vrot.slane %v11339_v1, 1  ;;  %v6687_v15 = vrot.slane %v11344_v52, 4  ;;  %v15087_v54 = vadd.f32 %v14989_v48, %v1754_v53  ;;  %v1744_v32 = vadd.f32 %v1743_v21, %v14964_v14 }
 0x132   : > { %12489 = vmatprep.mubr.f32.mxu0 %v17367_v55  ;;  %12509 = vmatprep.mubr.f32.mxu1 %v14807_v29  ;;  %v6678_v16 = vsel %vm605_vm6, %v6677_v46, %v6676_v63  ;;  %v6689_v30 = vrot.slane %v11345_v10, 3  ;;  %v12155_v7 = vpop.f32.mrf.mxu0  ;;  %v17369_v55 = vand.u32 4294901760, %v14793_v34  ;;  %v15099_v48 = vand.u32 4294901760, %v15044_v43  ;;  %v11351_v63 = vld [vmem:[%s13033_s24 + $0x102] sm:$0x1] }
 0x133   : > { %12540 = vmatprep.subr.mxu0 %v17368_v44  ;;  %v15095_v1 = vpop.f32.mrf.mxu1  ;;  %v15102_v14 = vand.u32 4294901760, %v15055_v31  ;;  %v6666_v46 = vsel %vm608_vm7, %v6665_v11, %v6664_v28  ;;  %v6684_v52 = vsel %vm593_vm2, %v6683_v60, %v6682_v36  ;;  %v15109_v34 = vadd.f32 %v15006_v49, %v1744_v32  ;;  %v11348_v11 = vld [vmem:[%s13033_s24 + $0xfc] sm:$0x1]  ;;  %v11352_v28 = vld [vmem:[%s13033_s24 + $0x104] sm:$0x1] }
 0x134   : > { %12490 = vmatmul.mubr.f32.gmra.mxu0 %v17369_v55  ;;  %v1774_v10 = vadd.f32 %v12155_v7, %v14982_v50  ;;  %v17370_v61 = vand.u32 4294901760, %v14822_v23  ;;  %v17371_v53 = vand.u32 4294901760, %v14560_v27  ;;  %v6686_v21 = vsel %vm596_vm3, %v6685_v37, %v6684_v52  ;;  %v1763_v13 = vpop.f32.mrf.mxu0 }
 0x135   : > { %12510 = vmatmul.mubr.f32.gmra.mxu1 %v14830_v19  ;;  %v6691_v55 = vrot.slane %v11346_v20, 2  ;;  %v15119_v60 = vpop.f32.mrf.mxu1  ;;  %v6680_v49 = vsel %vm608_vm7, %v6679_v47, %v6678_v16  ;;  %v6688_v50 = vsel %vm599_vm4, %v6687_v15, %v6686_v21  ;;  %v6695_v36 = vrot.slane %v11349_v40, 7  ;;  %v11353_v20 = vld [vmem:[%s13033_s24 + $0x106] sm:$0x1] }
 0x136   : > { %12492 = vmatprep.mubr.f32.mxu0 %v17370_v61  ;;  %12528 = vmatprep.mubr.f32.mxu1 %v17371_v53  ;;  %v6697_v23 = vrot.slane %v11350_v3, 6  ;;  %v15124_v32 = vadd.f32 %v15021_v62, %v1774_v10  ;;  %v1764_v7 = vadd.f32 %v1763_v13, %v14999_v22  ;;  %v6690_v37 = vsel %vm602_vm5, %v6689_v30, %v6688_v50  ;;  %v12158_v61 = vpop.f32.mrf.mxu0  ;;  %v17373_v47 = vld [vmem:[#allocation7_spill] sm:$0xff]  ;;  %v11354_v22 = vld [vmem:[%s13033_s24 + $0x108] sm:$0x1] }
 0x137   : > { %v6699_v52 = vrot.slane %v11351_v63, 5  ;;  %v17372_v53 = vand.u32 4294901760, %v14862_v6  ;;  %v15131_v33 = vpop.f32.mrf.mxu1  ;;  %v17374_v15 = vand.u32 4294901760, %v17373_v47  ;;  %v15137_v62 = vsub.f32 %v15044_v43, %v15099_v48 }
 0x138   : > { %v6693_v16 = vrot.slane %v11347_v2, 1  ;;  %v6696_v13 = vsel %vm590_vm1, %v6695_v36, %v11348_v11  ;;  %v6701_v30 = vrot.slane %v11352_v28, 4  ;;  %v15142_v40 = vadd.f32 %v15041_v24, %v1764_v7  ;;  %v11357_v2 = vld [vmem:[%s13033_s24 + $0x122] sm:$0x1]  ;;  %v1783_v63 = vpop.f32.mrf.mxu0  ;;  %v17375_v24 = vld [vmem:[#allocation8_spill] sm:$0xff] }
 0x139   : > { %12493 = vmatmul.mubr.f32.gmra.mxu0 %v17372_v53  ;;  %12529 = vmatmul.mubr.f32.vlgmr.msra.gmra.mxu1 %v17374_v15  ;;  %v1794_v6 = vadd.f32 %v12158_v61, %v15014_v35  ;;  %v15149_v43 = vsel %vm708_vm8, %v6666_v46, 0  ;;  %v6692_v3 = vsel %vm605_vm6, %v6691_v55, %v6690_v37  ;;  %v15153_v10 = vpop.f32.mrf.mxu1  ;;  %v17376_v21 = vand.u32 4294901760, %v17375_v24  ;;  %v11358_v55 = vld [vmem:[%s13033_s24 + $0x124] sm:$0x1]  ;;  %v11356_v7 = vld [vmem:[%s13033_s24 + $0x120] sm:$0x1] }
 0x13a   : > { %12495 = vmatprep.mubr.f32.mxu0 %v5856_v51  ;;  %12555 = vmatpush3.msra.mxu1 %v14411_v38  ;;  %v15160_v18 = vsub.f32 %v15055_v31, %v15102_v14  ;;  %v6731_v38 = vsel %vm708_vm8, %v6680_v49, 0  ;;  %v11355_v51 = vld [vmem:[%s13033_s24 + $0x10a] sm:$0x1]  ;;  %v6698_v35 = vsel %vm593_vm2, %v6697_v23, %v6696_v13  ;;  %v6703_v46 = vrot.slane %v11353_v20, 3  ;;  %v11359_v31 = vld [vmem:[%s13033_s24 + $0x126] sm:$0x1]  ;;  %v12161_v37 = vpop.f32.mrf.mxu0 }
 0x13b   : > { %12531 = vmatprep.mubr.f32.mxu1 %v17376_v21  ;;  %12582 = vmatprep.subr.mxu1 %v14977_v26  ;;  %v15167_v11 = vadd.f32 %v15061_v5, %v1794_v6  ;;  %v1784_v28 = vadd.f32 %v1783_v63, %v15032_v8  ;;  %v6700_v50 = vsel %vm596_vm3, %v6699_v52, %v6698_v35  ;;  %v6705_v36 = vrot.slane %v11354_v22, 2  ;;  %v15175_v61 = vpop.f32.mrf.mxu1  ;;  %v17378_v23 = vld [vmem:[#allocation9_spill] sm:$0xff]  ;;  %v11360_v53 = vld [vmem:[%s13033_s24 + $0x128] sm:$0x1]  ;;  %v17380_v13 = vld [vmem:[#allocation10_spill] sm:$0xff] }
 0x13c   : > { %v17377_v49 = vand.u32 4294901760, %v14944_v39  ;;  %v17379_v20 = vand.u32 4294901760, %v17378_v23  ;;  %v15180_v5 = vand.u32 4294901760, %v15149_v43  ;;  %v6694_v8 = vsel %vm608_vm7, %v6693_v16, %v6692_v3  ;;  %v11361_v21 = vld [vmem:[%s13033_s24 + $0x12a] sm:$0x1] }
 0x13d   : > { %v6702_v52 = vsel %vm599_vm4, %v6701_v30, %v6700_v50  ;;  %v6709_v15 = vrot.slane %v11357_v2, 7  ;;  %v15186_v22 = vadd.f32 %v15075_v45, %v1784_v28  ;;  %v1814_v39 = vadd.f32 %v12161_v37, %v15051_v57  ;;  %v11362_v3 = vld [vmem:[%s13033_s24 + $0x12c] sm:$0x1] }
 0x13e   : > { %12496 = vmatmul.mubr.f32.gmra.mxu0 %v17377_v49  ;;  %12532 = vmatmul.mubr.f32.gmra.mxu1 %v17379_v20  ;;  %v17381_v6 = vand.u32 4294901760, %v17380_v13  ;;  %v6707_v63 = vrot.slane %v11355_v51, 1  ;;  %v6711_v35 = vrot.slane %v11358_v55, 6  ;;  %v1803_v49 = vpop.f32.mrf.mxu0  ;;  %v15193_v20 = vpop.f32.mrf.mxu1  ;;  %v15195_v16 = vand.u32 4294901760, %v6731_v38 }
 0x13f   : > { %12514 = vmatprep.mubr.f32.mxu0 %v14560_v27  ;;  %v6704_v30 = vsel %vm602_vm5, %v6703_v46, %v6702_v52  ;;  %v6710_v45 = vsel %vm590_vm1, %v6709_v15, %v11356_v7  ;;  %v6713_v2 = vrot.slane %v11359_v31, 5  ;;  %v15201_v57 = vadd.f32 %v15095_v1, %v1814_v39  ;;  %v17382_v46 = vld [vmem:[#allocation11_spill] sm:$0xff] }
 0x140   : > { %12534 = vmatprep.mubr.f32.mxu1 %v17381_v6  ;;  %v1804_v27 = vadd.f32 %v1803_v49, %v15068_v56  ;;  %v6706_v51 = vsel %vm605_vm6, %v6705_v36, %v6704_v30  ;;  %v6715_v55 = vrot.slane %v11360_v53, 4  ;;  %v12180_v28 = vpop.f32.mrf.mxu0  ;;  %v15206_v50 = vpop.f32.mrf.mxu1  ;;  %v17383_v37 = vand.u32 4294901760, %v17382_v46  ;;  %v11363_v53 = vld [vmem:[%s13033_s24 + $0x12e] sm:$0x1]  ;;  %v11365_v39 = vld [vmem:[%s13033_s24 + $0x27] sm:$0x1] }
 0x141   : > { %v17271_v7 = vand.u32 4294901760, %v15137_v62  ;;  %v6733_v1 = vsel %vm708_vm8, %v6694_v8, 0  ;;  %v6712_v31 = vsel %vm593_vm2, %v6711_v35, %v6710_v45  ;;  %v6717_v56 = vrot.slane %v11361_v21, 3  ;;  %v11366_v35 = vld [vmem:[%s13033_s24 + $0x29] sm:$0x1] }
 0x142   : > { %12515 = vmatmul.mubr.f32.vlgmr.msra.gmra.mxu0 %v17373_v47  ;;  %12535 = vmatmul.mubr.f32.gmra.mxu1 %v17383_v37  ;;  %v15214_v52 = vadd.f32 %v15119_v60, %v1804_v27  ;;  %v2013_v36 = vadd.f32 %v12180_v28, %v15087_v54  ;;  %v6708_v47 = vsel %vm608_vm7, %v6707_v63, %v6706_v51  ;;  %v6719_v15 = vrot.slane %v11362_v3, 2  ;;  %v2005_v8 = vpop.f32.mrf.mxu0  ;;  %v15222_v6 = vpop.f32.mrf.mxu1  ;;  %v17385_v60 = vld [vmem:[#allocation12_spill] sm:$0xff]  ;;  %v11364_v27 = vld [vmem:[%s13033_s24 + $0x25] sm:$0x1] }
 0x143   : > { %12541 = vmatpush3.msra.mxu0 %v17368_v44  ;;  %12517 = vmatprep.mubr.f32.mxu0 %v17375_v24  ;;  %v17384_v21 = vand.u32 4294901760, %v14845_v42  ;;  %v17270_v54 = vand.u32 4294901760, %v15160_v18  ;;  %v15230_v44 = vsub.f32 %v15149_v43, %v15180_v5  ;;  %v15233_v24 = vsub.f32 %v6731_v38, %v15195_v16 }
 0x144   : > { %12568 = vmatprep.subr.mxu0 %v17385_v60  ;;  %v6714_v63 = vsel %vm596_vm3, %v6713_v2, %v6712_v31  ;;  %v15238_v49 = vadd.f32 %v15131_v33, %v2013_v36  ;;  %v2006_v30 = vadd.f32 %v2005_v8, %v15109_v34  ;;  %v15241_v3 = vand.u32 4294901760, %v6733_v1  ;;  %v12183_v51 = vpop.f32.mrf.mxu0  ;;  %v15246_v43 = vpop.f32.mrf.mxu1  ;;  %v11367_v36 = vld [vmem:[%s13033_s24 + $0x2b] sm:$0x1] }
 0x145   : > { %12537 = vmatprep.mubr.f32.mxu1 %v17384_v21  ;;  %v6716_v45 = vsel %vm599_vm4, %v6715_v55, %v6714_v63  ;;  %v17386_v38 = vand.u32 4294901760, %v14871_v4  ;;  %v6735_v2 = vsel %vm708_vm8, %v6708_v47, 0  ;;  %v6721_v34 = vrot.slane %v11363_v53, 1 }
 0x146   : > { %12518 = vmatmul.mubr.f32.gmra.mxu0 %v17378_v23  ;;  %v6718_v33 = vsel %vm602_vm5, %v6717_v56, %v6716_v45  ;;  %v7626_v28 = vrot.slane %v11365_v39, 7  ;;  %v15253_v37 = vadd.f32 %v15153_v10, %v2006_v30  ;;  %v2027_v55 = vadd.f32 %v12183_v51, %v15124_v32  ;;  %v17387_v23 = vld [vmem:[#allocation6_spill] sm:$0xff]  ;;  %v2019_v21 = vpop.f32.mrf.mxu0  ;;  %v15260_v47 = vpop.f32.mrf.mxu1 }
 0x147   : > { %12538 = vmatmul.mubr.f32.gmra.mxu1 %v17386_v38  ;;  %12520 = vmatprep.mubr.f32.mxu0 %v17380_v13  ;;  %v6720_v31 = vsel %vm605_vm6, %v6719_v15, %v6718_v33  ;;  %v7628_v8 = vrot.slane %v11366_v35, 6  ;;  %v15266_v10 = vsub.f32 %v15137_v62, %v17271_v7  ;;  %v15271_v32 = vsub.f32 %v15160_v18, %v17270_v54  ;;  %v11368_v13 = vld [vmem:[%s13033_s24 + $0x2d] sm:$0x1]  ;;  %v7561_v35 = vld [vmem:[%s17210_s1 + $0x1c] sm:$0xf] }
 0x148   : > { %12556 = vmatprep.mubr.f32.mxu1 %v17387_v23  ;;  %v7627_v53 = vsel %vm590_vm1, %v7626_v28, %v11364_v27  ;;  %v15276_v15 = vadd.f32 %v15175_v61, %v2027_v55  ;;  %v2020_v39 = vadd.f32 %v2019_v21, %v15142_v40  ;;  %v17272_v63 = vand.u32 4294901760, %v15230_v44  ;;  %v12186_v45 = vpop.f32.mrf.mxu0  ;;  %v15285_v51 = vpop.f32.mrf.mxu1  ;;  %v11369_v38 = vld [vmem:[%s13033_s24 + $0x2f] sm:$0x1] }
 0x149   : > { %v7629_v30 = vsel %vm593_vm2, %v7628_v8, %v7627_v53  ;;  %v15289_v61 = vsub.f32 %v6733_v1, %v15241_v3  ;;  %v15291_v27 = vand.u32 4294901760, %v6735_v2  ;;  %v6722_v40 = vsel %vm608_vm7, %v6721_v34, %v6720_v31  ;;  %v11370_v53 = vld [vmem:[%s13033_s24 + $0x31] sm:$0x1] }
 0x14a   : > { %12521 = vmatmul.mubr.f32.gmra.mxu0 %v17382_v46  ;;  %v7630_v33 = vrot.slane %v11367_v36, 5  ;;  %v15296_v28 = vadd.f32 %v15193_v20, %v2020_v39  ;;  %v2041_v55 = vadd.f32 %v12186_v45, %v15167_v11  ;;  %v17273_v46 = vand.u32 4294901760, %v15233_v24  ;;  %v2033_v8 = vpop.f32.mrf.mxu0  ;;  %v15302_v21 = vpop.f32.mrf.mxu1  ;;  %v11374_v45 = vld [vmem:[%s13033_s24 + $0x4d] sm:$0x1]  ;;  %v11376_v11 = vld [vmem:[%s13033_s24 + $0x51] sm:$0x1] }
 0x14b   : > { %12557 = vmatmul.mubr.f32.vlgmr.msra.gmra.mxu1 %v14614_v41  ;;  %17388 = vst [vmem:[#allocation4_spill] sm:$0xff] %v15289_v61  ;;  %12523 = vmatprep.mubr.f32.mxu0 %v14845_v42  ;;  %v7632_v1 = vrot.slane %v11368_v13, 4  ;;  %v7755_v42 = vsel %vm725_vm0, %v7561_v35, 0  ;;  %v2034_v36 = vadd.f32 %v2033_v8, %v15186_v22  ;;  %v6737_v13 = vsel %vm708_vm8, %v6722_v40, 0  ;;  %v11372_v40 = vld [vmem:[%s13033_s24 + $0x49] sm:$0x1] }
 0x14c   : > { %12583 = vmatpush3.msra.mxu1 %v14977_v26  ;;  %12559 = vmatprep.mubr.f32.mxu1 %v14641_v12  ;;  %v7631_v20 = vsel %vm596_vm3, %v7630_v33, %v7629_v30  ;;  %v11373_v26 = vld [vmem:[%s13033_s24 + $0x4b] sm:$0x1]  ;;  %v15312_v31 = vadd.f32 %v15206_v50, %v2041_v55  ;;  %v7634_v39 = vrot.slane %v11369_v38, 3  ;;  %v12189_v54 = vpop.f32.mrf.mxu0  ;;  %v15319_v7 = vpop.f32.mrf.mxu1  ;;  %v15325_v50 = vsub.f32 %v15230_v44, %v17272_v63 }
 0x14d   : > { %12610 = vmatprep.subr.mxu1 %v17385_v60  ;;  %v17274_v22 = vand.u32 4294901760, %v15289_v61  ;;  %v15329_v35 = vsub.f32 %v6735_v2, %v15291_v27  ;;  %v7633_v30 = vsel %vm599_vm4, %v7632_v1, %v7631_v20  ;;  %v2055_v38 = vadd.f32 %v12189_v54, %v15201_v57  ;;  %v11375_v2 = vld [vmem:[%s13033_s24 + $0x4f] sm:$0x1]  ;;  %v11371_v57 = vld [vmem:[%s13033_s24 + $0x33] sm:$0x1] }
 0x14e   : > { %12524 = vmatmul.mubr.f32.gmra.mxu0 %v14871_v4  ;;  %v15334_v4 = vadd.f32 %v15222_v6, %v2034_v36  ;;  %v15342_v33 = vsub.f32 %v15233_v24, %v17273_v46  ;;  %v7640_v55 = vrot.slane %v11373_v26, 7  ;;  %v2047_v8 = vpop.f32.mrf.mxu0  ;;  %v15345_v1 = vpop.f32.mrf.mxu1  ;;  %v15347_v20 = vand.u32 4294901760, %v6737_v13 }
 0x14f   : > { %12560 = vmatmul.mubr.f32.gmra.mxu1 %v14663_v17  ;;  %12542 = vmatprep.mubr.f32.mxu0 %v17387_v23  ;;  %v15349_v6 = vand.u32 4294901760, %v7755_v42  ;;  %v7636_v54 = vrot.slane %v11370_v53, 2  ;;  %v7642_v23 = vrot.slane %v11374_v45, 6  ;;  %v15353_v36 = vadd.f32 %v15246_v43, %v2055_v38  ;;  %v11381_v45 = vld [vmem:[%s13033_s24 + $0x6f] sm:$0x1] }
 0x150   : > { %12562 = vmatprep.mubr.f32.mxu1 %v14685_v25  ;;  %v2048_v63 = vadd.f32 %v2047_v8, %v15214_v52  ;;  %v7635_v46 = vsel %vm602_vm5, %v7634_v39, %v7633_v30  ;;  %v7641_v26 = vsel %vm590_vm1, %v7640_v55, %v11372_v40  ;;  %v12208_v34 = vpop.f32.mrf.mxu0  ;;  %v15360_v56 = vpop.f32.mrf.mxu1  ;;  %v15367_v43 = vsub.f32 %v15289_v61, %v17274_v22  ;;  %v11382_v55 = vld [vmem:[%s13033_s24 + $0x71] sm:$0x1]  ;;  %v11380_v52 = vld [vmem:[%s13033_s24 + $0x6d] sm:$0x1] }
 0x151   : > { %v7644_v39 = vrot.slane %v11375_v2, 5  ;;  %v7638_v40 = vrot.slane %v11371_v57, 1  ;;  %v7643_v38 = vsel %vm593_vm2, %v7642_v23, %v7641_v26  ;;  %v17389_v2 = vld [vmem:[#allocation3_spill] sm:$0xff]  ;;  %v11377_v26 = vld [vmem:[%s13033_s24 + $0x53] sm:$0x1]  ;;  %v7646_v53 = vrot.slane %v11376_v11, 4 }
 0x152   : > { %12543 = vmatmul.mubr.f32.vlgmr.msra.gmra.mxu0 %v14614_v41  ;;  %v15372_v30 = vadd.f32 %v15260_v47, %v2048_v63  ;;  %v2265_v41 = vadd.f32 %v12208_v34, %v15238_v49  ;;  %v2258_v8 = vpop.f32.mrf.mxu0  ;;  %v15379_v22 = vpop.f32.mrf.mxu1  ;;  %v15385_v49 = vsub.f32 %v6737_v13, %v15347_v20  ;;  %v15388_v63 = vsub.f32 %v7755_v42, %v15349_v6  ;;  %v11383_v34 = vld [vmem:[%s13033_s24 + $0x73] sm:$0x1] }
 0x153   : > { %12563 = vmatmul.mubr.f32.gmra.mxu1 %v14731_v58  ;;  %12569 = vmatpush3.msra.mxu0 %v17385_v60  ;;  %v2259_v23 = vadd.f32 %v2258_v8, %v15253_v37  ;;  %v7654_v47 = vrot.slane %v11381_v45, 7  ;;  %v7645_v37 = vsel %vm596_vm3, %v7644_v39, %v7643_v38  ;;  %v7656_v11 = vrot.slane %v11382_v55, 6  ;;  %v11384_v8 = vld [vmem:[%s13033_s24 + $0x75] sm:$0x1] }
 0x154   : > { %12545 = vmatprep.mubr.f32.mxu0 %v14641_v12  ;;  %12565 = vmatprep.mubr.f32.mxu1 %v14807_v29  ;;  %17390 = vst [vmem:[#allocation5_spill] sm:$0xff] %v15388_v63  ;;  %v7637_v12 = vsel %vm605_vm6, %v7636_v54, %v7635_v46  ;;  %v15393_v57 = vadd.f32 %v15285_v51, %v2265_v41  ;;  %v12211_v61 = vpop.f32.mrf.mxu0  ;;  %v15399_v13 = vpop.f32.mrf.mxu1  ;;  %v17392_v51 = vand.u32 4294901760, %v15329_v35  ;;  %v15417_v41 = vld [vmem:[%s13033_s24 + $0x55] sm:$0x1]  ;;  %v15424_v55 = vand.u32 4294901760, %v15388_v63 }
 0x155   : > { %12596 = vmatprep.subr.mxu0 %v17389_v2  ;;  %v15410_v54 = vadd.f32 %v15302_v21, %v2259_v23  ;;  %v7639_v45 = vsel %vm608_vm7, %v7638_v40, %v7637_v12  ;;  %v15433_v23 = vld [vmem:[%s13033_s24 + $0x57] sm:$0x1]  ;;  %v11390_v21 = vld [vmem:[%s13033_s24 + $0x95] sm:$0x1] }
 0x156   : > { %17391 = vst [vmem:[#allocation7_spill] sm:$0xff] %v15393_v57  ;;  %12546 = vmatmul.mubr.f32.gmra.mxu0 %v14663_v17  ;;  %v15406_v42 = vsub.f32 %v15329_v35, %v17392_v51  ;;  %v2277_v17 = vadd.f32 %v12211_v61, %v15276_v15  ;;  %v7658_v51 = vrot.slane %v11383_v34, 5  ;;  %v2270_v39 = vpop.f32.mrf.mxu0  ;;  %v15420_v38 = vpop.f32.mrf.mxu1  ;;  %17394 = vst [vmem:[#allocation9_spill] sm:$0xff] %v15424_v55  ;;  %v7648_v15 = vrot.slane %v11377_v26, 3  ;;  %v11389_v61 = vld [vmem:[%s13033_s24 + $0x93] sm:$0x1] }
 0x157   : > { %12566 = vmatmul.mubr.f32.gmra.mxu1 %v14830_v19  ;;  %17393 = vst [vmem:[#allocation8_spill] sm:$0xff] %v15410_v54  ;;  %12548 = vmatprep.mubr.f32.mxu0 %v14685_v25  ;;  %v7655_v25 = vsel %vm590_vm1, %v7654_v47, %v11380_v52  ;;  %v2271_v12 = vadd.f32 %v2270_v39, %v15296_v28  ;;  %v15444_v28 = vsel %vm708_vm8, %v7639_v45, 0  ;;  %v7650_v52 = vrot.slane %v15417_v41, 2  ;;  %v11391_v45 = vld [vmem:[%s13033_s24 + $0x97] sm:$0x1] }
 0x158   : > { %12584 = vmatprep.mubr.f32.mxu1 %v14958_v9  ;;  %v15429_v40 = vadd.f32 %v15319_v7, %v2277_v17  ;;  %v7647_v34 = vsel %vm599_vm4, %v7646_v53, %v7645_v37  ;;  %v7657_v46 = vsel %vm593_vm2, %v7656_v11, %v7655_v25  ;;  %v12214_v54 = vpop.f32.mrf.mxu0  ;;  %v15439_v26 = vpop.f32.mrf.mxu1  ;;  %v11385_v53 = vld [vmem:[%s13033_s24 + $0x77] sm:$0x1]  ;;  %v7660_v47 = vrot.slane %v11384_v8, 4  ;;  %v11388_v17 = vld [vmem:[%s13033_s24 + $0x91] sm:$0x1] }
 0x159   : > { %v15449_v37 = vadd.f32 %v15345_v1, %v2271_v12  ;;  %v7659_v11 = vsel %vm596_vm3, %v7658_v51, %v7657_v46  ;;  %v7668_v39 = vrot.slane %v11389_v61, 7  ;;  %v17397_v1 = vand.u32 4294901760, %v15385_v49  ;;  %v11392_v51 = vld [vmem:[%s13033_s24 + $0x99] sm:$0x1] }
 0x15a   : > { %17395 = vst [vmem:[#allocation10_spill] sm:$0xff] %v15429_v40  ;;  %12549 = vmatmul.mubr.f32.gmra.mxu0 %v14731_v58  ;;  %v2289_v58 = vadd.f32 %v12214_v54, %v15312_v31  ;;  %v2282_v41 = vpop.f32.mrf.mxu0  ;;  %v15457_v8 = vpop.f32.mrf.mxu1  ;;  %v7649_v46 = vsel %vm602_vm5, %v7648_v15, %v7647_v34  ;;  %v11386_v54 = vld [vmem:[%s13033_s24 + $0x79] sm:$0x1]  ;;  %v7670_v25 = vrot.slane %v11390_v21, 6  ;;  %v7662_v7 = vrot.slane %v11385_v53, 3 }
 0x15b   : > { %12585 = vmatmul.mubr.f32.vlgmr.msra.gmra.mxu1 %v15099_v48  ;;  %17396 = vst [vmem:[#allocation11_spill] sm:$0xff] %v15449_v37  ;;  %12551 = vmatprep.mubr.f32.mxu0 %v14807_v29  ;;  %v15463_v31 = vsub.f32 %v15385_v49, %v17397_v1  ;;  %v7937_v29 = vsub.f32 %v15388_v63, %v15424_v55  ;;  %v15476_v1 = vand.u32 4294901760, %v15444_v28  ;;  %v11397_v37 = vld [vmem:[%s13033_s24 + $0xb7] sm:$0x1]  ;;  %v11398_v40 = vld [vmem:[%s13033_s24 + $0xb9] sm:$0x1] }
 0x15c   : > { %12611 = vmatpush3.msra.mxu1 %v17385_v60  ;;  %12587 = vmatprep.mubr.f32.mxu1 %v15102_v14  ;;  %v15472_v61 = vadd.f32 %v15360_v56, %v2289_v58  ;;  %v2283_v12 = vadd.f32 %v2282_v41, %v15334_v4  ;;  %v12217_v57 = vpop.f32.mrf.mxu0  ;;  %v15481_v15 = vpop.f32.mrf.mxu1  ;;  %v7652_v56 = vrot.slane %v15433_v23, 1  ;;  %v15486_v21 = vld [vmem:[%s13033_s24 + $0x7b] sm:$0x1]  ;;  %v7661_v4 = vsel %vm599_vm4, %v7660_v47, %v7659_v11  ;;  %v11396_v47 = vld [vmem:[%s13033_s24 + $0xb5] sm:$0x1] }
 0x15d   : > { %12638 = vmatprep.subr.mxu1 %v17385_v60  ;;  %17399 = vst [vmem:[#allocation6_spill] sm:$0xff] %v15476_v1  ;;  %v11393_v34 = vld [vmem:[%s13033_s24 + $0x9b] sm:$0x1]  ;;  %v7669_v53 = vsel %vm590_vm1, %v7668_v39, %v11388_v17  ;;  %v7672_v58 = vrot.slane %v11391_v45, 5  ;;  %v17401_v55 = vand.u32 4294901760, %v15082_v59  ;;  %v7651_v23 = vsel %vm605_vm6, %v7650_v52, %v7649_v46 }
 0x15e   : > { %17398 = vst [vmem:[#allocation12_spill] sm:$0xff] %v15472_v61  ;;  %12552 = vmatmul.mubr.f32.gmra.mxu0 %v14830_v19  ;;  %v15492_v41 = vadd.f32 %v15379_v22, %v2283_v12  ;;  %v2301_v19 = vadd.f32 %v12217_v57, %v15353_v36  ;;  %v7674_v61 = vrot.slane %v11392_v51, 4  ;;  %v11399_v11 = vld [vmem:[%s13033_s24 + $0xbb] sm:$0x1]  ;;  %v2294_v63 = vpop.f32.mrf.mxu0  ;;  %v15501_v17 = vpop.f32.mrf.mxu1  ;;  %v7664_v45 = vrot.slane %v11386_v54, 2 }
 0x15f   : > { %12588 = vmatmul.mubr.f32.gmra.mxu1 %v15180_v5  ;;  %12570 = vmatprep.mubr.f32.mxu0 %v17401_v55  ;;  %v7671_v22 = vsel %vm593_vm2, %v7670_v25, %v7669_v53  ;;  %v11400_v39 = vld [vmem:[%s13033_s24 + $0xbd] sm:$0x1]  ;;  %v7682_v36 = vrot.slane %v11397_v37, 7  ;;  %v7684_v57 = vrot.slane %v11398_v40, 6  ;;  %v2295_v55 = vadd.f32 %v2294_v63, %v15372_v30  ;;  %v11401_v51 = vld [vmem:[%s13033_s24 + $0xbf] sm:$0x1] }
 0x160   : > { %17400 = vst [vmem:[#allocation3_spill] sm:$0xff] %v15492_v41  ;;  %12590 = vmatprep.mubr.f32.mxu1 %v15195_v16  ;;  %v15506_v59 = vadd.f32 %v15399_v13, %v2301_v19  ;;  %v7663_v52 = vsel %vm602_vm5, %v7662_v7, %v7661_v4  ;;  %v7666_v46 = vrot.slane %v15486_v21, 1  ;;  %v12236_v12 = vpop.f32.mrf.mxu0  ;;  %v17402_v41 = vand.u32 4294901760, %v15266_v10  ;;  %v15514_v54 = vpop.f32.mrf.mxu1  ;;  %v11394_v37 = vld [vmem:[%s13033_s24 + $0x9d] sm:$0x1] }
 0x161   : > { %v7673_v40 = vsel %vm596_vm3, %v7672_v58, %v7671_v22  ;;  %v7676_v13 = vrot.slane %v11393_v34, 3  ;;  %v7683_v30 = vsel %vm590_vm1, %v7682_v36, %v11396_v47  ;;  %v7686_v63 = vrot.slane %v11399_v11, 5  ;;  %v11405_v19 = vld [vmem:[%s13033_s24 + $0xdb] sm:$0x1]  ;;  %v11395_v11 = vld [vmem:[%s13033_s24 + $0x9f] sm:$0x1] }
 0x162   : > { %12571 = vmatmul.mubr.f32.vlgmr.msra.gmra.mxu0 %v17402_v41  ;;  %v15521_v7 = vadd.f32 %v15420_v38, %v2295_v55  ;;  %v15524_v25 = vadd.f32 %v15439_v26, %v12236_v12  ;;  %v17403_v10 = vand.u32 4294901760, %v15271_v32  ;;  %v7675_v21 = vsel %vm599_vm4, %v7674_v61, %v7673_v40  ;;  %v2751_v34 = vpop.f32.mrf.mxu0  ;;  %v15530_v53 = vpop.f32.mrf.mxu1  ;;  %v17404_v38 = vld [vmem:[#allocation13_spill] sm:$0xff] }
 0x163   : > { %12591 = vmatmul.mubr.f32.gmra.mxu1 %v15241_v3  ;;  %12597 = vmatpush3.msra.mxu0 %v17389_v2  ;;  %v7688_v4 = vrot.slane %v11400_v39, 4  ;;  %v15534_v58 = vand.u32 4294901760, %v7937_v29  ;;  %v7665_v26 = vsel %vm605_vm6, %v7664_v45, %v7663_v52  ;;  %v11402_v2 = vld [vmem:[%s13033_s24 + $0xc1] sm:$0x1]  ;;  %v7685_v32 = vsel %vm593_vm2, %v7684_v57, %v7683_v30  ;;  %v11406_v29 = vld [vmem:[%s13033_s24 + $0xdd] sm:$0x1] }
 0x164   : > { %12573 = vmatprep.mubr.f32.mxu0 %v17403_v10  ;;  %12593 = vmatprep.mubr.f32.mxu1 %v15291_v27  ;;  %v7690_v41 = vrot.slane %v11401_v51, 3  ;;  %v15541_v61 = vadd.f32 %v15457_v8, %v2751_v34  ;;  %v7653_v47 = vsel %vm608_vm7, %v7652_v56, %v7651_v23  ;;  %v7678_v22 = vrot.slane %v11394_v37, 2  ;;  %v12239_v36 = vpop.f32.mrf.mxu0  ;;  %v15549_v57 = vpop.f32.mrf.mxu1  ;;  %v11404_v52 = vld [vmem:[%s13033_s24 + $0xd9] sm:$0x1]  ;;  %v11407_v51 = vld [vmem:[%s13033_s24 + $0xdf] sm:$0x1] }
 0x165   : > { %12624 = vmatprep.subr.mxu0 %v17404_v38  ;;  %v7687_v39 = vsel %vm596_vm3, %v7686_v63, %v7685_v32  ;;  %v17405_v45 = vand.u32 4294901760, %v15325_v50  ;;  %v6882_v55 = vand.u32 4294901760, %v15463_v31  ;;  %v15555_v8 = vsub.f32 %v15444_v28, %v15476_v1  ;;  %v11403_v37 = vld [vmem:[%s13033_s24 + $0xc3] sm:$0x1] }
 0x166   : > { %v7677_v56 = vsel %vm602_vm5, %v7676_v13, %v7675_v21  ;;  %v7689_v23 = vsel %vm599_vm4, %v7688_v4, %v7687_v39  ;;  %v15562_v50 = vadd.f32 %v15481_v15, %v12239_v36  ;;  %v17406_v12 = vand.u32 4294901760, %v15342_v33  ;;  %v2771_v30 = vpop.f32.mrf.mxu0  ;;  %v15570_v63 = vpop.f32.mrf.mxu1  ;;  %v11408_v33 = vld [vmem:[%s13033_s24 + $0xe1] sm:$0x1]  ;;  %v15591_v36 = vld [vmem:[%s13033_s24 + $0xe7] sm:$0x1] }
 0x167   : > { %12574 = vmatmul.mubr.f32.gmra.mxu0 %v17405_v45  ;;  %12594 = vmatmul.mubr.f32.gmra.mxu1 %v15347_v20  ;;  %v17407_v31 = vand.u32 4294901760, %v14994_v0  ;;  %v7667_v28 = vsel %vm608_vm7, %v7666_v46, %v7665_v26  ;;  %v7692_v40 = vrot.slane %v11402_v2, 2  ;;  %v7696_v13 = vrot.slane %v11405_v19, 7  ;;  %v11409_v26 = vld [vmem:[%s13033_s24 + $0xe3] sm:$0x1] }
 0x168   : > { %12576 = vmatprep.mubr.f32.mxu0 %v17406_v12  ;;  %v7740_v10 = vsel %vm708_vm8, %v7653_v47, 0  ;;  %v7680_v15 = vrot.slane %v11395_v11, 1  ;;  %v7691_v21 = vsel %vm602_vm5, %v7690_v41, %v7689_v23  ;;  %v7698_v4 = vrot.slane %v11406_v29, 6  ;;  %v11410_v2 = vld [vmem:[%s13033_s24 + $0xe5] sm:$0x1]  ;;  %v12242_v39 = vpop.f32.mrf.mxu0  ;;  %v15584_v41 = vpop.f32.mrf.mxu1 }
 0x169   : > { %12612 = vmatprep.mubr.f32.mxu1 %v17407_v31  ;;  %v15576_v34 = vadd.f32 %v15501_v17, %v2771_v30  ;;  %v7679_v46 = vsel %vm605_vm6, %v7678_v22, %v7677_v56  ;;  %v7697_v32 = vsel %vm590_vm1, %v7696_v13, %v11404_v52  ;;  %v7700_v19 = vrot.slane %v11407_v51, 5  ;;  %v11413_v56 = vld [vmem:[%s13033_s24 + $0xff] sm:$0x1]  ;;  %v11414_v31 = vld [vmem:[%s13033_s24 + $0x101] sm:$0x1] }
 0x16a   : > { %v17408_v47 = vand.u32 4294901760, %v15367_v43  ;;  %v17409_v11 = vand.u32 4294901760, %v15137_v62  ;;  %v17285_v17 = vand.u32 4294901760, %v15555_v8  ;;  %v7742_v22 = vsel %vm708_vm8, %v7667_v28, 0  ;;  %v11415_v28 = vld [vmem:[%s13033_s24 + $0x103] sm:$0x1]  ;;  %v15605_v13 = vpop.f32.mrf.mxu1 }
 0x16b   : > { %v7694_v29 = vrot.slane %v11403_v37, 1  ;;  %v7699_v45 = vsel %vm593_vm2, %v7698_v4, %v7697_v32  ;;  %v15596_v43 = vadd.f32 %v15514_v54, %v12242_v39  ;;  %v17410_v23 = vand.u32 4294901760, %v15406_v42  ;;  %v2791_v37 = vpop.f32.mrf.mxu0 }
 0x16c   : > { %12577 = vmatmul.mubr.f32.gmra.mxu0 %v17408_v47  ;;  %12613 = vmatmul.mubr.f32.vlgmr.msra.gmra.mxu1 %v17409_v11  ;;  %v7693_v52 = vsel %vm605_vm6, %v7692_v40, %v7691_v21  ;;  %v7701_v51 = vsel %vm596_vm3, %v7700_v19, %v7699_v45  ;;  %v7702_v12 = vrot.slane %v11408_v33, 4  ;;  %v17411_v54 = vand.u32 4294901760, %v15160_v18  ;;  %v11412_v21 = vld [vmem:[%s13033_s24 + $0xfd] sm:$0x1]  ;;  %v11416_v19 = vld [vmem:[%s13033_s24 + $0x105] sm:$0x1]  ;;  %v15621_v11 = vpop.f32.mrf.mxu1 }
 0x16d   : > { %12579 = vmatprep.mubr.f32.mxu0 %v17410_v23  ;;  %12639 = vmatpush3.msra.mxu1 %v17385_v60  ;;  %v15610_v42 = vand.u32 4294901760, %v7740_v10  ;;  %v7681_v60 = vsel %vm608_vm7, %v7680_v15, %v7679_v46  ;;  %v7704_v30 = vrot.slane %v11409_v26, 3  ;;  %v7706_v40 = vrot.slane %v11410_v2, 2  ;;  %v12245_v47 = vpop.f32.mrf.mxu0 }
 0x16e   : > { %12615 = vmatprep.mubr.f32.mxu1 %v17411_v54  ;;  %12666 = vmatprep.subr.mxu1 %v15534_v58  ;;  %v15615_v4 = vadd.f32 %v15530_v53, %v2791_v37  ;;  %v15617_v33 = vand.u32 4294901760, %v7742_v22  ;;  %v7703_v32 = vsel %vm599_vm4, %v7702_v12, %v7701_v51  ;;  %v7710_v39 = vrot.slane %v11413_v56, 7 }
 0x16f   : > { %v17412_v15 = vand.u32 4294901760, %v15230_v44  ;;  %v7695_v46 = vsel %vm608_vm7, %v7694_v29, %v7693_v52  ;;  %v7705_v53 = vsel %vm602_vm5, %v7704_v30, %v7703_v32  ;;  %v7712_v26 = vrot.slane %v11414_v31, 6  ;;  %v11417_v29 = vld [vmem:[%s13033_s24 + $0x107] sm:$0x1]  ;;  %v11418_v52 = vld [vmem:[%s13033_s24 + $0x109] sm:$0x1]  ;;  %v2811_v12 = vpop.f32.mrf.mxu0  ;;  %v15640_v31 = vpop.f32.mrf.mxu1 }
 0x170   : > { %12580 = vmatmul.mubr.f32.gmra.mxu0 %v6882_v55  ;;  %v7714_v2 = vrot.slane %v11415_v28, 5  ;;  %v15628_v45 = vadd.f32 %v15549_v57, %v12245_v47  ;;  %v17413_v55 = vand.u32 4294901760, %v15233_v24  ;;  %v15634_v56 = vsel %vm708_vm8, %v7681_v60, 0  ;;  %v11419_v28 = vld [vmem:[%s13033_s24 + $0x10b] sm:$0x1] }
 0x171   : > { %12616 = vmatmul.mubr.f32.gmra.mxu1 %v17412_v15  ;;  %12598 = vmatprep.mubr.f32.mxu0 %v14994_v0  ;;  %v7708_v23 = vrot.slane %v15591_v36, 1  ;;  %v7711_v51 = vsel %vm590_vm1, %v7710_v39, %v11412_v21  ;;  %v15643_v57 = vsub.f32 %v7740_v10, %v15610_v42  ;;  %v7707_v0 = vsel %vm605_vm6, %v7706_v40, %v7705_v53  ;;  %v11421_v36 = vld [vmem:[%s13033_s24 + $0x123] sm:$0x1]  ;;  %v11422_v10 = vld [vmem:[%s13033_s24 + $0x125] sm:$0x1]  ;;  %v12264_v40 = vpop.f32.mrf.mxu0  ;;  %v15660_v47 = vpop.f32.mrf.mxu1 }
 0x172   : > { %12618 = vmatprep.mubr.f32.mxu1 %v17413_v55  ;;  %v7713_v37 = vsel %vm593_vm2, %v7712_v26, %v7711_v51  ;;  %v7716_v54 = vrot.slane %v11416_v19, 4  ;;  %v15650_v60 = vadd.f32 %v15570_v63, %v2811_v12  ;;  %v15653_v30 = vsub.f32 %v7742_v22, %v15617_v33  ;;  %v11423_v39 = vld [vmem:[%s13033_s24 + $0x127] sm:$0x1]  ;;  %v17414_v19 = vld [vmem:[#allocation4_spill] sm:$0xff]  ;;  %v11420_v26 = vld [vmem:[%s13033_s24 + $0x121] sm:$0x1] }
 0x173   : > { %v7746_v21 = vsel %vm708_vm8, %v7695_v46, 0  ;;  %v7715_v32 = vsel %vm596_vm3, %v7714_v2, %v7713_v37  ;;  %v17415_v15 = vand.u32 4294901760, %v17414_v19  ;;  %v15665_v63 = vand.u32 4294901760, %v15634_v56  ;;  %v11424_v51 = vld [vmem:[%s13033_s24 + $0x129] sm:$0x1]  ;;  %v3013_v37 = vpop.f32.mrf.mxu0 }
 0x174   : > { %12599 = vmatmul.mubr.f32.vlgmr.msra.gmra.mxu0 %v15137_v62  ;;  %v7717_v22 = vsel %vm599_vm4, %v7716_v54, %v7715_v32  ;;  %v7718_v53 = vrot.slane %v11417_v29, 3  ;;  %v7720_v46 = vrot.slane %v11418_v52, 2  ;;  %v3021_v2 = vadd.f32 %v12264_v40, %v15524_v25 }
 0x175   : > { %12619 = vmatmul.mubr.f32.gmra.mxu1 %v17415_v15  ;;  %12625 = vmatpush3.msra.mxu0 %v17404_v38  ;;  %v7709_v62 = vsel %vm608_vm7, %v7708_v23, %v7707_v0  ;;  %v7722_v55 = vrot.slane %v11419_v28, 1  ;;  %v7724_v12 = vrot.slane %v11421_v36, 7  ;;  %v15674_v15 = vpop.f32.mrf.mxu1  ;;  %v17416_v54 = vand.u32 4294901760, %v15329_v35  ;;  %v11425_v28 = vld [vmem:[%s13033_s24 + $0x12b] sm:$0x1]  ;;  %v12267_v32 = vpop.f32.mrf.mxu0 }
 0x176   : > { %12601 = vmatprep.mubr.f32.mxu0 %v15160_v18  ;;  %12652 = vmatprep.subr.mxu0 %v15349_v6  ;;  %v15679_v25 = vand.u32 4294901760, %v7746_v21  ;;  %v7719_v38 = vsel %vm602_vm5, %v7718_v53, %v7717_v22  ;;  %v7726_v18 = vrot.slane %v11422_v10, 6  ;;  %v7728_v29 = vrot.slane %v11423_v39, 5  ;;  %v11426_v39 = vld [vmem:[%s13033_s24 + $0x12d] sm:$0x1] }
 0x177   : > { %12621 = vmatprep.mubr.f32.mxu1 %v17416_v54  ;;  %v15683_v23 = vadd.f32 %v15584_v41, %v3021_v2  ;;  %v3014_v52 = vadd.f32 %v3013_v37, %v15541_v61  ;;  %v7721_v0 = vsel %vm605_vm6, %v7720_v46, %v7719_v38  ;;  %v7725_v36 = vsel %vm590_vm1, %v7724_v12, %v11420_v26  ;;  %v15690_v40 = vpop.f32.mrf.mxu1  ;;  %v11427_v2 = vld [vmem:[%s13033_s24 + $0x12f] sm:$0x1]  ;;  %v3027_v12 = vpop.f32.mrf.mxu0 }
 0x178   : > { %12602 = vmatmul.mubr.f32.gmra.mxu0 %v15230_v44  ;;  %v17417_v22 = vand.u32 4294901760, %v15385_v49  ;;  %v7748_v10 = vsel %vm708_vm8, %v7709_v62, 0  ;;  %v7723_v41 = vsel %vm608_vm7, %v7722_v55, %v7721_v0  ;;  %v7727_v61 = vsel %vm593_vm2, %v7726_v18, %v7725_v36 }
 0x179   : > { %v7730_v53 = vrot.slane %v11424_v51, 4  ;;  %v15699_v46 = vadd.f32 %v15605_v13, %v3014_v52  ;;  %v3035_v26 = vadd.f32 %v12267_v32, %v15562_v50  ;;  %12604 = vmatprep.mubr.f32.mxu0 %v15233_v24  ;;  %v7750_v44 = vsel %vm708_vm8, %v7723_v41, 0  ;;  %v15707_v55 = vpop.f32.mrf.mxu1  ;;  %v12270_v52 = vpop.f32.mrf.mxu0 }
 0x17a   : > { %12622 = vmatmul.mubr.f32.gmra.mxu1 %v17417_v22  ;;  %v7729_v62 = vsel %vm596_vm3, %v7728_v29, %v7727_v61  ;;  %v17284_v37 = vand.u32 4294901760, %v15643_v57  ;;  %v15712_v13 = vsub.f32 %v15634_v56, %v15665_v63  ;;  %v7732_v51 = vrot.slane %v11425_v28, 3  ;;  %v8577_v29 = vld [vmem:[%s17210_s1 + $0x20] sm:$0xf]  ;;  %v11429_v22 = vld [vmem:[%s13033_s24 + $0x28] sm:$0x1] }
 0x17b   : > { %12640 = vmatprep.mubr.f32.mxu1 %v14958_v9  ;;  %v7731_v50 = vsel %vm599_vm4, %v7730_v53, %v7729_v62  ;;  %v15716_v24 = vadd.f32 %v15621_v11, %v3035_v26  ;;  %v3028_v54 = vadd.f32 %v3027_v12, %v15576_v34  ;;  %v15720_v38 = vsub.f32 %v7746_v21, %v15679_v25  ;;  %v15726_v56 = vpop.f32.mrf.mxu1  ;;  %v3041_v41 = vpop.f32.mrf.mxu0 }
 0x17c   : > { %v7734_v18 = vrot.slane %v11426_v39, 2  ;;  %12605 = vmatmul.mubr.f32.gmra.mxu0 %v17414_v19  ;;  %v15729_v11 = vand.u32 4294901760, %v7748_v10  ;;  %v15731_v0 = vand.u32 4294901760, %v7750_v44  ;;  %v7733_v34 = vsel %vm602_vm5, %v7732_v51, %v7731_v50 }
 0x17d   : > { %v7736_v21 = vrot.slane %v11427_v2, 1  ;;  %v15735_v28 = vadd.f32 %v15640_v31, %v3028_v54  ;;  %v3049_v36 = vadd.f32 %v12270_v52, %v15596_v43  ;;  %12607 = vmatprep.mubr.f32.mxu0 %v15329_v35  ;;  %v17281_v19 = vand.u32 4294901760, %v15653_v30  ;;  %v15743_v39 = vpop.f32.mrf.mxu1  ;;  %v12273_v2 = vpop.f32.mrf.mxu0 }
 0x17e   : > { %12641 = vmatmul.mubr.f32.vlgmr.msra.gmra.mxu1 %v15099_v48  ;;  %v7735_v32 = vsel %vm605_vm6, %v7734_v18, %v7733_v34  ;;  %v15749_v31 = vsub.f32 %v15555_v8, %v17285_v17  ;;  %v15754_v35 = vsub.f32 %v15643_v57, %v17284_v37  ;;  %v8771_v43 = vsel %vm725_vm0, %v8577_v29, 0  ;;  %v11428_v18 = vld [vmem:[%s13033_s24 + $0x26] sm:$0x1]  ;;  %v11431_v34 = vld [vmem:[%s13033_s24 + $0x2c] sm:$0x1] }
 0x17f   : > { %12667 = vmatpush3.msra.mxu1 %v15534_v58  ;;  %12643 = vmatprep.mubr.f32.mxu1 %v15102_v14  ;;  %v17283_v58 = vand.u32 4294901760, %v15712_v13  ;;  %v15760_v61 = vadd.f32 %v15660_v47, %v3049_v36  ;;  %v3042_v53 = vadd.f32 %v3041_v41, %v15615_v4  ;;  %v17282_v26 = vand.u32 4294901760, %v15720_v38  ;;  %v15765_v62 = vpop.f32.mrf.mxu1  ;;  %v11430_v4 = vld [vmem:[%s13033_s24 + $0x2a] sm:$0x1]  ;;  %v3055_v29 = vpop.f32.mrf.mxu0  ;;  %v11437_v41 = vld [vmem:[%s13033_s24 + $0x4c] sm:$0x1] }
 0x180   : > { %12694 = vmatprep.subr.mxu1 %v15349_v6  ;;  %12608 = vmatmul.mubr.f32.gmra.mxu0 %v15385_v49  ;;  %v15769_v12 = vsub.f32 %v7748_v10, %v15729_v11  ;;  %v15772_v50 = vsub.f32 %v7750_v44, %v15731_v0  ;;  %v7737_v47 = vsel %vm608_vm7, %v7736_v21, %v7735_v32  ;;  %v8642_v51 = vrot.slane %v11429_v22, 7  ;;  %v11439_v37 = vld [vmem:[%s13033_s24 + $0x50] sm:$0x1] }
 0x181   : > { %v15777_v54 = vadd.f32 %v15674_v15, %v3042_v53  ;;  %v3063_v49 = vadd.f32 %v12273_v2, %v15628_v45  ;;  %12626 = vmatprep.mubr.f32.mxu0 %v14958_v9  ;;  %v15785_v10 = vsub.f32 %v15653_v30, %v17281_v19  ;;  %v15787_v44 = vand.u32 4294901760, %v8771_v43  ;;  %v15790_v52 = vpop.f32.mrf.mxu1  ;;  %v11438_v53 = vld [vmem:[%s13033_s24 + $0x4e] sm:$0x1]  ;;  %v12292_v2 = vpop.f32.mrf.mxu0 }
 0x182   : > { %12644 = vmatmul.mubr.f32.gmra.mxu1 %v15180_v5  ;;  %17418 = vst [vmem:[#allocation13_spill] sm:$0xff] %v15769_v12  ;;  %17419 = vst [vmem:[#allocation4_spill] sm:$0xff] %v15772_v50  ;;  %v15797_v9 = vsub.f32 %v15712_v13, %v17283_v58  ;;  %v3056_v36 = vadd.f32 %v3055_v29, %v15650_v60  ;;  %v7752_v32 = vsel %vm708_vm8, %v7737_v47, 0  ;;  %v8644_v22 = vrot.slane %v11430_v4, 6  ;;  %v11436_v58 = vld [vmem:[%s13033_s24 + $0x4a] sm:$0x1] }
 0x183   : > { %12646 = vmatprep.mubr.f32.mxu1 %v15195_v16  ;;  %17420 = vst [vmem:[#allocation14_spill] sm:$0xff] %v15787_v44  ;;  %v15801_v21 = vadd.f32 %v15690_v40, %v3063_v49  ;;  %v15808_v19 = vpop.f32.mrf.mxu1  ;;  %v15814_v40 = vsub.f32 %v15720_v38, %v17282_v26  ;;  %v17286_v60 = vand.u32 4294901760, %v15769_v12  ;;  %v8643_v4 = vsel %vm590_vm1, %v8642_v51, %v11428_v18  ;;  %v3266_v17 = vpop.f32.mrf.mxu0 }
 0x184   : > { %12627 = vmatmul.mubr.f32.vlgmr.msra.gmra.mxu0 %v15099_v48  ;;  %v15820_v49 = vadd.f32 %v15707_v55, %v3056_v36  ;;  %v3273_v48 = vadd.f32 %v12292_v2, %v15683_v23  ;;  %v15827_v26 = vsub.f32 %v8771_v43, %v15787_v44  ;;  %v17421_v55 = vld [vmem:[#allocation5_spill] sm:$0xff]  ;;  %v15835_v23 = vand.u32 4294901760, %v7752_v32 }
 0x185   : > { %12653 = vmatpush3.msra.mxu0 %v15349_v6  ;;  %12629 = vmatprep.mubr.f32.mxu0 %v15102_v14  ;;  %v15831_v45 = vpop.f32.mrf.mxu1  ;;  %v8646_v51 = vrot.slane %v11431_v34, 5  ;;  %v8656_v14 = vrot.slane %v11437_v41, 7  ;;  %v8658_v18 = vrot.slane %v11438_v53, 6  ;;  %v3267_v43 = vadd.f32 %v3266_v17, %v15699_v46  ;;  %v12295_v15 = vpop.f32.mrf.mxu0  ;;  %v17423_v53 = vld [vmem:[#allocation7_spill] sm:$0xff]  ;;  %v11446_v44 = vld [vmem:[%s13033_s24 + $0x72] sm:$0x1] }
 0x186   : > { %12647 = vmatmul.mubr.f32.gmra.mxu1 %v15241_v3  ;;  %12680 = vmatprep.subr.mxu0 %v17421_v55  ;;  %v3387_v36 = vadd.f32 %v15726_v56, %v3273_v48  ;;  %v8645_v29 = vsel %vm593_vm2, %v8644_v22, %v8643_v4  ;;  %v15848_v34 = vsub.f32 %v15769_v12, %v17286_v60  ;;  %v17422_v17 = vand.u32 4294901760, %v15772_v50  ;;  %v11432_v56 = vld [vmem:[%s13033_s24 + $0x2e] sm:$0x1]  ;;  %v11440_v22 = vld [vmem:[%s13033_s24 + $0x52] sm:$0x1] }
 0x187   : > { %12649 = vmatprep.mubr.f32.mxu1 %v15291_v27  ;;  %v15842_v47 = vpop.f32.mrf.mxu1  ;;  %v8660_v41 = vrot.slane %v11439_v37, 5  ;;  %v3381_v48 = vadd.f32 %v15743_v39, %v3267_v43  ;;  %v3285_v2 = vadd.f32 %v12295_v15, %v15716_v24  ;;  %v11445_v60 = vld [vmem:[%s13033_s24 + $0x70] sm:$0x1]  ;;  %v15871_v37 = vsub.f32 %v7752_v32, %v15835_v23  ;;  %v11447_v32 = vld [vmem:[%s13033_s24 + $0x74] sm:$0x1] }
 0x188   : > { %12630 = vmatmul.mubr.f32.gmra.mxu0 %v15180_v5  ;;  %v15853_v46 = vsub.f32 %v15772_v50, %v17422_v17  ;;  %v8657_v5 = vsel %vm590_vm1, %v8656_v14, %v11436_v58  ;;  %v15859_v4 = vadd.f32 %v3387_v36, %v17423_v53  ;;  %v3278_v50 = vpop.f32.mrf.mxu0  ;;  %v15874_v39 = vand.u32 4294901760, %v15827_v26  ;;  %v15877_v24 = vld [vmem:[%s13033_s24 + $0x30] sm:$0x1]  ;;  %v17426_v14 = vld [vmem:[#allocation8_spill] sm:$0xff] }
 0x189   : > { %12632 = vmatprep.mubr.f32.mxu0 %v15195_v16  ;;  %v15868_v58 = vpop.f32.mrf.mxu1  ;;  %v8647_v16 = vsel %vm596_vm3, %v8646_v51, %v8645_v29  ;;  %v8659_v15 = vsel %vm593_vm2, %v8658_v18, %v8657_v5  ;;  %v15882_v36 = vadd.f32 %v3381_v48, %v17426_v14  ;;  %v3399_v43 = vadd.f32 %v15765_v62, %v3285_v2  ;;  %v17427_v62 = vld [vmem:[#allocation10_spill] sm:$0xff] }
 0x18a   : > { %12650 = vmatmul.mubr.f32.gmra.mxu1 %v15347_v20  ;;  %17424 = vst [vmem:[#allocation5_spill] sm:$0xff] %v15859_v4  ;;  %17425 = vst [vmem:[#allocation7_spill] sm:$0xff] %v15874_v39  ;;  %v3279_v53 = vadd.f32 %v3278_v50, %v15735_v28  ;;  %v8648_v17 = vrot.slane %v11432_v56, 4  ;;  %v11444_v4 = vld [vmem:[%s13033_s24 + $0x6e] sm:$0x1]  ;;  %v8661_v29 = vsel %vm596_vm3, %v8660_v41, %v8659_v15  ;;  %v8662_v51 = vrot.slane %v11440_v22, 4 }
 0x18b   : > { %12668 = vmatprep.mubr.f32.mxu1 %v15476_v1  ;;  %v12298_v1 = vpop.f32.mrf.mxu0  ;;  %v15889_v12 = vpop.f32.mrf.mxu1  ;;  %v8670_v18 = vrot.slane %v11445_v60, 7  ;;  %v8672_v5 = vrot.slane %v11446_v44, 6  ;;  %v15894_v2 = vadd.f32 %v3399_v43, %v17427_v62  ;;  %v11441_v56 = vld [vmem:[%s13033_s24 + $0x54] sm:$0x1]  ;;  %v11448_v22 = vld [vmem:[%s13033_s24 + $0x76] sm:$0x1] }
 0x18c   : > { %12633 = vmatmul.mubr.f32.gmra.mxu0 %v15241_v3  ;;  %v3393_v28 = vadd.f32 %v15790_v52, %v3279_v53  ;;  %v3297_v50 = vadd.f32 %v12298_v1, %v15760_v61  ;;  %v8650_v1 = vrot.slane %v15877_v24, 3  ;;  %v8674_v52 = vrot.slane %v11447_v32, 5  ;;  %v17429_v41 = vld [vmem:[#allocation11_spill] sm:$0xff]  ;;  %v11434_v43 = vld [vmem:[%s13033_s24 + $0x32] sm:$0x1] }
 0x18d   : > { %17428 = vst [vmem:[#allocation8_spill] sm:$0xff] %v15894_v2  ;;  %12635 = vmatprep.mubr.f32.mxu0 %v15291_v27  ;;  %v3290_v60 = vpop.f32.mrf.mxu0  ;;  %v15903_v44 = vpop.f32.mrf.mxu1  ;;  %v8671_v61 = vsel %vm590_vm1, %v8670_v18, %v11444_v4  ;;  %v8649_v53 = vsel %vm599_vm4, %v8648_v17, %v8647_v16  ;;  %v11449_v62 = vld [vmem:[%s13033_s24 + $0x78] sm:$0x1]  ;;  %v11453_v3 = vld [vmem:[%s13033_s24 + $0x94] sm:$0x1]  ;;  %v8663_v32 = vsel %vm599_vm4, %v8662_v51, %v8661_v29  ;;  %v8676_v18 = vrot.slane %v11448_v22, 4 }
 0x18e   : > { %12669 = vmatmul.mubr.f32.vlgmr.msra.gmra.mxu1 %v15610_v42  ;;  %v15912_v48 = vadd.f32 %v3393_v28, %v17429_v41  ;;  %v3411_v15 = vadd.f32 %v15808_v19, %v3297_v50  ;;  %v3291_v14 = vadd.f32 %v3290_v60, %v15777_v54  ;;  %v11442_v4 = vld [vmem:[%s13033_s24 + $0x56] sm:$0x1]  ;;  %v8664_v19 = vrot.slane %v11441_v56, 3  ;;  %v17430_v17 = vld [vmem:[#allocation12_spill] sm:$0xff]  ;;  %v15937_v51 = vld [vmem:[%s13033_s24 + $0x34] sm:$0x1] }
 0x18f   : > { %12695 = vmatpush3.msra.mxu1 %v15349_v6  ;;  %12671 = vmatprep.mubr.f32.mxu1 %v15617_v33  ;;  %v12301_v2 = vpop.f32.mrf.mxu0  ;;  %v15921_v24 = vpop.f32.mrf.mxu1  ;;  %v8673_v54 = vsel %vm593_vm2, %v8672_v5, %v8671_v61  ;;  %v11450_v5 = vld [vmem:[%s13033_s24 + $0x7a] sm:$0x1]  ;;  %v8652_v60 = vrot.slane %v11434_v43, 2  ;;  %v8678_v61 = vrot.slane %v11449_v62, 3  ;;  %v11452_v27 = vld [vmem:[%s13033_s24 + $0x92] sm:$0x1] }
 0x190   : > { %12722 = vmatprep.subr.mxu1 %v15349_v6  ;;  %12636 = vmatmul.mubr.f32.gmra.mxu0 %v15347_v20  ;;  %v15928_v16 = vadd.f32 %v3411_v15, %v17430_v17  ;;  %v3405_v28 = vadd.f32 %v15831_v45, %v3291_v14  ;;  %v3309_v50 = vadd.f32 %v12301_v2, %v15801_v21  ;;  %v17431_v20 = vand.u32 4294901760, %v15749_v31  ;;  %v11454_v21 = vld [vmem:[%s13033_s24 + $0x96] sm:$0x1]  ;;  %v17432_v31 = vld [vmem:[#allocation3_spill] sm:$0xff]  ;;  %v11443_v17 = vld [vmem:[%s13033_s24 + $0x58] sm:$0x1] }
 0x191   : > { %v3302_v56 = vpop.f32.mrf.mxu0  ;;  %v15940_v22 = vpop.f32.mrf.mxu1  ;;  %v8675_v45 = vsel %vm596_vm3, %v8674_v52, %v8673_v54  ;;  %v8684_v2 = vrot.slane %v11453_v3, 7  ;;  %v17434_v43 = vand.u32 4294901760, %v15754_v35  ;;  %v8651_v3 = vsel %vm602_vm5, %v8650_v1, %v8649_v53  ;;  %v11451_v1 = vld [vmem:[%s13033_s24 + $0x7c] sm:$0x1]  ;;  %v11455_v53 = vld [vmem:[%s13033_s24 + $0x98] sm:$0x1] }
 0x192   : > { %12672 = vmatmul.mubr.f32.gmra.mxu1 %v15665_v63  ;;  %12654 = vmatprep.mubr.f32.mxu0 %v17431_v20  ;;  %v15945_v41 = vadd.f32 %v3405_v28, %v17432_v31  ;;  %v3423_v15 = vadd.f32 %v15842_v47, %v3309_v50  ;;  %v3303_v14 = vadd.f32 %v3302_v56, %v15820_v49  ;;  %v8666_v20 = vrot.slane %v11442_v4, 2 }
 0x193   : > { %12674 = vmatprep.mubr.f32.mxu1 %v15679_v25  ;;  %v12320_v29 = vpop.f32.mrf.mxu0  ;;  %v15953_v52 = vpop.f32.mrf.mxu1  ;;  %v8665_v62 = vsel %vm602_vm5, %v8664_v19, %v8663_v32  ;;  %v8677_v47 = vsel %vm599_vm4, %v8676_v18, %v8675_v45  ;;  %v8680_v49 = vrot.slane %v11450_v5, 2  ;;  %v17436_v35 = vand.u32 4294901760, %v15785_v10  ;;  %v11461_v45 = vld [vmem:[%s13033_s24 + $0xb8] sm:$0x1] }
 0x194   : > { %17433 = vst [vmem:[#allocation10_spill] sm:$0xff] %v15945_v41  ;;  %12655 = vmatmul.mubr.f32.vlgmr.msra.gmra.mxu0 %v17434_v43  ;;  %v15960_v54 = vadd.f32 %v3423_v15, %v15506_v59  ;;  %v3417_v4 = vadd.f32 %v15868_v58, %v3303_v14  ;;  %v15964_v28 = vadd.f32 %v15889_v12, %v12320_v29  ;;  %v8686_v32 = vrot.slane %v11454_v21, 6  ;;  %v17437_v59 = vld [vmem:[#allocation9_spill] sm:$0xff]  ;;  %v11462_v21 = vld [vmem:[%s13033_s24 + $0xba] sm:$0x1] }
 0x195   : > { %12681 = vmatpush3.msra.mxu0 %v17421_v55  ;;  %12657 = vmatprep.mubr.f32.mxu0 %v17436_v35  ;;  %v3767_v19 = vpop.f32.mrf.mxu0  ;;  %v15971_v18 = vpop.f32.mrf.mxu1  ;;  %v8654_v12 = vrot.slane %v15937_v51, 1  ;;  %v8668_v58 = vrot.slane %v11443_v17, 1  ;;  %v8679_v55 = vsel %vm602_vm5, %v8678_v61, %v8677_v47  ;;  %v8685_v10 = vsel %vm590_vm1, %v8684_v2, %v11452_v27  ;;  %v11463_v35 = vld [vmem:[%s13033_s24 + $0xbc] sm:$0x1] }
 0x196   : > { %12675 = vmatmul.mubr.f32.gmra.mxu1 %v15729_v11  ;;  %17435 = vst [vmem:[#allocation11_spill] sm:$0xff] %v15960_v54  ;;  %12708 = vmatprep.subr.mxu0 %v17437_v59  ;;  %v15979_v50 = vadd.f32 %v3417_v4, %v15521_v7  ;;  %v15982_v29 = vadd.f32 %v15903_v44, %v3767_v19  ;;  %v17439_v31 = vand.u32 4294901760, %v15797_v9  ;;  %v7887_v61 = vand.u32 4294901760, %v15853_v46 }
 0x197   : > { %12677 = vmatprep.mubr.f32.mxu1 %v15731_v0  ;;  %v8653_v5 = vsel %vm605_vm6, %v8652_v60, %v8651_v3  ;;  %v8667_v56 = vsel %vm605_vm6, %v8666_v20, %v8665_v62  ;;  %v12323_v51 = vpop.f32.mrf.mxu0  ;;  %v12343_v27 = vpop.f32.mrf.mxu1  ;;  %v17440_v7 = vand.u32 4294901760, %v15871_v37  ;;  %v8682_v44 = vrot.slane %v11451_v1, 1  ;;  %v11456_v60 = vld [vmem:[%s13033_s24 + $0x9a] sm:$0x1]  ;;  %v11460_v62 = vld [vmem:[%s13033_s24 + $0xb6] sm:$0x1] }
 0x198   : > { %17438 = vst [vmem:[#allocation12_spill] sm:$0xff] %v15979_v50  ;;  %12658 = vmatmul.mubr.f32.gmra.mxu0 %v17439_v31  ;;  %v8688_v15 = vrot.slane %v11455_v53, 5  ;;  %v15997_v14 = vadd.f32 %v15921_v24, %v12323_v51  ;;  %v17441_v9 = vand.u32 4294901760, %v15814_v40  ;;  %v17442_v46 = vand.u32 4294901760, %v15555_v8  ;;  %v11457_v51 = vld [vmem:[%s13033_s24 + $0x9c] sm:$0x1] }
 0x199   : > { %v7896_v2 = vsub.f32 %v15871_v37, %v17440_v7  ;;  %v17443_v17 = vsub.f32 %v15827_v26, %v15874_v39  ;;  %v8681_v43 = vsel %vm605_vm6, %v8680_v49, %v8679_v55  ;;  %v8687_v3 = vsel %vm593_vm2, %v8686_v32, %v8685_v10  ;;  %v3787_v47 = vpop.f32.mrf.mxu0  ;;  %v16011_v4 = vpop.f32.mrf.mxu1  ;;  %v16037_v7 = vld [vmem:[%s13033_s24 + $0x9e] sm:$0x1] }
 0x19a   : > { %12678 = vmatmul.mubr.f32.gmra.mxu1 %v15835_v23  ;;  %12660 = vmatprep.mubr.f32.mxu0 %v17441_v9  ;;  %v8655_v40 = vsel %vm608_vm7, %v8654_v12, %v8653_v5  ;;  %v8669_v24 = vsel %vm608_vm7, %v8668_v58, %v8667_v56  ;;  %v8698_v1 = vrot.slane %v11461_v45, 7  ;;  %v8700_v53 = vrot.slane %v11462_v21, 6 }
 0x19b   : > { %12696 = vmatprep.mubr.f32.mxu1 %v17442_v46  ;;  %v16006_v20 = vand.u32 4294901760, %v17443_v17  ;;  %v16017_v19 = vadd.f32 %v15940_v22, %v3787_v47  ;;  %v8690_v49 = vrot.slane %v11456_v60, 4  ;;  %v12326_v55 = vpop.f32.mrf.mxu0  ;;  %v17444_v32 = vand.u32 4294901760, %v15848_v34  ;;  %v16022_v31 = vpop.f32.mrf.mxu1  ;;  %v11464_v22 = vld [vmem:[%s13033_s24 + $0xbe] sm:$0x1] }
 0x19c   : > { %v7897_v10 = vand.u32 4294901760, %v7896_v2  ;;  %v17445_v12 = vand.u32 4294901760, %v15643_v57  ;;  %v8683_v58 = vsel %vm608_vm7, %v8682_v44, %v8681_v43  ;;  %v8689_v5 = vsel %vm596_vm3, %v8688_v15, %v8687_v3  ;;  %v11469_v44 = vld [vmem:[%s13033_s24 + $0xdc] sm:$0x1]  ;;  %v11471_v46 = vld [vmem:[%s13033_s24 + $0xe0] sm:$0x1] }
 0x19d   : > { %12661 = vmatmul.mubr.f32.gmra.mxu0 %v17444_v32  ;;  %v8699_v56 = vsel %vm590_vm1, %v8698_v1, %v11460_v62  ;;  %v16031_v45 = vadd.f32 %v15953_v52, %v12326_v55  ;;  %v8754_v34 = vsel %vm708_vm8, %v8655_v40, 0  ;;  %v8756_v21 = vsel %vm708_vm8, %v8669_v24, 0  ;;  %v3807_v60 = vpop.f32.mrf.mxu0  ;;  %v16040_v15 = vpop.f32.mrf.mxu1  ;;  %v11465_v62 = vld [vmem:[%s13033_s24 + $0xc0] sm:$0x1]  ;;  %v11468_v47 = vld [vmem:[%s13033_s24 + $0xda] sm:$0x1] }
 0x19e   : > { %12697 = vmatmul.mubr.f32.vlgmr.msra.gmra.mxu1 %v17445_v12  ;;  %12663 = vmatprep.mubr.f32.mxu0 %v7887_v61  ;;  %v8702_v2 = vrot.slane %v11463_v35, 5  ;;  %v17446_v9 = vand.u32 4294901760, %v15653_v30  ;;  %v8692_v52 = vrot.slane %v11457_v51, 3  ;;  %v11470_v61 = vld [vmem:[%s13033_s24 + $0xde] sm:$0x1]  ;;  %v16049_v17 = vadd.f32 %v15971_v18, %v3807_v60 }
 0x19f   : > { %12723 = vmatpush3.msra.mxu1 %v15349_v6  ;;  %v8701_v6 = vsel %vm593_vm2, %v8700_v53, %v8699_v56  ;;  %v8758_v43 = vsel %vm708_vm8, %v8683_v58, 0  ;;  %v8691_v3 = vsel %vm599_vm4, %v8690_v49, %v8689_v5  ;;  %v12329_v40 = vpop.f32.mrf.mxu0  ;;  %v16055_v24 = vpop.f32.mrf.mxu1  ;;  %v17447_v35 = vand.u32 4294901760, %v15712_v13  ;;  %v11472_v51 = vld [vmem:[%s13033_s24 + $0xe2] sm:$0x1]  ;;  %v11473_v12 = vld [vmem:[%s13033_s24 + $0xe4] sm:$0x1] }
 0x1a0   : > { %12699 = vmatprep.mubr.f32.mxu1 %v17446_v9  ;;  %12750 = vmatprep.subr.mxu1 %v16006_v20  ;;  %v16059_v1 = vand.u32 4294901760, %v8754_v34  ;;  %v16061_v53 = vand.u32 4294901760, %v8756_v21  ;;  %v8704_v18 = vrot.slane %v11464_v22, 4  ;;  %v8712_v55 = vrot.slane %v11469_v44, 7  ;;  %v16076_v44 = vld [vmem:[%s13033_s24 + $0xa0] sm:$0x1] }
 0x1a1   : > { %12664 = vmatmul.mubr.f32.gmra.mxu0 %v7897_v10  ;;  %v16064_v49 = vadd.f32 %v12343_v27, %v12329_v40  ;;  %v17448_v32 = vand.u32 4294901760, %v15720_v38  ;;  %v8703_v10 = vsel %vm596_vm3, %v8702_v2, %v8701_v6  ;;  %v8714_v58 = vrot.slane %v11470_v61, 6  ;;  %v3827_v56 = vpop.f32.mrf.mxu0  ;;  %v16071_v60 = vpop.f32.mrf.mxu1  ;;  %v11466_v6 = vld [vmem:[%s13033_s24 + $0xc2] sm:$0x1] }
 0x1a2   : > { %12700 = vmatmul.mubr.f32.gmra.mxu1 %v17447_v35  ;;  %12682 = vmatprep.mubr.f32.mxu0 %v15555_v8  ;;  %v8716_v5 = vrot.slane %v11471_v46, 5  ;;  %v16073_v22 = vand.u32 4294901760, %v8758_v43  ;;  %v8693_v27 = vsel %vm602_vm5, %v8692_v52, %v8691_v3  ;;  %v8694_v8 = vrot.slane %v16037_v7, 2  ;;  %v11477_v35 = vld [vmem:[%s13033_s24 + $0x100] sm:$0x1]  ;;  %v17449_v7 = vld [vmem:[#allocation13_spill] sm:$0xff] }
 0x1a3   : > { %12702 = vmatprep.mubr.f32.mxu1 %v17448_v32  ;;  %v8713_v9 = vsel %vm590_vm1, %v8712_v55, %v11468_v47  ;;  %v16082_v2 = vadd.f32 %v16011_v4, %v3827_v56  ;;  %v8706_v61 = vrot.slane %v11465_v62, 3  ;;  %v8718_v40 = vrot.slane %v11472_v51, 4  ;;  %v12348_v32 = vpop.f32.mrf.mxu0  ;;  %v16088_v52 = vpop.f32.mrf.mxu1  ;;  %v16097_v62 = vld [vmem:[%s13033_s24 + $0xe6] sm:$0x1] }
 0x1a4   : > { %v8715_v46 = vsel %vm593_vm2, %v8714_v58, %v8713_v9  ;;  %v17450_v3 = vand.u32 4294901760, %v17449_v7  ;;  %v16093_v47 = vsub.f32 %v8754_v34, %v16059_v1  ;;  %v8705_v4 = vsel %vm599_vm4, %v8704_v18, %v8703_v10  ;;  %v11478_v58 = vld [vmem:[%s13033_s24 + $0x102] sm:$0x1]  ;;  %v11476_v10 = vld [vmem:[%s13033_s24 + $0xfe] sm:$0x1] }
 0x1a5   : > { %12683 = vmatmul.mubr.f32.vlgmr.msra.gmra.mxu0 %v15643_v57  ;;  %v8717_v51 = vsel %vm596_vm3, %v8716_v5, %v8715_v46  ;;  %v8720_v55 = vrot.slane %v11473_v12, 3  ;;  %v4037_v56 = vadd.f32 %v12348_v32, %v15964_v28  ;;  %v16105_v57 = vsub.f32 %v8756_v21, %v16061_v53  ;;  %v11479_v9 = vld [vmem:[%s13033_s24 + $0x104] sm:$0x1]  ;;  %v4029_v5 = vpop.f32.mrf.mxu0  ;;  %v16111_v12 = vpop.f32.mrf.mxu1  ;;  %v17451_v46 = vld [vmem:[#allocation4_spill] sm:$0xff] }
 0x1a6   : > { %12703 = vmatmul.mubr.f32.gmra.mxu1 %v17450_v3  ;;  %12709 = vmatpush3.msra.mxu0 %v17437_v59  ;;  %v8696_v34 = vrot.slane %v16076_v44, 1  ;;  %v8719_v18 = vsel %vm599_vm4, %v8718_v40, %v8717_v51  ;;  %v17452_v28 = vand.u32 4294901760, %v17451_v46  ;;  %v17453_v59 = vld [vmem:[#allocation14_spill] sm:$0xff]  ;;  %v8695_v21 = vsel %vm605_vm6, %v8694_v8, %v8693_v27  ;;  %v11467_v51 = vld [vmem:[%s13033_s24 + $0xc4] sm:$0x1] }
 0x1a7   : > { %12685 = vmatprep.mubr.f32.mxu0 %v15653_v30  ;;  %12736 = vmatprep.subr.mxu0 %v17453_v59  ;;  %v16117_v30 = vsub.f32 %v8758_v43, %v16073_v22  ;;  %v8708_v44 = vrot.slane %v11466_v6, 2  ;;  %v8726_v32 = vrot.slane %v11477_v35, 7  ;;  %v16121_v40 = vadd.f32 %v16022_v31, %v4037_v56  ;;  %v12351_v54 = vpop.f32.mrf.mxu0  ;;  %v16128_v43 = vpop.f32.mrf.mxu1  ;;  %v11482_v6 = vld [vmem:[%s13033_s24 + $0x10a] sm:$0x1] }
 0x1a8   : > { %12705 = vmatprep.mubr.f32.mxu1 %v17452_v28  ;;  %v4030_v3 = vadd.f32 %v4029_v5, %v15982_v29  ;;  %v8707_v50 = vsel %vm602_vm5, %v8706_v61, %v8705_v4  ;;  %v11480_v28 = vld [vmem:[%s13033_s24 + $0x106] sm:$0x1]  ;;  %v8728_v39 = vrot.slane %v11478_v58, 6  ;;  %v17454_v27 = vand.u32 4294901760, %v15871_v37  ;;  %v11481_v29 = vld [vmem:[%s13033_s24 + $0x108] sm:$0x1] }
 0x1a9   : > { %12686 = vmatmul.mubr.f32.gmra.mxu0 %v15712_v13  ;;  %v8721_v8 = vsel %vm602_vm5, %v8720_v55, %v8719_v18  ;;  %v8722_v31 = vrot.slane %v16097_v62, 2  ;;  %v8727_v61 = vsel %vm590_vm1, %v8726_v32, %v11476_v10  ;;  %v8730_v35 = vrot.slane %v11479_v9, 5  ;;  %v17455_v58 = vld [vmem:[#allocation6_spill] sm:$0xff]  ;;  %v11475_v55 = vld [vmem:[%s13033_s24 + $0xe8] sm:$0x1]  ;;  %v4043_v56 = vpop.f32.mrf.mxu0  ;;  %v16145_v18 = vpop.f32.mrf.mxu1 }
 0x1aa   : > { %12706 = vmatmul.mubr.f32.gmra.mxu1 %v17454_v27  ;;  %v16138_v4 = vadd.f32 %v16040_v15, %v4030_v3  ;;  %v4051_v13 = vadd.f32 %v12351_v54, %v15997_v14  ;;  %12688 = vmatprep.mubr.f32.mxu0 %v15720_v38  ;;  %v8729_v62 = vsel %vm593_vm2, %v8728_v39, %v8727_v61  ;;  %v8710_v9 = vrot.slane %v11467_v51, 1  ;;  %v11483_v5 = vld [vmem:[%s13033_s24 + $0x10c] sm:$0x1]  ;;  %v11485_v54 = vld [vmem:[%s13033_s24 + $0x124] sm:$0x1] }
 0x1ab   : > { %12724 = vmatprep.mubr.f32.mxu1 %v17455_v58  ;;  %v8709_v10 = vsel %vm605_vm6, %v8708_v44, %v8707_v50  ;;  %v8731_v15 = vsel %vm596_vm3, %v8730_v35, %v8729_v62  ;;  %v8732_v32 = vrot.slane %v11480_v28, 4  ;;  %v4044_v14 = vadd.f32 %v4043_v56, %v16017_v19  ;;  %v11486_v39 = vld [vmem:[%s13033_s24 + $0x126] sm:$0x1]  ;;  %v11487_v61 = vld [vmem:[%s13033_s24 + $0x128] sm:$0x1]  ;;  %v12354_v41 = vpop.f32.mrf.mxu0  ;;  %v16158_v50 = vpop.f32.mrf.mxu1 }
 0x1ac   : > { %v16152_v38 = vadd.f32 %v16055_v24, %v4051_v13  ;;  %v8734_v3 = vrot.slane %v11481_v29, 3  ;;  %v8736_v27 = vrot.slane %v11482_v6, 2  ;;  %v8697_v44 = vsel %vm608_vm7, %v8696_v34, %v8695_v21  ;;  %v11484_v19 = vld [vmem:[%s13033_s24 + $0x122] sm:$0x1]  ;;  %v11488_v34 = vld [vmem:[%s13033_s24 + $0x12a] sm:$0x1] }
 0x1ad   : > { %12689 = vmatmul.mubr.f32.gmra.mxu0 %v17449_v7  ;;  %v8723_v51 = vsel %vm605_vm6, %v8722_v31, %v8721_v8  ;;  %v8724_v24 = vrot.slane %v11475_v55, 1  ;;  %v8733_v28 = vsel %vm599_vm4, %v8732_v32, %v8731_v15  ;;  %v16166_v29 = vadd.f32 %v16071_v60, %v4044_v14  ;;  %v4057_v8 = vpop.f32.mrf.mxu0  ;;  %v16173_v31 = vpop.f32.mrf.mxu1  ;;  %v11489_v55 = vld [vmem:[%s13033_s24 + $0x12c] sm:$0x1]  ;;  %v11490_v62 = vld [vmem:[%s13033_s24 + $0x12e] sm:$0x1] }
 0x1ae   : > { %12725 = vmatmul.mubr.f32.vlgmr.msra.gmra.mxu1 %v15610_v42  ;;  %v4065_v6 = vadd.f32 %v12354_v41, %v16031_v45  ;;  %12691 = vmatprep.mubr.f32.mxu0 %v17451_v46  ;;  %v8735_v7 = vsel %vm602_vm5, %v8734_v3, %v8733_v28  ;;  %v8740_v21 = vrot.slane %v11485_v54, 7  ;;  %v8711_v60 = vsel %vm608_vm7, %v8710_v9, %v8709_v10  ;;  %v11491_v9 = vld [vmem:[%s13033_s24 + $0x130] sm:$0x1] }
 0x1af   : > { %12751 = vmatpush3.msra.mxu1 %v16006_v20  ;;  %12727 = vmatprep.mubr.f32.mxu1 %v15617_v33  ;;  %v8738_v41 = vrot.slane %v11483_v5, 1  ;;  %v8742_v45 = vrot.slane %v11486_v39, 6  ;;  %v8744_v46 = vrot.slane %v11487_v61, 5  ;;  %v4058_v35 = vadd.f32 %v4057_v8, %v16049_v17  ;;  %v12357_v15 = vpop.f32.mrf.mxu0  ;;  %v16187_v32 = vpop.f32.mrf.mxu1 }
 0x1b0   : > { %12778 = vmatprep.subr.mxu1 %v17453_v59  ;;  %v16179_v20 = vadd.f32 %v16088_v52, %v4065_v6  ;;  %v8737_v13 = vsel %vm605_vm6, %v8736_v27, %v8735_v7  ;;  %v8741_v56 = vsel %vm590_vm1, %v8740_v21, %v11484_v19  ;;  %v8760_v10 = vsel %vm708_vm8, %v8697_v44, 0 }
 0x1b1   : > { %12692 = vmatmul.mubr.f32.gmra.mxu0 %v15871_v37  ;;  %v8725_v52 = vsel %vm608_vm7, %v8724_v24, %v8723_v51  ;;  %v8743_v17 = vsel %vm593_vm2, %v8742_v45, %v8741_v56  ;;  %v8746_v5 = vrot.slane %v11488_v34, 4  ;;  %v16195_v54 = vadd.f32 %v16111_v12, %v4058_v35  ;;  %v4071_v27 = vpop.f32.mrf.mxu0  ;;  %v16202_v39 = vpop.f32.mrf.mxu1 }
 0x1b2   : > { %12728 = vmatmul.mubr.f32.gmra.mxu1 %v15665_v63  ;;  %v4079_v14 = vadd.f32 %v12357_v15, %v16064_v49  ;;  %12710 = vmatprep.mubr.f32.mxu0 %v17455_v58  ;;  %v8762_v37 = vsel %vm708_vm8, %v8711_v60, 0  ;;  %v8745_v3 = vsel %vm596_vm3, %v8744_v46, %v8743_v17  ;;  %v8739_v61 = vsel %vm608_vm7, %v8738_v41, %v8737_v13 }
 0x1b3   : > { %12730 = vmatprep.mubr.f32.mxu1 %v15679_v25  ;;  %v8747_v44 = vsel %vm599_vm4, %v8746_v5, %v8745_v3  ;;  %v8748_v51 = vrot.slane %v11489_v55, 3  ;;  %v8750_v12 = vrot.slane %v11490_v62, 2  ;;  %v4072_v49 = vadd.f32 %v4071_v27, %v16082_v2  ;;  %v12376_v19 = vpop.f32.mrf.mxu0  ;;  %v16213_v6 = vpop.f32.mrf.mxu1 }
 0x1b4   : > { %v16207_v24 = vadd.f32 %v16128_v43, %v4079_v14  ;;  %v16210_v58 = vand.u32 4294901760, %v8760_v10  ;;  %v8752_v28 = vrot.slane %v11491_v9, 1  ;;  %v8841_v7 = vand.u32 4294901760, %v16093_v47 }
 0x1b5   : > { %12711 = vmatmul.mubr.f32.vlgmr.msra.gmra.mxu0 %v15610_v42  ;;  %v16217_v34 = vand.u32 4294901760, %v8762_v37  ;;  %v8764_v21 = vsel %vm708_vm8, %v8725_v52, 0  ;;  %v8749_v43 = vsel %vm602_vm5, %v8748_v51, %v8747_v44  ;;  %v16222_v2 = vadd.f32 %v16145_v18, %v4072_v49  ;;  %v4282_v41 = vpop.f32.mrf.mxu0  ;;  %v16229_v45 = vpop.f32.mrf.mxu1 }
 0x1b6   : > { %12731 = vmatmul.mubr.f32.gmra.mxu1 %v15729_v11  ;;  %v4289_v8 = vadd.f32 %v12376_v19, %v16121_v40  ;;  %12737 = vmatpush3.msra.mxu0 %v17453_v59  ;;  %v8766_v42 = vsel %vm708_vm8, %v8739_v61, 0  ;;  %v8751_v60 = vsel %vm605_vm6, %v8750_v12, %v8749_v43  ;;  %v8851_v18 = vand.u32 4294901760, %v16105_v57 }
 0x1b7   : > { %12713 = vmatprep.mubr.f32.mxu0 %v15617_v33  ;;  %12733 = vmatprep.mubr.f32.mxu1 %v15731_v0  ;;  %v8861_v46 = vand.u32 4294901760, %v16117_v30  ;;  %v8753_v40 = vsel %vm608_vm7, %v8752_v28, %v8751_v60  ;;  %v4283_v33 = vadd.f32 %v4282_v41, %v16138_v4  ;;  %v16239_v13 = vsub.f32 %v8760_v10, %v16210_v58  ;;  %v12379_v55 = vpop.f32.mrf.mxu0  ;;  %v12399_v62 = vpop.f32.mrf.mxu1  ;;  %v17456_v4 = vld [vmem:[#allocation5_spill] sm:$0xff] }
 0x1b8   : > { %12764 = vmatprep.subr.mxu0 %v15827_v26  ;;  %v4403_v35 = vadd.f32 %v16158_v50, %v4289_v8  ;;  %v8842_v56 = vsub.f32 %v16093_v47, %v8841_v7  ;;  %v16247_v15 = vsub.f32 %v8762_v37, %v16217_v34  ;;  %v16249_v52 = vand.u32 4294901760, %v8764_v21 }
 0x1b9   : > { %12714 = vmatmul.mubr.f32.gmra.mxu0 %v15665_v63  ;;  %v16251_v50 = vand.u32 4294901760, %v8766_v42  ;;  %v4397_v9 = vadd.f32 %v16173_v31, %v4283_v33  ;;  %v4301_v63 = vadd.f32 %v12379_v55, %v16152_v38  ;;  %v8768_v17 = vsel %vm708_vm8, %v8753_v40, 0  ;;  %v4294_v5 = vpop.f32.mrf.mxu0  ;;  %v4432_v14 = vpop.f32.mrf.mxu1 }
 0x1ba   : > { %12734 = vmatmul.mubr.f32.gmra.mxu1 %v15835_v23  ;;  %v16254_v10 = vadd.f32 %v4403_v35, %v17456_v4  ;;  %12716 = vmatprep.mubr.f32.mxu0 %v15679_v25  ;;  %v8852_v37 = vsub.f32 %v16105_v57, %v8851_v18  ;;  %v8862_v3 = vsub.f32 %v16117_v30, %v8861_v46  ;;  %v8871_v27 = vand.u32 4294901760, %v16239_v13 }
 0x1bb   : > { %12752 = vmatprep.mubr.f32.mxu1 %v16059_v1  ;;  %v16268_v31 = vadd.f32 %v4397_v9, %v15882_v36  ;;  %v4415_v38 = vadd.f32 %v16187_v32, %v4301_v63  ;;  %v4295_v25 = vadd.f32 %v4294_v5, %v16166_v29  ;;  %v12382_v61 = vpop.f32.mrf.mxu0  ;;  %v12418_v44 = vpop.f32.mrf.mxu1  ;;  %v8881_v51 = vand.u32 4294901760, %v16247_v15  ;;  %v17457_v32 = vld [vmem:[#allocation8_spill] sm:$0xff]  ;;  %v17458_v9 = vld [vmem:[#allocation10_spill] sm:$0xff] }
 0x1bc   : > { %v16277_v12 = vsub.f32 %v8764_v21, %v16249_v52  ;;  %v16280_v36 = vsub.f32 %v8766_v42, %v16251_v50  ;;  %v16282_v49 = vand.u32 4294901760, %v8768_v17  ;;  %v8843_v19 = vand.u32 4294901760, %v8842_v56 }
 0x1bd   : > { %12717 = vmatmul.mubr.f32.gmra.mxu0 %v15729_v11  ;;  %v16285_v29 = vadd.f32 %v4415_v38, %v17457_v32  ;;  %v4409_v28 = vadd.f32 %v16202_v39, %v4295_v25  ;;  %v4313_v11 = vadd.f32 %v12382_v61, %v16179_v20  ;;  %v4306_v43 = vpop.f32.mrf.mxu0  ;;  %v8853_v21 = vand.u32 4294901760, %v8852_v37  ;;  %v4928_v8 = vpop.f32.mrf.mxu1  ;;  %v17459_v25 = vld [vmem:[#allocation11_spill] sm:$0xff] }
 0x1be   : > { %12753 = vmatmul.mubr.f32.vlgmr.msra.gmra.mxu1 %v16061_v53  ;;  %12719 = vmatprep.mubr.f32.mxu0 %v15731_v0  ;;  %v4307_v39 = vadd.f32 %v4306_v43, %v16195_v54  ;;  %v8872_v0 = vsub.f32 %v16239_v13, %v8871_v27  ;;  %v8882_v40 = vsub.f32 %v16247_v15, %v8881_v51  ;;  %v8863_v55 = vand.u32 4294901760, %v8862_v3  ;;  %v17461_v43 = vld [vmem:[#allocation12_spill] sm:$0xff] }
 0x1bf   : > { %12779 = vmatpush3.msra.mxu1 %v17453_v59  ;;  %12755 = vmatprep.mubr.f32.mxu1 %v16073_v22  ;;  %v16294_v42 = vadd.f32 %v4409_v28, %v15912_v48  ;;  %v4427_v60 = vadd.f32 %v16213_v6, %v4313_v11  ;;  %v12385_v20 = vpop.f32.mrf.mxu0  ;;  %v12421_v41 = vpop.f32.mrf.mxu1  ;;  %v8891_v48 = vand.u32 4294901760, %v16277_v12  ;;  %v8901_v6 = vand.u32 4294901760, %v16280_v36 }
 0x1c0   : > { %12806 = vmatprep.subr.mxu1 %v17453_v59  ;;  %v16309_v54 = vsub.f32 %v8768_v17, %v16282_v49  ;;  %v4421_v33 = vadd.f32 %v16229_v45, %v4307_v39  ;;  %v8883_v32 = vand.u32 4294901760, %v8882_v40 }
 0x1c1   : > { %12720 = vmatmul.mubr.f32.gmra.mxu0 %v15835_v23  ;;  %v16312_v35 = vadd.f32 %v4427_v60, %v15928_v16  ;;  %v4325_v23 = vadd.f32 %v12385_v20, %v16207_v24  ;;  %v4318_v56 = vpop.f32.mrf.mxu0  ;;  %v4940_v4 = vpop.f32.mrf.mxu1  ;;  %v8873_v16 = vand.u32 4294901760, %v8872_v0  ;;  %v8892_v24 = vsub.f32 %v16277_v12, %v8891_v48 }
 0x1c2   : > { %12756 = vmatmul.mubr.f32.gmra.mxu1 %v16210_v58  ;;  %12738 = vmatprep.mubr.f32.mxu0 %v8843_v19  ;;  %v16318_v63 = vadd.f32 %v4421_v33, %v17458_v9  ;;  %v4319_v17 = vadd.f32 %v4318_v56, %v16222_v2  ;;  %v8902_v45 = vsub.f32 %v16280_v36, %v8901_v6  ;;  %v8911_v3 = vand.u32 4294901760, %v16309_v54  ;;  %v17460_v19 = vld [vmem:[#allocation7_spill] sm:$0xff] }
 0x1c3   : > { %12758 = vmatprep.mubr.f32.mxu1 %v16217_v34  ;;  %v4439_v5 = vadd.f32 %v12399_v62, %v4325_v23  ;;  %v12404_v37 = vpop.f32.mrf.mxu0  ;;  %v12424_v38 = vpop.f32.mrf.mxu1  ;;  %v8893_v0 = vand.u32 4294901760, %v8892_v24 }
 0x1c4   : > { %v4433_v2 = vadd.f32 %v4432_v14, %v4319_v17  ;;  %v4935_v61 = vadd.f32 %v12418_v44, %v12404_v37  ;;  %v8912_v44 = vsub.f32 %v16309_v54, %v8911_v3  ;;  %v8903_v20 = vand.u32 4294901760, %v8902_v45 }
 0x1c5   : > { %12739 = vmatmul.mubr.f32.vlgmr.msra.gmra.mxu0 %v8853_v21  ;;  %v16330_v62 = vadd.f32 %v4439_v5, %v17459_v25  ;;  %v4782_v28 = vpop.f32.mrf.mxu0  ;;  %v4952_v11 = vpop.f32.mrf.mxu1 }
 0x1c6   : > { %12759 = vmatmul.mubr.f32.gmra.mxu1 %v16249_v52  ;;  %12765 = vmatpush3.msra.mxu0 %v15827_v26  ;;  %v16336_v21 = vadd.f32 %v4433_v2, %v17461_v43  ;;  %v16338_v60 = vadd.f32 %v4928_v8, %v4782_v28 }
 0x1c7   : > { %12741 = vmatprep.mubr.f32.mxu0 %v8863_v55  ;;  %12761 = vmatprep.mubr.f32.mxu1 %v16251_v50  ;;  %v12407_v39 = vpop.f32.mrf.mxu0  ;;  %v12427_v14 = vpop.f32.mrf.mxu1  ;;  %v8913_v55 = vand.u32 4294901760, %v8912_v44 }
 0x1c8   : > { %12792 = vmatprep.subr.mxu0 %v17460_v19  ;;  %v4947_v26 = vadd.f32 %v12421_v41, %v12407_v39 }
 0x1c9   : > { %12742 = vmatmul.mubr.f32.gmra.mxu0 %v8873_v16  ;;  %v4802_v40 = vpop.f32.mrf.mxu0  ;;  %v4964_v33 = vpop.f32.mrf.mxu1 }
 0x1ca   : > { %12762 = vmatmul.mubr.f32.gmra.mxu1 %v16282_v49  ;;  %12744 = vmatprep.mubr.f32.mxu0 %v8883_v32  ;;  %v16344_v23 = vadd.f32 %v4940_v4, %v4802_v40 }
 0x1cb   : > { %12780 = vmatprep.mubr.f32.mxu1 %v8841_v7  ;;  %v12410_v8 = vpop.f32.mrf.mxu0  ;;  %v12446_v56 = vpop.f32.mrf.mxu1 }
 0x1cc   : > { %v4959_v9 = vadd.f32 %v12424_v38, %v12410_v8 }
 0x1cd   : > { %12745 = vmatmul.mubr.f32.gmra.mxu0 %v8893_v0  ;;  %v4822_v41 = vpop.f32.mrf.mxu0  ;;  %v5167_v5 = vpop.f32.mrf.mxu1 }
 0x1ce   : > { %12781 = vmatmul.mubr.f32.vlgmr.msra.gmra.mxu1 %v8851_v18  ;;  %12747 = vmatprep.mubr.f32.mxu0 %v8903_v20  ;;  %v16351_v7 = vadd.f32 %v4952_v11, %v4822_v41 }
 0x1cf   : > { %12807 = vmatpush3.msra.mxu1 %v17453_v59  ;;  %12783 = vmatprep.mubr.f32.mxu1 %v8861_v46  ;;  %v12413_v4 = vpop.f32.mrf.mxu0  ;;  %v12449_v17 = vpop.f32.mrf.mxu1 }
 0x1d0   : > { %v4971_v37 = vadd.f32 %v12427_v14, %v12413_v4 }
 0x1d1   : > { %12748 = vmatmul.mubr.f32.gmra.mxu0 %v8913_v55  ;;  %v4842_v59 = vpop.f32.mrf.mxu0  ;;  %v5183_v18 = vpop.f32.mrf.mxu1 }
 0x1d2   : > { %12784 = vmatmul.mubr.f32.gmra.mxu1 %v8871_v27  ;;  %12766 = vmatprep.mubr.f32.mxu0 %v16093_v47  ;;  %v16358_v16 = vadd.f32 %v4964_v33, %v4842_v59 }
 0x1d3   : > { %12786 = vmatprep.mubr.f32.mxu1 %v8881_v51  ;;  %v12432_v38 = vpop.f32.mrf.mxu0  ;;  %v12452_v46 = vpop.f32.mrf.mxu1 }
 0x1d4   : > { %v5052_v24 = vadd.f32 %v12432_v38, %v4935_v61 }
 0x1d5   : > { %12767 = vmatmul.mubr.f32.vlgmr.msra.gmra.mxu0 %v16105_v57  ;;  %v5044_v47 = vpop.f32.mrf.mxu0  ;;  %v5199_v27 = vpop.f32.mrf.mxu1 }
 0x1d6   : > { %12787 = vmatmul.mubr.f32.gmra.mxu1 %v8891_v48  ;;  %12793 = vmatpush3.msra.mxu0 %v17460_v19  ;;  %v5176_v51 = vadd.f32 %v12446_v56, %v5052_v24  ;;  %v5045_v19 = vadd.f32 %v5044_v47, %v16338_v60 }
 0x1d7   : > { %12769 = vmatprep.mubr.f32.mxu0 %v16117_v30  ;;  %12789 = vmatprep.mubr.f32.mxu1 %v8901_v6  ;;  %v12435_v45 = vpop.f32.mrf.mxu0  ;;  %v12455_v25 = vpop.f32.mrf.mxu1 }
 0x1d8   : > { %v5066_v57 = vadd.f32 %v12435_v45, %v4947_v26 }
 0x1d9   : > { %12770 = vmatmul.mubr.f32.gmra.mxu0 %v16239_v13  ;;  %v5058_v48 = vpop.f32.mrf.mxu0  ;;  %v16370_v2 = vpop.f32.mrf.mxu1 }
 0x1da   : > { %12790 = vmatmul.mubr.f32.gmra.mxu1 %v8911_v3  ;;  %12772 = vmatprep.mubr.f32.mxu0 %v16247_v15  ;;  %v5192_v30 = vadd.f32 %v12449_v17, %v5066_v57  ;;  %v5059_v44 = vadd.f32 %v5058_v48, %v16344_v23 }
 0x1db   : > { %12808 = vmatprep.mubr.f32.mxu1 %v16059_v1  ;;  %v12438_v61 = vpop.f32.mrf.mxu0  ;;  %v12474_v32 = vpop.f32.mrf.mxu1 }
 0x1dc   : > { %v5080_v6 = vadd.f32 %v12438_v61, %v4959_v9  ;;  %v5184_v55 = vadd.f32 %v5183_v18, %v5059_v44 }
 0x1dd   : > { %12773 = vmatmul.mubr.f32.gmra.mxu0 %v16277_v12  ;;  %v5072_v13 = vpop.f32.mrf.mxu0  ;;  %v5411_v3 = vpop.f32.mrf.mxu1 }
 0x1de   : > { %12809 = vmatmul.mubr.f32.vlgmr.msra.gmra.mxu1 %v16061_v53  ;;  %12775 = vmatprep.mubr.f32.mxu0 %v16280_v36  ;;  %v5208_v15 = vadd.f32 %v12452_v46, %v5080_v6  ;;  %v5073_v33 = vadd.f32 %v5072_v13, %v16351_v7 }
 0x1df   : > { %12811 = vmatprep.mubr.f32.mxu1 %v16073_v22  ;;  %v12441_v28 = vpop.f32.mrf.mxu0  ;;  %v12477_v11 = vpop.f32.mrf.mxu1 }
 0x1e0   : > { %v5094_v12 = vadd.f32 %v12441_v28, %v4971_v37  ;;  %v5200_v17 = vadd.f32 %v5199_v27, %v5073_v33 }
 0x1e1   : > { %12776 = vmatmul.mubr.f32.gmra.mxu0 %v16309_v54  ;;  %v5086_v43 = vpop.f32.mrf.mxu0  ;;  %v5423_v36 = vpop.f32.mrf.mxu1  ;;  %v5168_v54 = vadd.f32 %v5167_v5, %v5045_v19 }
 0x1e2   : > { %12812 = vmatmul.mubr.f32.gmra.mxu1 %v16210_v58  ;;  %12794 = vmatprep.mubr.f32.mxu0 %v16059_v1  ;;  %v5224_v39 = vadd.f32 %v12455_v25, %v5094_v12  ;;  %v5087_v59 = vadd.f32 %v5086_v43, %v16358_v16 }
 0x1e3   : > { %12814 = vmatprep.mubr.f32.mxu1 %v16217_v34  ;;  %v12460_v0 = vpop.f32.mrf.mxu0  ;;  %v12480_v14 = vpop.f32.mrf.mxu1 }
 0x1e4   : > { %v5304_v26 = vadd.f32 %v12460_v0, %v5176_v51  ;;  %v5216_v16 = vadd.f32 %v16370_v2, %v5087_v59 }
 0x1e5   : > { %12795 = vmatmul.mubr.f32.vlgmr.msra.gmra.mxu0 %v16061_v53  ;;  %v5297_v1 = vpop.f32.mrf.mxu0  ;;  %v5435_v60 = vpop.f32.mrf.mxu1 }
 0x1e6   : > { %12815 = vmatmul.mubr.f32.gmra.mxu1 %v16249_v52  ;;  %12797 = vmatprep.mubr.f32.mxu0 %v16073_v22  ;;  %v5418_v20 = vadd.f32 %v12474_v32, %v5304_v26  ;;  %v5298_v40 = vadd.f32 %v5297_v1, %v5168_v54 }
 0x1e7   : > { %12817 = vmatprep.mubr.f32.mxu1 %v16251_v50  ;;  %v12463_v8 = vpop.f32.mrf.mxu0  ;;  %v12483_v53 = vpop.f32.mrf.mxu1 }
 0x1e8   : > { %v16390_v23 = vadd.f32 %v5418_v20, %v16254_v10  ;;  %v5412_v56 = vadd.f32 %v5411_v3, %v5298_v40  ;;  %v5316_v22 = vadd.f32 %v12463_v8, %v5192_v30 }
 0x1e9   : > { %12798 = vmatmul.mubr.f32.gmra.mxu0 %v16210_v58  ;;  %v5309_v9 = vpop.f32.mrf.mxu0  ;;  %v5447_v41 = vpop.f32.mrf.mxu1 }
 0x1ea   : > { %12818 = vmatmul.mubr.f32.gmra.mxu1 %v16282_v49  ;;  %12800 = vmatprep.mubr.f32.mxu0 %v16217_v34  ;;  %v16394_v5 = vadd.f32 %v5412_v56, %v16268_v31  ;;  %v5430_v7 = vadd.f32 %v12477_v11, %v5316_v22  ;;  %v5310_v4 = vadd.f32 %v5309_v9, %v5184_v55 }
 0x1eb   : > { %v12466_v58 = vpop.f32.mrf.mxu0  ;;  %v12502_v37 = vpop.f32.mrf.mxu1 }
 0x1ec   : > { %v16399_v10 = vadd.f32 %v5430_v7, %v16285_v29  ;;  %v5424_v18 = vadd.f32 %v5423_v36, %v5310_v4  ;;  %v5328_v38 = vadd.f32 %v12466_v58, %v5208_v15 }
 0x1ed   : > { %12801 = vmatmul.mubr.f32.gmra.mxu0 %v16249_v52  ;;  %v5321_v34 = vpop.f32.mrf.mxu0  ;;  %v5944_v46 = vpop.f32.mrf.mxu1 }
 0x1ee   : > { %12803 = vmatprep.mubr.f32.mxu0 %v16251_v50  ;;  %v16403_v31 = vadd.f32 %v5424_v18, %v16294_v42  ;;  %v5442_v24 = vadd.f32 %v12480_v14, %v5328_v38  ;;  %v5322_v47 = vadd.f32 %v5321_v34, %v5200_v17 }
 0x1ef   : > { %v12469_v27 = vpop.f32.mrf.mxu0  ;;  %v12505_v52 = vpop.f32.mrf.mxu1 }
 0x1f0   : > { %v16408_v29 = vadd.f32 %v5442_v24, %v16312_v35  ;;  %v5436_v51 = vadd.f32 %v5435_v60, %v5322_v47  ;;  %v5340_v45 = vadd.f32 %v12469_v27, %v5224_v39 }
 0x1f1   : > { %12804 = vmatmul.mubr.f32.gmra.mxu0 %v16282_v49  ;;  %v5333_v25 = vpop.f32.mrf.mxu0  ;;  %v5956_v50 = vpop.f32.mrf.mxu1 }
 0x1f2   : > { %v16411_v57 = vadd.f32 %v5436_v51, %v16318_v63  ;;  %v5454_v42 = vadd.f32 %v12483_v53, %v5340_v45  ;;  %v5334_v48 = vadd.f32 %v5333_v25, %v5216_v16 }
 0x1f3   : > { %v12488_v30 = vpop.f32.mrf.mxu0  ;;  %v12508_v61 = vpop.f32.mrf.mxu1 }
 0x1f4   : > { %v16414_v32 = vadd.f32 %v5454_v42, %v16330_v62  ;;  %v5448_v49 = vadd.f32 %v5447_v41, %v5334_v48  ;;  %v5951_v6 = vadd.f32 %v12502_v37, %v12488_v30 }
 0x1f5   : > { %v5798_v2 = vpop.f32.mrf.mxu0  ;;  %v5968_v13 = vpop.f32.mrf.mxu1 }
 0x1f6   : > { %v16417_v35 = vadd.f32 %v5448_v49, %v16336_v21  ;;  %v5945_v60 = vadd.f32 %v5944_v46, %v5798_v2 }
 0x1f7   : > { %v12491_v3 = vpop.f32.mrf.mxu0  ;;  %v12511_v15 = vpop.f32.mrf.mxu1 }
 0x1f8   : > { %v5963_v28 = vadd.f32 %v12505_v52, %v12491_v3 }
 0x1f9   : > { %v5818_v11 = vpop.f32.mrf.mxu0  ;;  %v5980_v63 = vpop.f32.mrf.mxu1 }
 0x1fa   : > { %v5957_v56 = vadd.f32 %v5956_v50, %v5818_v11 }
 0x1fb   : > { %v12494_v19 = vpop.f32.mrf.mxu0  ;;  %v12530_v12 = vpop.f32.mrf.mxu1 }
 0x1fc   : > { %v5975_v43 = vadd.f32 %v12508_v61, %v12494_v19 }
 0x1fd   : > { %v5838_v36 = vpop.f32.mrf.mxu0  ;;  %v6183_v39 = vpop.f32.mrf.mxu1 }
 0x1fe   : > { %v5969_v59 = vadd.f32 %v5968_v13, %v5838_v36 }
 0x1ff   : > { %v12497_v0 = vpop.f32.mrf.mxu0  ;;  %v12533_v62 = vpop.f32.mrf.mxu1 }
 0x200   : > { %v5987_v14 = vadd.f32 %v12511_v15, %v12497_v0 }
 0x201   : > { %v5858_v54 = vpop.f32.mrf.mxu0  ;;  %v6199_v44 = vpop.f32.mrf.mxu1 }
 0x202   : > { %v5981_v16 = vadd.f32 %v5980_v63, %v5858_v54 }
 0x203   : > { %v12516_v26 = vpop.f32.mrf.mxu0  ;;  %v12536_v1 = vpop.f32.mrf.mxu1 }
 0x204   : > { %v6068_v21 = vadd.f32 %v12516_v26, %v5951_v6 }
 0x205   : > { %v6060_v20 = vpop.f32.mrf.mxu0  ;;  %v6215_v40 = vpop.f32.mrf.mxu1 }
 0x206   : > { %v6192_v33 = vadd.f32 %v12530_v12, %v6068_v21  ;;  %v6061_v8 = vadd.f32 %v6060_v20, %v5945_v60 }
 0x207   : > { %v12519_v53 = vpop.f32.mrf.mxu0  ;;  %v12539_v55 = vpop.f32.mrf.mxu1 }
 0x208   : > { %v6184_v22 = vadd.f32 %v6183_v39, %v6061_v8  ;;  %v6082_v9 = vadd.f32 %v12519_v53, %v5963_v28 }
 0x209   : > { %v6074_v41 = vpop.f32.mrf.mxu0  ;;  %v6231_v7 = vpop.f32.mrf.mxu1 }
 0x20a   : > { %v6208_v4 = vadd.f32 %v12533_v62, %v6082_v9  ;;  %v6075_v17 = vadd.f32 %v6074_v41, %v5957_v56 }
 0x20b   : > { %v12522_v58 = vpop.f32.mrf.mxu0  ;;  %v12558_v37 = vpop.f32.mrf.mxu1 }
 0x20c   : > { %v6200_v18 = vadd.f32 %v6199_v44, %v6075_v17  ;;  %v6096_v38 = vadd.f32 %v12522_v58, %v5975_v43 }
 0x20d   : > { %v6088_v34 = vpop.f32.mrf.mxu0  ;;  %v6427_v46 = vpop.f32.mrf.mxu1 }
 0x20e   : > { %v6224_v24 = vadd.f32 %v12536_v1, %v6096_v38  ;;  %v6089_v47 = vadd.f32 %v6088_v34, %v5969_v59  ;;  %v12937_v38 = vmov 0.0  }
 0x20f   : > { %v12525_v27 = vpop.f32.mrf.mxu0  ;;  %v12561_v52 = vpop.f32.mrf.mxu1  ;;  %379 = vst.msk [vmem:[#allocation2 + $0x20] sm:$0xff] %vm373_vm9, %v12937_v38  ;;  %374 = vst.msk [vmem:[#allocation2] sm:$0xff] %vm373_vm9, %v12937_v38 }
 0x210   : > { %v6216_v51 = vadd.f32 %v6215_v40, %v6089_v47  ;;  %v6110_v45 = vadd.f32 %v12525_v27, %v5987_v14  ;;  %380 = vst.msk [vmem:[#allocation2 + $0x28] sm:$0x3] %vm375_vm10, %v12937_v38  ;;  %376 = vst.msk [vmem:[#allocation2 + $0x8] sm:$0x3] %vm375_vm10, %v12937_v38 }
 0x211   : > { %v6102_v25 = vpop.f32.mrf.mxu0  ;;  %v6439_v50 = vpop.f32.mrf.mxu1  ;;  %377 = vst.msk [vmem:[#allocation2 + $0x10] sm:$0xff] %vm373_vm9, %v12937_v38  ;;  %381 = vst.msk [vmem:[#allocation2 + $0x30] sm:$0xff] %vm373_vm9, %v12937_v38 }
 0x212   : > { %v6240_v42 = vadd.f32 %v12539_v55, %v6110_v45  ;;  %v6103_v48 = vadd.f32 %v6102_v25, %v5981_v16  ;;  %378 = vst.msk [vmem:[#allocation2 + $0x18] sm:$0x3] %vm375_vm10, %v12937_v38  ;;  %382 = vst.msk [vmem:[#allocation2 + $0x38] sm:$0x3] %vm375_vm10, %v12937_v38 }
 0x213   : > { %v12544_v30 = vpop.f32.mrf.mxu0  ;;  %v12564_v61 = vpop.f32.mrf.mxu1  ;;  %383 = vst.msk [vmem:[#allocation2 + $0x40] sm:$0xff] %vm373_vm9, %v12937_v38  ;;  %385 = vst.msk [vmem:[#allocation2 + $0x50] sm:$0xff] %vm373_vm9, %v12937_v38 }
 0x214   : > { %v6232_v49 = vadd.f32 %v6231_v7, %v6103_v48  ;;  %v6320_v6 = vadd.f32 %v12544_v30, %v6192_v33  ;;  %384 = vst.msk [vmem:[#allocation2 + $0x48] sm:$0x3] %vm375_vm10, %v12937_v38  ;;  %386 = vst.msk [vmem:[#allocation2 + $0x58] sm:$0x3] %vm375_vm10, %v12937_v38 }
 0x215   : > { %v6313_v2 = vpop.f32.mrf.mxu0  ;;  %v6451_v13 = vpop.f32.mrf.mxu1  ;;  %387 = vst.msk [vmem:[#allocation2 + $0x60] sm:$0xff] %vm373_vm9, %v12937_v38  ;;  %389 = vst.msk [vmem:[#allocation2 + $0x70] sm:$0xff] %vm373_vm9, %v12937_v38 }
 0x216   : > { %v6434_v3 = vadd.f32 %v12558_v37, %v6320_v6  ;;  %v6314_v15 = vadd.f32 %v6313_v2, %v6184_v22  ;;  %388 = vst.msk [vmem:[#allocation2 + $0x68] sm:$0x3] %vm375_vm10, %v12937_v38  ;;  %390 = vst.msk [vmem:[#allocation2 + $0x78] sm:$0x3] %vm375_vm10, %v12937_v38 }
 0x217   : > { %v12547_v28 = vpop.f32.mrf.mxu0  ;;  %v12567_v11 = vpop.f32.mrf.mxu1  ;;  %391 = vst.msk [vmem:[#allocation2 + $0x80] sm:$0xff] %vm373_vm9, %v12937_v38  ;;  %393 = vst.msk [vmem:[#allocation2 + $0x90] sm:$0xff] %vm373_vm9, %v12937_v38 }
 0x218   : > { %v16420_v19 = vadd.f32 %v6434_v3, %v16390_v23  ;;  %v6428_v63 = vadd.f32 %v6427_v46, %v6314_v15  ;;  %v6332_v12 = vadd.f32 %v12547_v28, %v6208_v4  ;;  %392 = vst.msk [vmem:[#allocation2 + $0x88] sm:$0x3] %vm375_vm10, %v12937_v38  ;;  %394 = vst.msk [vmem:[#allocation2 + $0x98] sm:$0x3] %vm375_vm10, %v12937_v38 }
 0x219   : > { %v6325_v43 = vpop.f32.mrf.mxu0  ;;  %v6463_v36 = vpop.f32.mrf.mxu1 }
 0x21a   : > { %v16423_v39 = vadd.f32 %v6428_v63, %v16394_v5  ;;  %v6446_v0 = vadd.f32 %v12561_v52, %v6332_v12  ;;  %v6326_v62 = vadd.f32 %v6325_v43, %v6200_v18 }
 0x21b   : > { %v12550_v14 = vpop.f32.mrf.mxu0  ;;  %v12586_v54 = vpop.f32.mrf.mxu1 }
 0x21c   : > { %v16426_v44 = vadd.f32 %v6446_v0, %v16399_v10  ;;  %v6440_v26 = vadd.f32 %v6439_v50, %v6326_v62  ;;  %v6344_v1 = vadd.f32 %v12550_v14, %v6224_v24 }
 0x21d   : > { %v6337_v60 = vpop.f32.mrf.mxu0  ;;  %v6960_v21 = vpop.f32.mrf.mxu1 }
 0x21e   : > { %v16429_v23 = vadd.f32 %v6440_v26, %v16403_v31  ;;  %v6458_v20 = vadd.f32 %v12564_v61, %v6344_v1  ;;  %v6338_v40 = vadd.f32 %v6337_v60, %v6216_v51 }
 0x21f   : > { %v12553_v33 = vpop.f32.mrf.mxu0  ;;  %v12589_v8 = vpop.f32.mrf.mxu1 }
 0x220   : > { %v16432_v5 = vadd.f32 %v6458_v20, %v16408_v29  ;;  %v6452_v53 = vadd.f32 %v6451_v13, %v6338_v40  ;;  %v6356_v55 = vadd.f32 %v12553_v33, %v6240_v42 }
 0x221   : > { %v6349_v56 = vpop.f32.mrf.mxu0  ;;  %v6972_v22 = vpop.f32.mrf.mxu1 }
 0x222   : > { %v16435_v10 = vadd.f32 %v6452_v53, %v16411_v57  ;;  %v6470_v9 = vadd.f32 %v12567_v11, %v6356_v55  ;;  %v6350_v41 = vadd.f32 %v6349_v56, %v6232_v49 }
 0x223   : > { %v12572_v7 = vpop.f32.mrf.mxu0  ;;  %v12592_v4 = vpop.f32.mrf.mxu1 }
 0x224   : > { %v16438_v31 = vadd.f32 %v6470_v9, %v16414_v32  ;;  %v6464_v17 = vadd.f32 %v6463_v36, %v6350_v41  ;;  %v6967_v58 = vadd.f32 %v12586_v54, %v12572_v7 }
 0x225   : > { %v6814_v37 = vpop.f32.mrf.mxu0  ;;  %v6984_v29 = vpop.f32.mrf.mxu1 }
 0x226   : > { %v16441_v59 = vadd.f32 %v6464_v17, %v16417_v35  ;;  %v6961_v18 = vadd.f32 %v6960_v21, %v6814_v37 }
 0x227   : > { %v12575_v57 = vpop.f32.mrf.mxu0  ;;  %v12595_v32 = vpop.f32.mrf.mxu1 }
 0x228   : > { %v6979_v35 = vadd.f32 %v12589_v8, %v12575_v57 }
 0x229   : > { %v6834_v34 = vpop.f32.mrf.mxu0  ;;  %v6996_v46 = vpop.f32.mrf.mxu1 }
 0x22a   : > { %v6973_v24 = vadd.f32 %v6972_v22, %v6834_v34  ;;  %v9854_v34 = vld [vmem:[%s17214_s5 + $0x8] sm:$0xff] }
 0x22c   : > { %v12578_v47 = vpop.f32.mrf.mxu0  ;;  %v12614_v27 = vpop.f32.mrf.mxu1 }
 0x22d   : > { %v6991_v52 = vadd.f32 %v12592_v4, %v12578_v47 }
 0x22e   : > { %v6854_v16 = vpop.f32.mrf.mxu0  ;;  %v7199_v51 = vpop.f32.mrf.mxu1 }
 0x22f   : > { %v6985_v45 = vadd.f32 %v6984_v29, %v6854_v16 }
 0x230   : > { %v12581_v25 = vpop.f32.mrf.mxu0 }
 0x231   : > { %v12617_v50 = vpop.f32.mrf.mxu1  ;;  %v7003_v42 = vadd.f32 %v12595_v32, %v12581_v25 }
 0x232   : > { %v6874_v48 = vpop.f32.mrf.mxu0 }
 0x233   : > { %v7215_v30 = vpop.f32.mrf.mxu1  ;;  %v6997_v61 = vadd.f32 %v6996_v46, %v6874_v48 }
 0x234   : > { %v12600_v49 = vpop.f32.mrf.mxu0 }
 0x235   : > { %v12620_v6 = vpop.f32.mrf.mxu1  ;;  %v7084_v2 = vadd.f32 %v12600_v49, %v6967_v58 }
 0x236   : > { %v7076_v13 = vpop.f32.mrf.mxu0 }
 0x237   : > { %v7231_v3 = vpop.f32.mrf.mxu1  ;;  %v7208_v15 = vadd.f32 %v12614_v27, %v7084_v2  ;;  %v7077_v28 = vadd.f32 %v7076_v13, %v6961_v18  ;;  %v16469_v27 = vand.u32 4294901760, %v9854_v34 }
 0x238   : > { %v12603_v11 = vpop.f32.mrf.mxu0 }
 0x239   : > { %v7200_v12 = vadd.f32 %v7199_v51, %v7077_v28  ;;  %v7098_v43 = vadd.f32 %v12603_v11, %v6979_v35  ;;  %v9853_v51 = vld [vmem:[%s17214_s5] sm:$0xff]  ;;  %12820 = vmatprep.subr.mxu0 %v16469_v27 }
 0x23a   : > { %v12623_v63 = vpop.f32.mrf.mxu1  ;;  %v7090_v36 = vpop.f32.mrf.mxu0  ;;  %12821 = vmatpush3.msra.mxu0 %v16469_v27 }
 0x23b   : > { %v7224_v62 = vadd.f32 %v12617_v50, %v7098_v43  ;;  %v7091_v14 = vadd.f32 %v7090_v36, %v6973_v24 }
 0x23c   : > { %v7247_v0 = vpop.f32.mrf.mxu1  ;;  %v12606_v54 = vpop.f32.mrf.mxu0 }
 0x23d   : > { %v7216_v1 = vadd.f32 %v7215_v30, %v7091_v14  ;;  %v7112_v60 = vadd.f32 %v12606_v54, %v6991_v52  ;;  %v16482_v30 = vand.u32 4294901760, %v9853_v51 }
 0x23e   : > { %v12642_v26 = vpop.f32.mrf.mxu1  ;;  %v7104_v21 = vpop.f32.mrf.mxu0 }
 0x23f   : > { %v7240_v40 = vadd.f32 %v12620_v6, %v7112_v60  ;;  %v7105_v33 = vadd.f32 %v7104_v21, %v6985_v45  ;;  %12822 = vmatprep.subr.mxu0 %v16482_v30 }
 0x240   : > { %v7443_v20 = vpop.f32.mrf.mxu1  ;;  %v12609_v8 = vpop.f32.mrf.mxu0  ;;  %12823 = vmatpush3.msra.mxu0 %v16482_v30 }
 0x241   : > { %v7232_v55 = vadd.f32 %v7231_v3, %v7105_v33  ;;  %v7126_v56 = vadd.f32 %v12609_v8, %v7003_v42  ;;  %v16491_v3 = vsub.f32 %v9853_v51, %v16482_v30 }
 0x242   : > { %v12645_v53 = vpop.f32.mrf.mxu1  ;;  %v7118_v22 = vpop.f32.mrf.mxu0 }
 0x243   : > { %v7256_v41 = vadd.f32 %v12623_v63, %v7126_v56  ;;  %v7119_v7 = vadd.f32 %v7118_v22, %v6997_v61  ;;  %17464 = vst [vmem:[#allocation13_spill] sm:$0xff] %v16491_v3  ;;  %v16501_v43 = vand.u32 4294901760, %v16491_v3 }
 0x244   : > { %v7455_v9 = vpop.f32.mrf.mxu1  ;;  %v12628_v4 = vpop.f32.mrf.mxu0 }
 0x245   : > { %v7248_v58 = vadd.f32 %v7247_v0, %v7119_v7  ;;  %v7336_v37 = vadd.f32 %v12628_v4, %v7208_v15  ;;  %17465 = vst [vmem:[#allocation4_spill] sm:$0xff] %v16501_v43 }
 0x246   : > { %v12648_v17 = vpop.f32.mrf.mxu1  ;;  %v7329_v29 = vpop.f32.mrf.mxu0 }
 0x247   : > { %v7450_v38 = vadd.f32 %v12642_v26, %v7336_v37  ;;  %v7330_v57 = vadd.f32 %v7329_v29, %v7200_v12  ;;  %v10072_v26 = vsub.f32 %v16491_v3, %v16501_v43 }
 0x248   : > { %v7467_v18 = vpop.f32.mrf.mxu1  ;;  %v12631_v32 = vpop.f32.mrf.mxu0 }
 0x249   : > { %v16467_v46 = vadd.f32 %v7450_v38, %v16420_v19  ;;  %v7444_v24 = vadd.f32 %v7443_v20, %v7330_v57  ;;  %v7348_v47 = vadd.f32 %v12631_v32, %v7224_v62  ;;  %v16479_v19 = vsub.f32 %v9854_v34, %v16469_v27 }
 0x24a   : > { %v12651_v35 = vpop.f32.mrf.mxu1  ;;  %v7341_v52 = vpop.f32.mrf.mxu0  ;;  %v10073_v33 = vand.u32 4294901760, %v10072_v26 }
 0x24b   : > { %v16475_v45 = vadd.f32 %v7444_v24, %v16423_v39  ;;  %v7462_v25 = vadd.f32 %v12645_v53, %v7348_v47  ;;  %v7342_v50 = vadd.f32 %v7341_v52, %v7216_v1  ;;  %17462 = vst [vmem:[#allocation3_spill] sm:$0xff] %v16479_v19  ;;  %v16488_v39 = vand.u32 4294901760, %v16479_v19  ;;  %12852 = vmatprep.subr.mxu0 %v16479_v19 }
 0x24c   : > { %v7479_v16 = vpop.f32.mrf.mxu1  ;;  %v12634_v42 = vpop.f32.mrf.mxu0 }
 0x24d   : > { %v16485_v61 = vadd.f32 %v7462_v25, %v16426_v44  ;;  %v7456_v49 = vadd.f32 %v7455_v9, %v7342_v50  ;;  %v7360_v6 = vadd.f32 %v12634_v42, %v7240_v40  ;;  %17463 = vst [vmem:[#allocation9_spill] sm:$0xff] %v16488_v39  ;;  %v10065_v44 = vsub.f32 %v16479_v19, %v16488_v39 }
 0x24e   : > { %v12670_v48 = vpop.f32.mrf.mxu1  ;;  %v7353_v2 = vpop.f32.mrf.mxu0 }
 0x24f   : > { %v16495_v15 = vadd.f32 %v7456_v49, %v16429_v23  ;;  %v7474_v28 = vadd.f32 %v12648_v17, %v7360_v6  ;;  %v7354_v11 = vadd.f32 %v7353_v2, %v7232_v55  ;;  %v10066_v62 = vand.u32 4294901760, %v10065_v44 }
 0x250   : > { %v7975_v13 = vpop.f32.mrf.mxu1  ;;  %v12637_v63 = vpop.f32.mrf.mxu0 }
 0x251   : > { %v16505_v36 = vadd.f32 %v7474_v28, %v16432_v5  ;;  %v7468_v0 = vadd.f32 %v7467_v18, %v7354_v11  ;;  %v7372_v23 = vadd.f32 %v12637_v63, %v7256_v41  ;;  %12836 = vmatprep.subr.mxu1 %v10066_v62 }
 0x252   : > { %v12673_v12 = vpop.f32.mrf.mxu1  ;;  %v7365_v14 = vpop.f32.mrf.mxu0  ;;  %12837 = vmatpush3.msra.mxu1 %v10066_v62 }
 0x253   : > { %v16510_v1 = vadd.f32 %v7468_v0, %v16435_v10  ;;  %v7486_v60 = vadd.f32 %v12651_v35, %v7372_v23  ;;  %v7366_v21 = vadd.f32 %v7365_v14, %v7248_v58  ;;  %12838 = vmatprep.subr.mxu1 %v10073_v33 }
 0x254   : > { %v7987_v54 = vpop.f32.mrf.mxu1  ;;  %v12656_v20 = vpop.f32.mrf.mxu0  ;;  %12839 = vmatpush3.msra.mxu1 %v10073_v33 }
 0x255   : > { %v16513_v5 = vadd.f32 %v7486_v60, %v16438_v31  ;;  %v7480_v8 = vadd.f32 %v7479_v16, %v7366_v21  ;;  %v7982_v53 = vadd.f32 %v12670_v48, %v12656_v20  ;;  %12868 = vmatprep.subr.mxu1 %v16469_v27 }
 0x256   : > { %v12676_v40 = vpop.f32.mrf.mxu1  ;;  %v7829_v55 = vpop.f32.mrf.mxu0 }
 0x257   : > { %v16516_v22 = vadd.f32 %v7480_v8, %v16441_v59  ;;  %v7976_v10 = vadd.f32 %v7975_v13, %v7829_v55 }
 0x258   : > { %v7999_v56 = vpop.f32.mrf.mxu1  ;;  %v12659_v9 = vpop.f32.mrf.mxu0 }
 0x259   : > { %v7994_v7 = vadd.f32 %v12673_v12, %v12659_v9 }
 0x25a   : > { %v12679_v41 = vpop.f32.mrf.mxu1  ;;  %v7849_v4 = vpop.f32.mrf.mxu0 }
 0x25b   : > { %v7988_v58 = vadd.f32 %v7987_v54, %v7849_v4 }
 0x25c   : > { %v8011_v17 = vpop.f32.mrf.mxu1 }
 0x25d   : > { %v12662_v31 = vpop.f32.mrf.mxu0 }
 0x25e   : > { %v12698_v37 = vpop.f32.mrf.mxu1  ;;  %v8006_v29 = vadd.f32 %v12676_v40, %v12662_v31 }
 0x25f   : > { %v7869_v18 = vpop.f32.mrf.mxu0 }
 0x260   : > { %v8214_v38 = vpop.f32.mrf.mxu1  ;;  %v8000_v57 = vadd.f32 %v7999_v56, %v7869_v18 }
 0x261   : > { %v12665_v32 = vpop.f32.mrf.mxu0 }
 0x262   : > { %v12701_v35 = vpop.f32.mrf.mxu1  ;;  %v8018_v59 = vadd.f32 %v12679_v41, %v12665_v32 }
 0x263   : > { %v7889_v34 = vpop.f32.mrf.mxu0 }
 0x264   : > { %v8230_v24 = vpop.f32.mrf.mxu1  ;;  %v8012_v47 = vadd.f32 %v8011_v17, %v7889_v34 }
 0x265   : > { %v12684_v52 = vpop.f32.mrf.mxu0 }
 0x266   : > { %v12704_v16 = vpop.f32.mrf.mxu1  ;;  %v8099_v11 = vadd.f32 %v12684_v52, %v7982_v53 }
 0x267   : > { %v8091_v51 = vpop.f32.mrf.mxu0 }
 0x268   : > { %v8246_v25 = vpop.f32.mrf.mxu1  ;;  %v8092_v12 = vadd.f32 %v8091_v51, %v7976_v10  ;;  %v8223_v62 = vadd.f32 %v12698_v37, %v8099_v11 }
 0x269   : > { %v12687_v50 = vpop.f32.mrf.mxu0 }
 0x26a   : > { %v12707_v42 = vpop.f32.mrf.mxu1  ;;  %v8113_v14 = vadd.f32 %v12687_v50, %v7994_v7  ;;  %v8215_v60 = vadd.f32 %v8214_v38, %v8092_v12 }
 0x26b   : > { %v8105_v48 = vpop.f32.mrf.mxu0 }
 0x26c   : > { %v8262_v49 = vpop.f32.mrf.mxu1  ;;  %v8106_v21 = vadd.f32 %v8105_v48, %v7988_v58  ;;  %v8239_v55 = vadd.f32 %v12701_v35, %v8113_v14 }
 0x26d   : > { %v12690_v6 = vpop.f32.mrf.mxu0 }
 0x26e   : > { %v12726_v2 = vpop.f32.mrf.mxu1  ;;  %v8127_v40 = vadd.f32 %v12690_v6, %v8006_v29  ;;  %v8231_v17 = vadd.f32 %v8230_v24, %v8106_v21 }
 0x26f   : > { %v8119_v13 = vpop.f32.mrf.mxu0 }
 0x270   : > { %v8458_v28 = vpop.f32.mrf.mxu1  ;;  %v8120_v41 = vadd.f32 %v8119_v13, %v8000_v57  ;;  %v8255_v37 = vadd.f32 %v12704_v16, %v8127_v40 }
 0x271   : > { %v12693_v44 = vpop.f32.mrf.mxu0 }
 0x272   : > { %v12729_v63 = vpop.f32.mrf.mxu1  ;;  %v8141_v58 = vadd.f32 %v12693_v44, %v8018_v59  ;;  %v8247_v34 = vadd.f32 %v8246_v25, %v8120_v41 }
 0x273   : > { %v8133_v0 = vpop.f32.mrf.mxu0 }
 0x274   : > { %v8470_v23 = vpop.f32.mrf.mxu1  ;;  %v8134_v51 = vadd.f32 %v8133_v0, %v8012_v47  ;;  %v8271_v16 = vadd.f32 %v12707_v42, %v8141_v58 }
 0x275   : > { %v12712_v54 = vpop.f32.mrf.mxu0 }
 0x276   : > { %v12732_v26 = vpop.f32.mrf.mxu1  ;;  %v8351_v20 = vadd.f32 %v12712_v54, %v8223_v62  ;;  %v8263_v11 = vadd.f32 %v8262_v49, %v8134_v51 }
 0x277   : > { %v8344_v33 = vpop.f32.mrf.mxu0 }
 0x278   : > { %v8482_v8 = vpop.f32.mrf.mxu1  ;;  %v8465_v56 = vadd.f32 %v12726_v2, %v8351_v20  ;;  %v8345_v9 = vadd.f32 %v8344_v33, %v8215_v60 }
 0x279   : > { %v12715_v53 = vpop.f32.mrf.mxu0 }
 0x27a   : > { %v12735_v4 = vpop.f32.mrf.mxu1  ;;  %v16520_v10 = vadd.f32 %v8465_v56, %v16467_v46  ;;  %v8459_v31 = vadd.f32 %v8458_v28, %v8345_v9  ;;  %v8363_v7 = vadd.f32 %v12715_v53, %v8239_v55 }
 0x27b   : > { %v8356_v18 = vpop.f32.mrf.mxu0 }
 0x27c   : > { %v8494_v38 = vpop.f32.mrf.mxu1  ;;  %v16523_v29 = vadd.f32 %v8459_v31, %v16475_v45  ;;  %v8477_v32 = vadd.f32 %v12729_v63, %v8363_v7  ;;  %v8357_v35 = vadd.f32 %v8356_v18, %v8231_v17 }
 0x27d   : > { %v12718_v52 = vpop.f32.mrf.mxu0 }
 0x27e   : > { %v12754_v57 = vpop.f32.mrf.mxu1  ;;  %v16526_v24 = vadd.f32 %v8477_v32, %v16485_v61  ;;  %v8471_v46 = vadd.f32 %v8470_v23, %v8357_v35  ;;  %v8375_v50 = vadd.f32 %v12718_v52, %v8255_v37 }
 0x27f   : > { %v8368_v48 = vpop.f32.mrf.mxu0 }
 0x280   : > { %v8991_v6 = vpop.f32.mrf.mxu1  ;;  %v16529_v2 = vadd.f32 %v8471_v46, %v16495_v15  ;;  %v8489_v59 = vadd.f32 %v12732_v26, %v8375_v50  ;;  %v8369_v45 = vadd.f32 %v8368_v48, %v8247_v34 }
 0x281   : > { %v12721_v13 = vpop.f32.mrf.mxu0 }
 0x282   : > { %v12757_v28 = vpop.f32.mrf.mxu1  ;;  %v16532_v25 = vadd.f32 %v8489_v59, %v16505_v36  ;;  %v8483_v47 = vadd.f32 %v8482_v8, %v8369_v45  ;;  %v8387_v44 = vadd.f32 %v12721_v13, %v8271_v16 }
 0x283   : > { %v8380_v61 = vpop.f32.mrf.mxu0 }
 0x284   : > { %v9003_v63 = vpop.f32.mrf.mxu1  ;;  %v16535_v12 = vadd.f32 %v8483_v47, %v16510_v1  ;;  %v8501_v0 = vadd.f32 %v12735_v4, %v8387_v44  ;;  %v8381_v42 = vadd.f32 %v8380_v61, %v8263_v11 }
 0x285   : > { %v12740_v23 = vpop.f32.mrf.mxu0 }
 0x286   : > { %v12760_v15 = vpop.f32.mrf.mxu1  ;;  %v16538_v62 = vadd.f32 %v8501_v0, %v16513_v5  ;;  %v8495_v14 = vadd.f32 %v8494_v38, %v8381_v42  ;;  %v8998_v58 = vadd.f32 %v12754_v57, %v12740_v23 }
 0x287   : > { %v8845_v54 = vpop.f32.mrf.mxu0 }
 0x288   : > { %v9015_v49 = vpop.f32.mrf.mxu1  ;;  %v16541_v36 = vadd.f32 %v8495_v14, %v16516_v22  ;;  %v8992_v34 = vadd.f32 %v8991_v6, %v8845_v54 }
 0x289   : > { %v12743_v26 = vpop.f32.mrf.mxu0 }
 0x28a   : > { %v12763_v60 = vpop.f32.mrf.mxu1  ;;  %v9010_v46 = vadd.f32 %v12757_v28, %v12743_v26  ;;  %v16552_v26 = vld [vmem:[#allocation2] sm:$0xff] }
 0x28b   : > { %v8865_v21 = vpop.f32.mrf.mxu0  ;;  %17466 = vst [vmem:[#allocation14_spill] sm:$0xff] %v16552_v26 }
 0x28c   : > { %v9027_v20 = vpop.f32.mrf.mxu1  ;;  %v9004_v59 = vadd.f32 %v9003_v63, %v8865_v21  ;;  %v16550_v63 = vld [vmem:[%s17211_s2] ss:$0 sm:$0xff] }
 0x28d   : > { %v12746_v40 = vpop.f32.mrf.mxu0 }
 0x28e   : > { %v12782_v1 = vpop.f32.mrf.mxu1  ;;  %v9022_v11 = vadd.f32 %v12760_v15, %v12746_v40 }
 0x28f   : > { %v8885_v33 = vpop.f32.mrf.mxu0 }
 0x290   : > { %v9230_v8 = vpop.f32.mrf.mxu1  ;;  %v9016_v42 = vadd.f32 %v9015_v49, %v8885_v33  ;;  %v16560_v33 = vld [vmem:[#allocation2 + $0x1] sm:$0xff] }
 0x291   : > { %v12749_v55 = vpop.f32.mrf.mxu0  ;;  %17467 = vst [vmem:[#allocation6_spill] sm:$0xff] %v16560_v33 }
 0x292   : > { %v12785_v56 = vpop.f32.mrf.mxu1 }
 0x293   : > { %v8905_v9 = vpop.f32.mrf.mxu0 }
 0x294   : > { %v9246_v41 = vpop.f32.mrf.mxu1 }
 0x295   : > { %v12768_v5 = vpop.f32.mrf.mxu0 }
 0x296   : > { %v12788_v53 = vpop.f32.mrf.mxu1  ;;  %v9115_v52 = vadd.f32 %v12768_v5, %v8998_v58  ;;  %v9034_v5 = vadd.f32 %v12763_v60, %v12749_v55  ;;  %v16565_v60 = vld [vmem:[%s17212_s3 + $0x1] ss:$0 sm:$0xff]  ;;  %v9028_v55 = vadd.f32 %v9027_v20, %v8905_v9 }
 0x297   : > { %v9107_v4 = vpop.f32.mrf.mxu0 }
 0x298   : > { %v9262_v17 = vpop.f32.mrf.mxu1  ;;  %v9108_v50 = vadd.f32 %v9107_v4, %v8992_v34  ;;  %v9239_v45 = vadd.f32 %v12782_v1, %v9115_v52  ;;  %v16558_v1 = vld [vmem:[%s17212_s3] ss:$0 sm:$0xff] }
 0x299   : > { %v12771_v31 = vpop.f32.mrf.mxu0 }
 0x29a   : > { %v16543_v7 = vpop.f32.mrf.mxu1  ;;  %v9129_v13 = vadd.f32 %v12771_v31, %v9010_v46  ;;  %v9231_v44 = vadd.f32 %v9230_v8, %v9108_v50 }
 0x29b   : > { %v9121_v22 = vpop.f32.mrf.mxu0 }
 0x29c   : > { %v16545_v37 = vpop.f32.mrf.mxu1  ;;  %v9122_v61 = vadd.f32 %v9121_v22, %v9004_v59  ;;  %v9255_v43 = vadd.f32 %v12785_v56, %v9129_v13 }
 0x29d   : > { %v12774_v18 = vpop.f32.mrf.mxu0 }
 0x29e   : > { %v12810_v38 = vpop.f32.mrf.mxu1  ;;  %v9143_v14 = vadd.f32 %v12774_v18, %v9022_v11  ;;  %v9247_v21 = vadd.f32 %v9246_v41, %v9122_v61 }
 0x29f   : > { %v9135_v32 = vpop.f32.mrf.mxu0 }
 0x2a0   : > { %v9474_v35 = vpop.f32.mrf.mxu1  ;;  %v9136_v28 = vadd.f32 %v9135_v32, %v9016_v42  ;;  %v9271_v56 = vadd.f32 %v12788_v53, %v9143_v14  ;;  %v16580_v53 = vld [vmem:[#allocation2 + $0x2] sm:$0xff]  ;;  %v9734_v14 = vld [vmem:[#allocation2 + $0x90] sm:$0xff] }
 0x2a1   : > { %v12777_v51 = vpop.f32.mrf.mxu0  ;;  %17468 = vst [vmem:[#allocation5_spill] sm:$0xff] %v16580_v53 }
 0x2a2   : > { %v12813_v16 = vpop.f32.mrf.mxu1  ;;  %v9157_v4 = vadd.f32 %v12777_v51, %v9034_v5  ;;  %v9263_v58 = vadd.f32 %v9262_v17, %v9136_v28 }
 0x2a3   : > { %v9149_v48 = vpop.f32.mrf.mxu0 }
 0x2a4   : > { %v9486_v23 = vpop.f32.mrf.mxu1  ;;  %v9150_v32 = vadd.f32 %v9149_v48, %v9028_v55  ;;  %v9287_v51 = vadd.f32 %v16543_v7, %v9157_v4 }
 0x2a5   : > { %v12796_v47 = vpop.f32.mrf.mxu0 }
 0x2a6   : > { %v9367_v0 = vadd.f32 %v12796_v47, %v9239_v45  ;;  %v12816_v31 = vpop.f32.mrf.mxu1  ;;  %v9279_v13 = vadd.f32 %v16545_v37, %v9150_v32  ;;  %v16607_v37 = vld [vmem:[%s17212_s3 + $0x6] ss:$0 sm:$0xff] }
 0x2a7   : > { %v9360_v57 = vpop.f32.mrf.mxu0  ;;  %v16639_v55 = vmul.f32 %v16607_v37, %v9734_v14 }
 0x2a8   : > { %v9481_v6 = vadd.f32 %v12810_v38, %v9367_v0  ;;  %v9361_v54 = vadd.f32 %v9360_v57, %v9231_v44  ;;  %v9498_v50 = vpop.f32.mrf.mxu1 }
 0x2a9   : > { %v12799_v15 = vpop.f32.mrf.mxu0 }
 0x2aa   : > { %v9521_v40 = vadd.f32 %v9481_v6, %v16520_v10  ;;  %v9475_v49 = vadd.f32 %v9474_v35, %v9361_v54  ;;  %v9379_v8 = vadd.f32 %v12799_v15, %v9255_v43  ;;  %v9565_v35 = vmul.f32 %v16558_v1, %v16552_v26  ;;  %v9763_v54 = vld [vmem:[#allocation2 + $0x91] sm:$0xff] }
 0x2ab   : > { %v9372_v41 = vpop.f32.mrf.mxu0  ;;  %v9594_v43 = vmul.f32 %v16565_v60, %v16560_v33  ;;  %v9792_v15 = vld [vmem:[#allocation2 + $0x92] sm:$0xff]  ;;  %v16749_v33 = vld [vmem:[%s17213_s4] ss:$0 sm:$0xff] }
 0x2ac   : > { %v16568_v10 = vadd.f32 %v16550_v63, %v9521_v40  ;;  %v9520_v22 = vadd.f32 %v9475_v49, %v16523_v29  ;;  %v9493_v18 = vadd.f32 %v12813_v16, %v9379_v8  ;;  %v9373_v38 = vadd.f32 %v9372_v41, %v9247_v21  ;;  %v16585_v29 = vld [vmem:[%s17212_s3 + $0x2] ss:$0 sm:$0xff]  ;;  %v16622_v40 = vld [vmem:[%s17212_s3 + $0x3] ss:$0 sm:$0xff]  ;;  %v16627_v49 = vld [vmem:[%s17212_s3 + $0x7] ss:$0 sm:$0xff] }
 0x2ad   : > { %v12802_v20 = vpop.f32.mrf.mxu0  ;;  %v9602_v11 = vadd.f32 %v9594_v43, %v9565_v35 }
 0x2ae   : > { %9545 = vst.msk [vmem:[#allocation2 + $0x21] sm:$0xff] %vm373_vm9, %v16568_v10  ;;  %v16578_v9 = vadd.f32 %v16550_v63, %v9520_v22  ;;  %v9523_v17 = vadd.f32 %v9493_v18, %v16526_v24  ;;  %v9487_v34 = vadd.f32 %v9486_v23, %v9373_v38  ;;  %v9391_v52 = vadd.f32 %v12802_v20, %v9271_v56 }
 0x2af   : > { %v9384_v46 = vpop.f32.mrf.mxu0  ;;  %v9623_v24 = vmul.f32 %v16585_v29, %v16580_v53 }
 0x2b0   : > { %9544 = vst.msk [vmem:[#allocation2 + $0x11] sm:$0xff] %vm373_vm9, %v16578_v9  ;;  %v16592_v48 = vadd.f32 %v16550_v63, %v9523_v17  ;;  %v9522_v16 = vadd.f32 %v9487_v34, %v16529_v2  ;;  %v9505_v59 = vadd.f32 %v12816_v31, %v9391_v52  ;;  %v9385_v45 = vadd.f32 %v9384_v46, %v9263_v58  ;;  %v12819_v2 = vpop.f32.mrf.mxu1  ;;  %v16661_v34 = vld [vmem:[%s17212_s3 + $0x4] ss:$0 sm:$0xff] }
 0x2b1   : > { %v12805_v47 = vpop.f32.mrf.mxu0  ;;  %v9631_v21 = vadd.f32 %v9623_v24, %v9602_v11  ;;  %v16650_v58 = vmul.f32 %v16627_v49, %v9763_v54 }
 0x2b2   : > { %17469 = vst [vmem:[#allocation8_spill] sm:$0xff] %v16592_v48  ;;  %9547 = vst.msk [vmem:[#allocation2 + $0x41] sm:$0xff] %vm373_vm9, %v16592_v48  ;;  %v16601_v7 = vadd.f32 %v16550_v63, %v9522_v16  ;;  %v9525_v44 = vadd.f32 %v9505_v59, %v16532_v25  ;;  %v9499_v61 = vadd.f32 %v9498_v50, %v9385_v45  ;;  %v9510_v38 = vpop.f32.mrf.mxu1 }
 0x2b3   : > { %v9403_v0 = vadd.f32 %v12805_v47, %v9287_v51  ;;  %v9396_v42 = vpop.f32.mrf.mxu0 }
 0x2b4   : > { %9546 = vst.msk [vmem:[#allocation2 + $0x31] sm:$0xff] %vm373_vm9, %v16601_v7  ;;  %v16612_v57 = vadd.f32 %v16550_v63, %v9525_v44  ;;  %v9524_v23 = vadd.f32 %v9499_v61, %v16535_v12  ;;  %v9397_v25 = vadd.f32 %v9396_v42, %v9279_v13  ;;  %v16632_v12 = vld [vmem:[%s17212_s3 + $0x8] ss:$0 sm:$0xff]  ;;  %v16678_v13 = vld [vmem:[%s17212_s3 + $0x5] ss:$0 sm:$0xff] }
 0x2b5   : > { %v9517_v6 = vadd.f32 %v12819_v2, %v9403_v0  ;;  %v16615_v5 = vld [vmem:[#allocation2 + $0x20] sm:$0xff]  ;;  %v16656_v17 = vmul.f32 %v16632_v12, %v9792_v15 }
 0x2b6   : > { %17470 = vst [vmem:[#allocation10_spill] sm:$0xff] %v16612_v57  ;;  %v16617_v28 = vld [vmem:[#allocation2 + $0x21] sm:$0xff]  ;;  %v9567_v8 = vmul.f32 %v16558_v1, %v16615_v5  ;;  %9549 = vst.msk [vmem:[#allocation2 + $0x61] sm:$0xff] %vm373_vm9, %v16612_v57  ;;  %v16646_v22 = vadd.f32 %v16550_v63, %v9524_v23  ;;  %v9740_v43 = vmul.f32 %v16607_v37, %v16615_v5 }
 0x2b7   : > { %v9639_v56 = vld [vmem:[#allocation2 + $0x10] sm:$0xff]  ;;  %v16641_v41 = vld [vmem:[#allocation2 + $0x22] sm:$0xff]  ;;  %v9596_v31 = vmul.f32 %v16565_v60, %v16617_v28  ;;  %v9527_v18 = vadd.f32 %v9517_v6, %v16538_v62  ;;  %v9511_v20 = vadd.f32 %v9510_v38, %v9397_v25  ;;  %v9769_v11 = vmul.f32 %v16627_v49, %v16617_v28 }
 0x2b8   : > { %v9668_v4 = vld [vmem:[#allocation2 + $0x11] sm:$0xff]  ;;  %v9652_v32 = vmul.f32 %v16622_v40, %v9639_v56  ;;  %9548 = vst.msk [vmem:[#allocation2 + $0x51] sm:$0xff] %vm373_vm9, %v16646_v22  ;;  %v9566_v50 = vmul.f32 %v16558_v1, %v9639_v56  ;;  %v9625_v24 = vmul.f32 %v16585_v29, %v16641_v41  ;;  %v9798_v44 = vmul.f32 %v16632_v12, %v16641_v41 }
 0x2b9   : > { %v9697_v35 = vld [vmem:[#allocation2 + $0x12] sm:$0xff]  ;;  %v9604_v62 = vadd.f32 %v9596_v31, %v9567_v8  ;;  %v16663_v52 = vld [vmem:[#allocation2 + $0x40] sm:$0xff]  ;;  %v16670_v46 = vadd.f32 %v16550_v63, %v9527_v18  ;;  %v9595_v16 = vmul.f32 %v16565_v60, %v9668_v4  ;;  %v9681_v45 = vmul.f32 %v16661_v34, %v9668_v4 }
 0x2ba   : > { %v16665_v51 = vld [vmem:[#allocation2 + $0x41] sm:$0xff]  ;;  %v9660_v59 = vadd.f32 %v9652_v32, %v9631_v21  ;;  %v9710_v47 = vmul.f32 %v16678_v13, %v9697_v35  ;;  %v9569_v42 = vmul.f32 %v16558_v1, %v16663_v52  ;;  %v9742_v54 = vmul.f32 %v16607_v37, %v16663_v52 }
 0x2bb   : > { %v16687_v61 = vld [vmem:[#allocation2 + $0x30] sm:$0xff]  ;;  %v16691_v2 = vld [vmem:[#allocation2 + $0x42] sm:$0xff]  ;;  %v9598_v14 = vmul.f32 %v16565_v60, %v16665_v51  ;;  %9551 = vst.msk [vmem:[#allocation2 + $0x81] sm:$0xff] %vm373_vm9, %v16670_v46  ;;  %v9633_v6 = vadd.f32 %v9625_v24, %v9604_v62  ;;  %v9771_v21 = vmul.f32 %v16627_v49, %v16665_v51  ;;  %v9526_v31 = vadd.f32 %v9511_v20, %v16541_v36 }
 0x2bc   : > { %v16689_v0 = vld [vmem:[#allocation2 + $0x31] sm:$0xff]  ;;  %v9689_v23 = vadd.f32 %v9681_v45, %v9660_v59  ;;  %v9654_v25 = vmul.f32 %v16622_v40, %v16687_v61  ;;  %v9603_v18 = vadd.f32 %v9595_v16, %v9566_v50  ;;  %v9800_v59 = vmul.f32 %v16632_v12, %v16691_v2 }
 0x2bd   : > { %v16703_v15 = vld [vmem:[#allocation2 + $0x32] sm:$0xff]  ;;  %v9606_v8 = vadd.f32 %v9598_v14, %v9569_v42  ;;  %v16707_v56 = vld [vmem:[#allocation2 + $0x60] sm:$0xff]  ;;  %v9683_v62 = vmul.f32 %v16661_v34, %v16689_v0  ;;  %v9627_v45 = vmul.f32 %v16585_v29, %v16691_v2  ;;  %v16721_v42 = vadd.f32 %v16550_v63, %v9526_v31 }
 0x2be   : > { %v16709_v4 = vld [vmem:[#allocation2 + $0x61] sm:$0xff]  ;;  %v9718_v38 = vadd.f32 %v9710_v47, %v9689_v23  ;;  %v9662_v32 = vadd.f32 %v9654_v25, %v9633_v6  ;;  %v9571_v36 = vmul.f32 %v16558_v1, %v16707_v56  ;;  %v9624_v20 = vmul.f32 %v16585_v29, %v9697_v35 }
 0x2bf   : > { %v16718_v24 = vld [vmem:[#allocation2 + $0x62] sm:$0xff]  ;;  %v9712_v47 = vmul.f32 %v16678_v13, %v16703_v15  ;;  %v16728_v14 = vld [vmem:[#allocation2 + $0x50] sm:$0xff]  ;;  %v9600_v6 = vmul.f32 %v16565_v60, %v16709_v4  ;;  %v9635_v25 = vadd.f32 %v9627_v45, %v9606_v8  ;;  %v9744_v35 = vmul.f32 %v16607_v37, %v16707_v56  ;;  %9550 = vst.msk [vmem:[#allocation2 + $0x71] sm:$0xff] %vm373_vm9, %v16721_v42 }
 0x2c0   : > { %17471 = vst [vmem:[#allocation11_spill] sm:$0xff] %v16718_v24  ;;  %v9748_v50 = vadd.f32 %v9740_v43, %v9718_v38  ;;  %v9691_v16 = vadd.f32 %v9683_v62, %v9662_v32  ;;  %v16730_v23 = vld [vmem:[#allocation2 + $0x51] sm:$0xff]  ;;  %v9656_v63 = vmul.f32 %v16622_v40, %v16728_v14  ;;  %v9632_v43 = vadd.f32 %v9624_v20, %v9603_v18 }
 0x2c1   : > { %v16736_v31 = vld [vmem:[#allocation2 + $0x52] sm:$0xff]  ;;  %v9773_v62 = vmul.f32 %v16627_v49, %v16709_v4  ;;  %v9802_v8 = vmul.f32 %v16632_v12, %v16718_v24  ;;  %v9685_v57 = vmul.f32 %v16661_v34, %v16730_v23  ;;  %v9608_v18 = vadd.f32 %v9600_v6, %v9571_v36 }
 0x2c2   : > { %v9777_v38 = vadd.f32 %v9769_v11, %v9748_v50  ;;  %v9720_v32 = vadd.f32 %v9712_v47, %v9691_v16  ;;  %v9646_v45 = vld [vmem:[#allocation2 + $0x80] sm:$0xff]  ;;  %v9664_v26 = vadd.f32 %v9656_v63, %v9635_v25  ;;  %v9653_v20 = vmul.f32 %v16622_v40, %v16615_v5 }
 0x2c3   : > { %v9675_v53 = vld [vmem:[#allocation2 + $0x81] sm:$0xff]  ;;  %v9714_v47 = vmul.f32 %v16678_v13, %v16736_v31  ;;  %v9629_v39 = vmul.f32 %v16585_v29, %v16718_v24  ;;  %v9659_v19 = vmul.f32 %v16622_v40, %v9646_v45  ;;  %v9682_v5 = vmul.f32 %v16661_v34, %v16617_v28 }
 0x2c4   : > { %v9704_v11 = vld [vmem:[#allocation2 + $0x82] sm:$0xff]  ;;  %v9806_v50 = vadd.f32 %v9798_v44, %v9777_v38  ;;  %v9750_v16 = vadd.f32 %v9742_v54, %v9720_v32  ;;  %v9693_v3 = vadd.f32 %v9685_v57, %v9664_v26  ;;  %v9688_v25 = vmul.f32 %v16661_v34, %v9675_v53 }
 0x2c5   : > { %v9661_v63 = vadd.f32 %v9653_v20, %v9632_v43  ;;  %v9717_v48 = vmul.f32 %v16678_v13, %v9704_v11  ;;  %v9637_v54 = vadd.f32 %v9629_v39, %v9608_v18  ;;  %v9746_v38 = vmul.f32 %v16607_v37, %v9646_v45 }
 0x2c6   : > { %v9821_v36 = vadd.f32 %v16749_v33, %v9806_v50  ;;  %v9779_v6 = vadd.f32 %v9771_v21, %v9750_v16  ;;  %v9722_v44 = vadd.f32 %v9714_v47, %v9693_v3  ;;  %v9775_v32 = vmul.f32 %v16627_v49, %v9675_v53  ;;  %v16768_v24 = vld [vmem:[#allocation2 + $0x70] sm:$0xff] }
 0x2c7   : > { %17472 = vst [vmem:[#allocation7_spill] sm:$0xff] %v16768_v24  ;;  %v16770_v43 = vld [vmem:[#allocation2 + $0x71] sm:$0xff]  ;;  %v9690_v21 = vadd.f32 %v9682_v5, %v9661_v63  ;;  %v9711_v50 = vmul.f32 %v16678_v13, %v16641_v41  ;;  %v9572_v39 = vmul.f32 %v16558_v1, %v16768_v24  ;;  %v9658_v45 = vmul.f32 %v16622_v40, %v16768_v24 }
 0x2c8   : > { %v9829_v26 = vmax.f32 %v16578_v9, %v9821_v36  ;;  %v9808_v57 = vadd.f32 %v9800_v59, %v9779_v6  ;;  %v16772_v20 = vld [vmem:[#allocation2 + $0x72] sm:$0xff]  ;;  %v9752_v28 = vadd.f32 %v9744_v35, %v9722_v44  ;;  %v9601_v3 = vmul.f32 %v16565_v60, %v16770_v43 }
 0x2c9   : > { %v9741_v9 = vmul.f32 %v16607_v37, %v16687_v61  ;;  %v9630_v59 = vmul.f32 %v16585_v29, %v16772_v20  ;;  %v9568_v41 = vmul.f32 %v16558_v1, %v16687_v61  ;;  %v9687_v16 = vmul.f32 %v16661_v34, %v16770_v43 }
 0x2ca   : > { %v9823_v53 = vadd.f32 %v16749_v33, %v9808_v57  ;;  %v9781_v35 = vadd.f32 %v9773_v62, %v9752_v28  ;;  %v9609_v18 = vadd.f32 %v9601_v3, %v9572_v39  ;;  %v9863_v47 = vsel %vm373_vm9, %v9829_v26, 0 }
 0x2cb   : > { %v9666_v36 = vadd.f32 %v9658_v45, %v9637_v54  ;;  %v16795_v6 = vand.u32 4294901760, %v9863_v47  ;;  %v9719_v5 = vadd.f32 %v9711_v50, %v9690_v21  ;;  %v9770_v24 = vmul.f32 %v16627_v49, %v16689_v0 }
 0x2cc   : > { %v16793_v63 = vmax.f32 %v16601_v7, %v9823_v53  ;;  %v9810_v44 = vadd.f32 %v9802_v8, %v9781_v35  ;;  %v9638_v57 = vadd.f32 %v9630_v59, %v9609_v18  ;;  %v9597_v61 = vmul.f32 %v16565_v60, %v16689_v0 }
 0x2cd   : > { %v9695_v62 = vadd.f32 %v9687_v16, %v9666_v36  ;;  %v9716_v28 = vmul.f32 %v16678_v13, %v16772_v20  ;;  %12840 = vmatprep.mubr.f32.mxu1 %v16795_v6  ;;  %v9749_v7 = vadd.f32 %v9741_v9, %v9719_v5  ;;  %v9799_v54 = vmul.f32 %v16632_v12, %v16703_v15 }
 0x2ce   : > { %v9825_v21 = vadd.f32 %v16749_v33, %v9810_v44  ;;  %v9667_v8 = vadd.f32 %v9659_v19, %v9638_v57  ;;  %v16808_v50 = vsub.f32 %v9863_v47, %v16795_v6  ;;  %v9626_v39 = vmul.f32 %v16585_v29, %v16703_v15 }
 0x2cf   : > { %v9724_v0 = vadd.f32 %v9716_v28, %v9695_v62  ;;  %v9778_v3 = vadd.f32 %v9770_v24, %v9749_v7  ;;  %v16814_v53 = vsel %vm373_vm9, %v16793_v63, 0  ;;  %v9605_v59 = vadd.f32 %v9597_v61, %v9568_v41 }
 0x2d0   : > { %v9696_v9 = vadd.f32 %v9688_v25, %v9667_v8  ;;  %v9804_v45 = vmul.f32 %v16632_v12, %v9704_v11  ;;  %v9955_v35 = vand.u32 4294901760, %v16808_v50  ;;  %v9655_v19 = vmul.f32 %v16622_v40, %v16663_v52 }
 0x2d1   : > { %v16821_v18 = vmax.f32 %v16646_v22, %v9825_v21  ;;  %v9754_v15 = vadd.f32 %v9746_v38, %v9724_v0  ;;  %v9807_v16 = vadd.f32 %v9799_v54, %v9778_v3  ;;  %v9634_v24 = vadd.f32 %v9626_v39, %v9605_v59 }
 0x2d2   : > { %v9837_v47 = vsel %vm373_vm9, %v9829_v26, -inf  ;;  %v9725_v36 = vadd.f32 %v9717_v48, %v9696_v9  ;;  %v16825_v41 = vand.u32 4294901760, %v16814_v53  ;;  %v9956_v11 = vsub.f32 %v16808_v50, %v9955_v35 }
 0x2d3   : > { %v9783_v25 = vadd.f32 %v9775_v32, %v9754_v15  ;;  %v9822_v5 = vadd.f32 %v16749_v33, %v9807_v16  ;;  %v9663_v52 = vadd.f32 %v9655_v19, %v9634_v24  ;;  %v9684_v22 = vmul.f32 %v16661_v34, %v16665_v51  ;;  %v17473_v24 = vld [vmem:[#allocation11_spill] sm:$0xff] }
 0x2d4   : > { %v9755_v38 = vadd.f32 %v16639_v55, %v9725_v36  ;;  %v9957_v44 = vand.u32 4294901760, %v9956_v11  ;;  %v9713_v48 = vmul.f32 %v16678_v13, %v16691_v2  ;;  %v9743_v26 = vmul.f32 %v16607_v37, %v16728_v14 }
 0x2d5   : > { %v9812_v57 = vadd.f32 %v9804_v45, %v9783_v25  ;;  %v9830_v61 = vmax.f32 %v16568_v10, %v9822_v5  ;;  %v9692_v32 = vadd.f32 %v9684_v22, %v9663_v52  ;;  %v9875_v62 = vsel %vm373_vm9, %v16821_v18, 0  ;;  %v17474_v22 = vld [vmem:[#allocation7_spill] sm:$0xff] }
 0x2d6   : > { %v9784_v28 = vadd.f32 %v16650_v58, %v9755_v38  ;;  %12824 = vmatprep.mubr.f32.mxu0 %v9957_v44  ;;  %v9570_v55 = vmul.f32 %v16558_v1, %v16728_v14  ;;  %v9599_v51 = vmul.f32 %v16565_v60, %v16730_v23  ;;  %v9628_v2 = vmul.f32 %v16585_v29, %v16736_v31 }
 0x2d7   : > { %v9827_v10 = vadd.f32 %v16749_v33, %v9812_v57  ;;  %v9838_v58 = vsel %vm373_vm9, %v9830_v61, -inf  ;;  %v9866_v7 = vsel %vm373_vm9, %v9830_v61, 0  ;;  %v9721_v54 = vadd.f32 %v9713_v48, %v9692_v32  ;;  %v17475_v48 = vld [vmem:[#allocation8_spill] sm:$0xff] }
 0x2d8   : > { %v9813_v1 = vadd.f32 %v16656_v17, %v9784_v28  ;;  %v9839_v14 = vmax.f32 %v9837_v47, %v9838_v58  ;;  %v16858_v60 = vand.u32 4294901760, %v9866_v7  ;;  %v9607_v21 = vadd.f32 %v9599_v51, %v9570_v55  ;;  %v17476_v55 = vld [vmem:[#allocation3_spill] sm:$0xff] }
 0x2d9   : > { %v9835_v29 = vmax.f32 %v16721_v42, %v9827_v10  ;;  %v9751_v8 = vadd.f32 %v9743_v26, %v9721_v54  ;;  %v9772_v39 = vmul.f32 %v16627_v49, %v16730_v23  ;;  %v9657_v59 = vmul.f32 %v16622_v40, %v16707_v56  ;;  %v17478_v54 = vld [vmem:[#allocation9_spill] sm:$0xff] }
 0x2da   : > { %v9828_v0 = vadd.f32 %v16749_v33, %v9813_v1  ;;  %9849 = vst.msk [vmem:[%s16852_s30] sm:$0xff] %vm373_vm9, %v9839_v14  ;;  %v16867_v3 = vsub.f32 %v9866_v7, %v16858_v60  ;;  %12841 = vmatmul.mubr.f32.vlgmr.msra.gmra.mxu1 %v16858_v60  ;;  %v9636_v17 = vadd.f32 %v9628_v2, %v9607_v21  ;;  %v16875_v23 = vand.u32 4294901760, %v9875_v62 }
 0x2db   : > { %12843 = vmatprep.mubr.f32.mxu1 %v16825_v41  ;;  %v9780_v42 = vadd.f32 %v9772_v39, %v9751_v8  ;;  %v9801_v9 = vmul.f32 %v16632_v12, %v16736_v31  ;;  %12869 = vmatpush3.msra.mxu1 %v16469_v27  ;;  %v9686_v16 = vmul.f32 %v16661_v34, %v16709_v4  ;;  %v9846_v40 = vsel %vm373_vm9, %v9835_v29, -inf  ;;  %v17479_v39 = vld [vmem:[#allocation10_spill] sm:$0xff] }
 0x2dc   : > { %v9836_v45 = vmax.f32 %v16670_v46, %v9828_v0  ;;  %v9965_v19 = vand.u32 4294901760, %v16867_v3  ;;  %v9665_v15 = vadd.f32 %v9657_v59, %v9636_v17  ;;  %12870 = vmatprep.subr.mxu1 %v16482_v30  ;;  %v9715_v31 = vmul.f32 %v16678_v13, %v17473_v24 }
 0x2dd   : > { %v9809_v56 = vadd.f32 %v9801_v9, %v9780_v42  ;;  %v16888_v47 = vsub.f32 %v16814_v53, %v16825_v41  ;;  %12871 = vmatpush3.msra.mxu1 %v16482_v30  ;;  %v9881_v36 = vsel %vm373_vm9, %v9835_v29, 0  ;;  %v16900_v53 = vsub.f32 %v9875_v62, %v16875_v23 }
 0x2de   : > { %v9847_v46 = vsel %vm373_vm9, %v9836_v45, -inf  ;;  %v9966_v34 = vsub.f32 %v16867_v3, %v9965_v19  ;;  %v9694_v4 = vadd.f32 %v9686_v16, %v9665_v15  ;;  %12900 = vmatprep.subr.mxu1 %v16469_v27  ;;  %v9745_v38 = vmul.f32 %v16607_v37, %v17474_v22 }
 0x2df   : > { %v9848_v11 = vmax.f32 %v9846_v40, %v9847_v46  ;;  %v9824_v13 = vadd.f32 %v16749_v33, %v9809_v56  ;;  %v9975_v25 = vand.u32 4294901760, %v16888_v47  ;;  %v9840_v44 = vsel %vm373_vm9, %v16793_v63, -inf }
 0x2e0   : > { %v9967_v5 = vand.u32 4294901760, %v9966_v34  ;;  %v9723_v52 = vadd.f32 %v9715_v31, %v9694_v4  ;;  %v9774_v32 = vmul.f32 %v16627_v49, %v16770_v43  ;;  %v9803_v37 = vmul.f32 %v16632_v12, %v16772_v20  ;;  %v17477_v43 = vld [vmem:[#allocation13_spill] sm:$0xff] }
 0x2e1   : > { %9852 = vst.msk [vmem:[%s16852_s30 + $0x18] sm:$0xff] %vm373_vm9, %v9848_v11  ;;  %v9832_v26 = vmax.f32 %v17475_v48, %v9824_v13  ;;  %v9976_v57 = vsub.f32 %v16888_v47, %v9975_v25  ;;  %v16916_v62 = vand.u32 4294901760, %v9881_v36  ;;  %v9995_v2 = vand.u32 4294901760, %v16900_v53 }
 0x2e2   : > { %12825 = vmatmul.mubr.f32.vlgmr.msra.gmra.mxu0 %v9967_v5  ;;  %v9753_v61 = vadd.f32 %v9745_v38, %v9723_v52  ;;  %v9884_v49 = vsel %vm373_vm9, %v9836_v45, 0  ;;  %v9843_v59 = vsel %vm373_vm9, %v16821_v18, -inf }
 0x2e3   : > { %v9841_v63 = vsel %vm373_vm9, %v9832_v26, -inf  ;;  %v9872_v28 = vsel %vm373_vm9, %v9832_v26, 0  ;;  %12853 = vmatpush3.msra.mxu0 %v17476_v55  ;;  %v9977_v51 = vand.u32 4294901760, %v9976_v57  ;;  %v16933_v1 = vand.u32 4294901760, %v9884_v49 }
 0x2e4   : > { %v9842_v10 = vmax.f32 %v9840_v44, %v9841_v63  ;;  %v16922_v58 = vand.u32 4294901760, %v9872_v28  ;;  %v9782_v7 = vadd.f32 %v9774_v32, %v9753_v61  ;;  %12854 = vmatprep.subr.mxu0 %v17477_v43  ;;  %v9996_v14 = vsub.f32 %v16900_v53, %v9995_v2 }
 0x2e5   : > { %12827 = vmatprep.mubr.f32.mxu0 %v9977_v51  ;;  %12855 = vmatpush3.msra.mxu0 %v17477_v43  ;;  %v10014_v8 = vsub.f32 %v9881_v36, %v16916_v62  ;;  %v10024_v42 = vsub.f32 %v9884_v49, %v16933_v1 }
 0x2e6   : > { %9850 = vst.msk [vmem:[%s16852_s30 + $0x8] sm:$0xff] %vm373_vm9, %v9842_v10  ;;  %v9984_v12 = vsub.f32 %v9872_v28, %v16922_v58  ;;  %12844 = vmatmul.mubr.f32.gmra.mxu1 %v16922_v58  ;;  %v9811_v20 = vadd.f32 %v9803_v37, %v9782_v7  ;;  %12884 = vmatprep.subr.mxu0 %v17478_v54  ;;  %v9997_v9 = vand.u32 4294901760, %v9996_v14  ;;  %v11503_v37 = vld [vmem:[%s17215_s6] ss:$0 sm:$0xff] }
 0x2e7   : > { %12846 = vmatprep.mubr.f32.mxu1 %v16875_v23  ;;  %v10015_v40 = vand.u32 4294901760, %v10014_v8  ;;  %v10025_v31 = vand.u32 4294901760, %v10024_v42 }
 0x2e8   : > { %v9826_v21 = vadd.f32 %v16749_v33, %v9811_v20  ;;  %v9985_v29 = vand.u32 4294901760, %v9984_v12 }
 0x2e9   : > { %v10016_v18 = vsub.f32 %v10014_v8, %v10015_v40  ;;  %v10026_v4 = vsub.f32 %v10024_v42, %v10025_v31 }
 0x2ea   : > { %v9834_v0 = vmax.f32 %v17479_v39, %v9826_v21  ;;  %v9986_v17 = vsub.f32 %v9984_v12, %v9985_v29 }
 0x2eb   : > { %v10017_v36 = vand.u32 4294901760, %v10016_v18  ;;  %v10027_v13 = vand.u32 4294901760, %v10026_v4 }
 0x2ec   : > { %v9844_v45 = vsel %vm373_vm9, %v9834_v0, -inf  ;;  %v9878_v15 = vsel %vm373_vm9, %v9834_v0, 0  ;;  %v9987_v16 = vand.u32 4294901760, %v9986_v17 }
 0x2ed   : > { %v9845_v56 = vmax.f32 %v9843_v59, %v9844_v45  ;;  %v10003_v33 = vand.u32 4294901760, %v9878_v15 }
 0x2ee   : > { %12828 = vmatmul.mubr.f32.gmra.mxu0 %v9987_v16 }
 0x2ef   : > { %9851 = vst.msk [vmem:[%s16852_s30 + $0x10] sm:$0xff] %vm373_vm9, %v9845_v56  ;;  %v10004_v24 = vsub.f32 %v9878_v15, %v10003_v33  ;;  %12847 = vmatmul.mubr.f32.gmra.mxu1 %v10003_v33  ;;  %12830 = vmatprep.mubr.f32.mxu0 %v9997_v9 }
 0x2f0   : > { %12849 = vmatprep.mubr.f32.mxu1 %v16916_v62 }
 0x2f1   : > { %v10005_v46 = vand.u32 4294901760, %v10004_v24 }
 0x2f3   : > { %12850 = vmatmul.mubr.f32.gmra.mxu1 %v16933_v1  ;;  %v10006_v34 = vsub.f32 %v10004_v24, %v10005_v46 }
 0x2f4   : > { %12872 = vmatprep.mubr.f32.mxu1 %v9955_v35  ;;  %v17480_v35 = vld [vmem:[#allocation4_spill] sm:$0xff] }
 0x2f5   : > { %v10007_v11 = vand.u32 4294901760, %v10006_v34 }
 0x2f7   : > { %12831 = vmatmul.mubr.f32.gmra.mxu0 %v10007_v11  ;;  %12873 = vmatmul.mubr.f32.vlgmr.msra.gmra.mxu1 %v9965_v19 }
 0x2f8   : > { %12833 = vmatprep.mubr.f32.mxu0 %v10017_v36  ;;  %12875 = vmatprep.mubr.f32.mxu1 %v9975_v25 }
 0x2f9   : > { %12901 = vmatpush3.msra.mxu1 %v16469_v27 }
 0x2fa   : > { %12902 = vmatprep.subr.mxu1 %v16482_v30 }
 0x2fb   : > { %12834 = vmatmul.mubr.f32.gmra.mxu0 %v10027_v13  ;;  %12876 = vmatmul.mubr.f32.gmra.mxu1 %v9985_v29  ;;  %v17481_v13 = vld [vmem:[#allocation14_spill] sm:$0xff] }
 0x2fc   : > { %12856 = vmatprep.mubr.f32.mxu0 %v16808_v50  ;;  %12878 = vmatprep.mubr.f32.mxu1 %v9995_v2 }
 0x2fd   : > { %12903 = vmatpush3.msra.mxu1 %v16482_v30 }
 0x2ff   : > { %12857 = vmatmul.mubr.f32.vlgmr.msra.gmra.mxu0 %v16867_v3  ;;  %12879 = vmatmul.mubr.f32.gmra.mxu1 %v10005_v46 }
 0x300   : > { %12885 = vmatpush3.msra.mxu0 %v17478_v54  ;;  %12859 = vmatprep.mubr.f32.mxu0 %v16888_v47 }
 0x301   : > { %12881 = vmatprep.mubr.f32.mxu1 %v10015_v40  ;;  %12886 = vmatprep.subr.mxu0 %v17480_v35 }
 0x302   : > { %12887 = vmatpush3.msra.mxu0 %v17480_v35 }
 0x303   : > { %12860 = vmatmul.mubr.f32.gmra.mxu0 %v9984_v12  ;;  %12882 = vmatmul.mubr.f32.gmra.mxu1 %v10025_v31 }
 0x304   : > { %12862 = vmatprep.mubr.f32.mxu0 %v16900_v53  ;;  %12904 = vmatprep.mubr.f32.mxu1 %v16795_v6 }
 0x307   : > { %12863 = vmatmul.mubr.f32.gmra.mxu0 %v10004_v24  ;;  %12905 = vmatmul.mubr.f32.vlgmr.msra.gmra.mxu1 %v16858_v60  ;;  %v17009_v24 = vld [vmem:[%s17216_s7 + $0x1] ss:$0 sm:$0xff] }
 0x308   : > { %12865 = vmatprep.mubr.f32.mxu0 %v10014_v8  ;;  %12907 = vmatprep.mubr.f32.mxu1 %v16825_v41 }
 0x30b   : > { %12866 = vmatmul.mubr.f32.gmra.mxu0 %v10024_v42  ;;  %12908 = vmatmul.mubr.f32.gmra.mxu1 %v16922_v58 }
 0x30c   : > { %12888 = vmatprep.mubr.f32.mxu0 %v16795_v6  ;;  %12910 = vmatprep.mubr.f32.mxu1 %v16875_v23 }
 0x30f   : > { %12889 = vmatmul.mubr.f32.vlgmr.msra.gmra.mxu0 %v16858_v60  ;;  %12911 = vmatmul.mubr.f32.gmra.mxu1 %v10003_v33 }
 0x310   : > { %12891 = vmatprep.mubr.f32.mxu0 %v16825_v41  ;;  %12913 = vmatprep.mubr.f32.mxu1 %v16916_v62 }
 0x313   : > { %12892 = vmatmul.mubr.f32.gmra.mxu0 %v16922_v58  ;;  %12914 = vmatmul.mubr.f32.gmra.mxu1 %v16933_v1 }
 0x314   : > { %12894 = vmatprep.mubr.f32.mxu0 %v16875_v23 }
 0x317   : > { %12895 = vmatmul.mubr.f32.gmra.mxu0 %v10003_v33  ;;  %v17004_v33 = vld [vmem:[%s17216_s7] ss:$0 sm:$0xff] }
 0x318   : > { %12897 = vmatprep.mubr.f32.mxu0 %v16916_v62  ;;  %v10667_v35 = vmul.f32 %v17004_v33, %v17481_v13 }
 0x31b   : > { %12898 = vmatmul.mubr.f32.gmra.mxu0 %v16933_v1 }
 0x39a   : > { %v12842_v27 = vpop.f32.mrf.mxu1 }
 0x39c   : > { %v10110_v30 = vpop.f32.mrf.mxu1 }
 0x3a2   : > { %v12826_v50 = vpop.f32.mrf.mxu0 }
 0x3a3   : > { %v9970_v51 = vadd.f32 %v12826_v50, %v11503_v37 }
 0x3a4   : > { %v9959_v3 = vpop.f32.mrf.mxu0 }
 0x3a5   : > { %v9960_v58 = vadd.f32 %v11503_v37, %v9959_v3  ;;  %v10117_v43 = vadd.f32 %v12842_v27, %v9970_v51  ;;  %v17482_v27 = vld [vmem:[#allocation6_spill] sm:$0xff] }
 0x3a6   : > { %v12845_v6 = vpop.f32.mrf.mxu1 }
 0x3a7   : > { %v10111_v14 = vadd.f32 %v10110_v30, %v9960_v58  ;;  %v10696_v30 = vmul.f32 %v17009_v24, %v17482_v27 }
 0x3a8   : > { %v10122_v60 = vpop.f32.mrf.mxu1 }
 0x3ae   : > { %v12829_v19 = vpop.f32.mrf.mxu0 }
 0x3af   : > { %v12848_v41 = vpop.f32.mrf.mxu1  ;;  %v9990_v49 = vadd.f32 %v12829_v19, %v11503_v37  ;;  %v17024_v19 = vld [vmem:[%s17216_s7 + $0x2] ss:$0 sm:$0xff] }
 0x3b0   : > { %v9979_v53 = vpop.f32.mrf.mxu0 }
 0x3b1   : > { %v16978_v47 = vpop.f32.mrf.mxu1  ;;  %v9980_v54 = vadd.f32 %v11503_v37, %v9979_v53  ;;  %v10129_v39 = vadd.f32 %v12845_v6, %v9990_v49 }
 0x3b3   : > { %v16980_v25 = vpop.f32.mrf.mxu1  ;;  %v10123_v42 = vadd.f32 %v10122_v60, %v9980_v54  ;;  %v17047_v54 = vld [vmem:[%s17216_s7 + $0x3] ss:$0 sm:$0xff] }
 0x3b5   : > { %v16982_v5 = vpop.f32.mrf.mxu1 }
 0x3b7   : > { %v12832_v23 = vpop.f32.mrf.mxu0  ;;  %v12874_v52 = vpop.f32.mrf.mxu1 }
 0x3b8   : > { %v10010_v29 = vadd.f32 %v12832_v23, %v11503_v37 }
 0x3b9   : > { %v9999_v22 = vpop.f32.mrf.mxu0  ;;  %v10352_v38 = vpop.f32.mrf.mxu1 }
 0x3ba   : > { %v10141_v16 = vadd.f32 %v12848_v41, %v10010_v29  ;;  %v10000_v11 = vadd.f32 %v11503_v37, %v9999_v22 }
 0x3bb   : > { %v16984_v44 = vpop.f32.mrf.mxu0  ;;  %v12877_v48 = vpop.f32.mrf.mxu1 }
 0x3bd   : > { %v16986_v26 = vpop.f32.mrf.mxu0  ;;  %v10368_v57 = vpop.f32.mrf.mxu1 }
 0x3be   : > { %v10020_v58 = vadd.f32 %v11503_v37, %v16986_v26 }
 0x3bf   : > { %v12858_v61 = vpop.f32.mrf.mxu0  ;;  %v12880_v32 = vpop.f32.mrf.mxu1 }
 0x3c0   : > { %v10236_v1 = vadd.f32 %v12858_v61, %v10117_v43 }
 0x3c1   : > { %v10228_v62 = vpop.f32.mrf.mxu0  ;;  %v16991_v63 = vpop.f32.mrf.mxu1 }
 0x3c2   : > { %v10229_v8 = vadd.f32 %v10228_v62, %v10111_v14  ;;  %v10361_v9 = vadd.f32 %v12874_v52, %v10236_v1  ;;  %v17483_v62 = vld [vmem:[#allocation5_spill] sm:$0xff] }
 0x3c3   : > { %v12861_v28 = vpop.f32.mrf.mxu0  ;;  %v16993_v55 = vpop.f32.mrf.mxu1 }
 0x3c4   : > { %v10250_v59 = vadd.f32 %v12861_v28, %v10129_v39  ;;  %v10353_v56 = vadd.f32 %v10352_v38, %v10229_v8  ;;  %v10135_v38 = vadd.f32 %v16978_v47, %v10000_v11  ;;  %v10725_v28 = vmul.f32 %v17024_v19, %v17483_v62 }
 0x3c5   : > { %v10242_v2 = vpop.f32.mrf.mxu0  ;;  %v16995_v10 = vpop.f32.mrf.mxu1 }
 0x3c6   : > { %v10243_v15 = vadd.f32 %v10242_v2, %v10123_v42  ;;  %v10377_v36 = vadd.f32 %v12877_v48, %v10250_v59  ;;  %v10704_v48 = vadd.f32 %v10696_v30, %v10667_v35 }
 0x3c7   : > { %v12864_v7 = vpop.f32.mrf.mxu0  ;;  %v12906_v12 = vpop.f32.mrf.mxu1 }
 0x3c8   : > { %v10264_v46 = vadd.f32 %v12864_v7, %v10141_v16  ;;  %v10369_v3 = vadd.f32 %v10368_v57, %v10243_v15  ;;  %v10030_v57 = vadd.f32 %v16984_v44, %v11503_v37  ;;  %v10147_v37 = vadd.f32 %v16982_v5, %v10020_v58  ;;  %v17062_v5 = vld [vmem:[%s17216_s7 + $0x4] ss:$0 sm:$0xff] }
 0x3c9   : > { %v10256_v20 = vpop.f32.mrf.mxu0  ;;  %v10600_v0 = vpop.f32.mrf.mxu1 }
 0x3ca   : > { %v10393_v22 = vadd.f32 %v12880_v32, %v10264_v46  ;;  %v10257_v7 = vadd.f32 %v10256_v20, %v10135_v38  ;;  %v10153_v43 = vadd.f32 %v16980_v25, %v10030_v57  ;;  %v17076_v46 = vld [vmem:[%s17216_s7 + $0x6] ss:$0 sm:$0xff] }
 0x3cb   : > { %v16997_v21 = vpop.f32.mrf.mxu0  ;;  %v12909_v31 = vpop.f32.mrf.mxu1 }
 0x3cc   : > { %v10385_v25 = vadd.f32 %v16991_v63, %v10257_v7  ;;  %v10278_v39 = vadd.f32 %v16997_v21, %v10153_v43 }
 0x3cd   : > { %v16999_v17 = vpop.f32.mrf.mxu0  ;;  %v10612_v41 = vpop.f32.mrf.mxu1 }
 0x3ce   : > { %v10271_v63 = vadd.f32 %v16999_v17, %v10147_v37 }
 0x3cf   : > { %v12890_v45 = vpop.f32.mrf.mxu0  ;;  %v12912_v49 = vpop.f32.mrf.mxu1 }
 0x3d0   : > { %v10492_v40 = vadd.f32 %v12890_v45, %v10361_v9  ;;  %v17067_v45 = vld [vmem:[%s17216_s7 + $0x5] ss:$0 sm:$0xff] }
 0x3d1   : > { %v10485_v18 = vpop.f32.mrf.mxu0 }
 0x3d2   : > { %v17011_v34 = vadd.f32 %v12906_v12, %v10492_v40  ;;  %v10486_v4 = vadd.f32 %v10485_v18, %v10353_v56  ;;  %v10733_v12 = vadd.f32 %v10725_v28, %v10704_v48 }
 0x3d3   : > { %v12893_v6 = vpop.f32.mrf.mxu0 }
 0x3d4   : > { %10647 = vst.msk [vmem:[#allocation2 + $0x21] sm:$0xff] %vm373_vm9, %v17011_v34  ;;  %v17019_v50 = vadd.f32 %v10600_v0, %v10486_v4  ;;  %v10504_v60 = vadd.f32 %v12893_v6, %v10377_v36  ;;  %v17081_v4 = vld [vmem:[%s17216_s7 + $0x7] ss:$0 sm:$0xff] }
 0x3d5   : > { %v10497_v53 = vpop.f32.mrf.mxu0 }
 0x3d6   : > { %10646 = vst.msk [vmem:[#allocation2 + $0x11] sm:$0xff] %vm373_vm9, %v17019_v50  ;;  %v17028_v23 = vadd.f32 %v12909_v31, %v10504_v60  ;;  %v10498_v52 = vadd.f32 %v10497_v53, %v10369_v3  ;;  %v17090_v3 = vld [vmem:[%s17216_s7 + $0x8] ss:$0 sm:$0xff] }
 0x3d7   : > { %v12896_v61 = vpop.f32.mrf.mxu0 }
 0x3d8   : > { %10649 = vst.msk [vmem:[#allocation2 + $0x41] sm:$0xff] %vm373_vm9, %v17028_v23  ;;  %v17036_v51 = vadd.f32 %v10612_v41, %v10498_v52  ;;  %v10516_v2 = vadd.f32 %v12896_v61, %v10393_v22 }
 0x3d9   : > { %v10509_v26 = vpop.f32.mrf.mxu0 }
 0x3da   : > { %10648 = vst.msk [vmem:[#allocation2 + $0x31] sm:$0xff] %vm373_vm9, %v17036_v51  ;;  %v17041_v47 = vadd.f32 %v12912_v49, %v10516_v2  ;;  %v10510_v16 = vadd.f32 %v10509_v26, %v10385_v25  ;;  %v10624_v49 = vpop.f32.mrf.mxu1 }
 0x3db   : > { %v10742_v32 = vld [vmem:[#allocation2 + $0x20] sm:$0xff] }
 0x3dc   : > { %v10771_v44 = vld [vmem:[#allocation2 + $0x21] sm:$0xff]  ;;  %10651 = vst.msk [vmem:[#allocation2 + $0x61] sm:$0xff] %vm373_vm9, %v17041_v47  ;;  %v10669_v29 = vmul.f32 %v17004_v33, %v10742_v32  ;;  %v10755_v21 = vmul.f32 %v17047_v54, %v10742_v32  ;;  %v10841_v22 = vmul.f32 %v17076_v46, %v10742_v32 }
 0x3dd   : > { %v10655_v20 = vld [vmem:[#allocation2 + $0x10] sm:$0xff]  ;;  %v10698_v8 = vmul.f32 %v17009_v24, %v10771_v44  ;;  %v10800_v9 = vld [vmem:[#allocation2 + $0x22] sm:$0xff]  ;;  %v10784_v17 = vmul.f32 %v17062_v5, %v10771_v44  ;;  %v10870_v38 = vmul.f32 %v17081_v4, %v10771_v44 }
 0x3de   : > { %v10684_v1 = vld [vmem:[#allocation2 + $0x11] sm:$0xff]  ;;  %v10668_v0 = vmul.f32 %v17004_v33, %v10655_v20  ;;  %v10754_v42 = vmul.f32 %v17047_v54, %v10655_v20  ;;  %v10813_v11 = vmul.f32 %v17067_v45, %v10800_v9  ;;  %v10727_v30 = vmul.f32 %v17024_v19, %v10800_v9 }
 0x3df   : > { %v10713_v14 = vld [vmem:[#allocation2 + $0x12] sm:$0xff]  ;;  %v10697_v59 = vmul.f32 %v17009_v24, %v10684_v1  ;;  %v10706_v15 = vadd.f32 %v10698_v8, %v10669_v29  ;;  %v10783_v18 = vmul.f32 %v17062_v5, %v10684_v1  ;;  %v10744_v52 = vld [vmem:[#allocation2 + $0x40] sm:$0xff]  ;;  %v10899_v7 = vmul.f32 %v17090_v3, %v10800_v9  ;;  %v12899_v1 = vpop.f32.mrf.mxu0 }
 0x3e0   : > { %v10726_v56 = vmul.f32 %v17024_v19, %v10713_v14  ;;  %v10762_v31 = vadd.f32 %v10754_v42, %v10733_v12  ;;  %v10812_v36 = vmul.f32 %v17067_v45, %v10713_v14  ;;  %v10773_v58 = vld [vmem:[#allocation2 + $0x41] sm:$0xff]  ;;  %v10757_v43 = vmul.f32 %v17047_v54, %v10744_v52 }
 0x3e1   : > { %v10705_v40 = vadd.f32 %v10697_v59, %v10668_v0  ;;  %v10657_v13 = vld [vmem:[#allocation2 + $0x30] sm:$0xff]  ;;  %v10735_v48 = vadd.f32 %v10727_v30, %v10706_v15  ;;  %v17101_v20 = vadd.f32 %v10624_v49, %v10510_v16  ;;  %v10671_v8 = vmul.f32 %v17004_v33, %v10744_v52  ;;  %v10521_v30 = vpop.f32.mrf.mxu0 }
 0x3e2   : > { %v10686_v35 = vld [vmem:[#allocation2 + $0x31] sm:$0xff]  ;;  %v10791_v60 = vadd.f32 %v10783_v18, %v10762_v31  ;;  %v10670_v41 = vmul.f32 %v17004_v33, %v10657_v13  ;;  %v10756_v61 = vmul.f32 %v17047_v54, %v10657_v13  ;;  %v10700_v25 = vmul.f32 %v17009_v24, %v10773_v58  ;;  %v12915_v18 = vpop.f32.mrf.mxu1 }
 0x3e3   : > { %v10715_v27 = vld [vmem:[#allocation2 + $0x32] sm:$0xff]  ;;  %v10734_v6 = vadd.f32 %v10726_v56, %v10705_v40  ;;  %v10699_v53 = vmul.f32 %v17009_v24, %v10686_v35  ;;  %v10785_v26 = vmul.f32 %v17062_v5, %v10686_v35  ;;  %v10842_v9 = vmul.f32 %v17076_v46, %v10657_v13  ;;  %10650 = vst.msk [vmem:[#allocation2 + $0x51] sm:$0xff] %vm373_vm9, %v17101_v20 }
 0x3e4   : > { %v10820_v62 = vadd.f32 %v10812_v36, %v10791_v60  ;;  %v10728_v2 = vmul.f32 %v17024_v19, %v10715_v27  ;;  %v10764_v12 = vadd.f32 %v10756_v61, %v10735_v48  ;;  %v10814_v29 = vmul.f32 %v17067_v45, %v10715_v27  ;;  %v10802_v36 = vld [vmem:[#allocation2 + $0x42] sm:$0xff] }
 0x3e5   : > { %v10763_v57 = vadd.f32 %v10755_v21, %v10734_v6  ;;  %v10707_v28 = vadd.f32 %v10699_v53, %v10670_v41  ;;  %v17112_v21 = vld [vmem:[%s17217_s8] ss:$0 sm:$0xff]  ;;  %v10843_v16 = vmul.f32 %v17076_v46, %v10744_v52  ;;  %v10409_v40 = vadd.f32 %v16993_v55, %v10278_v39 }
 0x3e6   : > { %v10849_v37 = vadd.f32 %v10841_v22, %v10820_v62  ;;  %v10793_v14 = vadd.f32 %v10785_v26, %v10764_v12  ;;  %v10401_v56 = vadd.f32 %v16995_v10, %v10271_v63  ;;  %v10871_v13 = vmul.f32 %v17081_v4, %v10686_v35  ;;  %v10746_v62 = vld [vmem:[#allocation2 + $0x60] sm:$0xff] }
 0x3e7   : > { %v10792_v32 = vadd.f32 %v10784_v17, %v10763_v57  ;;  %v10736_v44 = vadd.f32 %v10728_v2, %v10707_v28  ;;  %v10786_v17 = vmul.f32 %v17062_v5, %v10773_v58  ;;  %v10872_v60 = vmul.f32 %v17081_v4, %v10773_v58  ;;  %v10636_v57 = vpop.f32.mrf.mxu1  ;;  %v10775_v28 = vld [vmem:[#allocation2 + $0x61] sm:$0xff] }
 0x3e8   : > { %v10878_v59 = vadd.f32 %v10870_v38, %v10849_v37  ;;  %v10822_v15 = vadd.f32 %v10814_v29, %v10793_v14  ;;  %v10900_v41 = vmul.f32 %v17090_v3, %v10715_v27  ;;  %v10708_v53 = vadd.f32 %v10700_v25, %v10671_v8 }
 0x3e9   : > { %v10821_v0 = vadd.f32 %v10813_v11, %v10792_v32  ;;  %v10765_v42 = vadd.f32 %v10757_v43, %v10736_v44  ;;  %v10528_v63 = vadd.f32 %v12899_v1, %v10409_v40  ;;  %v10901_v35 = vmul.f32 %v17090_v3, %v10802_v36 }
 0x3ea   : > { %v10907_v31 = vadd.f32 %v10899_v7, %v10878_v59  ;;  %v10851_v6 = vadd.f32 %v10843_v16, %v10822_v15  ;;  %v10729_v22 = vmul.f32 %v17024_v19, %v10802_v36  ;;  %v10522_v38 = vadd.f32 %v10521_v30, %v10401_v56  ;;  %v10659_v7 = vld [vmem:[#allocation2 + $0x50] sm:$0xff] }
 0x3eb   : > { %v10850_v11 = vadd.f32 %v10842_v9, %v10821_v0  ;;  %v10794_v39 = vadd.f32 %v10786_v17, %v10765_v42  ;;  %v10815_v48 = vmul.f32 %v17067_v45, %v10802_v36  ;;  %v17132_v2 = vadd.f32 %v12915_v18, %v10528_v63  ;;  %v10688_v49 = vld [vmem:[#allocation2 + $0x51] sm:$0xff]  ;;  %v10804_v36 = vld [vmem:[#allocation2 + $0x62] sm:$0xff] }
 0x3ec   : > { %v10922_v55 = vadd.f32 %v17112_v21, %v10907_v31  ;;  %v10880_v52 = vadd.f32 %v10872_v60, %v10851_v6  ;;  %v10717_v43 = vld [vmem:[#allocation2 + $0x52] sm:$0xff]  ;;  %v10737_v12 = vadd.f32 %v10729_v22, %v10708_v53  ;;  %v17134_v26 = vadd.f32 %v10636_v57, %v10522_v38 }
 0x3ed   : > { %v10879_v10 = vadd.f32 %v10871_v13, %v10850_v11  ;;  %v10823_v32 = vadd.f32 %v10815_v48, %v10794_v39  ;;  %v10672_v37 = vmul.f32 %v17004_v33, %v10659_v7  ;;  %v10701_v44 = vmul.f32 %v17009_v24, %v10688_v49  ;;  %10653 = vst.msk [vmem:[#allocation2 + $0x81] sm:$0xff] %vm373_vm9, %v17132_v2 }
 0x3ee   : > { %v10930_v27 = vmax.f32 %v17019_v50, %v10922_v55  ;;  %v10909_v58 = vadd.f32 %v10901_v35, %v10880_v52  ;;  %v10758_v14 = vmul.f32 %v17047_v54, %v10659_v7  ;;  %10652 = vst.msk [vmem:[#allocation2 + $0x71] sm:$0xff] %vm373_vm9, %v17134_v26  ;;  %v10673_v29 = vmul.f32 %v17004_v33, %v10746_v62 }
 0x3ef   : > { %v10908_v61 = vadd.f32 %v10900_v41, %v10879_v10  ;;  %v10702_v8 = vmul.f32 %v17009_v24, %v10775_v28  ;;  %v10709_v0 = vadd.f32 %v10701_v44, %v10672_v37  ;;  %v10730_v59 = vmul.f32 %v17024_v19, %v10717_v43 }
 0x3f0   : > { %10938 = vst.msk [vmem:[%s17126_s19] sm:$0xff] %vm373_vm9, %v10930_v27  ;;  %v10924_v1 = vadd.f32 %v17112_v21, %v10909_v58  ;;  %v10844_v42 = vmul.f32 %v17076_v46, %v10659_v7  ;;  %v10766_v15 = vadd.f32 %v10758_v14, %v10737_v12  ;;  %v10787_v16 = vmul.f32 %v17062_v5, %v10688_v49 }
 0x3f1   : > { %v10923_v50 = vadd.f32 %v17112_v21, %v10908_v61  ;;  %v10738_v40 = vadd.f32 %v10730_v59, %v10709_v0  ;;  %v10759_v56 = vmul.f32 %v17047_v54, %v10746_v62  ;;  %v10873_v18 = vmul.f32 %v17081_v4, %v10688_v49 }
 0x3f2   : > { %v10932_v9 = vmax.f32 %v17036_v51, %v10924_v1  ;;  %v10852_v31 = vadd.f32 %v10844_v42, %v10823_v32  ;;  %v10795_v17 = vadd.f32 %v10787_v16, %v10766_v15  ;;  %v10816_v11 = vmul.f32 %v17067_v45, %v10717_v43 }
 0x3f3   : > { %v10931_v25 = vmax.f32 %v17011_v34, %v10923_v50  ;;  %v10788_v34 = vmul.f32 %v17062_v5, %v10775_v28  ;;  %v10767_v51 = vadd.f32 %v10759_v56, %v10738_v40  ;;  %v10902_v30 = vmul.f32 %v17090_v3, %v10717_v43  ;;  %v12926_v40 = vld [vmem:[#allocation2 + $0x90] sm:$0xff] }
 0x3f4   : > { %10940 = vst.msk [vmem:[%s17126_s19 + $0x10] sm:$0xff] %vm373_vm9, %v10932_v9  ;;  %v10881_v13 = vadd.f32 %v10873_v18, %v10852_v31  ;;  %v10710_v6 = vadd.f32 %v10702_v8, %v10673_v29  ;;  %v10824_v60 = vadd.f32 %v10816_v11, %v10795_v17  ;;  %v10845_v41 = vmul.f32 %v17076_v46, %v10746_v62  ;;  %v10748_v62 = vld [vmem:[#allocation2 + $0x80] sm:$0xff]  ;;  %v12927_v11 = vld [vmem:[#allocation2 + $0x91] sm:$0xff] }
 0x3f5   : > { %10939 = vst.msk [vmem:[%s17126_s19 + $0x8] sm:$0xff] %vm373_vm9, %v10931_v25  ;;  %v10796_v53 = vadd.f32 %v10788_v34, %v10767_v51  ;;  %v10817_v55 = vmul.f32 %v17067_v45, %v10804_v36  ;;  %v10661_v10 = vld [vmem:[#allocation2 + $0x70] sm:$0xff]  ;;  %v10731_v35 = vmul.f32 %v17024_v19, %v10804_v36  ;;  %v10874_v38 = vmul.f32 %v17081_v4, %v10775_v28  ;;  %v10777_v50 = vld [vmem:[#allocation2 + $0x81] sm:$0xff] }
 0x3f6   : > { %v10910_v39 = vadd.f32 %v10902_v30, %v10881_v13  ;;  %v10690_v63 = vld [vmem:[#allocation2 + $0x71] sm:$0xff]  ;;  %v10853_v22 = vadd.f32 %v10845_v41, %v10824_v60  ;;  %v10674_v27 = vmul.f32 %v17004_v33, %v10661_v10  ;;  %v10760_v7 = vmul.f32 %v17047_v54, %v10661_v10  ;;  %v10806_v29 = vld [vmem:[#allocation2 + $0x82] sm:$0xff] }
 0x3f7   : > { %v10719_v52 = vld [vmem:[#allocation2 + $0x72] sm:$0xff]  ;;  %v10703_v48 = vmul.f32 %v17009_v24, %v10690_v63  ;;  %v10825_v61 = vadd.f32 %v10817_v55, %v10796_v53  ;;  %v10739_v58 = vadd.f32 %v10731_v35, %v10710_v6  ;;  %v10903_v43 = vmul.f32 %v17090_v3, %v10804_v36 }
 0x3f8   : > { %v10925_v57 = vadd.f32 %v17112_v21, %v10910_v39  ;;  %v10882_v49 = vadd.f32 %v10874_v38, %v10853_v22  ;;  %v10732_v32 = vmul.f32 %v17024_v19, %v10719_v52  ;;  %v10789_v24 = vmul.f32 %v17062_v5, %v10690_v63 }
 0x3f9   : > { %v10711_v12 = vadd.f32 %v10703_v48, %v10674_v27  ;;  %v10768_v33 = vadd.f32 %v10760_v7, %v10739_v58  ;;  %v10846_v37 = vmul.f32 %v17076_v46, %v10661_v10  ;;  %v10761_v1 = vmul.f32 %v17047_v54, %v10748_v62 }
 0x3fa   : > { %v10933_v28 = vmax.f32 %v17028_v23, %v10925_v57  ;;  %v10911_v44 = vadd.f32 %v10903_v43, %v10882_v49  ;;  %v10818_v25 = vmul.f32 %v17067_v45, %v10719_v52  ;;  %v10875_v19 = vmul.f32 %v17081_v4, %v10690_v63 }
 0x3fb   : > { %v10740_v14 = vadd.f32 %v10732_v32, %v10711_v12  ;;  %v10797_v8 = vadd.f32 %v10789_v24, %v10768_v33  ;;  %v10854_v0 = vadd.f32 %v10846_v37, %v10825_v61  ;;  %v10790_v59 = vmul.f32 %v17062_v5, %v10777_v50 }
 0x3fc   : > { %10941 = vst.msk [vmem:[%s17126_s19 + $0x18] sm:$0xff] %vm373_vm9, %v10933_v28  ;;  %v10926_v23 = vadd.f32 %v17112_v21, %v10911_v44  ;;  %v10847_v15 = vmul.f32 %v17076_v46, %v10748_v62  ;;  %v10904_v16 = vmul.f32 %v17090_v3, %v10719_v52  ;;  %v10848_v56 = vmul.f32 %v12926_v40, %v17076_v46 }
 0x3fd   : > { %v10769_v42 = vadd.f32 %v10761_v1, %v10740_v14  ;;  %v10826_v9 = vadd.f32 %v10818_v25, %v10797_v8  ;;  %v10883_v54 = vadd.f32 %v10875_v19, %v10854_v0  ;;  %v10819_v18 = vmul.f32 %v17067_v45, %v10806_v29  ;;  %v12928_v45 = vld [vmem:[#allocation2 + $0x92] sm:$0xff] }
 0x3fe   : > { %v10934_v31 = vmax.f32 %v17101_v20, %v10926_v23  ;;  %v10876_v36 = vmul.f32 %v17081_v4, %v10777_v50  ;;  %v10877_v51 = vmul.f32 %v12927_v11, %v17081_v4  ;;  %v10905_v46 = vmul.f32 %v17090_v3, %v10806_v29 }
 0x3ff   : > { %v10798_v34 = vadd.f32 %v10790_v59, %v10769_v42  ;;  %v10855_v17 = vadd.f32 %v10847_v15, %v10826_v9  ;;  %v10912_v5 = vadd.f32 %v10904_v16, %v10883_v54  ;;  %v10906_v6 = vmul.f32 %v12928_v45, %v17090_v3 }
 0x400   : > { %10942 = vst.msk [vmem:[%s17126_s19 + $0x20] sm:$0xff] %vm373_vm9, %v10934_v31 }
 0x401   : > { %v10827_v13 = vadd.f32 %v10819_v18, %v10798_v34  ;;  %v10884_v30 = vadd.f32 %v10876_v36, %v10855_v17  ;;  %v10927_v20 = vadd.f32 %v17112_v21, %v10912_v5 }
 0x403   : > { %v10856_v60 = vadd.f32 %v10848_v56, %v10827_v13  ;;  %v10913_v41 = vadd.f32 %v10905_v46, %v10884_v30  ;;  %v10935_v53 = vmax.f32 %v17041_v47, %v10927_v20 }
 0x405   : > { %v10885_v55 = vadd.f32 %v10877_v51, %v10856_v60  ;;  %v10928_v4 = vadd.f32 %v17112_v21, %v10913_v41  ;;  %10943 = vst.msk [vmem:[%s17126_s19 + $0x28] sm:$0xff] %vm373_vm9, %v10935_v53 }
 0x407   : > { %v10914_v39 = vadd.f32 %v10906_v6, %v10885_v55  ;;  %v10936_v10 = vmax.f32 %v17134_v26, %v10928_v4 }
 0x409   : > { %v10929_v63 = vadd.f32 %v17112_v21, %v10914_v39  ;;  %10944 = vst.msk [vmem:[%s17126_s19 + $0x30] sm:$0xff] %vm373_vm9, %v10936_v10 }
 0x40b   : > { %v10937_v52 = vmax.f32 %v17132_v2, %v10929_v63 }
 0x40d   : > { %10945 = vst.msk [vmem:[%s17126_s19 + $0x38] sm:$0xff] %vm373_vm9, %v10937_v52 }
 0x40e PF: > { %s21_s13 = sadd.s32 1, %s12935_s13  }
 0x40f   : > { %p18_p4 = scmp.ge.s32.totalorder %s21_s13, 4  }
 0x411   :  { %20 = sbr.rel (!%p18_p4) target bundleno = 1 (0x1), region = 105 }

</bundles_post_ra>
